<compile_context>
chip_gen: v7x
topology: tpu7x:2x2x1
jax: 0.10.0
libtpu: 0.0.40
codegen_flags: <defaults>
</compile_context>

<pallas_src>
import functools

import jax
import jax.numpy as jnp
import numpy as np
from jax.experimental import pallas as pl
from jax.experimental.pallas import tpu as pltpu

LRELU_SLOPE = 0.1


def _round_up(x, m):
    return ((x + m - 1) // m) * m


def _resblock1_kernel(x_ref, w1_ref, w2_ref, b1_ref, b2_ref, o_ref,
                      pad_s, win_s, res_s, *, W, K, dilations,
                      pad_left, pad_right):
    """Fused ResBlock1 on one (tm, W, Cp) row block.

    x_ref  : (tm, W, Cp)                 input rows (rows = N*H)
    w1_ref : (n_pairs, K*Cp, Cp) bf16    dilated-conv weights, taps stacked on
                                         the contraction axis (row block k=tap)
    w2_ref : (n_pairs, K*Cp, Cp) bf16    dilation-1 conv weights
    b1_ref : (n_pairs, Cp) f32           biases of convs1
    b2_ref : (n_pairs, Cp) f32           biases of convs2
    o_ref  : (tm, W, Cp)                 output rows
    pad_s  : VMEM (tm, Wp, Cp) bf16      zero-padded activation image
    win_s  : VMEM (tm, W, K*Cp) bf16     concatenated-tap window buffer
    res_s  : VMEM (tm, W, Cp) f32        f32 residual carrier
    """
    TM = o_ref.shape[0]
    Cp = o_ref.shape[2]
    KC = K * Cp

    # Zero the halo columns every block (cheap; under megacore partitioning a
    # core may never see block 0, so do NOT gate this on program_id).
    # leaky_relu(0) == 0, so zero-padding the *activated* image is exactly the
    # conv's 'same' zero padding.
    pad_s[:, :pad_left, :] = jnp.zeros((TM, pad_left, Cp), jnp.bfloat16)
    pad_s[:, pad_left + W:, :] = jnp.zeros((TM, pad_right, Cp), jnp.bfloat16)

    # Residual carrier stays f32 in VMEM for the whole block; o_ref is written
    # exactly once at the very end.
    res_s[...] = x_ref[...].astype(jnp.float32)

    def act_to_pad(v_f32):
        # leaky_relu computed in f32, stored bf16 (MXU operand dtype).
        pad_s[:, pad_left:pad_left + W, :] = jnp.where(
            v_f32 >= 0, v_f32, LRELU_SLOPE * v_f32).astype(jnp.bfloat16)

    def conv_same(w_pair, dilation):
        """'same' 1xK dilated conv of the activation image held in pad_s.

        The K taps are concatenated along the lane axis of win_s so the whole
        conv is ONE bf16 MXU matmul with contraction depth K*Cp (no per-tap
        accumulator RMW).  Returns (TM*W, Cp) f32, bias NOT included.
        """
        p = dilation * (K - 1) // 2
        for kw in range(K):                              # K is small & static
            off = pad_left - p + kw * dilation
            win_s[:, :, kw * Cp:(kw + 1) * Cp] = pad_s[:, off:off + W, :]
        return jnp.dot(win_s[...].reshape(TM * W, KC), w_pair,
                       preferred_element_type=jnp.float32)

    for i, d in enumerate(dilations):
        # xt = c1(leaky_relu(x))        (dilation d); bias folded post-matmul.
        act_to_pad(res_s[...])
        xt = conv_same(w1_ref[i], d) + b1_ref[i:i + 1, :]
        # xt = c2(leaky_relu(xt))       (dilation 1)
        act_to_pad(xt.reshape(TM, W, Cp))
        xt = conv_same(w2_ref[i], 1) + b2_ref[i:i + 1, :]
        # x = xt + x                    (residual stays f32)
        res_s[...] = res_s[...] + xt.reshape(TM, W, Cp)

    o_ref[...] = res_s[...].astype(o_ref.dtype)


def _vmem_capacity_bytes():
    try:
        return max(int(pltpu.get_tpu_info().vmem_capacity_bytes), 32 << 20)
    except Exception:
        return 64 << 20            # conservative: v7x has the smallest VMEM


def _choose_tm(M, W, Wp, Cp, K, n_pairs, dtype_size, budget_bytes,
               min_blocks, tm_cap=1024):
    """Largest row-tile (multiple of 8) fitting the VMEM budget."""
    # single-buffered resident weights + biases
    fixed = 2 * n_pairs * K * Cp * Cp * 2 + 2 * n_pairs * Cp * 4
    per_row = (2 * 2 * W * Cp * dtype_size   # double-buffered in + out blocks
               + Wp * Cp * 2                 # pad_s (bf16)
               + W * K * Cp * 2              # win_s (bf16)
               + W * Cp * 4                  # res_s (f32)
               + 2 * W * Cp * 4)             # f32 matmul-result temporaries
    avail = max(budget_bytes - fixed, 8 * per_row)
    tm = max(8, avail // per_row)
    # On v7x (2 TensorCores) keep >= 2 grid blocks so both cores get work.
    cap_by_rows = _round_up(max(pl.cdiv(M, min_blocks), 8), 8)
    tm = min(tm, tm_cap, cap_by_rows)
    return int(max(8, (tm // 8) * 8))


def resblock1_forward(x_nchw, weights1, biases1, weights2, biases2, *,
                      kernel_size=3, dilations=(1, 3, 5)):
    """ResBlock1.forward.  x_nchw: (N, C, H, W); weights*[i]: (C, C, 1, K)."""
    N, C, H, W = x_nchw.shape
    K = kernel_size
    assert K % 2 == 1, "'same' padding formula requires odd kernel_size"
    n_pairs = len(dilations)
    assert len(weights1) == len(weights2) == n_pairs
    assert len(biases1) == len(biases2) == n_pairs
    dtype = x_nchw.dtype
    dtype_size = jnp.dtype(dtype).itemsize

    # TODO(synk): small-C fallback (C <= 32) keeping channels on sublanes and
    # doing the conv on the VPU; padding C=4 -> 128 wastes MXU work but is
    # correct and keeps the lane axis dense.
    Cp = max(128, _round_up(C, 128))
    pad_max = max(dilations) * (K - 1) // 2
    pad_left = _round_up(max(pad_max, 1), 8)    # sublane-aligned centre writes
    pad_right = _round_up(max(pad_max, 1), 8)   # tile-aligned right-halo store
    Wp = pad_left + W + pad_right

    M = N * H
    capacity = _vmem_capacity_bytes()
    budget = (capacity * 3) // 4        # ~96 MiB on v5e/v6e, ~48 MiB on v7x
    min_blocks = 2 if capacity <= (64 << 20) else 1   # v7x: feed both TCs
    tm = _choose_tm(M, W, Wp, Cp, K, n_pairs, dtype_size, budget, min_blocks)
    Mp = _round_up(M, tm)

    # NCHW -> (M, W, C) with C on the lane axis; pad rows to Mp and channels
    # to Cp (extra channels have zero weights/bias, so they stay exactly 0).
    x = jnp.transpose(x_nchw, (0, 2, 3, 1)).reshape(M, W, C)
    x = jnp.pad(x, ((0, Mp - M), (0, 0), (0, Cp - C)))

    def pack_w(ws):
        # (Cout, Cin, 1, K) -> (n_pairs, K*Cp, Cp) bf16, row block k = tap k,
        # so each conv is ONE matmul with contraction depth K*Cp.
        stk = []
        for w in ws:
            wk = jnp.transpose(w[:, :, 0, :], (2, 1, 0))       # (K, Cin, Cout)
            wk = jnp.pad(wk, ((0, 0), (0, Cp - C), (0, Cp - C)))
            stk.append(wk.reshape(K * Cp, Cp))
        return jnp.stack(stk, axis=0).astype(jnp.bfloat16)

    def pack_b(bs):
        return jnp.stack([jnp.pad(b, (0, Cp - C)) for b in bs]
                         ).astype(jnp.float32)

    w1 = pack_w(weights1)
    w2 = pack_w(weights2)
    b1 = pack_b(biases1)
    b2 = pack_b(biases2)

    kernel = functools.partial(
        _resblock1_kernel, W=W, K=K, dilations=tuple(dilations),
        pad_left=pad_left, pad_right=pad_right)

    # VMEM estimate: double-buffered activation blocks, single-buffered
    # weights, scratch + f32 matmul temporaries.  Limit stays below capacity.
    vmem_est = (2 * 2 * tm * W * Cp * dtype_size
                + 2 * n_pairs * K * Cp * Cp * 2 + 2 * n_pairs * Cp * 4
                + tm * Wp * Cp * 2 + tm * W * K * Cp * 2
                + tm * W * Cp * 4 + 2 * tm * W * Cp * 4)
    vmem_limit = int(min(capacity - (8 << 20),
                         max(vmem_est * 5 // 4 + (2 << 20), 16 << 20)))

    # Grid-invariant weights/biases: whole arrays resident in VMEM
    # (single-buffered, no per-step DMA) instead of double-buffered blocks.
    def const_vmem():
        return pl.BlockSpec(memory_space=pltpu.MemorySpace.VMEM)

    # TODO(synk): production HiFiGAN (C=512, W of thousands of samples) needs
    # a W grid axis with halo (overlapping index_map or manual DMA of
    # (tm, Wt + 2*pad, C) slabs) instead of keeping the whole W extent in one
    # block.
    out = pl.pallas_call(
        kernel,
        out_shape=jax.ShapeDtypeStruct((Mp, W, Cp), dtype),
        grid_spec=pltpu.PrefetchScalarGridSpec(
            num_scalar_prefetch=0,
            grid=(Mp // tm,),
            in_specs=[
                pl.BlockSpec((tm, W, Cp), lambda i: (i, 0, 0)),
                const_vmem(),      # w1  (n_pairs, K*Cp, Cp) bf16
                const_vmem(),      # w2  (n_pairs, K*Cp, Cp) bf16
                const_vmem(),      # b1  (n_pairs, Cp) f32
                const_vmem(),      # b2  (n_pairs, Cp) f32
            ],
            out_specs=pl.BlockSpec((tm, W, Cp), lambda i: (i, 0, 0)),
            scratch_shapes=[
                pltpu.VMEM((tm, Wp, Cp), jnp.bfloat16),      # padded activation
                pltpu.VMEM((tm, W, K * Cp), jnp.bfloat16),   # tap windows
                pltpu.VMEM((tm, W, Cp), jnp.float32),        # f32 residual
            ]),
        compiler_params=pltpu.CompilerParams(
            dimension_semantics=("parallel",),
            vmem_limit_bytes=vmem_limit),
    )(x, w1, w2, b1, b2)

    out = out[:M, :, :C].reshape(N, H, W, C)
    return jnp.transpose(out, (0, 3, 1, 2))


# ---------------- pure-JAX reference (mirrors the PyTorch forward) ----------
def _reference_forward(x, weights1, biases1, weights2, biases2,
                       kernel_size=3, dilations=(1, 3, 5)):
    def conv(xv, w, b, d):
        pad = d * (kernel_size - 1) // 2
        y = jax.lax.conv_general_dilated(
            xv, w, window_strides=(1, 1),
            padding=((0, 0), (pad, pad)),
            rhs_dilation=(1, d),
            dimension_numbers=("NCHW", "OIHW", "NCHW"),
            precision=jax.lax.Precision.HIGHEST)
        return y + b.reshape(1, -1, 1, 1)

    for w1, b1, w2, b2, d in zip(weights1, biases1, weights2, biases2,
                                 dilations):
        xt = jnp.where(x >= 0, x, LRELU_SLOPE * x)
        xt = conv(xt, w1, b1, d)
        xt = jnp.where(xt >= 0, xt, LRELU_SLOPE * xt)
        xt = conv(xt, w2, b2, 1)
        x = xt + x
    return x


if __name__ == "__main__":
    # Small shapes consistent with the module (Conv2d with a (1,K) kernel).
    N, C, H, W = 2, 4, 16, 16
    K = 3
    dilations = (1, 3, 5)

    key = jax.random.PRNGKey(0)
    keys = jax.random.split(key, 13)

    x = jax.random.normal(keys[0], (N, C, H, W), dtype=jnp.float32)
    # init_weights in HiFiGAN: normal(mean=0, std=0.01); small biases.
    weights1 = [0.01 * jax.random.normal(keys[1 + i], (C, C, 1, K),
                                         dtype=jnp.float32) for i in range(3)]
    weights2 = [0.01 * jax.random.normal(keys[4 + i], (C, C, 1, K),
                                         dtype=jnp.float32) for i in range(3)]
    biases1 = [0.01 * jax.random.normal(keys[7 + i], (C,), dtype=jnp.float32)
               for i in range(3)]
    biases2 = [0.01 * jax.random.normal(keys[10 + i], (C,), dtype=jnp.float32)
               for i in range(3)]

    out = resblock1_forward(x, weights1, biases1, weights2, biases2,
                            kernel_size=K, dilations=dilations)
    out = jax.block_until_ready(out)

    ref = _reference_forward(x, weights1, biases1, weights2, biases2,
                             kernel_size=K, dilations=dilations)
    # bf16 MXU operands (per perf review) -> bf16-level tolerance vs f32 ref;
    # residual accumulation is f32, so the error stays well inside this.
    np.testing.assert_allclose(np.asarray(out), np.asarray(ref),
                               rtol=2e-3, atol=2e-3)
    print("KERNEL_OK")
</pallas_src>

<mosaic_0001>
module attributes {stable_mosaic.version = 11 : i64} {
  func.func @_resblock1_kernel(%arg0: i32, %arg1: memref<16x16x128xf32, #tpu.memory_space<vmem>>, %arg2: memref<3x384x128xbf16, #tpu.memory_space<vmem>>, %arg3: memref<3x384x128xbf16, #tpu.memory_space<vmem>>, %arg4: memref<3x128xf32, #tpu.memory_space<vmem>>, %arg5: memref<3x128xf32, #tpu.memory_space<vmem>>, %arg6: memref<16x16x128xf32, #tpu.memory_space<vmem>>, %arg7: memref<16x32x128xbf16, #tpu.memory_space<vmem>>, %arg8: memref<16x16x384xbf16, #tpu.memory_space<vmem>>, %arg9: memref<16x16x128xf32, #tpu.memory_space<vmem>>) attributes {dimension_semantics = [#tpu.dimension_semantics<parallel>], iteration_bounds = array<i64: 2>, scalar_prefetch = 0 : i64, scratch_operands = 3 : i64, tpu.core_type = #tpu.core_type<tc>, window_params = [{transform_indices = @transform_0, window_bounds = array<i64: 16, 16, 128>}, {pipeline_mode = #tpu.pipeline_mode<synchronous>, transform_indices = @transform_1, window_bounds = array<i64: 3, 384, 128>}, {pipeline_mode = #tpu.pipeline_mode<synchronous>, transform_indices = @transform_2, window_bounds = array<i64: 3, 384, 128>}, {pipeline_mode = #tpu.pipeline_mode<synchronous>, transform_indices = @transform_3, window_bounds = array<i64: 3, 128>}, {pipeline_mode = #tpu.pipeline_mode<synchronous>, transform_indices = @transform_4, window_bounds = array<i64: 3, 128>}, {transform_indices = @transform_5, window_bounds = array<i64: 16, 16, 128>}]} {
    %cst = arith.constant 0.000000e+00 : bf16
    %0 = vector.broadcast %cst : bf16 to vector<16x8x128xbf16>
    %c0 = arith.constant 0 : index
    %c0_0 = arith.constant 0 : index
    %c0_1 = arith.constant 0 : index
    %1 = vector.load %arg7[%c0, %c0_0, %c0_1] : memref<16x32x128xbf16, #tpu.memory_space<vmem>>, vector<16x8x128xbf16>
    tpu.vector_store %arg7[%c0, %c0_0, %c0_1], %0 {strides = array<i32>} : memref<16x32x128xbf16, #tpu.memory_space<vmem>>, vector<16x8x128xbf16>,
    %cst_2 = arith.constant 0.000000e+00 : bf16
    %2 = vector.broadcast %cst_2 : bf16 to vector<16x8x128xbf16>
    %c0_3 = arith.constant 0 : index
    %c24 = arith.constant 24 : index
    %c0_4 = arith.constant 0 : index
    %3 = vector.load %arg7[%c0_3, %c24, %c0_4] : memref<16x32x128xbf16, #tpu.memory_space<vmem>>, vector<16x8x128xbf16>
    tpu.vector_store %arg7[%c0_3, %c24, %c0_4], %2 {strides = array<i32>} : memref<16x32x128xbf16, #tpu.memory_space<vmem>>, vector<16x8x128xbf16>,
    %c0_5 = arith.constant 0 : index
    %c0_6 = arith.constant 0 : index
    %c0_7 = arith.constant 0 : index
    %4 = vector.load %arg1[%c0_5, %c0_6, %c0_7] : memref<16x16x128xf32, #tpu.memory_space<vmem>>, vector<16x16x128xf32>
    %c0_8 = arith.constant 0 : index
    %c0_9 = arith.constant 0 : index
    %c0_10 = arith.constant 0 : index
    %5 = vector.load %arg9[%c0_8, %c0_9, %c0_10] : memref<16x16x128xf32, #tpu.memory_space<vmem>>, vector<16x16x128xf32>
    tpu.vector_store %arg9[%c0_8, %c0_9, %c0_10], %4 {strides = array<i32>} : memref<16x16x128xf32, #tpu.memory_space<vmem>>, vector<16x16x128xf32>,
    %c0_11 = arith.constant 0 : index
    %c0_12 = arith.constant 0 : index
    %c0_13 = arith.constant 0 : index
    %6 = vector.load %arg9[%c0_11, %c0_12, %c0_13] : memref<16x16x128xf32, #tpu.memory_space<vmem>>, vector<16x16x128xf32>
    %cst_14 = arith.constant 0.000000e+00 : f32
    %7 = vector.broadcast %cst_14 : f32 to vector<16x16x128xf32>
    %8 = arith.cmpf oge, %6, %7 : vector<16x16x128xf32>
    %cst_15 = arith.constant 1.000000e-01 : f32
    %9 = vector.broadcast %cst_15 : f32 to vector<16x16x128xf32>
    %10 = arith.mulf %9, %6 : vector<16x16x128xf32>
    %11 = arith.select %8, %6, %10 : vector<16x16x128xi1>, vector<16x16x128xf32>
    %12 = arith.truncf %11 : vector<16x16x128xf32> to vector<16x16x128xbf16>
    %c0_16 = arith.constant 0 : index
    %c8 = arith.constant 8 : index
    %c0_17 = arith.constant 0 : index
    %13 = vector.load %arg7[%c0_16, %c8, %c0_17] : memref<16x32x128xbf16, #tpu.memory_space<vmem>>, vector<16x16x128xbf16>
    tpu.vector_store %arg7[%c0_16, %c8, %c0_17], %12 {strides = array<i32>} : memref<16x32x128xbf16, #tpu.memory_space<vmem>>, vector<16x16x128xbf16>,
    %c0_18 = arith.constant 0 : index
    %c0_19 = arith.constant 0 : index
    %c0_20 = arith.constant 0 : index
    %14 = vector.load %arg2[%c0_18, %c0_19, %c0_20] : memref<3x384x128xbf16, #tpu.memory_space<vmem>>, vector<1x384x128xbf16>
    %15 = vector.shape_cast %14 : vector<1x384x128xbf16> to vector<384x128xbf16>
    %c0_21 = arith.constant 0 : index
    %c7 = arith.constant 7 : index
    %c0_22 = arith.constant 0 : index
    %16 = vector.load %arg7[%c0_21, %c7, %c0_22] : memref<16x32x128xbf16, #tpu.memory_space<vmem>>, vector<16x16x128xbf16>
    %c0_23 = arith.constant 0 : index
    %c0_24 = arith.constant 0 : index
    %c0_25 = arith.constant 0 : index
    %17 = vector.load %arg8[%c0_23, %c0_24, %c0_25] : memref<16x16x384xbf16, #tpu.memory_space<vmem>>, vector<16x16x128xbf16>
    tpu.vector_store %arg8[%c0_23, %c0_24, %c0_25], %16 {strides = array<i32>} : memref<16x16x384xbf16, #tpu.memory_space<vmem>>, vector<16x16x128xbf16>,
    %c0_26 = arith.constant 0 : index
    %c8_27 = arith.constant 8 : index
    %c0_28 = arith.constant 0 : index
    %18 = vector.load %arg7[%c0_26, %c8_27, %c0_28] : memref<16x32x128xbf16, #tpu.memory_space<vmem>>, vector<16x16x128xbf16>
    %c0_29 = arith.constant 0 : index
    %c0_30 = arith.constant 0 : index
    %c128 = arith.constant 128 : index
    %19 = vector.load %arg8[%c0_29, %c0_30, %c128] : memref<16x16x384xbf16, #tpu.memory_space<vmem>>, vector<16x16x128xbf16>
    tpu.vector_store %arg8[%c0_29, %c0_30, %c128], %18 {strides = array<i32>} : memref<16x16x384xbf16, #tpu.memory_space<vmem>>, vector<16x16x128xbf16>,
    %c0_31 = arith.constant 0 : index
    %c9 = arith.constant 9 : index
    %c0_32 = arith.constant 0 : index
    %20 = vector.load %arg7[%c0_31, %c9, %c0_32] : memref<16x32x128xbf16, #tpu.memory_space<vmem>>, vector<16x16x128xbf16>
    %c0_33 = arith.constant 0 : index
    %c0_34 = arith.constant 0 : index
    %c256 = arith.constant 256 : index
    %21 = vector.load %arg8[%c0_33, %c0_34, %c256] : memref<16x16x384xbf16, #tpu.memory_space<vmem>>, vector<16x16x128xbf16>
    tpu.vector_store %arg8[%c0_33, %c0_34, %c256], %20 {strides = array<i32>} : memref<16x16x384xbf16, #tpu.memory_space<vmem>>, vector<16x16x128xbf16>,
    %c0_35 = arith.constant 0 : index
    %c0_36 = arith.constant 0 : index
    %c0_37 = arith.constant 0 : index
    %22 = vector.load %arg8[%c0_35, %c0_36, %c0_37] : memref<16x16x384xbf16, #tpu.memory_space<vmem>>, vector<16x16x384xbf16>
    %23 = vector.shape_cast %22 : vector<16x16x384xbf16> to vector<256x384xbf16>
    %cst_38 = arith.constant dense<0.000000e+00> : vector<256x128xf32>
    %24 = tpu.matmul %23, %15, %cst_38 {dimension_numbers = #tpu.dot_dimension_numbers<[1], [0], [0], [1], [0, 0, 1, 1], [], []>} : vector<256x384xbf16>, vector<384x128xbf16>, vector<256x128xf32> -> vector<256x128xf32>
    %c0_39 = arith.constant 0 : index
    %c0_40 = arith.constant 0 : index
    %25 = vector.load %arg4[%c0_39, %c0_40] : memref<3x128xf32, #tpu.memory_space<vmem>>, vector<1x128xf32>
    %26 = vector.broadcast %25 : vector<1x128xf32> to vector<256x128xf32>
    %27 = arith.addf %24, %26 : vector<256x128xf32>
    %28 = vector.shape_cast %27 : vector<256x128xf32> to vector<16x16x128xf32>
    %cst_41 = arith.constant 0.000000e+00 : f32
    %29 = vector.broadcast %cst_41 : f32 to vector<16x16x128xf32>
    %30 = arith.cmpf oge, %28, %29 : vector<16x16x128xf32>
    %cst_42 = arith.constant 1.000000e-01 : f32
    %31 = vector.broadcast %cst_42 : f32 to vector<16x16x128xf32>
    %32 = arith.mulf %31, %28 : vector<16x16x128xf32>
    %33 = arith.select %30, %28, %32 : vector<16x16x128xi1>, vector<16x16x128xf32>
    %34 = arith.truncf %33 : vector<16x16x128xf32> to vector<16x16x128xbf16>
    %c0_43 = arith.constant 0 : index
    %c8_44 = arith.constant 8 : index
    %c0_45 = arith.constant 0 : index
    %35 = vector.load %arg7[%c0_43, %c8_44, %c0_45] : memref<16x32x128xbf16, #tpu.memory_space<vmem>>, vector<16x16x128xbf16>
    tpu.vector_store %arg7[%c0_43, %c8_44, %c0_45], %34 {strides = array<i32>} : memref<16x32x128xbf16, #tpu.memory_space<vmem>>, vector<16x16x128xbf16>,
    %c0_46 = arith.constant 0 : index
    %c0_47 = arith.constant 0 : index
    %c0_48 = arith.constant 0 : index
    %36 = vector.load %arg3[%c0_46, %c0_47, %c0_48] : memref<3x384x128xbf16, #tpu.memory_space<vmem>>, vector<1x384x128xbf16>
    %37 = vector.shape_cast %36 : vector<1x384x128xbf16> to vector<384x128xbf16>
    %c0_49 = arith.constant 0 : index
    %c7_50 = arith.constant 7 : index
    %c0_51 = arith.constant 0 : index
    %38 = vector.load %arg7[%c0_49, %c7_50, %c0_51] : memref<16x32x128xbf16, #tpu.memory_space<vmem>>, vector<16x16x128xbf16>
    %c0_52 = arith.constant 0 : index
    %c0_53 = arith.constant 0 : index
    %c0_54 = arith.constant 0 : index
    %39 = vector.load %arg8[%c0_52, %c0_53, %c0_54] : memref<16x16x384xbf16, #tpu.memory_space<vmem>>, vector<16x16x128xbf16>
    tpu.vector_store %arg8[%c0_52, %c0_53, %c0_54], %38 {strides = array<i32>} : memref<16x16x384xbf16, #tpu.memory_space<vmem>>, vector<16x16x128xbf16>,
    %c0_55 = arith.constant 0 : index
    %c8_56 = arith.constant 8 : index
    %c0_57 = arith.constant 0 : index
    %40 = vector.load %arg7[%c0_55, %c8_56, %c0_57] : memref<16x32x128xbf16, #tpu.memory_space<vmem>>, vector<16x16x128xbf16>
    %c0_58 = arith.constant 0 : index
    %c0_59 = arith.constant 0 : index
    %c128_60 = arith.constant 128 : index
    %41 = vector.load %arg8[%c0_58, %c0_59, %c128_60] : memref<16x16x384xbf16, #tpu.memory_space<vmem>>, vector<16x16x128xbf16>
    tpu.vector_store %arg8[%c0_58, %c0_59, %c128_60], %40 {strides = array<i32>} : memref<16x16x384xbf16, #tpu.memory_space<vmem>>, vector<16x16x128xbf16>,
    %c0_61 = arith.constant 0 : index
    %c9_62 = arith.constant 9 : index
    %c0_63 = arith.constant 0 : index
    %42 = vector.load %arg7[%c0_61, %c9_62, %c0_63] : memref<16x32x128xbf16, #tpu.memory_space<vmem>>, vector<16x16x128xbf16>
    %c0_64 = arith.constant 0 : index
    %c0_65 = arith.constant 0 : index
    %c256_66 = arith.constant 256 : index
    %43 = vector.load %arg8[%c0_64, %c0_65, %c256_66] : memref<16x16x384xbf16, #tpu.memory_space<vmem>>, vector<16x16x128xbf16>
    tpu.vector_store %arg8[%c0_64, %c0_65, %c256_66], %42 {strides = array<i32>} : memref<16x16x384xbf16, #tpu.memory_space<vmem>>, vector<16x16x128xbf16>,
    %c0_67 = arith.constant 0 : index
    %c0_68 = arith.constant 0 : index
    %c0_69 = arith.constant 0 : index
    %44 = vector.load %arg8[%c0_67, %c0_68, %c0_69] : memref<16x16x384xbf16, #tpu.memory_space<vmem>>, vector<16x16x384xbf16>
    %45 = vector.shape_cast %44 : vector<16x16x384xbf16> to vector<256x384xbf16>
    %cst_70 = arith.constant dense<0.000000e+00> : vector<256x128xf32>
    %46 = tpu.matmul %45, %37, %cst_70 {dimension_numbers = #tpu.dot_dimension_numbers<[1], [0], [0], [1], [0, 0, 1, 1], [], []>} : vector<256x384xbf16>, vector<384x128xbf16>, vector<256x128xf32> -> vector<256x128xf32>
    %c0_71 = arith.constant 0 : index
    %c0_72 = arith.constant 0 : index
    %47 = vector.load %arg5[%c0_71, %c0_72] : memref<3x128xf32, #tpu.memory_space<vmem>>, vector<1x128xf32>
    %48 = vector.broadcast %47 : vector<1x128xf32> to vector<256x128xf32>
    %49 = arith.addf %46, %48 : vector<256x128xf32>
    %c0_73 = arith.constant 0 : index
    %c0_74 = arith.constant 0 : index
    %c0_75 = arith.constant 0 : index
    %50 = vector.load %arg9[%c0_73, %c0_74, %c0_75] : memref<16x16x128xf32, #tpu.memory_space<vmem>>, vector<16x16x128xf32>
    %51 = vector.shape_cast %49 : vector<256x128xf32> to vector<16x16x128xf32>
    %52 = arith.addf %50, %51 : vector<16x16x128xf32>
    %c0_76 = arith.constant 0 : index
    %c0_77 = arith.constant 0 : index
    %c0_78 = arith.constant 0 : index
    %53 = vector.load %arg9[%c0_76, %c0_77, %c0_78] : memref<16x16x128xf32, #tpu.memory_space<vmem>>, vector<16x16x128xf32>
    tpu.vector_store %arg9[%c0_76, %c0_77, %c0_78], %52 {strides = array<i32>} : memref<16x16x128xf32, #tpu.memory_space<vmem>>, vector<16x16x128xf32>,
    %c0_79 = arith.constant 0 : index
    %c0_80 = arith.constant 0 : index
    %c0_81 = arith.constant 0 : index
    %54 = vector.load %arg9[%c0_79, %c0_80, %c0_81] : memref<16x16x128xf32, #tpu.memory_space<vmem>>, vector<16x16x128xf32>
    %cst_82 = arith.constant 0.000000e+00 : f32
    %55 = vector.broadcast %cst_82 : f32 to vector<16x16x128xf32>
    %56 = arith.cmpf oge, %54, %55 : vector<16x16x128xf32>
    %cst_83 = arith.constant 1.000000e-01 : f32
    %57 = vector.broadcast %cst_83 : f32 to vector<16x16x128xf32>
    %58 = arith.mulf %57, %54 : vector<16x16x128xf32>
    %59 = arith.select %56, %54, %58 : vector<16x16x128xi1>, vector<16x16x128xf32>
    %60 = arith.truncf %59 : vector<16x16x128xf32> to vector<16x16x128xbf16>
    %c0_84 = arith.constant 0 : index
    %c8_85 = arith.constant 8 : index
    %c0_86 = arith.constant 0 : index
    %61 = vector.load %arg7[%c0_84, %c8_85, %c0_86] : memref<16x32x128xbf16, #tpu.memory_space<vmem>>, vector<16x16x128xbf16>
    tpu.vector_store %arg7[%c0_84, %c8_85, %c0_86], %60 {strides = array<i32>} : memref<16x32x128xbf16, #tpu.memory_space<vmem>>, vector<16x16x128xbf16>,
    %c1 = arith.constant 1 : index
    %c0_87 = arith.constant 0 : index
    %c0_88 = arith.constant 0 : index
    %62 = vector.load %arg2[%c1, %c0_87, %c0_88] : memref<3x384x128xbf16, #tpu.memory_space<vmem>>, vector<1x384x128xbf16>
    %63 = vector.shape_cast %62 : vector<1x384x128xbf16> to vector<384x128xbf16>
    %c0_89 = arith.constant 0 : index
    %c5 = arith.constant 5 : index
    %c0_90 = arith.constant 0 : index
    %64 = vector.load %arg7[%c0_89, %c5, %c0_90] : memref<16x32x128xbf16, #tpu.memory_space<vmem>>, vector<16x16x128xbf16>
    %c0_91 = arith.constant 0 : index
    %c0_92 = arith.constant 0 : index
    %c0_93 = arith.constant 0 : index
    %65 = vector.load %arg8[%c0_91, %c0_92, %c0_93] : memref<16x16x384xbf16, #tpu.memory_space<vmem>>, vector<16x16x128xbf16>
    tpu.vector_store %arg8[%c0_91, %c0_92, %c0_93], %64 {strides = array<i32>} : memref<16x16x384xbf16, #tpu.memory_space<vmem>>, vector<16x16x128xbf16>,
    %c0_94 = arith.constant 0 : index
    %c8_95 = arith.constant 8 : index
    %c0_96 = arith.constant 0 : index
    %66 = vector.load %arg7[%c0_94, %c8_95, %c0_96] : memref<16x32x128xbf16, #tpu.memory_space<vmem>>, vector<16x16x128xbf16>
    %c0_97 = arith.constant 0 : index
    %c0_98 = arith.constant 0 : index
    %c128_99 = arith.constant 128 : index
    %67 = vector.load %arg8[%c0_97, %c0_98, %c128_99] : memref<16x16x384xbf16, #tpu.memory_space<vmem>>, vector<16x16x128xbf16>
    tpu.vector_store %arg8[%c0_97, %c0_98, %c128_99], %66 {strides = array<i32>} : memref<16x16x384xbf16, #tpu.memory_space<vmem>>, vector<16x16x128xbf16>,
    %c0_100 = arith.constant 0 : index
    %c11 = arith.constant 11 : index
    %c0_101 = arith.constant 0 : index
    %68 = vector.load %arg7[%c0_100, %c11, %c0_101] : memref<16x32x128xbf16, #tpu.memory_space<vmem>>, vector<16x16x128xbf16>
    %c0_102 = arith.constant 0 : index
    %c0_103 = arith.constant 0 : index
    %c256_104 = arith.constant 256 : index
    %69 = vector.load %arg8[%c0_102, %c0_103, %c256_104] : memref<16x16x384xbf16, #tpu.memory_space<vmem>>, vector<16x16x128xbf16>
    tpu.vector_store %arg8[%c0_102, %c0_103, %c256_104], %68 {strides = array<i32>} : memref<16x16x384xbf16, #tpu.memory_space<vmem>>, vector<16x16x128xbf16>,
    %c0_105 = arith.constant 0 : index
    %c0_106 = arith.constant 0 : index
    %c0_107 = arith.constant 0 : index
    %70 = vector.load %arg8[%c0_105, %c0_106, %c0_107] : memref<16x16x384xbf16, #tpu.memory_space<vmem>>, vector<16x16x384xbf16>
    %71 = vector.shape_cast %70 : vector<16x16x384xbf16> to vector<256x384xbf16>
    %cst_108 = arith.constant dense<0.000000e+00> : vector<256x128xf32>
    %72 = tpu.matmul %71, %63, %cst_108 {dimension_numbers = #tpu.dot_dimension_numbers<[1], [0], [0], [1], [0, 0, 1, 1], [], []>} : vector<256x384xbf16>, vector<384x128xbf16>, vector<256x128xf32> -> vector<256x128xf32>
    %c1_109 = arith.constant 1 : index
    %c0_110 = arith.constant 0 : index
    %73 = vector.load %arg4[%c1_109, %c0_110] : memref<3x128xf32, #tpu.memory_space<vmem>>, vector<1x128xf32>
    %74 = vector.broadcast %73 : vector<1x128xf32> to vector<256x128xf32>
    %75 = arith.addf %72, %74 : vector<256x128xf32>
    %76 = vector.shape_cast %75 : vector<256x128xf32> to vector<16x16x128xf32>
    %cst_111 = arith.constant 0.000000e+00 : f32
    %77 = vector.broadcast %cst_111 : f32 to vector<16x16x128xf32>
    %78 = arith.cmpf oge, %76, %77 : vector<16x16x128xf32>
    %cst_112 = arith.constant 1.000000e-01 : f32
    %79 = vector.broadcast %cst_112 : f32 to vector<16x16x128xf32>
    %80 = arith.mulf %79, %76 : vector<16x16x128xf32>
    %81 = arith.select %78, %76, %80 : vector<16x16x128xi1>, vector<16x16x128xf32>
    %82 = arith.truncf %81 : vector<16x16x128xf32> to vector<16x16x128xbf16>
    %c0_113 = arith.constant 0 : index
    %c8_114 = arith.constant 8 : index
    %c0_115 = arith.constant 0 : index
    %83 = vector.load %arg7[%c0_113, %c8_114, %c0_115] : memref<16x32x128xbf16, #tpu.memory_space<vmem>>, vector<16x16x128xbf16>
    tpu.vector_store %arg7[%c0_113, %c8_114, %c0_115], %82 {strides = array<i32>} : memref<16x32x128xbf16, #tpu.memory_space<vmem>>, vector<16x16x128xbf16>,
    %c1_116 = arith.constant 1 : index
    %c0_117 = arith.constant 0 : index
    %c0_118 = arith.constant 0 : index
    %84 = vector.load %arg3[%c1_116, %c0_117, %c0_118] : memref<3x384x128xbf16, #tpu.memory_space<vmem>>, vector<1x384x128xbf16>
    %85 = vector.shape_cast %84 : vector<1x384x128xbf16> to vector<384x128xbf16>
    %c0_119 = arith.constant 0 : index
    %c7_120 = arith.constant 7 : index
    %c0_121 = arith.constant 0 : index
    %86 = vector.load %arg7[%c0_119, %c7_120, %c0_121] : memref<16x32x128xbf16, #tpu.memory_space<vmem>>, vector<16x16x128xbf16>
    %c0_122 = arith.constant 0 : index
    %c0_123 = arith.constant 0 : index
    %c0_124 = arith.constant 0 : index
    %87 = vector.load %arg8[%c0_122, %c0_123, %c0_124] : memref<16x16x384xbf16, #tpu.memory_space<vmem>>, vector<16x16x128xbf16>
    tpu.vector_store %arg8[%c0_122, %c0_123, %c0_124], %86 {strides = array<i32>} : memref<16x16x384xbf16, #tpu.memory_space<vmem>>, vector<16x16x128xbf16>,
    %c0_125 = arith.constant 0 : index
    %c8_126 = arith.constant 8 : index
    %c0_127 = arith.constant 0 : index
    %88 = vector.load %arg7[%c0_125, %c8_126, %c0_127] : memref<16x32x128xbf16, #tpu.memory_space<vmem>>, vector<16x16x128xbf16>
    %c0_128 = arith.constant 0 : index
    %c0_129 = arith.constant 0 : index
    %c128_130 = arith.constant 128 : index
    %89 = vector.load %arg8[%c0_128, %c0_129, %c128_130] : memref<16x16x384xbf16, #tpu.memory_space<vmem>>, vector<16x16x128xbf16>
    tpu.vector_store %arg8[%c0_128, %c0_129, %c128_130], %88 {strides = array<i32>} : memref<16x16x384xbf16, #tpu.memory_space<vmem>>, vector<16x16x128xbf16>,
    %c0_131 = arith.constant 0 : index
    %c9_132 = arith.constant 9 : index
    %c0_133 = arith.constant 0 : index
    %90 = vector.load %arg7[%c0_131, %c9_132, %c0_133] : memref<16x32x128xbf16, #tpu.memory_space<vmem>>, vector<16x16x128xbf16>
    %c0_134 = arith.constant 0 : index
    %c0_135 = arith.constant 0 : index
    %c256_136 = arith.constant 256 : index
    %91 = vector.load %arg8[%c0_134, %c0_135, %c256_136] : memref<16x16x384xbf16, #tpu.memory_space<vmem>>, vector<16x16x128xbf16>
    tpu.vector_store %arg8[%c0_134, %c0_135, %c256_136], %90 {strides = array<i32>} : memref<16x16x384xbf16, #tpu.memory_space<vmem>>, vector<16x16x128xbf16>,
    %c0_137 = arith.constant 0 : index
    %c0_138 = arith.constant 0 : index
    %c0_139 = arith.constant 0 : index
    %92 = vector.load %arg8[%c0_137, %c0_138, %c0_139] : memref<16x16x384xbf16, #tpu.memory_space<vmem>>, vector<16x16x384xbf16>
    %93 = vector.shape_cast %92 : vector<16x16x384xbf16> to vector<256x384xbf16>
    %cst_140 = arith.constant dense<0.000000e+00> : vector<256x128xf32>
    %94 = tpu.matmul %93, %85, %cst_140 {dimension_numbers = #tpu.dot_dimension_numbers<[1], [0], [0], [1], [0, 0, 1, 1], [], []>} : vector<256x384xbf16>, vector<384x128xbf16>, vector<256x128xf32> -> vector<256x128xf32>
    %c1_141 = arith.constant 1 : index
    %c0_142 = arith.constant 0 : index
    %95 = vector.load %arg5[%c1_141, %c0_142] : memref<3x128xf32, #tpu.memory_space<vmem>>, vector<1x128xf32>
    %96 = vector.broadcast %95 : vector<1x128xf32> to vector<256x128xf32>
    %97 = arith.addf %94, %96 : vector<256x128xf32>
    %c0_143 = arith.constant 0 : index
    %c0_144 = arith.constant 0 : index
    %c0_145 = arith.constant 0 : index
    %98 = vector.load %arg9[%c0_143, %c0_144, %c0_145] : memref<16x16x128xf32, #tpu.memory_space<vmem>>, vector<16x16x128xf32>
    %99 = vector.shape_cast %97 : vector<256x128xf32> to vector<16x16x128xf32>
    %100 = arith.addf %98, %99 : vector<16x16x128xf32>
    %c0_146 = arith.constant 0 : index
    %c0_147 = arith.constant 0 : index
    %c0_148 = arith.constant 0 : index
    %101 = vector.load %arg9[%c0_146, %c0_147, %c0_148] : memref<16x16x128xf32, #tpu.memory_space<vmem>>, vector<16x16x128xf32>
    tpu.vector_store %arg9[%c0_146, %c0_147, %c0_148], %100 {strides = array<i32>} : memref<16x16x128xf32, #tpu.memory_space<vmem>>, vector<16x16x128xf32>,
    %c0_149 = arith.constant 0 : index
    %c0_150 = arith.constant 0 : index
    %c0_151 = arith.constant 0 : index
    %102 = vector.load %arg9[%c0_149, %c0_150, %c0_151] : memref<16x16x128xf32, #tpu.memory_space<vmem>>, vector<16x16x128xf32>
    %cst_152 = arith.constant 0.000000e+00 : f32
    %103 = vector.broadcast %cst_152 : f32 to vector<16x16x128xf32>
    %104 = arith.cmpf oge, %102, %103 : vector<16x16x128xf32>
    %cst_153 = arith.constant 1.000000e-01 : f32
    %105 = vector.broadcast %cst_153 : f32 to vector<16x16x128xf32>
    %106 = arith.mulf %105, %102 : vector<16x16x128xf32>
    %107 = arith.select %104, %102, %106 : vector<16x16x128xi1>, vector<16x16x128xf32>
    %108 = arith.truncf %107 : vector<16x16x128xf32> to vector<16x16x128xbf16>
    %c0_154 = arith.constant 0 : index
    %c8_155 = arith.constant 8 : index
    %c0_156 = arith.constant 0 : index
    %109 = vector.load %arg7[%c0_154, %c8_155, %c0_156] : memref<16x32x128xbf16, #tpu.memory_space<vmem>>, vector<16x16x128xbf16>
    tpu.vector_store %arg7[%c0_154, %c8_155, %c0_156], %108 {strides = array<i32>} : memref<16x32x128xbf16, #tpu.memory_space<vmem>>, vector<16x16x128xbf16>,
    %c2 = arith.constant 2 : index
    %c0_157 = arith.constant 0 : index
    %c0_158 = arith.constant 0 : index
    %110 = vector.load %arg2[%c2, %c0_157, %c0_158] : memref<3x384x128xbf16, #tpu.memory_space<vmem>>, vector<1x384x128xbf16>
    %111 = vector.shape_cast %110 : vector<1x384x128xbf16> to vector<384x128xbf16>
    %c0_159 = arith.constant 0 : index
    %c3 = arith.constant 3 : index
    %c0_160 = arith.constant 0 : index
    %112 = vector.load %arg7[%c0_159, %c3, %c0_160] : memref<16x32x128xbf16, #tpu.memory_space<vmem>>, vector<16x16x128xbf16>
    %c0_161 = arith.constant 0 : index
    %c0_162 = arith.constant 0 : index
    %c0_163 = arith.constant 0 : index
    %113 = vector.load %arg8[%c0_161, %c0_162, %c0_163] : memref<16x16x384xbf16, #tpu.memory_space<vmem>>, vector<16x16x128xbf16>
    tpu.vector_store %arg8[%c0_161, %c0_162, %c0_163], %112 {strides = array<i32>} : memref<16x16x384xbf16, #tpu.memory_space<vmem>>, vector<16x16x128xbf16>,
    %c0_164 = arith.constant 0 : index
    %c8_165 = arith.constant 8 : index
    %c0_166 = arith.constant 0 : index
    %114 = vector.load %arg7[%c0_164, %c8_165, %c0_166] : memref<16x32x128xbf16, #tpu.memory_space<vmem>>, vector<16x16x128xbf16>
    %c0_167 = arith.constant 0 : index
    %c0_168 = arith.constant 0 : index
    %c128_169 = arith.constant 128 : index
    %115 = vector.load %arg8[%c0_167, %c0_168, %c128_169] : memref<16x16x384xbf16, #tpu.memory_space<vmem>>, vector<16x16x128xbf16>
    tpu.vector_store %arg8[%c0_167, %c0_168, %c128_169], %114 {strides = array<i32>} : memref<16x16x384xbf16, #tpu.memory_space<vmem>>, vector<16x16x128xbf16>,
    %c0_170 = arith.constant 0 : index
    %c13 = arith.constant 13 : index
    %c0_171 = arith.constant 0 : index
    %116 = vector.load %arg7[%c0_170, %c13, %c0_171] : memref<16x32x128xbf16, #tpu.memory_space<vmem>>, vector<16x16x128xbf16>
    %c0_172 = arith.constant 0 : index
    %c0_173 = arith.constant 0 : index
    %c256_174 = arith.constant 256 : index
    %117 = vector.load %arg8[%c0_172, %c0_173, %c256_174] : memref<16x16x384xbf16, #tpu.memory_space<vmem>>, vector<16x16x128xbf16>
    tpu.vector_store %arg8[%c0_172, %c0_173, %c256_174], %116 {strides = array<i32>} : memref<16x16x384xbf16, #tpu.memory_space<vmem>>, vector<16x16x128xbf16>,
    %c0_175 = arith.constant 0 : index
    %c0_176 = arith.constant 0 : index
    %c0_177 = arith.constant 0 : index
    %118 = vector.load %arg8[%c0_175, %c0_176, %c0_177] : memref<16x16x384xbf16, #tpu.memory_space<vmem>>, vector<16x16x384xbf16>
    %119 = vector.shape_cast %118 : vector<16x16x384xbf16> to vector<256x384xbf16>
    %cst_178 = arith.constant dense<0.000000e+00> : vector<256x128xf32>
    %120 = tpu.matmul %119, %111, %cst_178 {dimension_numbers = #tpu.dot_dimension_numbers<[1], [0], [0], [1], [0, 0, 1, 1], [], []>} : vector<256x384xbf16>, vector<384x128xbf16>, vector<256x128xf32> -> vector<256x128xf32>
    %c2_179 = arith.constant 2 : index
    %c0_180 = arith.constant 0 : index
    %121 = vector.load %arg4[%c2_179, %c0_180] : memref<3x128xf32, #tpu.memory_space<vmem>>, vector<1x128xf32>
    %122 = vector.broadcast %121 : vector<1x128xf32> to vector<256x128xf32>
    %123 = arith.addf %120, %122 : vector<256x128xf32>
    %124 = vector.shape_cast %123 : vector<256x128xf32> to vector<16x16x128xf32>
    %cst_181 = arith.constant 0.000000e+00 : f32
    %125 = vector.broadcast %cst_181 : f32 to vector<16x16x128xf32>
    %126 = arith.cmpf oge, %124, %125 : vector<16x16x128xf32>
    %cst_182 = arith.constant 1.000000e-01 : f32
    %127 = vector.broadcast %cst_182 : f32 to vector<16x16x128xf32>
    %128 = arith.mulf %127, %124 : vector<16x16x128xf32>
    %129 = arith.select %126, %124, %128 : vector<16x16x128xi1>, vector<16x16x128xf32>
    %130 = arith.truncf %129 : vector<16x16x128xf32> to vector<16x16x128xbf16>
    %c0_183 = arith.constant 0 : index
    %c8_184 = arith.constant 8 : index
    %c0_185 = arith.constant 0 : index
    %131 = vector.load %arg7[%c0_183, %c8_184, %c0_185] : memref<16x32x128xbf16, #tpu.memory_space<vmem>>, vector<16x16x128xbf16>
    tpu.vector_store %arg7[%c0_183, %c8_184, %c0_185], %130 {strides = array<i32>} : memref<16x32x128xbf16, #tpu.memory_space<vmem>>, vector<16x16x128xbf16>,
    %c2_186 = arith.constant 2 : index
    %c0_187 = arith.constant 0 : index
    %c0_188 = arith.constant 0 : index
    %132 = vector.load %arg3[%c2_186, %c0_187, %c0_188] : memref<3x384x128xbf16, #tpu.memory_space<vmem>>, vector<1x384x128xbf16>
    %133 = vector.shape_cast %132 : vector<1x384x128xbf16> to vector<384x128xbf16>
    %c0_189 = arith.constant 0 : index
    %c7_190 = arith.constant 7 : index
    %c0_191 = arith.constant 0 : index
    %134 = vector.load %arg7[%c0_189, %c7_190, %c0_191] : memref<16x32x128xbf16, #tpu.memory_space<vmem>>, vector<16x16x128xbf16>
    %c0_192 = arith.constant 0 : index
    %c0_193 = arith.constant 0 : index
    %c0_194 = arith.constant 0 : index
    %135 = vector.load %arg8[%c0_192, %c0_193, %c0_194] : memref<16x16x384xbf16, #tpu.memory_space<vmem>>, vector<16x16x128xbf16>
    tpu.vector_store %arg8[%c0_192, %c0_193, %c0_194], %134 {strides = array<i32>} : memref<16x16x384xbf16, #tpu.memory_space<vmem>>, vector<16x16x128xbf16>,
    %c0_195 = arith.constant 0 : index
    %c8_196 = arith.constant 8 : index
    %c0_197 = arith.constant 0 : index
    %136 = vector.load %arg7[%c0_195, %c8_196, %c0_197] : memref<16x32x128xbf16, #tpu.memory_space<vmem>>, vector<16x16x128xbf16>
    %c0_198 = arith.constant 0 : index
    %c0_199 = arith.constant 0 : index
    %c128_200 = arith.constant 128 : index
    %137 = vector.load %arg8[%c0_198, %c0_199, %c128_200] : memref<16x16x384xbf16, #tpu.memory_space<vmem>>, vector<16x16x128xbf16>
    tpu.vector_store %arg8[%c0_198, %c0_199, %c128_200], %136 {strides = array<i32>} : memref<16x16x384xbf16, #tpu.memory_space<vmem>>, vector<16x16x128xbf16>,
    %c0_201 = arith.constant 0 : index
    %c9_202 = arith.constant 9 : index
    %c0_203 = arith.constant 0 : index
    %138 = vector.load %arg7[%c0_201, %c9_202, %c0_203] : memref<16x32x128xbf16, #tpu.memory_space<vmem>>, vector<16x16x128xbf16>
    %c0_204 = arith.constant 0 : index
    %c0_205 = arith.constant 0 : index
    %c256_206 = arith.constant 256 : index
    %139 = vector.load %arg8[%c0_204, %c0_205, %c256_206] : memref<16x16x384xbf16, #tpu.memory_space<vmem>>, vector<16x16x128xbf16>
    tpu.vector_store %arg8[%c0_204, %c0_205, %c256_206], %138 {strides = array<i32>} : memref<16x16x384xbf16, #tpu.memory_space<vmem>>, vector<16x16x128xbf16>,
    %c0_207 = arith.constant 0 : index
    %c0_208 = arith.constant 0 : index
    %c0_209 = arith.constant 0 : index
    %140 = vector.load %arg8[%c0_207, %c0_208, %c0_209] : memref<16x16x384xbf16, #tpu.memory_space<vmem>>, vector<16x16x384xbf16>
    %141 = vector.shape_cast %140 : vector<16x16x384xbf16> to vector<256x384xbf16>
    %cst_210 = arith.constant dense<0.000000e+00> : vector<256x128xf32>
    %142 = tpu.matmul %141, %133, %cst_210 {dimension_numbers = #tpu.dot_dimension_numbers<[1], [0], [0], [1], [0, 0, 1, 1], [], []>} : vector<256x384xbf16>, vector<384x128xbf16>, vector<256x128xf32> -> vector<256x128xf32>
    %c2_211 = arith.constant 2 : index
    %c0_212 = arith.constant 0 : index
    %143 = vector.load %arg5[%c2_211, %c0_212] : memref<3x128xf32, #tpu.memory_space<vmem>>, vector<1x128xf32>
    %144 = vector.broadcast %143 : vector<1x128xf32> to vector<256x128xf32>
    %145 = arith.addf %142, %144 : vector<256x128xf32>
    %c0_213 = arith.constant 0 : index
    %c0_214 = arith.constant 0 : index
    %c0_215 = arith.constant 0 : index
    %146 = vector.load %arg9[%c0_213, %c0_214, %c0_215] : memref<16x16x128xf32, #tpu.memory_space<vmem>>, vector<16x16x128xf32>
    %147 = vector.shape_cast %145 : vector<256x128xf32> to vector<16x16x128xf32>
    %148 = arith.addf %146, %147 : vector<16x16x128xf32>
    %c0_216 = arith.constant 0 : index
    %c0_217 = arith.constant 0 : index
    %c0_218 = arith.constant 0 : index
    %149 = vector.load %arg9[%c0_216, %c0_217, %c0_218] : memref<16x16x128xf32, #tpu.memory_space<vmem>>, vector<16x16x128xf32>
    tpu.vector_store %arg9[%c0_216, %c0_217, %c0_218], %148 {strides = array<i32>} : memref<16x16x128xf32, #tpu.memory_space<vmem>>, vector<16x16x128xf32>,
    %c0_219 = arith.constant 0 : index
    %c0_220 = arith.constant 0 : index
    %c0_221 = arith.constant 0 : index
    %150 = vector.load %arg9[%c0_219, %c0_220, %c0_221] : memref<16x16x128xf32, #tpu.memory_space<vmem>>, vector<16x16x128xf32>
    %c0_222 = arith.constant 0 : index
    %c0_223 = arith.constant 0 : index
    %c0_224 = arith.constant 0 : index
    %151 = vector.load %arg6[%c0_222, %c0_223, %c0_224] : memref<16x16x128xf32, #tpu.memory_space<vmem>>, vector<16x16x128xf32>
    tpu.vector_store %arg6[%c0_222, %c0_223, %c0_224], %150 {strides = array<i32>} : memref<16x16x128xf32, #tpu.memory_space<vmem>>, vector<16x16x128xf32>,
    return
  }
  func.func @transform_0(%arg0: i32) -> (i32, i32, i32) {
    %c0_i32 = arith.constant 0 : i32
    %c0_i32_0 = arith.constant 0 : i32
    %c0_i32_1 = arith.constant 0 : i32
    return %arg0, %c0_i32, %c0_i32_0 : i32, i32, i32
  }
  func.func @transform_1(%arg0: i32) -> (i32, i32, i32) {
    %c0_i32 = arith.constant 0 : i32
    %c0_i32_0 = arith.constant 0 : i32
    %c0_i32_1 = arith.constant 0 : i32
    %c0_i32_2 = arith.constant 0 : i32
    return %c0_i32, %c0_i32_0, %c0_i32_1 : i32, i32, i32
  }
  func.func @transform_2(%arg0: i32) -> (i32, i32, i32) {
    %c0_i32 = arith.constant 0 : i32
    %c0_i32_0 = arith.constant 0 : i32
    %c0_i32_1 = arith.constant 0 : i32
    %c0_i32_2 = arith.constant 0 : i32
    return %c0_i32, %c0_i32_0, %c0_i32_1 : i32, i32, i32
  }
  func.func @transform_3(%arg0: i32) -> (i32, i32) {
    %c0_i32 = arith.constant 0 : i32
    %c0_i32_0 = arith.constant 0 : i32
    %c0_i32_1 = arith.constant 0 : i32
    return %c0_i32, %c0_i32_0 : i32, i32
  }
  func.func @transform_4(%arg0: i32) -> (i32, i32) {
    %c0_i32 = arith.constant 0 : i32
    %c0_i32_0 = arith.constant 0 : i32
    %c0_i32_1 = arith.constant 0 : i32
    return %c0_i32, %c0_i32_0 : i32, i32
  }
  func.func @transform_5(%arg0: i32) -> (i32, i32, i32) {
    %c0_i32 = arith.constant 0 : i32
    %c0_i32_0 = arith.constant 0 : i32
    %c0_i32_1 = arith.constant 0 : i32
    return %arg0, %c0_i32, %c0_i32_0 : i32, i32, i32
  }
}

</mosaic_0001>

<bundles_post_ra>
// kernel: tpu_custom_call.1
= control target key start
LH: loop header
LB: loop body
LE: loop exit
PB: predicated region body
PF: predicated region fallthrough
CT: control target
= control target key end

     0   :  { %10 = vsyncpa [#allocation6], 0  ;;  %s13726_s0 = inlined_call_operand.hbm [shape: f32[32,16,128], index: 0, kind: input, shape index: {}]   ;;  %s13727_s1 = inlined_call_operand.hbm [shape: bf16[3,384,128], index: 1, kind: input, shape index: {}]   ;;  %s13728_s2 = inlined_call_operand.hbm [shape: bf16[3,384,128], index: 2, kind: input, shape index: {}]   ;;  %s13729_s3 = inlined_call_operand.vmem [shape: f32[3,128], index: 3, kind: input, shape index: {}]   ;;  %s13730_s4 = inlined_call_operand.vmem [shape: f32[3,128], index: 4, kind: input, shape index: {}]   ;;  %s13731_s5 = inlined_call_operand.hbm [shape: f32[32,16,128], index: 5, kind: output, shape index: {}]  }
   0x1   :  { %12 = vsyncpa [#allocation6 + $0x1], 0 }
   0x2   :  { %13 = vsyncpa [#allocation9], 0 }
   0x3   :  { %14 = vsyncpa [#allocation7], 0 }
   0x4   :  { %16 = vsyncpa [#allocation7 + $0x1], 0  ;;  %s12120_s18 = smov 0   ;;  %s12122_s19 = smov 0  }
   0x5   :  { %s12124_s20 = smov 0   ;;  %s12126_s21 = smov 0  }
   0x6 LB: > { %s12141_s22 = sadd.s32 4294967295, %s12077_s21   ;;  %s10388_s23 = sadd.s32 4294967294, %s12077_s21   ;;  %s12077_s21 = sphi %s12126_s21, %s13781_s21   ;;  %s12073_s20 = sphi %s12124_s20, %s13780_s20   ;;  %s12069_s19 = sphi %s12122_s19, %s13779_s19   ;;  %s12065_s18 = sphi %s12120_s18, %s13778_s18  }
   0x7   : > { %p42_p0 = scmp.ne.s32.totalorder %s12069_s19, %s12065_s18  ;;  %p13732_p1 = scmp.eq.s32.totalorder %s12141_s22, 0 }
   0x8   : > { %p156_p3 = scmp.eq.s32.totalorder %s10388_s23, 1  ;;  %p10389_p5 = scmp.ge.s32.totalorder %s12077_s21, 1 }
   0x9   : > { %p12150_p4 = por %p13732_p1, %p42_p0  ;;  %p163_p7 = scmp.lt.s32.totalorder %s12077_s21, 3 }
   0xa   : > { %p12155_p6 = por %p156_p3, %p42_p0  ;;  %s12079_s27 = smov [#allocation8]  }
   0xb   : > { %s13745_s24 = scalar_select %p12150_p4, 1, 0 }
   0xc   : > { %s13746_s25 = scalar_select %p12155_p6, 1, 0 }
   0xd   : > { %p12160_p8 = pnand %p10389_p5, %p163_p7  ;;  %s175_s28 = sshll.u32 %s12079_s27, 4  ;;  %s12164_s28 = int_to_ptr.vmem [resolvable:$true] %s175_s28 }
   0xe   : > { %s12080_s30 = smov [#allocation10]   ;;  %s11921_s9 = scalar_lea.hbm %s13727_s1, 9216 }
   0xf   : > { %p11678_p9 = pneg %p12160_p8  ;;  %s188_s6 = sshll.u32 %s12080_s30, 4  ;;  %s12175_s6 = int_to_ptr.vmem [resolvable:$true] %s188_s6 }
  0x10   : > { %p11922_p12 = scmp.ne.s32.totalorder %s13727_s1, %s11921_s9  ;;  %p11928_p5 = scmp.lt.u32.totalorder %s11921_s9, %s13727_s1 }
  0x11   : > { %p12171_p11 = pnand %p11678_p9, %p13732_p1 }
  0x13   : > { %p11923_p13 = pneg %p12171_p11 }
  0x15   : > { %p11924_p0 = pnand %p11923_p13, %p11922_p12 }
  0x17   : > { %p11925_p3 = pneg %p11924_p0 }
  0x19   : > { %p11930_p7 = pnand %p11928_p5, %p11925_p3 }
  0x1b   : > { %11933 = shalt.err (!%p11930_p7)
}
  0x1c   : > { %s11934_s14 = scalar_lea.vmem %s12164_s28, 9216  ;;  %p11942_p2 = scmp.lt.s32.totalorder %s12164_s28, %s12164_s28 }
  0x1d   : > { %p11935_p9 = scmp.ne.s32.totalorder %s12164_s28, %s11934_s14  ;;  %p11943_p12 = scmp.lt.s32.totalorder %s11934_s14, %s11934_s14 }
  0x1f   : > { %p11937_p10 = pnand %p11935_p9, %p11923_p13  ;;  %p11944_p0 = por %p11943_p12, %p11942_p2 }
  0x21   : > { %p11938_p1 = pneg %p11937_p10 }
  0x23   : > { %p11945_p6 = pnand %p11944_p0, %p11938_p1 }
  0x25   : > { %11948 = shalt.err (!%p11945_p6)
}
  0x26   : > { %s12081_s15 = smov 64   ;;  %s12082_s16 = smov 4  }
  0x27   : > { %11681 = dma.hbm_to_vmem [thread:$0]  (!%p12171_p11), %s13727_s1, 9216, %s12164_s28, [#allocation9], %s12081_s15, %s12081_s15, %s12082_s16  }
  0x28   : > { %s11949_s7 = scalar_lea.hbm %s13728_s2, 9216 }
  0x29   : > { %p11950_p2 = scmp.ne.s32.totalorder %s13728_s2, %s11949_s7  ;;  %p11956_p10 = scmp.lt.u32.totalorder %s11949_s7, %s13728_s2 }
  0x2b   : > { %p11952_p1 = pnand %p11950_p2, %p11923_p13 }
  0x2d   : > { %p11953_p6 = pneg %p11952_p1 }
  0x2f   : > { %p11958_p3 = pnand %p11956_p10, %p11953_p6 }
  0x31   : > { %11961 = shalt.err (!%p11958_p3)
}
  0x32   : > { %s11962_s28 = scalar_lea.vmem %s12175_s6, 9216  ;;  %p11970_p12 = scmp.lt.s32.totalorder %s12175_s6, %s12175_s6 }
  0x33   : > { %p11963_p5 = scmp.ne.s32.totalorder %s12175_s6, %s11962_s28  ;;  %p11971_p0 = scmp.lt.s32.totalorder %s11962_s28, %s11962_s28 }
  0x35   : > { %p11965_p7 = pnand %p11963_p5, %p11923_p13  ;;  %p11972_p2 = por %p11971_p0, %p11970_p12 }
  0x37   : > { %p11966_p9 = pneg %p11965_p7 }
  0x39   : > { %p11973_p1 = pnand %p11972_p2, %p11966_p9 }
  0x3b   : > { %11976 = shalt.err (!%p11973_p1)
}
  0x3c   : > { %11684 = dma.hbm_to_vmem [thread:$0]  (!%p12171_p11), %s13728_s2, 9216, %s12175_s6, [#allocation9], %s12081_s15, %s12081_s15, %s12082_s16  }
  0x3d   : > { %s12230_s14 = sadd.s32 1, %s12077_s21   ;;  %s29_s29 = sadd.s32 1, %s12073_s20 }
  0x3e   : > { %s26_s17 = ssub.s32 %s12077_s21, %s12230_s14  ;;  %p36_p13 = scmp.ne.s32.totalorder %s12073_s20, %s12069_s19 }
  0x3f   : > { %p27_p6 = scmp.eq.s32.totalorder %s26_s17, 0  ;;  %p37_p10 = scmp.eq.s32.totalorder %s12077_s21, 0 }
  0x40   : > { %p13749_p3 = scmp.eq.s32.totalorder %s12141_s22, 1  ;;  %p11695_p7 = scmp.lt.s32.totalorder %s12077_s21, 2 }
  0x41   : > { %s12246_s27 = scalar_select %p27_p6, %s12073_s20, %s29_s29  }
  0x42   : > { %p12240_p5 = por %p13749_p3, %p36_p13  ;;  %p38_p9 = por %p37_p10, %p36_p13 }
  0x43   : > { %s208_s30 = sand.u32 1, %s12073_s20   ;;  %s10559_s6 = sshll.u32 %s12077_s21, 12 }
  0x44   : > { %s13750_s23 = scalar_select %p12240_p5, 1, 0 }
  0x45   : > { %s10393_s7 = sshll.u32 %s208_s30, 8  ;;  %s12253_s8 = scalar_lea.hbm %s13726_s0, %s10559_s6 }
  0x46   : > { %s212_s9 = scalar_lea.vmem [#allocation5], %s10393_s7  ;;  %p12257_p11 = pnand %p11695_p7, %p38_p9 }
  0x47   : > { %s220_s10 = sshll.u32 %s212_s9, 4  ;;  %s12261_s28 = scalar_lea.sflag [#allocation6], %s208_s30  ;;  %s12255_s10 = int_to_ptr.vmem [resolvable:$true] %s220_s10 }
  0x48   : > { %s11977_s12 = scalar_lea.hbm %s12253_s8, 4096  ;;  %p11979_p0 = pneg %p12257_p11 }
  0x49   : > { %p11978_p12 = scmp.ne.s32.totalorder %s12253_s8, %s11977_s12  ;;  %s11982_s17 = scalar_lea.hbm %s13726_s0, 8192 }
  0x4a   : > { %p11983_p13 = scmp.lt.u32.totalorder %s12253_s8, %s13726_s0  ;;  %p11984_p6 = scmp.lt.u32.totalorder %s11982_s17, %s11977_s12 }
  0x4b   : > { %p11980_p2 = pnand %p11979_p0, %p11978_p12  ;;  %p11986_p3 = scmp.lt.u32.totalorder %s11977_s12, %s12253_s8 }
  0x4c   : > { %p11985_p10 = por %p11984_p6, %p11983_p13 }
  0x4d   : > { %p11981_p1 = pneg %p11980_p2 }
  0x4e   : > { %p11987_p7 = por %p11986_p3, %p11985_p10 }
  0x50   : > { %p11988_p9 = pnand %p11987_p7, %p11981_p1 }
  0x52   : > { %11991 = shalt.err (!%p11988_p9)
}
  0x53   : > { %s11992_s30 = scalar_lea.vmem %s12255_s10, 4096  ;;  %s12083_s15 = smov [#allocation5]  }
  0x54   : > { %p11993_p12 = scmp.ne.s32.totalorder %s12255_s10, %s11992_s30  ;;  %s11997_s16 = sshll.u32 %s12083_s15, 4  ;;  %s11998_s16 = int_to_ptr.vmem [resolvable:$false] %s11997_s16 }
  0x55   : > { %s11999_s9 = scalar_lea.vmem %s11998_s16, 8192  ;;  %p12000_p4 = scmp.lt.s32.totalorder %s12255_s10, %s11998_s16 }
  0x56   : > { %p11995_p2 = pnand %p11993_p12, %p11979_p0  ;;  %p12001_p13 = scmp.lt.s32.totalorder %s11999_s9, %s11992_s30 }
  0x58   : > { %p11996_p5 = pneg %p11995_p2  ;;  %p12002_p6 = por %p12001_p13, %p12000_p4 }
  0x5a   : > { %p12003_p10 = pnand %p12002_p6, %p11996_p5 }
  0x5c   : > { %12006 = shalt.err (!%p12003_p10)
}
  0x5d   : > { %s12084_s12 = smov 128   ;;  %s12085_s13 = smov 8  }
  0x5e   : > { %11688 = dma.hbm_to_vmem [thread:$0]  (!%p12257_p11), %s12253_s8, 4096, %s12255_s10, %s12261_s28, %s12084_s12, %s12084_s12, %s12085_s13  }
  0x5f   : > { %232 = sbr.rel (%p12160_p8) target bundleno = 1816 (0x718), region = 40 }
  0x66   : > { %s12292_s29 = sand.u32 1, %s12069_s19   ;;  %p13752_p4 = scmp.ne.s32.totalorder %s13745_s24, 0 }
  0x67   : > { %s10398_s17 = sshll.u32 %s12292_s29, 8  ;;  %s235_s7 = scalar_lea.sflag [#allocation6], %s12292_s29 }
  0x68   : > { %s12298_s6 = scalar_lea.vmem [#allocation5], %s10398_s17 }
  0x69   : > { %12052 = dma.done.wait (%p13752_p4), %s235_s7, 4096  }
  0x6a   : > { %12054 = vsyncadd (%p13752_p4), %s235_s7, 4294963200  ;;  %p13753_p5 = scmp.eq.s32.totalorder %s12141_s22, 0 }
  0x6c   : > { %12056 = dma.done.wait (%p13753_p5), [#allocation9], 18432   ;;  %p13754_p8 = pmov %p13753_p5 }
  0x6d   : > { %v12086_v0 = vmov 0   ;;  %v11740_v1 = vld [vmem:[#allocation8 + $0x40] sm:$0xff]   ;;  %v11743_v4 = vld [vmem:[#allocation8 + $0x48] sm:$0xff]   ;;  %v11746_v7 = vld [vmem:[#allocation8 + $0x50] sm:$0xff]   ;;  %vm1045_vm8 = vcmask 1043456   ;;  %s13583_s16 = scalar_lea.vmem [#allocation11], %s10398_s17 }
  0x6e   : > { %12058 = vsyncadd (%p13754_p8), [#allocation9], 4294948864  ;;  %276 = vst [vmem:[#allocation2] sm:$0xf] %v12086_v0  ;;  %v11741_v2 = vld [vmem:[#allocation8] sm:$0xff]   ;;  %10562 = vmatprep.subr.bf16.mxu0 %v11740_v1  ;;  %v11744_v5 = vld [vmem:[#allocation8 + $0x8] sm:$0xff]  }
  0x6f   : > { %277 = vst [vmem:[#allocation2 + $0x10] sm:$0xf] %v12086_v0  ;;  %278 = vst [vmem:[#allocation2 + $0x20] sm:$0xf] %v12086_v0  ;;  %v11742_v3 = vld [vmem:[#allocation8 + $0x80] sm:$0xff]   ;;  %10563 = vmatpush3.bf16.msra.mxu0 %v11741_v2  ;;  %v11745_v6 = vld [vmem:[#allocation8 + $0x88] sm:$0xff]  }
  0x70   : > { %279 = vst [vmem:[#allocation2 + $0x30] sm:$0xf] %v12086_v0  ;;  %280 = vst [vmem:[#allocation2 + $0x40] sm:$0xf] %v12086_v0  ;;  %11378 = vmatprep.subr.bf16.mxu1 %v11742_v3  ;;  %10564 = vmatprep.subr.bf16.mxu0 %v11743_v4  ;;  %v11747_v8 = vld [vmem:[#allocation8 + $0x10] sm:$0xff]   ;;  %v11749_v10 = vld [vmem:[#allocation8 + $0x58] sm:$0xff]  }
  0x71   : > { %281 = vst [vmem:[#allocation2 + $0x50] sm:$0xf] %v12086_v0  ;;  %282 = vst [vmem:[#allocation2 + $0x60] sm:$0xf] %v12086_v0  ;;  %11379 = vmatpush3.bf16.msra.mxu1 %v11742_v3  ;;  %v11748_v9 = vld [vmem:[#allocation8 + $0x90] sm:$0xff]   ;;  %v11750_v11 = vld [vmem:[#allocation8 + $0x18] sm:$0xff]  }
  0x72   : > { %283 = vst [vmem:[#allocation2 + $0x70] sm:$0xf] %v12086_v0  ;;  %284 = vst [vmem:[#allocation2 + $0x80] sm:$0xf] %v12086_v0  ;;  %11380 = vmatprep.subr.bf16.mxu1 %v11745_v6  ;;  %v11751_v12 = vld [vmem:[#allocation8 + $0x98] sm:$0xff]   ;;  %v11752_v13 = vld [vmem:[#allocation8 + $0x60] sm:$0xff]  }
  0x73   : > { %285 = vst [vmem:[#allocation2 + $0x90] sm:$0xf] %v12086_v0  ;;  %286 = vst [vmem:[#allocation2 + $0xa0] sm:$0xf] %v12086_v0  ;;  %10565 = vmatpush3.bf16.msra.mxu0 %v11744_v5  ;;  %v11754_v14 = vld [vmem:[#allocation8 + $0xa0] sm:$0xff]   ;;  %v11755_v16 = vld [vmem:[#allocation8 + $0x68] sm:$0xff]  }
  0x74   : > { %287 = vst [vmem:[#allocation2 + $0xb0] sm:$0xf] %v12086_v0  ;;  %288 = vst [vmem:[#allocation2 + $0xc0] sm:$0xf] %v12086_v0  ;;  %10566 = vmatprep.subr.bf16.mxu0 %v11746_v7  ;;  %v11753_v15 = vld [vmem:[#allocation8 + $0x20] sm:$0xff]   ;;  %v11757_v17 = vld [vmem:[#allocation8 + $0xa8] sm:$0xff]  }
  0x75   : > { %289 = vst [vmem:[#allocation2 + $0xd0] sm:$0xf] %v12086_v0  ;;  %290 = vst [vmem:[#allocation2 + $0xe0] sm:$0xf] %v12086_v0  ;;  %11381 = vmatpush3.bf16.msra.mxu1 %v11745_v6  ;;  %v11756_v18 = vld [vmem:[#allocation8 + $0x28] sm:$0xff]   ;;  %v11758_v19 = vld [vmem:[#allocation8 + $0x70] sm:$0xff]  }
  0x76   : > { %291 = vst [vmem:[#allocation2 + $0xf0] sm:$0xf] %v12086_v0  ;;  %292 = vst [vmem:[#allocation2 + $0x8] sm:$0xf0] %v12086_v0  ;;  %11382 = vmatprep.subr.bf16.mxu1 %v11748_v9  ;;  %v11759_v20 = vld [vmem:[#allocation8 + $0x30] sm:$0xff]   ;;  %v11761_v22 = vld [vmem:[#allocation8 + $0x78] sm:$0xff]  }
  0x77   : > { %293 = vst [vmem:[#allocation2 + $0x18] sm:$0xf0] %v12086_v0  ;;  %294 = vst [vmem:[#allocation2 + $0x28] sm:$0xf0] %v12086_v0  ;;  %10567 = vmatpush3.bf16.msra.mxu0 %v11747_v8  ;;  %v11760_v21 = vld [vmem:[#allocation8 + $0xb0] sm:$0xff]   ;;  %v11763_v23 = vld [vmem:[#allocation8 + $0xb8] sm:$0xff]  }
  0x78   : > { %295 = vst [vmem:[#allocation2 + $0x38] sm:$0xf0] %v12086_v0  ;;  %296 = vst [vmem:[#allocation2 + $0x48] sm:$0xf0] %v12086_v0  ;;  %10568 = vmatprep.subr.bf16.mxu0 %v11749_v10  ;;  %v308_v24 = vld [vmem:[%s12298_s6] sm:$0xff]  ;;  %v309_v25 = vld [vmem:[%s12298_s6 + $0x8] sm:$0xff] }
  0x79   : > { %297 = vst [vmem:[#allocation2 + $0x58] sm:$0xf0] %v12086_v0  ;;  %298 = vst [vmem:[#allocation2 + $0x68] sm:$0xf0] %v12086_v0  ;;  %11383 = vmatpush3.bf16.msra.mxu1 %v11748_v9  ;;  %v310_v26 = vld [vmem:[%s12298_s6 + $0x10] sm:$0xff]  ;;  %vm404_vm0 = vcmp.ge.f32.partialorder %v308_v24, 0.0 }
  0x7a   : > { %299 = vst [vmem:[#allocation2 + $0x78] sm:$0xf0] %v12086_v0  ;;  %300 = vst [vmem:[#allocation2 + $0x88] sm:$0xf0] %v12086_v0  ;;  %11384 = vmatprep.subr.bf16.mxu1 %v11751_v12  ;;  %vm405_vm1 = vcmp.ge.f32.partialorder %v309_v25, 0.0  ;;  %v311_v29 = vld [vmem:[%s12298_s6 + $0x18] sm:$0xff] }
  0x7b   : > { %301 = vst [vmem:[#allocation2 + $0x98] sm:$0xf0] %v12086_v0  ;;  %302 = vst [vmem:[#allocation2 + $0xa8] sm:$0xf0] %v12086_v0  ;;  %10569 = vmatpush3.bf16.msra.mxu0 %v11750_v11  ;;  %v436_v27 = vmul.f32 0.1, %v308_v24 }
  0x7c   : > { %303 = vst [vmem:[#allocation2 + $0xb8] sm:$0xf0] %v12086_v0  ;;  %304 = vst [vmem:[#allocation2 + $0xc8] sm:$0xf0] %v12086_v0  ;;  %10570 = vmatprep.subr.bf16.mxu0 %v11752_v13  ;;  %v437_v28 = vmul.f32 0.1, %v309_v25 }
  0x7d   : > { %305 = vst [vmem:[#allocation2 + $0xd8] sm:$0xf0] %v12086_v0  ;;  %306 = vst [vmem:[#allocation2 + $0xe8] sm:$0xf0] %v12086_v0  ;;  %11385 = vmatpush3.bf16.msra.mxu1 %v11751_v12  ;;  %vm406_vm2 = vcmp.ge.f32.partialorder %v310_v26, 0.0  ;;  %v312_v31 = vld [vmem:[%s12298_s6 + $0x20] sm:$0xff]  ;;  %v468_v34 = vsel %vm404_vm0, %v308_v24, %v436_v27 }
  0x7e   : > { %307 = vst [vmem:[#allocation2 + $0xf8] sm:$0xf0] %v12086_v0  ;;  %11386 = vmatprep.subr.bf16.mxu1 %v11754_v14  ;;  %v438_v30 = vmul.f32 0.1, %v310_v26  ;;  %v313_v32 = vld [vmem:[%s12298_s6 + $0x28] sm:$0xff]  ;;  %v11762_v33 = vld [vmem:[#allocation8 + $0x38] sm:$0xff]   ;;  %v469_v35 = vsel %vm405_vm1, %v309_v25, %v437_v28 }
  0x7f   : > { %10571 = vmatpush3.bf16.msra.mxu0 %v11753_v15  ;;  %vm407_vm3 = vcmp.ge.f32.partialorder %v311_v29, 0.0  ;;  %v439_v36 = vmul.f32 0.1, %v311_v29  ;;  %v314_v37 = vld [vmem:[%s12298_s6 + $0x30] sm:$0xff]  ;;  %v315_v38 = vld [vmem:[%s12298_s6 + $0x38] sm:$0xff]  ;;  %v500_v39 = vpack.c.bf16 %v469_v35, %v468_v34  ;;  %vm408_vm4 = vcmp.ge.f32.partialorder %v312_v31, 0.0 }
  0x80   : > { %10572 = vmatprep.subr.bf16.mxu0 %v11755_v16  ;;  %v470_v40 = vsel %vm406_vm2, %v310_v26, %v438_v30  ;;  %vm409_vm5 = vcmp.ge.f32.partialorder %v313_v32, 0.0  ;;  %v316_v41 = vld [vmem:[%s12298_s6 + $0x40] sm:$0xff]  ;;  %v440_v43 = vmul.f32 0.1, %v312_v31  ;;  %v441_v44 = vmul.f32 0.1, %v313_v32 }
  0x81   : > { %11387 = vmatpush3.bf16.msra.mxu1 %v11754_v14  ;;  %v471_v42 = vsel %vm407_vm3, %v311_v29, %v439_v36  ;;  %vm410_vm6 = vcmp.ge.f32.partialorder %v314_v37, 0.0  ;;  %v317_v45 = vld [vmem:[%s12298_s6 + $0x48] sm:$0xff]  ;;  %v532_v46 = vrot.slane %v500_v39, 4  ;;  %vm411_vm7 = vcmp.ge.f32.partialorder %v315_v38, 0.0  ;;  %v318_v52 = vld [vmem:[%s12298_s6 + $0x50] sm:$0xff]  ;;  %v319_v56 = vld [vmem:[%s12298_s6 + $0x58] sm:$0xff] }
  0x82   : > { %11388 = vmatprep.subr.bf16.mxu1 %v11757_v17  ;;  %v501_v47 = vpack.c.bf16 %v471_v42, %v470_v40  ;;  %v442_v48 = vmul.f32 0.1, %v314_v37  ;;  %v472_v49 = vsel %vm408_vm4, %v312_v31, %v440_v43  ;;  %v473_v50 = vsel %vm409_vm5, %v313_v32, %v441_v44  ;;  %v320_v60 = vld [vmem:[%s12298_s6 + $0x60] sm:$0xff]  ;;  %v321_v61 = vld [vmem:[%s12298_s6 + $0x68] sm:$0xff]  ;;  %v12328_v4 = vld [vmem:[%s12298_s6 + $0x70] sm:$0xff]  ;;  %s10561_s17 = sshll.u32 %s12141_s22, 12 }
  0x83   : > { %10573 = vmatpush3.bf16.msra.mxu0 %v11756_v18  ;;  %v443_v51 = vmul.f32 0.1, %v315_v38  ;;  %vm412_vm9 = vcmp.ge.f32.partialorder %v316_v41, 0.0  ;;  %564 = vst [vmem:[#allocation2 + $0x8] ss:$-4 sps:$4 sm:$0xff] %v532_v46   ;;  %v502_v54 = vpack.c.bf16 %v473_v50, %v472_v49  ;;  %vm413_vm10 = vcmp.ge.f32.partialorder %v317_v45, 0.0  ;;  %s13677_s7 = scalar_lea.hbm %s13731_s5, %s10561_s17 }
  0x84   : > { %10574 = vmatprep.subr.bf16.mxu0 %v11758_v19  ;;  %v533_v53 = vrot.slane %v501_v47, 4  ;;  %v474_v55 = vsel %vm410_vm6, %v314_v37, %v442_v48  ;;  %v444_v58 = vmul.f32 0.1, %v316_v41  ;;  %v445_v59 = vmul.f32 0.1, %v317_v45  ;;  %v11764_v49 = vld [vmem:[#allocation10 + $0x80] sm:$0xff]  }
  0x85   : > { %11389 = vmatpush3.bf16.msra.mxu1 %v11757_v17  ;;  %v475_v57 = vsel %vm411_vm7, %v315_v38, %v443_v51  ;;  %v534_v62 = vrot.slane %v502_v54, 4  ;;  %vm414_vm11 = vcmp.ge.f32.partialorder %v318_v52, 0.0  ;;  %v446_v0 = vmul.f32 0.1, %v318_v52  ;;  %s10296_s9 = sshll.u32 %s13583_s16, 4  ;;  %s10282_s22 = scalar_lea.sflag [#allocation7], %s12292_s29  ;;  %s13679_s9 = int_to_ptr.vmem [resolvable:$true] %s10296_s9 }
  0x86   : > { %11390 = vmatprep.subr.bf16.mxu1 %v11760_v21  ;;  %566 = vst [vmem:[#allocation2 + $0x18] ss:$-4 sps:$4 sm:$0xff] %v533_v53   ;;  %v503_v63 = vpack.c.bf16 %v475_v57, %v474_v55  ;;  %v476_v1 = vsel %vm412_vm9, %v316_v41, %v444_v58  ;;  %v477_v2 = vsel %vm413_vm10, %v317_v45, %v445_v59  ;;  %vm415_vm12 = vcmp.ge.f32.partialorder %v319_v56, 0.0  ;;  %p13775_p0 = scmp.ne.s32.totalorder %s13750_s23, 0  ;;  %s12087_s24 = smov [#allocation11]  }
  0x87   : > { %10575 = vmatpush3.bf16.msra.mxu0 %v11759_v20  ;;  %v447_v3 = vmul.f32 0.1, %v319_v56  ;;  %568 = vst [vmem:[#allocation2 + $0x28] ss:$-4 sps:$4 sm:$0xff] %v534_v62   ;;  %v504_v6 = vpack.c.bf16 %v477_v2, %v476_v1  ;;  %vm416_vm13 = vcmp.ge.f32.partialorder %v320_v60, 0.0  ;;  %vm417_vm14 = vcmp.ge.f32.partialorder %v321_v61, 0.0 }
  0x88   : > { %10576 = vmatprep.subr.bf16.mxu0 %v11761_v22  ;;  %v535_v5 = vrot.slane %v503_v63, 4  ;;  %vm676_vm15 = vsmask.f32 4352  ;;  %v448_v7 = vmul.f32 0.1, %v320_v60  ;;  %v12331_v10 = vsel %vm414_vm11, %v318_v52, %v446_v0  ;;  %v11765_v2 = vld [vmem:[#allocation10 + $0x88] sm:$0xff]  }
  0x89   : > { %11391 = vmatpush3.bf16.msra.mxu1 %v11760_v21  ;;  %v449_v8 = vmul.f32 0.1, %v321_v61  ;;  %v536_v9 = vrot.slane %v504_v6, 4  ;;  %v12333_v11 = vsel %vm415_vm12, %v319_v56, %v447_v3  ;;  %v12336_v12 = vmul.f32 0.1, %v12328_v4  ;;  %s12011_s26 = sshll.u32 %s12087_s24, 4  ;;  %s12012_s26 = int_to_ptr.vmem [resolvable:$false] %s12011_s26 }
  0x8a   : > { %11392 = vmatprep.subr.bf16.mxu1 %v11763_v23  ;;  %570 = vst [vmem:[#allocation2 + $0x38] ss:$-4 sps:$4 sm:$0xff] %v535_v5   ;;  %v981_v13 = vld [vmem:[#allocation2] sm:$0xf0]  ;;  %v982_v14 = vld [vmem:[#allocation2 + $0x8] sm:$0xf]  ;;  %v12338_v16 = vsel %vm416_vm13, %v320_v60, %v448_v7  ;;  %v505_v27 = vpack.c.bf16 %v12333_v11, %v12331_v10  ;;  %p12014_p7 = scmp.lt.s32.totalorder %s13679_s9, %s12012_s26 }
  0x8b   : > { %10577 = vmatpush3.bf16.msra.mxu0 %v11762_v33  ;;  %v644_v15 = vld [vmem:[#allocation2] sm:$0xf8]  ;;  %vm1158_vm0 = vsmask.f32 3328  ;;  %v12340_v17 = vsel %vm417_vm14, %v321_v61, %v449_v8  ;;  %v1046_v18 = vrot.slane %v981_v13, 4  ;;  %v1047_v19 = vrot.slane %v982_v14, 4 }
  0x8c   : > { %v645_v20 = vld [vmem:[#allocation2 + $0x8] sm:$0xf]  ;;  %v678_v21 = vshrl.u32 %v644_v15, 16  ;;  %v681_v22 = vshll.u32 %v644_v15, 16  ;;  %572 = vst [vmem:[#allocation2 + $0x48] ss:$-4 sps:$4 sm:$0xff] %v536_v9   ;;  %v506_v28 = vpack.c.bf16 %v12340_v17, %v12338_v16  ;;  %11426 = vmatprep.subr.bf16.mxu0 %v11764_v49 }
  0x8d   : > { %11393 = vmatpush3.bf16.msra.mxu1 %v11763_v23  ;;  %v686_v23 = vshrl.u32 %v645_v20, 16  ;;  %v689_v24 = vshll.u32 %v645_v20, 16  ;;  %v1126_v25 = vld [vmem:[#allocation2] sm:$0xf0]  ;;  %v1127_v26 = vld [vmem:[#allocation2 + $0x8] sm:$0x1f]  ;;  %v1048_v29 = vsel %vm1045_vm8, %v1046_v18, %v1047_v19 }
  0x8e   : > { %v680_v30 = vrot.slane %v678_v21, 3  ;;  %v683_v31 = vrot.slane %v681_v22, 4  ;;  %v1160_v32 = vshrl.u32 %v1126_v25, 16  ;;  %v1128_v33 = vld [vmem:[#allocation2 + $0x10] sm:$0xf0]  ;;  %1692 = vmatprep.mubr.bf16.mxu0 %v1048_v29  ;;  %v1163_v36 = vshll.u32 %v1126_v25, 16 }
  0x8f   : > { %v688_v34 = vrot.slane %v686_v23, 3  ;;  %v691_v35 = vrot.slane %v689_v24, 4  ;;  %v1168_v37 = vshrl.u32 %v1127_v26, 16  ;;  %v1129_v38 = vld [vmem:[#allocation2 + $0x18] sm:$0x1f]  ;;  %v1171_v41 = vshll.u32 %v1127_v26, 16 }
  0x90   : > { %v684_v39 = vor.u32 %v683_v31, %v680_v30  ;;  %v1162_v40 = vrot.slane %v1160_v32, 4  ;;  %v1177_v42 = vshrl.u32 %v1128_v33, 16  ;;  %v983_v43 = vld [vmem:[#allocation2 + $0x10] sm:$0xf0]  ;;  %v1165_v45 = vrot.slane %v1163_v36, 5  ;;  %v11768_v31 = vld [vmem:[#allocation10 + $0x40] sm:$0xff]  }
  0x91   : > { %v692_v44 = vor.u32 %v691_v35, %v688_v34  ;;  %v1170_v46 = vrot.slane %v1168_v37, 4  ;;  %v1180_v47 = vshll.u32 %v1128_v33, 16  ;;  %v984_v48 = vld [vmem:[#allocation2 + $0x18] sm:$0xf]  ;;  %v1173_v50 = vrot.slane %v1171_v41, 5  ;;  %v11766_v19 = vld [vmem:[#allocation10 + $0x90] sm:$0xff]   ;;  %10698 = vmatprep.subr.bf16.mxu1 %v11768_v31 }
  0x92   : > { %v1179_v51 = vrot.slane %v1177_v42, 4  ;;  %v1185_v52 = vshrl.u32 %v1129_v38, 16  ;;  %v1188_v53 = vshll.u32 %v1129_v38, 16  ;;  %v646_v54 = vld [vmem:[#allocation2 + $0x10] sm:$0xf8]  ;;  %v1166_v56 = vor.u32 %v1165_v45, %v1162_v40  ;;  %v11769_v37 = vld [vmem:[#allocation10] sm:$0xff]  }
  0x93   : > { %v693_v55 = vsel %vm676_vm15, %v684_v39, %v692_v44  ;;  %v1182_v57 = vrot.slane %v1180_v47, 5  ;;  %v1049_v58 = vrot.slane %v983_v43, 4  ;;  %v647_v59 = vld [vmem:[#allocation2 + $0x18] sm:$0xf]  ;;  %v985_v60 = vld [vmem:[#allocation2 + $0x20] sm:$0xf0]  ;;  %v1174_v61 = vor.u32 %v1173_v50, %v1170_v46 }
  0x94   : > { %1693 = vmatmul.mubr.bf16.vlgmr.msra.gmra.mrb[0].mxu0 %v693_v55  ;;  %v1187_v62 = vrot.slane %v1185_v52, 4  ;;  %v1190_v63 = vrot.slane %v1188_v53, 5  ;;  %v1050_v0 = vrot.slane %v984_v48, 4  ;;  %v986_v1 = vld [vmem:[#allocation2 + $0x28] sm:$0xf]  ;;  %v695_v5 = vshrl.u32 %v646_v54, 16 }
  0x95   : > { %v1183_v3 = vor.u32 %v1182_v57, %v1179_v51  ;;  %v698_v6 = vshll.u32 %v646_v54, 16  ;;  %v703_v7 = vshrl.u32 %v647_v59, 16  ;;  %v648_v8 = vld [vmem:[#allocation2 + $0x20] sm:$0xf8]  ;;  %11427 = vmatpush3.bf16.msra.mxu0 %v11764_v49  ;;  %v1175_v9 = vsel %vm1158_vm0, %v1166_v56, %v1174_v61  ;;  %v649_v18 = vld [vmem:[#allocation2 + $0x28] sm:$0xf] }
  0x96   : > { %v1191_v13 = vor.u32 %v1190_v63, %v1187_v62  ;;  %v1051_v14 = vsel %vm1045_vm8, %v1049_v58, %v1050_v0  ;;  %v706_v15 = vshll.u32 %v647_v59, 16  ;;  %11428 = vmatprep.subr.bf16.mxu0 %v11765_v2  ;;  %11394 = vmatprep.mubr.bf16.mxu1 %v1175_v9  ;;  %v697_v20 = vrot.slane %v695_v5, 3  ;;  %v1130_v24 = vld [vmem:[#allocation2 + $0x20] sm:$0xf0]  ;;  %v1131_v36 = vld [vmem:[#allocation2 + $0x28] sm:$0x1f] }
  0x97   : > { %1700 = vmatprep.mubr.bf16.mxu0 %v1051_v14  ;;  %v700_v21 = vrot.slane %v698_v6, 4  ;;  %v705_v22 = vrot.slane %v703_v7, 3  ;;  %v1052_v23 = vrot.slane %v985_v60, 4  ;;  %v1053_v29 = vrot.slane %v986_v1, 4  ;;  %v1132_v42 = vld [vmem:[#allocation2 + $0x30] sm:$0xf0] }
  0x98   : > { %v1192_v25 = vsel %vm1158_vm0, %v1183_v3, %v1191_v13  ;;  %v708_v26 = vrot.slane %v706_v15, 4  ;;  %v712_v30 = vshrl.u32 %v648_v8, 16  ;;  %v715_v33 = vshll.u32 %v648_v8, 16  ;;  %v11767_v43 = vld [vmem:[#allocation10 + $0x98] sm:$0xff]   ;;  %v987_v53 = vld [vmem:[#allocation2 + $0x30] sm:$0xf0] }
  0x99   : > { %11395 = vmatmul.mubr.bf16.vlgmr.msra.gmra.mrb[0].mxu1 %v1192_v25  ;;  %v701_v32 = vor.u32 %v700_v21, %v697_v20  ;;  %v720_v34 = vshrl.u32 %v649_v18, 16  ;;  %v723_v35 = vshll.u32 %v649_v18, 16  ;;  %11429 = vmatpush3.bf16.msra.mxu0 %v11765_v2  ;;  %v1054_v39 = vsel %vm1045_vm8, %v1052_v23, %v1053_v29  ;;  %v1133_v48 = vld [vmem:[#allocation2 + $0x38] sm:$0x1f]  ;;  %v11770_v54 = vld [vmem:[#allocation10 + $0x48] sm:$0xff]   ;;  %v11771_v21 = vld [vmem:[#allocation10 + $0xa0] sm:$0xff]  }
  0x9a   : > { %v709_v38 = vor.u32 %v708_v26, %v705_v22  ;;  %v714_v40 = vrot.slane %v712_v30, 3  ;;  %v1194_v41 = vshrl.u32 %v1130_v24, 16  ;;  %11430 = vmatprep.subr.bf16.mxu0 %v11766_v19  ;;  %v717_v44 = vrot.slane %v715_v33, 4  ;;  %10699 = vmatpush3.bf16.msra.mxu1 %v11769_v37  ;;  %v988_v59 = vld [vmem:[#allocation2 + $0x38] sm:$0xf]  ;;  %s12013_s8 = scalar_lea.vmem %s12012_s26, 8192 }
  0x9b   : > { %v722_v45 = vrot.slane %v720_v34, 3  ;;  %v725_v46 = vrot.slane %v723_v35, 4  ;;  %v1197_v47 = vshll.u32 %v1130_v24, 16  ;;  %vm418_vm1 = vcmp.ge.f32.partialorder %v12328_v4, 0.0  ;;  %v650_v60 = vld [vmem:[#allocation2 + $0x30] sm:$0xf8]  ;;  %10700 = vmatprep.subr.bf16.mxu1 %v11770_v54 }
  0x9c   : > { %v710_v49 = vsel %vm676_vm15, %v701_v32, %v709_v38  ;;  %v1196_v50 = vrot.slane %v1194_v41, 4  ;;  %v1202_v51 = vshrl.u32 %v1131_v36, 16  ;;  %v1205_v52 = vshll.u32 %v1131_v36, 16  ;;  %v12355_v61 = vld [vmem:[%s12298_s6 + $0x78] sm:$0xff]  ;;  %v989_v8 = vld [vmem:[#allocation2 + $0x40] sm:$0xf0] }
  0x9d   : > { %1701 = vmatmul.mubr.bf16.gmra.mrb[4].mxu0 %v710_v49  ;;  %v718_v55 = vor.u32 %v717_v44, %v714_v40  ;;  %v726_v56 = vor.u32 %v725_v46, %v722_v45  ;;  %v1199_v57 = vrot.slane %v1197_v47, 5  ;;  %v1211_v58 = vshrl.u32 %v1132_v42, 16  ;;  %v651_v2 = vld [vmem:[#allocation2 + $0x38] sm:$0xf]  ;;  %v990_v9 = vld [vmem:[#allocation2 + $0x48] sm:$0xf] }
  0x9e   : > { %1708 = vmatprep.mubr.bf16.mxu0 %v1054_v39  ;;  %v1204_v62 = vrot.slane %v1202_v51, 4  ;;  %v1207_v63 = vrot.slane %v1205_v52, 5  ;;  %v1214_v0 = vshll.u32 %v1132_v42, 16  ;;  %v1219_v1 = vshrl.u32 %v1133_v48, 16  ;;  %11431 = vmatpush3.bf16.msra.mxu0 %v11766_v19  ;;  %v652_v20 = vld [vmem:[#allocation2 + $0x40] sm:$0xf8] }
  0x9f   : > { %v727_v3 = vsel %vm676_vm15, %v718_v55, %v726_v56  ;;  %v1200_v5 = vor.u32 %v1199_v57, %v1196_v50  ;;  %v1213_v6 = vrot.slane %v1211_v58, 4  ;;  %v1222_v7 = vshll.u32 %v1133_v48, 16  ;;  %11432 = vmatprep.subr.bf16.mxu0 %v11767_v43  ;;  %v653_v19 = vld [vmem:[#allocation2 + $0x48] sm:$0xf]  ;;  %v1134_v32 = vld [vmem:[#allocation2 + $0x40] sm:$0xf0] }
  0xa0   : > { %v1208_v13 = vor.u32 %v1207_v63, %v1204_v62  ;;  %v1216_v14 = vrot.slane %v1214_v0, 5  ;;  %v1221_v15 = vrot.slane %v1219_v1, 4  ;;  %v1055_v18 = vrot.slane %v987_v53, 4  ;;  %v1135_v37 = vld [vmem:[#allocation2 + $0x48] sm:$0x1f]  ;;  %v324_v50 = vld [vmem:[%s12298_s6 + $0x80] sm:$0xff] }
  0xa1   : > { %v1224_v22 = vrot.slane %v1222_v7, 5  ;;  %v1056_v23 = vrot.slane %v988_v59, 4  ;;  %v729_v24 = vshrl.u32 %v650_v60, 16  ;;  %v732_v25 = vshll.u32 %v650_v60, 16  ;;  %v325_v55 = vld [vmem:[%s12298_s6 + $0x88] sm:$0xff]  ;;  %v326_v60 = vld [vmem:[%s12298_s6 + $0x90] sm:$0xff] }
  0xa2   : > { %v1209_v26 = vsel %vm1158_vm0, %v1200_v5, %v1208_v13  ;;  %v1217_v29 = vor.u32 %v1216_v14, %v1213_v6  ;;  %v737_v30 = vshrl.u32 %v651_v2, 16  ;;  %v740_v31 = vshll.u32 %v651_v2, 16  ;;  %11433 = vmatpush3.bf16.msra.mxu0 %v11767_v43  ;;  %v327_v62 = vld [vmem:[%s12298_s6 + $0x98] sm:$0xff]  ;;  %v11772_v63 = vld [vmem:[#allocation10 + $0x8] sm:$0xff]   ;;  %v11773_v2 = vld [vmem:[#allocation10 + $0x50] sm:$0xff]  }
  0xa3   : > { %vm419_vm2 = vcmp.ge.f32.partialorder %v12355_v61, 0.0  ;;  %11398 = vmatprep.mubr.bf16.mxu1 %v1209_v26  ;;  %v1225_v33 = vor.u32 %v1224_v22, %v1221_v15  ;;  %v1057_v34 = vsel %vm1045_vm8, %v1055_v18, %v1056_v23  ;;  %v731_v35 = vrot.slane %v729_v24, 3  ;;  %11434 = vmatprep.subr.bf16.mxu0 %v11771_v21  ;;  %v329_v18 = vld [vmem:[%s12298_s6 + $0xa8] sm:$0xff] }
  0xa4   : > { %v734_v36 = vrot.slane %v732_v25, 4  ;;  %v739_v38 = vrot.slane %v737_v30, 3  ;;  %v742_v39 = vrot.slane %v740_v31, 4  ;;  %v1058_v40 = vrot.slane %v989_v8, 4  ;;  %v328_v8 = vld [vmem:[%s12298_s6 + $0xa0] sm:$0xff]  ;;  %10701 = vmatpush3.bf16.msra.mxu1 %v11772_v63 }
  0xa5   : > { %v1059_v41 = vrot.slane %v990_v9, 4  ;;  %1709 = vmatmul.mubr.bf16.gmra.mrb[8].mxu0 %v727_v3  ;;  %v1226_v42 = vsel %vm1158_vm0, %v1217_v29, %v1225_v33  ;;  %v746_v45 = vshrl.u32 %v652_v20, 16  ;;  %v749_v43 = vshll.u32 %v652_v20, 16  ;;  %v11774_v9 = vld [vmem:[#allocation10 + $0x10] sm:$0xff]   ;;  %10702 = vmatprep.subr.bf16.mxu1 %v11773_v2  ;;  %v11776_v29 = vld [vmem:[#allocation10 + $0xa8] sm:$0xff]  }
  0xa6   : > { %v735_v44 = vor.u32 %v734_v36, %v731_v35  ;;  %11399 = vmatmul.mubr.bf16.gmra.mrb[4].mxu1 %v1226_v42  ;;  %1716 = vmatprep.mubr.bf16.mxu0 %v1057_v34  ;;  %v743_v46 = vor.u32 %v742_v39, %v739_v38  ;;  %v754_v47 = vshrl.u32 %v653_v19, 16  ;;  %v757_v48 = vshll.u32 %v653_v19, 16  ;;  %v11777_v38 = vld [vmem:[#allocation10 + $0x18] sm:$0xff]  }
  0xa7   : > { %v482_v49 = vsel %vm418_vm1, %v12328_v4, %v12336_v12  ;;  %v748_v51 = vrot.slane %v746_v45, 3  ;;  %v751_v52 = vrot.slane %v749_v43, 4  ;;  %v1228_v53 = vshrl.u32 %v1134_v32, 16  ;;  %11435 = vmatpush3.bf16.msra.mxu0 %v11771_v21 }
  0xa8   : > { %v1231_v54 = vshll.u32 %v1134_v32, 16  ;;  %v1060_v56 = vsel %vm1045_vm8, %v1058_v40, %v1059_v41  ;;  %v756_v57 = vrot.slane %v754_v47, 3  ;;  %v759_v58 = vrot.slane %v757_v48, 4  ;;  %10703 = vmatpush3.bf16.msra.mxu1 %v11774_v9  ;;  %11436 = vmatprep.subr.bf16.mxu0 %v11776_v29 }
  0xa9   : > { %v1236_v59 = vshrl.u32 %v1135_v37, 16  ;;  %v744_v0 = vsel %vm676_vm15, %v735_v44, %v743_v46  ;;  %v1230_v4 = vrot.slane %v1228_v53, 4  ;;  %v1239_v1 = vshll.u32 %v1135_v37, 16 }
  0xaa   : > { %v1233_v12 = vrot.slane %v1231_v54, 5  ;;  %v752_v3 = vor.u32 %v751_v52, %v748_v51  ;;  %v537_v6 = vrot.slane %v505_v27, 4  ;;  %v538_v7 = vrot.slane %v506_v28, 4  ;;  %v11775_v27 = vld [vmem:[#allocation10 + $0x58] sm:$0xff]   ;;  %v12385_v28 = vld [vmem:[%s12298_s6 + $0xb0] sm:$0xff] }
  0xab   : > { %v1238_v5 = vrot.slane %v1236_v59, 4  ;;  %v1241_v14 = vrot.slane %v1239_v1, 5  ;;  %v451_v15 = vmul.f32 0.1, %v12355_v61  ;;  %vm420_vm3 = vcmp.ge.f32.partialorder %v324_v50, 0.0  ;;  %10704 = vmatprep.subr.bf16.mxu1 %v11775_v27  ;;  %11437 = vmatpush3.bf16.msra.mxu0 %v11776_v29 }
  0xac   : > { %v1234_v13 = vor.u32 %v1233_v12, %v1230_v4  ;;  %v760_v20 = vor.u32 %v759_v58, %v756_v57  ;;  %574 = vst [vmem:[#allocation2 + $0x58] ss:$-4 sps:$4 sm:$0xff] %v537_v6   ;;  %576 = vst [vmem:[#allocation2 + $0x68] ss:$-4 sps:$4 sm:$0xff] %v538_v7   ;;  %vm421_vm4 = vcmp.ge.f32.partialorder %v325_v55, 0.0  ;;  %vm422_vm5 = vcmp.ge.f32.partialorder %v326_v60, 0.0  ;;  %10705 = vmatpush3.bf16.msra.mxu1 %v11777_v38 }
  0xad   : > { %v452_v10 = vmul.f32 0.1, %v324_v50  ;;  %v453_v11 = vmul.f32 0.1, %v325_v55  ;;  %1717 = vmatmul.mubr.bf16.gmra.mrb[12].mxu0 %v744_v0  ;;  %v1242_v16 = vor.u32 %v1241_v14, %v1238_v5  ;;  %v483_v17 = vsel %vm419_vm2, %v12355_v61, %v451_v15  ;;  %v11778_v4 = vld [vmem:[#allocation10 + $0x60] sm:$0xff]  }
  0xae   : > { %vm423_vm6 = vcmp.ge.f32.partialorder %v327_v62, 0.0  ;;  %1724 = vmatprep.mubr.bf16.mxu0 %v1060_v56  ;;  %v507_v21 = vpack.c.bf16 %v483_v17, %v482_v49  ;;  %v454_v24 = vmul.f32 0.1, %v326_v60  ;;  %v455_v26 = vmul.f32 0.1, %v327_v62  ;;  %10706 = vmatprep.subr.bf16.mxu1 %v11778_v4 }
  0xaf   : > { %v484_v22 = vsel %vm420_vm3, %v324_v50, %v452_v10  ;;  %v485_v23 = vsel %vm421_vm4, %v325_v55, %v453_v11  ;;  %v1243_v25 = vsel %vm1158_vm0, %v1234_v13, %v1242_v16  ;;  %vm424_vm7 = vcmp.ge.f32.partialorder %v328_v8, 0.0 }
  0xb0   : > { %v508_v19 = vpack.c.bf16 %v485_v23, %v484_v22  ;;  %11402 = vmatprep.mubr.bf16.mxu1 %v1243_v25  ;;  %v539_v61 = vrot.slane %v507_v21, 4  ;;  %vm425_vm9 = vcmp.ge.f32.partialorder %v329_v18, 0.0  ;;  %v456_v30 = vmul.f32 0.1, %v328_v8 }
  0xb1   : > { %v761_v31 = vsel %vm676_vm15, %v752_v3, %v760_v20  ;;  %v457_v33 = vmul.f32 0.1, %v329_v18  ;;  %v12391_v34 = vsel %vm422_vm5, %v326_v60, %v454_v24  ;;  %v12394_v35 = vsel %vm423_vm6, %v327_v62, %v455_v26 }
  0xb2   : > { %v540_v32 = vrot.slane %v508_v19, 4  ;;  %578 = vst [vmem:[#allocation2 + $0x78] ss:$-4 sps:$4 sm:$0xff] %v539_v61   ;;  %v12396_v36 = vsel %vm424_vm7, %v328_v8, %v456_v30  ;;  %v12399_v37 = vmul.f32 0.1, %v12385_v28  ;;  %v509_v52 = vpack.c.bf16 %v12394_v35, %v12391_v34 }
  0xb3   : > { %v1136_v39 = vld [vmem:[#allocation2 + $0x50] sm:$0xf0]  ;;  %v1137_v40 = vld [vmem:[#allocation2 + $0x58] sm:$0x1f]  ;;  %v12402_v42 = vsel %vm425_vm9, %v329_v18, %v457_v33  ;;  %v993_v58 = vld [vmem:[#allocation2 + $0x60] sm:$0xf0] }
  0xb4   : > { %v991_v41 = vld [vmem:[#allocation2 + $0x50] sm:$0xf0]  ;;  %580 = vst [vmem:[#allocation2 + $0x88] ss:$-4 sps:$4 sm:$0xff] %v540_v32   ;;  %v1245_v44 = vshrl.u32 %v1136_v39, 16  ;;  %v1248_v45 = vshll.u32 %v1136_v39, 16  ;;  %v510_v53 = vpack.c.bf16 %v12402_v42, %v12396_v36 }
  0xb5   : > { %v1253_v43 = vshrl.u32 %v1137_v40, 16  ;;  %v1256_v46 = vshll.u32 %v1137_v40, 16  ;;  %v992_v47 = vld [vmem:[#allocation2 + $0x58] sm:$0xf]  ;;  %1725 = vmatmul.mubr.bf16.gmra.mrb[16].mxu0 %v761_v31  ;;  %v1061_v48 = vrot.slane %v991_v41, 4  ;;  %v1064_v3 = vrot.slane %v993_v58, 4 }
  0xb6   : > { %v1062_v49 = vrot.slane %v992_v47, 4  ;;  %v654_v50 = vld [vmem:[#allocation2 + $0x50] sm:$0xf8]  ;;  %v655_v51 = vld [vmem:[#allocation2 + $0x58] sm:$0xf]  ;;  %v1247_v54 = vrot.slane %v1245_v44, 4 }
  0xb7   : > { %v1250_v55 = vrot.slane %v1248_v45, 5  ;;  %v1255_v56 = vrot.slane %v1253_v43, 4  ;;  %v1258_v57 = vrot.slane %v1256_v46, 5  ;;  %v763_v60 = vshrl.u32 %v654_v50, 16  ;;  %v994_v0 = vld [vmem:[#allocation2 + $0x68] sm:$0xf] }
  0xb8   : > { %v1063_v59 = vsel %vm1045_vm8, %v1061_v48, %v1062_v49  ;;  %v766_v62 = vshll.u32 %v654_v50, 16  ;;  %v771_v63 = vshrl.u32 %v655_v51, 16  ;;  %v774_v2 = vshll.u32 %v655_v51, 16  ;;  %v656_v5 = vld [vmem:[#allocation2 + $0x60] sm:$0xf8]  ;;  %v12414_v48 = vld [vmem:[%s12298_s6 + $0xb8] sm:$0xff] }
  0xb9   : > { %v1251_v12 = vor.u32 %v1250_v55, %v1247_v54  ;;  %v1259_v1 = vor.u32 %v1258_v57, %v1255_v56  ;;  %1732 = vmatprep.mubr.bf16.mxu0 %v1063_v59  ;;  %v657_v6 = vld [vmem:[#allocation2 + $0x68] sm:$0xf]  ;;  %v765_v7 = vrot.slane %v763_v60, 3  ;;  %v1065_v13 = vrot.slane %v994_v0, 4  ;;  %v1138_v14 = vld [vmem:[#allocation2 + $0x60] sm:$0xf0] }
  0xba   : > { %v768_v8 = vrot.slane %v766_v62, 4  ;;  %v773_v9 = vrot.slane %v771_v63, 3  ;;  %v776_v18 = vrot.slane %v774_v2, 4  ;;  %v780_v20 = vshrl.u32 %v656_v5, 16  ;;  %v1139_v11 = vld [vmem:[#allocation2 + $0x68] sm:$0x1f] }
  0xbb   : > { %v1260_v15 = vsel %vm1158_vm0, %v1251_v12, %v1259_v1  ;;  %v783_v10 = vshll.u32 %v656_v5, 16  ;;  %v1066_v16 = vsel %vm1045_vm8, %v1064_v3, %v1065_v13  ;;  %v788_v17 = vshrl.u32 %v657_v6, 16  ;;  %v1140_v19 = vld [vmem:[#allocation2 + $0x70] sm:$0xf0]  ;;  %v1141_v31 = vld [vmem:[#allocation2 + $0x78] sm:$0x1f] }
  0xbc   : > { %11403 = vmatmul.mubr.bf16.gmra.mrb[8].mxu1 %v1260_v15  ;;  %v769_v27 = vor.u32 %v768_v8, %v765_v7  ;;  %v791_v21 = vshll.u32 %v657_v6, 16  ;;  %v777_v22 = vor.u32 %v776_v18, %v773_v9  ;;  %v782_v23 = vrot.slane %v780_v20, 3  ;;  %v995_v40 = vld [vmem:[#allocation2 + $0x70] sm:$0xf0]  ;;  %v996_v41 = vld [vmem:[#allocation2 + $0x78] sm:$0xf] }
  0xbd   : > { %v785_v24 = vrot.slane %v783_v10, 4  ;;  %v1262_v25 = vshrl.u32 %v1138_v14, 16  ;;  %v790_v26 = vrot.slane %v788_v17, 3  ;;  %v1265_v61 = vshll.u32 %v1138_v14, 16  ;;  %v658_v47 = vld [vmem:[#allocation2 + $0x70] sm:$0xf8] }
  0xbe   : > { %v793_v29 = vrot.slane %v791_v21, 4  ;;  %v1270_v30 = vshrl.u32 %v1139_v11, 16  ;;  %vm426_vm10 = vcmp.ge.f32.partialorder %v12385_v28, 0.0  ;;  %v778_v32 = vsel %vm676_vm15, %v769_v27, %v777_v22  ;;  %v659_v55 = vld [vmem:[#allocation2 + $0x78] sm:$0xf] }
  0xbf   : > { %v786_v33 = vor.u32 %v785_v24, %v782_v23  ;;  %v1264_v38 = vrot.slane %v1262_v25, 4  ;;  %v1273_v39 = vshll.u32 %v1139_v11, 16  ;;  %1733 = vmatmul.mubr.bf16.gmra.mrb[20].mxu0 %v778_v32  ;;  %v1267_v45 = vrot.slane %v1265_v61, 5  ;;  %v997_v60 = vld [vmem:[#allocation2 + $0x80] sm:$0xf0] }
  0xc0   : > { %v794_v44 = vor.u32 %v793_v29, %v790_v26  ;;  %v1272_v43 = vrot.slane %v1270_v30, 4  ;;  %v1279_v46 = vshrl.u32 %v1140_v19, 16  ;;  %1740 = vmatprep.mubr.bf16.mxu0 %v1066_v16  ;;  %v1282_v50 = vshll.u32 %v1140_v19, 16  ;;  %v998_v62 = vld [vmem:[#allocation2 + $0x88] sm:$0xf] }
  0xc1   : > { %v1275_v49 = vrot.slane %v1273_v39, 5  ;;  %v1287_v51 = vshrl.u32 %v1141_v31, 16  ;;  %v1290_v54 = vshll.u32 %v1141_v31, 16  ;;  %v1268_v57 = vor.u32 %v1267_v45, %v1264_v38  ;;  %v660_v1 = vld [vmem:[#allocation2 + $0x80] sm:$0xf8] }
  0xc2   : > { %v795_v56 = vsel %vm676_vm15, %v786_v33, %v794_v44  ;;  %v1281_v58 = vrot.slane %v1279_v46, 4  ;;  %v1067_v59 = vrot.slane %v995_v40, 4  ;;  %v1284_v0 = vrot.slane %v1282_v50, 5  ;;  %v661_v2 = vld [vmem:[#allocation2 + $0x88] sm:$0xf]  ;;  %v332_v31 = vld [vmem:[%s12298_s6 + $0xc0] sm:$0xff] }
  0xc3   : > { %v1276_v63 = vor.u32 %v1275_v49, %v1272_v43  ;;  %v1289_v4 = vrot.slane %v1287_v51, 4  ;;  %v1292_v12 = vrot.slane %v1290_v54, 5  ;;  %v1068_v3 = vrot.slane %v996_v41, 4  ;;  %v1142_v8 = vld [vmem:[#allocation2 + $0x80] sm:$0xf0]  ;;  %v333_v40 = vld [vmem:[%s12298_s6 + $0xc8] sm:$0xff] }
  0xc4   : > { %v797_v5 = vshrl.u32 %v658_v47, 16  ;;  %v800_v6 = vshll.u32 %v658_v47, 16  ;;  %v805_v7 = vshrl.u32 %v659_v55, 16  ;;  %vm427_vm11 = vcmp.ge.f32.partialorder %v12414_v48, 0.0  ;;  %v1143_v27 = vld [vmem:[#allocation2 + $0x88] sm:$0x1f] }
  0xc5   : > { %v1277_v9 = vsel %vm1158_vm0, %v1268_v57, %v1276_v63  ;;  %v1285_v13 = vor.u32 %v1284_v0, %v1281_v58  ;;  %v1293_v14 = vor.u32 %v1292_v12, %v1289_v4  ;;  %v808_v15 = vshll.u32 %v659_v55, 16  ;;  %v334_v46 = vld [vmem:[%s12298_s6 + $0xd0] sm:$0xff] }
  0xc6   : > { %11406 = vmatprep.mubr.bf16.mxu1 %v1277_v9  ;;  %v1069_v18 = vsel %vm1045_vm8, %v1067_v59, %v1068_v3  ;;  %v799_v20 = vrot.slane %v797_v5, 3  ;;  %v802_v10 = vrot.slane %v800_v6, 4  ;;  %v807_v11 = vrot.slane %v805_v7, 3  ;;  %v12439_v59 = vld [vmem:[%s12298_s6 + $0xe0] sm:$0xff] }
  0xc7   : > { %v1294_v16 = vsel %vm1158_vm0, %v1285_v13, %v1293_v14  ;;  %v810_v17 = vrot.slane %v808_v15, 4  ;;  %v1070_v21 = vrot.slane %v997_v60, 4  ;;  %v1071_v22 = vrot.slane %v998_v62, 4  ;;  %1741 = vmatmul.mubr.bf16.gmra.mrb[24].mxu0 %v795_v56  ;;  %v12445_v62 = vld [vmem:[%s12298_s6 + $0xe8] sm:$0xff] }
  0xc8   : > { %11407 = vmatmul.mubr.bf16.gmra.mrb[12].mxu1 %v1294_v16  ;;  %v803_v23 = vor.u32 %v802_v10, %v799_v20  ;;  %v814_v24 = vshrl.u32 %v660_v1, 16  ;;  %v817_v25 = vshll.u32 %v660_v1, 16  ;;  %v822_v19 = vshrl.u32 %v661_v2, 16  ;;  %1748 = vmatprep.mubr.bf16.mxu0 %v1069_v18 }
  0xc9   : > { %v811_v26 = vor.u32 %v810_v17, %v807_v11  ;;  %v825_v29 = vshll.u32 %v661_v2, 16  ;;  %v1296_v61 = vshrl.u32 %v1142_v8, 16  ;;  %v490_v30 = vsel %vm426_vm10, %v12385_v28, %v12399_v37  ;;  %v335_v37 = vld [vmem:[%s12298_s6 + $0xd8] sm:$0xff] }
  0xca   : > { %v1072_v32 = vsel %vm1045_vm8, %v1070_v21, %v1071_v22  ;;  %v816_v33 = vrot.slane %v814_v24, 3  ;;  %v819_v38 = vrot.slane %v817_v25, 4  ;;  %v1299_v39 = vshll.u32 %v1142_v8, 16 }
  0xcb   : > { %v824_v41 = vrot.slane %v822_v19, 3  ;;  %v827_v44 = vrot.slane %v825_v29, 4  ;;  %v1298_v45 = vrot.slane %v1296_v61, 4  ;;  %v1304_v43 = vshrl.u32 %v1143_v27, 16 }
  0xcc   : > { %v812_v47 = vsel %vm676_vm15, %v803_v23, %v811_v26  ;;  %v1301_v49 = vrot.slane %v1299_v39, 5  ;;  %v1307_v50 = vshll.u32 %v1143_v27, 16  ;;  %v541_v28 = vrot.slane %v509_v52, 4 }
  0xcd   : > { %v820_v51 = vor.u32 %v819_v38, %v816_v33  ;;  %v1306_v54 = vrot.slane %v1304_v43, 4  ;;  %v542_v55 = vrot.slane %v510_v53, 4  ;;  %v459_v56 = vmul.f32 0.1, %v12414_v48 }
  0xce   : > { %v1302_v57 = vor.u32 %v1301_v49, %v1298_v45  ;;  %v1309_v58 = vrot.slane %v1307_v50, 5  ;;  %582 = vst [vmem:[#allocation2 + $0x98] ss:$-4 sps:$4 sm:$0xff] %v541_v28   ;;  %vm428_vm12 = vcmp.ge.f32.partialorder %v332_v31, 0.0  ;;  %vm429_vm13 = vcmp.ge.f32.partialorder %v333_v40, 0.0 }
  0xcf   : > { %v828_v60 = vor.u32 %v827_v44, %v824_v41  ;;  %584 = vst [vmem:[#allocation2 + $0xa8] ss:$-4 sps:$4 sm:$0xff] %v542_v55   ;;  %v491_v34 = vsel %vm427_vm11, %v12414_v48, %v459_v56  ;;  %v460_v35 = vmul.f32 0.1, %v332_v31  ;;  %v461_v52 = vmul.f32 0.1, %v333_v40  ;;  %1749 = vmatmul.mubr.bf16.gmra.mrb[28].mxu0 %v812_v47 }
  0xd0   : > { %v1310_v36 = vor.u32 %v1309_v58, %v1306_v54  ;;  %v511_v42 = vpack.c.bf16 %v491_v34, %v490_v30  ;;  %vm430_vm14 = vcmp.ge.f32.partialorder %v334_v46, 0.0  ;;  %vm431_vm1 = vcmp.ge.f32.partialorder %v335_v37, 0.0  ;;  %1756 = vmatprep.mubr.bf16.mxu0 %v1072_v32 }
  0xd1   : > { %v492_v53 = vsel %vm428_vm12, %v332_v31, %v460_v35  ;;  %v493_v63 = vsel %vm429_vm13, %v333_v40, %v461_v52  ;;  %v462_v0 = vmul.f32 0.1, %v334_v46  ;;  %v463_v4 = vmul.f32 0.1, %v335_v37 }
  0xd2   : > { %v1311_v12 = vsel %vm1158_vm0, %v1302_v57, %v1310_v36  ;;  %v543_v1 = vrot.slane %v511_v42, 4  ;;  %v512_v2 = vpack.c.bf16 %v493_v63, %v492_v53  ;;  %v12449_v48 = vmul.f32 0.1, %v12439_v59 }
  0xd3   : > { %11410 = vmatprep.mubr.bf16.mxu1 %v1311_v12  ;;  %v12451_v5 = vsel %vm430_vm14, %v334_v46, %v462_v0  ;;  %v12453_v6 = vsel %vm431_vm1, %v335_v37, %v463_v4  ;;  %v12456_v7 = vmul.f32 0.1, %v12445_v62  ;;  %v829_v8 = vsel %vm676_vm15, %v820_v51, %v828_v60 }
  0xd4   : > { %586 = vst [vmem:[#allocation2 + $0xb8] ss:$-4 sps:$4 sm:$0xff] %v543_v1   ;;  %v544_v3 = vrot.slane %v512_v2, 4  ;;  %v513_v22 = vpack.c.bf16 %v12453_v6, %v12451_v5  ;;  %vm432_vm2 = vcmp.ge.f32.partialorder %v12439_v59, 0.0  ;;  %vm433_vm3 = vcmp.ge.f32.partialorder %v12445_v62, 0.0 }
  0xd5   : > { %v1144_v9 = vld [vmem:[#allocation2 + $0x90] sm:$0xf0]  ;;  %v1145_v13 = vld [vmem:[#allocation2 + $0x98] sm:$0x1f] }
  0xd6   : > { %v999_v14 = vld [vmem:[#allocation2 + $0x90] sm:$0xf0]  ;;  %v1313_v15 = vshrl.u32 %v1144_v9, 16  ;;  %v1316_v18 = vshll.u32 %v1144_v9, 16  ;;  %v1321_v20 = vshrl.u32 %v1145_v13, 16  ;;  %v1324_v10 = vshll.u32 %v1145_v13, 16 }
  0xd7   : > { %v1000_v11 = vld [vmem:[#allocation2 + $0x98] sm:$0xf]  ;;  %588 = vst [vmem:[#allocation2 + $0xc8] ss:$-4 sps:$4 sm:$0xff] %v544_v3   ;;  %v1073_v27 = vrot.slane %v999_v14, 4  ;;  %1757 = vmatmul.mubr.bf16.gmra.mrb[32].mxu0 %v829_v8 }
  0xd8   : > { %v1074_v16 = vrot.slane %v1000_v11, 4  ;;  %v662_v17 = vld [vmem:[#allocation2 + $0x90] sm:$0xf8]  ;;  %v663_v21 = vld [vmem:[#allocation2 + $0x98] sm:$0xf]  ;;  %v1315_v23 = vrot.slane %v1313_v15, 4 }
  0xd9   : > { %v1318_v24 = vrot.slane %v1316_v18, 5  ;;  %v1323_v25 = vrot.slane %v1321_v20, 4  ;;  %v1326_v19 = vrot.slane %v1324_v10, 5  ;;  %v1001_v26 = vld [vmem:[#allocation2 + $0xa0] sm:$0xf0]  ;;  %v831_v61 = vshrl.u32 %v662_v17, 16 }
  0xda   : > { %v1075_v29 = vsel %vm1045_vm8, %v1073_v27, %v1074_v16  ;;  %v834_v30 = vshll.u32 %v662_v17, 16  ;;  %v839_v31 = vshrl.u32 %v663_v21, 16  ;;  %v1002_v32 = vld [vmem:[#allocation2 + $0xa8] sm:$0xf]  ;;  %v842_v39 = vshll.u32 %v663_v21, 16  ;;  %v12468_v10 = vld [vmem:[%s12298_s6 + $0xf0] sm:$0xff] }
  0xdb   : > { %v1319_v33 = vor.u32 %v1318_v24, %v1315_v23  ;;  %v1327_v38 = vor.u32 %v1326_v19, %v1323_v25  ;;  %1764 = vmatprep.mubr.bf16.mxu0 %v1075_v29  ;;  %v1076_v40 = vrot.slane %v1001_v26, 4  ;;  %v664_v41 = vld [vmem:[#allocation2 + $0xa0] sm:$0xf8]  ;;  %v665_v44 = vld [vmem:[#allocation2 + $0xa8] sm:$0xf]  ;;  %v833_v45 = vrot.slane %v831_v61, 3 }
  0xdc   : > { %v836_v43 = vrot.slane %v834_v30, 4  ;;  %v841_v46 = vrot.slane %v839_v31, 3  ;;  %v1077_v47 = vrot.slane %v1002_v32, 4  ;;  %v1146_v49 = vld [vmem:[#allocation2 + $0xa0] sm:$0xf0]  ;;  %v844_v28 = vrot.slane %v842_v39, 4 }
  0xdd   : > { %v1328_v50 = vsel %vm1158_vm0, %v1319_v33, %v1327_v38  ;;  %v848_v37 = vshrl.u32 %v664_v41, 16  ;;  %v851_v51 = vshll.u32 %v664_v41, 16  ;;  %v1147_v54 = vld [vmem:[#allocation2 + $0xa8] sm:$0x1f]  ;;  %v856_v57 = vshrl.u32 %v665_v44, 16 }
  0xde   : > { %11411 = vmatmul.mubr.bf16.gmra.mrb[16].mxu1 %v1328_v50  ;;  %v837_v55 = vor.u32 %v836_v43, %v833_v45  ;;  %v1078_v56 = vsel %vm1045_vm8, %v1076_v40, %v1077_v47  ;;  %v859_v58 = vshll.u32 %v665_v44, 16  ;;  %v845_v60 = vor.u32 %v844_v28, %v841_v46  ;;  %v1148_v36 = vld [vmem:[#allocation2 + $0xb0] sm:$0xf0]  ;;  %v1149_v4 = vld [vmem:[#allocation2 + $0xb8] sm:$0x1f] }
  0xdf   : > { %v850_v34 = vrot.slane %v848_v37, 3  ;;  %v853_v35 = vrot.slane %v851_v51, 4  ;;  %v1330_v52 = vshrl.u32 %v1146_v49, 16  ;;  %v858_v42 = vrot.slane %v856_v57, 3  ;;  %v1003_v8 = vld [vmem:[#allocation2 + $0xb0] sm:$0xf0] }
  0xe0   : > { %v861_v53 = vrot.slane %v859_v58, 4  ;;  %v1333_v63 = vshll.u32 %v1146_v49, 16  ;;  %v1338_v0 = vshrl.u32 %v1147_v54, 16  ;;  %v846_v12 = vsel %vm676_vm15, %v837_v55, %v845_v60  ;;  %v1004_v9 = vld [vmem:[#allocation2 + $0xb8] sm:$0xf]  ;;  %v11779_v60 = vld [vmem:[#allocation10 + $0x20] sm:$0xff]  }
  0xe1   : > { %v854_v1 = vor.u32 %v853_v35, %v850_v34  ;;  %v1332_v2 = vrot.slane %v1330_v52, 4  ;;  %v1341_v3 = vshll.u32 %v1147_v54, 16  ;;  %1765 = vmatmul.mubr.bf16.gmra.mrb[36].mxu0 %v846_v12  ;;  %v1347_v18 = vshrl.u32 %v1148_v36, 16  ;;  %v666_v20 = vld [vmem:[#allocation2 + $0xb0] sm:$0xf8]  ;;  %10707 = vmatpush3.bf16.msra.mxu1 %v11779_v60 }
  0xe2   : > { %v862_v13 = vor.u32 %v861_v53, %v858_v42  ;;  %v1335_v14 = vrot.slane %v1333_v63, 5  ;;  %v1340_v15 = vrot.slane %v1338_v0, 4  ;;  %1772 = vmatprep.mubr.bf16.mxu0 %v1078_v56  ;;  %v1350_v27 = vshll.u32 %v1148_v36, 16  ;;  %v667_v21 = vld [vmem:[#allocation2 + $0xb8] sm:$0xf] }
  0xe3   : > { %v1343_v11 = vrot.slane %v1341_v3, 5  ;;  %v1355_v16 = vshrl.u32 %v1149_v4, 16  ;;  %v1358_v17 = vshll.u32 %v1149_v4, 16  ;;  %v1349_v25 = vrot.slane %v1347_v18, 4  ;;  %v1005_v26 = vld [vmem:[#allocation2 + $0xc0] sm:$0xf0] }
  0xe4   : > { %v863_v23 = vsel %vm676_vm15, %v854_v1, %v862_v13  ;;  %v1336_v24 = vor.u32 %v1335_v14, %v1332_v2  ;;  %v1079_v19 = vrot.slane %v1003_v8, 4  ;;  %v1006_v29 = vld [vmem:[#allocation2 + $0xc8] sm:$0xf]  ;;  %v1352_v30 = vrot.slane %v1350_v27, 5  ;;  %v668_v33 = vld [vmem:[#allocation2 + $0xc0] sm:$0xf8] }
  0xe5   : > { %v1344_v61 = vor.u32 %v1343_v11, %v1340_v15  ;;  %v1357_v31 = vrot.slane %v1355_v16, 4  ;;  %v1360_v32 = vrot.slane %v1358_v17, 5  ;;  %v669_v38 = vld [vmem:[#allocation2 + $0xc8] sm:$0xf]  ;;  %v1080_v39 = vrot.slane %v1004_v9, 4  ;;  %v339_v3 = vld [vmem:[%s12298_s6 + $0xf8] sm:$0xff] }
  0xe6   : > { %v865_v40 = vshrl.u32 %v666_v20, 16  ;;  %v868_v41 = vshll.u32 %v666_v20, 16  ;;  %v873_v44 = vshrl.u32 %v667_v21, 16  ;;  %v1150_v45 = vld [vmem:[#allocation2 + $0xc0] sm:$0xf0]  ;;  %v1353_v46 = vor.u32 %v1352_v30, %v1349_v25 }
  0xe7   : > { %v1345_v43 = vsel %vm1158_vm0, %v1336_v24, %v1344_v61  ;;  %v1361_v47 = vor.u32 %v1360_v32, %v1357_v31  ;;  %v876_v49 = vshll.u32 %v667_v21, 16  ;;  %vm434_vm4 = vcmp.ge.f32.partialorder %v12468_v10, 0.0  ;;  %v1151_v54 = vld [vmem:[#allocation2 + $0xc8] sm:$0x1f] }
  0xe8   : > { %11414 = vmatprep.mubr.bf16.mxu1 %v1345_v43  ;;  %v1081_v50 = vsel %vm1045_vm8, %v1079_v19, %v1080_v39  ;;  %v867_v28 = vrot.slane %v865_v40, 3  ;;  %v870_v37 = vrot.slane %v868_v41, 4  ;;  %v875_v51 = vrot.slane %v873_v44, 3 }
  0xe9   : > { %v1362_v55 = vsel %vm1158_vm0, %v1353_v46, %v1361_v47  ;;  %v878_v56 = vrot.slane %v876_v49, 4  ;;  %v1082_v57 = vrot.slane %v1005_v26, 4  ;;  %v1083_v58 = vrot.slane %v1006_v29, 4  ;;  %1773 = vmatmul.mubr.bf16.gmra.mrb[40].mxu0 %v863_v23 }
  0xea   : > { %11415 = vmatmul.mubr.bf16.gmra.mrb[20].mxu1 %v1362_v55  ;;  %v882_v34 = vshrl.u32 %v668_v33, 16  ;;  %v885_v35 = vshll.u32 %v668_v33, 16  ;;  %v890_v52 = vshrl.u32 %v669_v38, 16  ;;  %v496_v36 = vsel %vm432_vm2, %v12439_v59, %v12449_v48  ;;  %1780 = vmatprep.mubr.bf16.mxu0 %v1081_v50 }
  0xeb   : > { %v871_v42 = vor.u32 %v870_v37, %v867_v28  ;;  %v879_v53 = vor.u32 %v878_v56, %v875_v51  ;;  %v893_v63 = vshll.u32 %v669_v38, 16  ;;  %v1364_v0 = vshrl.u32 %v1150_v45, 16  ;;  %v11780_v56 = vld [vmem:[#allocation10 + $0x68] sm:$0xff]  }
  0xec   : > { %v1084_v4 = vsel %vm1045_vm8, %v1082_v57, %v1083_v58  ;;  %v884_v12 = vrot.slane %v882_v34, 3  ;;  %v1367_v1 = vshll.u32 %v1150_v45, 16  ;;  %v497_v2 = vsel %vm433_vm3, %v12445_v62, %v12456_v7  ;;  %10708 = vmatprep.subr.bf16.mxu1 %v11780_v56 }
  0xed   : > { %v887_v8 = vrot.slane %v885_v35, 4  ;;  %v892_v9 = vrot.slane %v890_v52, 3  ;;  %v1366_v13 = vrot.slane %v1364_v0, 4  ;;  %v1372_v59 = vshrl.u32 %v1151_v54, 16 }
  0xee   : > { %v895_v48 = vrot.slane %v893_v63, 4  ;;  %v1369_v14 = vrot.slane %v1367_v1, 5  ;;  %v1375_v15 = vshll.u32 %v1151_v54, 16  ;;  %v545_v18 = vrot.slane %v513_v22, 4 }
  0xef   : > { %v880_v20 = vsel %vm676_vm15, %v871_v42, %v879_v53  ;;  %v1374_v11 = vrot.slane %v1372_v59, 4  ;;  %v514_v27 = vpack.c.bf16 %v497_v2, %v496_v36  ;;  %vm435_vm5 = vcmp.ge.f32.partialorder %v339_v3, 0.0 }
  0xf0   : > { %v1370_v16 = vor.u32 %v1369_v14, %v1366_v13  ;;  %v1377_v17 = vrot.slane %v1375_v15, 5  ;;  %590 = vst [vmem:[#allocation2 + $0xd8] ss:$-4 sps:$4 sm:$0xff] %v545_v18   ;;  %v466_v62 = vmul.f32 0.1, %v12468_v10  ;;  %v888_v6 = vor.u32 %v887_v8, %v884_v12  ;;  %v11781_v8 = vld [vmem:[#allocation10 + $0xb0] sm:$0xff]  }
  0xf1   : > { %v467_v7 = vmul.f32 0.1, %v339_v3  ;;  %v546_v21 = vrot.slane %v514_v27, 4  ;;  %1781 = vmatmul.mubr.bf16.gmra.mrb[44].mxu0 %v880_v20  ;;  %v896_v22 = vor.u32 %v895_v48, %v892_v9  ;;  %11438 = vmatprep.subr.bf16.mxu0 %v11781_v8 }
  0xf2   : > { %v1378_v23 = vor.u32 %v1377_v17, %v1374_v11  ;;  %v498_v24 = vsel %vm434_vm4, %v12468_v10, %v466_v62  ;;  %1788 = vmatprep.mubr.bf16.mxu0 %v1084_v4  ;;  %11439 = vmatpush3.bf16.msra.mxu0 %v11781_v8  ;;  %v12507_v8 = vld [vmem:[%s13729_s3] ss:$0 sm:$0xff] }
  0xf3   : > { %v499_v5 = vsel %vm435_vm5, %v339_v3, %v467_v7  ;;  %592 = vst [vmem:[#allocation2 + $0xe8] ss:$-4 sps:$4 sm:$0xff] %v546_v21   ;;  %v897_v29 = vsel %vm676_vm15, %v888_v6, %v896_v22 }
  0xf4   : > { %v515_v25 = vpack.c.bf16 %v499_v5, %v498_v24  ;;  %v1379_v19 = vsel %vm1158_vm0, %v1370_v16, %v1378_v23  ;;  %v11782_v16 = vld [vmem:[#allocation10 + $0x28] sm:$0xff]  }
  0xf5   : > { %11418 = vmatprep.mubr.bf16.mxu1 %v1379_v19  ;;  %10709 = vmatpush3.bf16.msra.mxu1 %v11782_v16 }
  0xf6   : > { %v547_v26 = vrot.slane %v515_v25, 4 }
  0xf7   : > { %v1152_v61 = vld [vmem:[#allocation2 + $0xd0] sm:$0xf0]  ;;  %v1153_v30 = vld [vmem:[#allocation2 + $0xd8] sm:$0x1f] }
  0xf8   : > { %v1007_v31 = vld [vmem:[#allocation2 + $0xd0] sm:$0xf0]  ;;  %594 = vst [vmem:[#allocation2 + $0xf8] ss:$-4 sps:$4 sm:$0xff] %v547_v26   ;;  %v1381_v32 = vshrl.u32 %v1152_v61, 16  ;;  %v1384_v33 = vshll.u32 %v1152_v61, 16 }
  0xf9   : > { %v1389_v38 = vshrl.u32 %v1153_v30, 16  ;;  %v1392_v10 = vshll.u32 %v1153_v30, 16  ;;  %v1008_v39 = vld [vmem:[#allocation2 + $0xd8] sm:$0xf]  ;;  %v1085_v40 = vrot.slane %v1007_v31, 4  ;;  %1789 = vmatmul.mubr.bf16.gmra.mrb[48].mxu0 %v897_v29 }
  0xfa   : > { %v1086_v41 = vrot.slane %v1008_v39, 4  ;;  %v670_v44 = vld [vmem:[#allocation2 + $0xd0] sm:$0xf8]  ;;  %v671_v45 = vld [vmem:[#allocation2 + $0xd8] sm:$0xf]  ;;  %v1383_v43 = vrot.slane %v1381_v32, 4 }
  0xfb   : > { %v1386_v46 = vrot.slane %v1384_v33, 5  ;;  %v1391_v47 = vrot.slane %v1389_v38, 4  ;;  %v1394_v49 = vrot.slane %v1392_v10, 5  ;;  %v1009_v50 = vld [vmem:[#allocation2 + $0xe0] sm:$0xf0]  ;;  %v899_v37 = vshrl.u32 %v670_v44, 16 }
  0xfc   : > { %v1087_v28 = vsel %vm1045_vm8, %v1085_v40, %v1086_v41  ;;  %v902_v51 = vshll.u32 %v670_v44, 16  ;;  %v907_v54 = vshrl.u32 %v671_v45, 16  ;;  %v1010_v55 = vld [vmem:[#allocation2 + $0xe8] sm:$0xf]  ;;  %v910_v60 = vshll.u32 %v671_v45, 16  ;;  %v11783_v32 = vld [vmem:[#allocation10 + $0x70] sm:$0xff]  }
  0xfd   : > { %v1387_v57 = vor.u32 %v1386_v46, %v1383_v43  ;;  %v1395_v58 = vor.u32 %v1394_v49, %v1391_v47  ;;  %1796 = vmatprep.mubr.bf16.mxu0 %v1087_v28  ;;  %v1088_v34 = vrot.slane %v1009_v50, 4  ;;  %v672_v35 = vld [vmem:[#allocation2 + $0xe0] sm:$0xf8]  ;;  %v673_v52 = vld [vmem:[#allocation2 + $0xe8] sm:$0xf]  ;;  %v901_v36 = vrot.slane %v899_v37, 3  ;;  %10710 = vmatprep.subr.bf16.mxu1 %v11783_v32 }
  0xfe   : > { %v904_v42 = vrot.slane %v902_v51, 4  ;;  %v909_v53 = vrot.slane %v907_v54, 3  ;;  %v1089_v63 = vrot.slane %v1010_v55, 4  ;;  %v1154_v0 = vld [vmem:[#allocation2 + $0xe0] sm:$0xf0]  ;;  %v912_v12 = vrot.slane %v910_v60, 4 }
  0xff   : > { %v1396_v4 = vsel %vm1158_vm0, %v1387_v57, %v1395_v58  ;;  %v916_v1 = vshrl.u32 %v672_v35, 16  ;;  %v919_v2 = vshll.u32 %v672_v35, 16  ;;  %v1155_v3 = vld [vmem:[#allocation2 + $0xe8] sm:$0x1f]  ;;  %v924_v59 = vshrl.u32 %v673_v52, 16  ;;  %v11784_v33 = vld [vmem:[#allocation10 + $0x30] sm:$0xff]  }
 0x100   : > { %11419 = vmatmul.mubr.bf16.gmra.mrb[24].mxu1 %v1396_v4  ;;  %v905_v9 = vor.u32 %v904_v42, %v901_v36  ;;  %v1090_v13 = vsel %vm1045_vm8, %v1088_v34, %v1089_v63  ;;  %v927_v48 = vshll.u32 %v673_v52, 16  ;;  %v1156_v14 = vld [vmem:[#allocation2 + $0xf0] sm:$0xf0]  ;;  %v913_v15 = vor.u32 %v912_v12, %v909_v53  ;;  %v1157_v27 = vld [vmem:[#allocation2 + $0xf8] sm:$0x1f] }
 0x101   : > { %v918_v18 = vrot.slane %v916_v1, 3  ;;  %v921_v20 = vrot.slane %v919_v2, 4  ;;  %v1398_v11 = vshrl.u32 %v1154_v0, 16  ;;  %v926_v17 = vrot.slane %v924_v59, 3  ;;  %v1011_v23 = vld [vmem:[#allocation2 + $0xf0] sm:$0xf0]  ;;  %10711 = vmatpush3.bf16.msra.mxu1 %v11784_v33 }
 0x102   : > { %v929_v62 = vrot.slane %v927_v48, 4  ;;  %v1401_v7 = vshll.u32 %v1154_v0, 16  ;;  %v1406_v21 = vshrl.u32 %v1155_v3, 16  ;;  %v914_v24 = vsel %vm676_vm15, %v905_v9, %v913_v15  ;;  %v1012_v25 = vld [vmem:[#allocation2 + $0xf8] sm:$0xf] }
 0x103   : > { %v922_v5 = vor.u32 %v921_v20, %v918_v18  ;;  %v1400_v6 = vrot.slane %v1398_v11, 4  ;;  %v1409_v22 = vshll.u32 %v1155_v3, 16  ;;  %v674_v19 = vld [vmem:[#allocation2 + $0xf0] sm:$0xf8]  ;;  %v675_v26 = vld [vmem:[#allocation2 + $0xf8] sm:$0xf]  ;;  %1797 = vmatmul.mubr.bf16.gmra.mrb[52].mxu0 %v914_v24 }
 0x104   : > { %v930_v29 = vor.u32 %v929_v62, %v926_v17  ;;  %v1403_v61 = vrot.slane %v1401_v7, 5  ;;  %v1408_v30 = vrot.slane %v1406_v21, 4  ;;  %v1415_v31 = vshrl.u32 %v1156_v14, 16  ;;  %1804 = vmatprep.mubr.bf16.mxu0 %v1090_v13  ;;  %v11785_v53 = vld [vmem:[#allocation10 + $0x78] sm:$0xff]  }
 0x105   : > { %v1411_v38 = vrot.slane %v1409_v22, 5  ;;  %v1418_v10 = vshll.u32 %v1156_v14, 16  ;;  %v1423_v39 = vshrl.u32 %v1157_v27, 16  ;;  %v1426_v40 = vshll.u32 %v1157_v27, 16  ;;  %v11786_v63 = vld [vmem:[#allocation10 + $0xb8] sm:$0xff]   ;;  %10712 = vmatprep.subr.bf16.mxu1 %v11785_v53 }
 0x106   : > { %v931_v41 = vsel %vm676_vm15, %v922_v5, %v930_v29  ;;  %v1404_v44 = vor.u32 %v1403_v61, %v1400_v6  ;;  %v1417_v45 = vrot.slane %v1415_v31, 4  ;;  %v1091_v43 = vrot.slane %v1011_v23, 4  ;;  %v11787_v0 = vld [vmem:[#allocation10 + $0x38] sm:$0xff]   ;;  %11440 = vmatprep.subr.bf16.mxu0 %v11786_v63 }
 0x107   : > { %v1412_v46 = vor.u32 %v1411_v38, %v1408_v30  ;;  %v1420_v47 = vrot.slane %v1418_v10, 5  ;;  %v1425_v49 = vrot.slane %v1423_v39, 4  ;;  %v1428_v50 = vrot.slane %v1426_v40, 5  ;;  %10713 = vmatpush3.bf16.msra.mxu1 %v11787_v0  ;;  %11441 = vmatpush3.bf16.msra.mxu0 %v11786_v63 }
 0x108   : > { %v1092_v28 = vrot.slane %v1012_v25, 4  ;;  %v933_v37 = vshrl.u32 %v674_v19, 16  ;;  %v936_v51 = vshll.u32 %v674_v19, 16  ;;  %v941_v54 = vshrl.u32 %v675_v26, 16 }
 0x109   : > { %v1413_v55 = vsel %vm1158_vm0, %v1404_v44, %v1412_v46  ;;  %v1421_v56 = vor.u32 %v1420_v47, %v1417_v45  ;;  %v1429_v57 = vor.u32 %v1428_v50, %v1425_v49  ;;  %v944_v58 = vshll.u32 %v675_v26, 16 }
 0x10a   : > { %11422 = vmatprep.mubr.bf16.mxu1 %v1413_v55  ;;  %v1093_v60 = vsel %vm1045_vm8, %v1091_v43, %v1092_v28  ;;  %v935_v34 = vrot.slane %v933_v37, 3  ;;  %v938_v35 = vrot.slane %v936_v51, 4  ;;  %v943_v52 = vrot.slane %v941_v54, 3 }
 0x10b   : > { %v1430_v36 = vsel %vm1158_vm0, %v1421_v56, %v1429_v57  ;;  %v946_v42 = vrot.slane %v944_v58, 4  ;;  %1805 = vmatmul.mubr.bf16.gmra.mrb[56].mxu0 %v931_v41 }
 0x10c   : > { %11423 = vmatmul.mubr.bf16.gmra.mrb[28].mxu1 %v1430_v36  ;;  %1812 = vmatprep.mubr.bf16.mxu0 %v1093_v60  ;;  %v939_v4 = vor.u32 %v938_v35, %v935_v34 }
 0x10d   : > { %v947_v12 = vor.u32 %v946_v42, %v943_v52 }
 0x10f   : > { %v948_v1 = vsel %vm676_vm15, %v939_v4, %v947_v12 }
 0x113   : > { %1813 = vmatmul.mubr.bf16.gmra.mrb[60].mxu0 %v948_v1 }
 0x167   : > { %v10578_v2 = vpop.f32.mrb[0].mxu0 }
 0x168   : > { %v10579_v3 = vpop.f32.mrb[1].mxu0 }
 0x169   : > { %v10580_v9 = vadd.f32 %v10579_v3, %v10578_v2  ;;  %v10581_v13 = vpop.f32.mrb[2].mxu0 }
 0x16a   : > { %v10582_v59 = vpop.f32.mrb[3].mxu0 }
 0x16b   : > { %v1695_v48 = vadd.f32 %v10580_v9, %v12507_v8  ;;  %v10583_v14 = vadd.f32 %v10582_v59, %v10581_v13 }
 0x16c   : > { %v11396_v15 = vpop.f32.mrb[0].mxu1 }
 0x16d   : > { %v1855_v18 = vpop.f32.mrb[1].mxu1  ;;  %v1698_v20 = vadd.f32 %v10583_v14, %v12507_v8 }
 0x16e   : > { %v1856_v11 = vadd.f32 %v1855_v18, %v1695_v48  ;;  %v11397_v27 = vpop.f32.mrb[2].mxu1 }
 0x16f   : > { %v1858_v16 = vpop.f32.mrb[3].mxu1 }
 0x170   : > { %v2014_v17 = vmul.f32 0.1, %v1856_v11  ;;  %v1859_v62 = vadd.f32 %v1858_v16, %v1698_v20  ;;  %v10584_v7 = vpop.f32.mrb[4].mxu0  ;;  %vm1982_vm6 = vcmp.ge.f32.partialorder %v1856_v11, 0.0 }
 0x171   : > { %v10585_v21 = vpop.f32.mrb[5].mxu0 }
 0x172   : > { %vm1983_vm7 = vcmp.ge.f32.partialorder %v1859_v62, 0.0  ;;  %v2015_v23 = vmul.f32 0.1, %v1859_v62  ;;  %v10586_v24 = vadd.f32 %v10585_v21, %v10584_v7  ;;  %v10587_v5 = vpop.f32.mrb[6].mxu0  ;;  %v2046_v22 = vsel %vm1982_vm6, %v1856_v11, %v2014_v17 }
 0x173   : > { %v10588_v6 = vpop.f32.mrb[7].mxu0 }
 0x174   : > { %v2047_v25 = vsel %vm1983_vm7, %v1859_v62, %v2015_v23  ;;  %v1703_v19 = vadd.f32 %v10586_v24, %v12507_v8  ;;  %v10589_v26 = vadd.f32 %v10588_v6, %v10587_v5 }
 0x175   : > { %v2078_v29 = vpack.c.bf16 %v2047_v25, %v2046_v22 }
 0x176   : > { %v1864_v61 = vadd.f32 %v11396_v15, %v1703_v19  ;;  %v1706_v30 = vadd.f32 %v10589_v26, %v12507_v8 }
 0x177   : > { %v2110_v31 = vrot.slane %v2078_v29, 4 }
 0x178   : > { %v2016_v32 = vmul.f32 0.1, %v1864_v61  ;;  %v1867_v33 = vadd.f32 %v11397_v27, %v1706_v30  ;;  %v10590_v38 = vpop.f32.mrb[8].mxu0  ;;  %vm1984_vm9 = vcmp.ge.f32.partialorder %v1864_v61, 0.0 }
 0x179   : > { %2142 = vst [vmem:[#allocation2 + $0x8] ss:$-4 sps:$4 sm:$0xff] %v2110_v31   ;;  %v10591_v10 = vpop.f32.mrb[9].mxu0  ;;  %v11400_v39 = vpop.f32.mrb[4].mxu1 }
 0x17a   : > { %vm1985_vm10 = vcmp.ge.f32.partialorder %v1867_v33, 0.0  ;;  %v2017_v40 = vmul.f32 0.1, %v1867_v33  ;;  %v10592_v41 = vadd.f32 %v10591_v10, %v10590_v38  ;;  %v10593_v44 = vpop.f32.mrb[10].mxu0  ;;  %v1871_v45 = vpop.f32.mrb[5].mxu1  ;;  %v2048_v47 = vsel %vm1984_vm9, %v1864_v61, %v2016_v32 }
 0x17b   : > { %v10594_v43 = vpop.f32.mrb[11].mxu0  ;;  %v11401_v46 = vpop.f32.mrb[6].mxu1 }
 0x17c   : > { %v2049_v49 = vsel %vm1985_vm10, %v1867_v33, %v2017_v40  ;;  %v1711_v50 = vadd.f32 %v10592_v41, %v12507_v8  ;;  %v10595_v28 = vadd.f32 %v10594_v43, %v10593_v44  ;;  %v1874_v37 = vpop.f32.mrb[7].mxu1 }
 0x17d   : > { %v2079_v51 = vpack.c.bf16 %v2049_v49, %v2048_v47 }
 0x17e   : > { %v1872_v54 = vadd.f32 %v1871_v45, %v1711_v50  ;;  %v1714_v55 = vadd.f32 %v10595_v28, %v12507_v8 }
 0x17f   : > { %v2111_v56 = vrot.slane %v2079_v51, 4 }
 0x180   : > { %vm1986_vm11 = vcmp.ge.f32.partialorder %v1872_v54, 0.0  ;;  %v2018_v57 = vmul.f32 0.1, %v1872_v54  ;;  %v1875_v58 = vadd.f32 %v1874_v37, %v1714_v55  ;;  %v10596_v60 = vpop.f32.mrb[12].mxu0  ;;  %v2558_v34 = vld [vmem:[#allocation2] sm:$0xf0] }
 0x181   : > { %2144 = vst [vmem:[#allocation2 + $0x18] ss:$-4 sps:$4 sm:$0xff] %v2111_v56   ;;  %v10597_v35 = vpop.f32.mrb[13].mxu0  ;;  %v2559_v52 = vld [vmem:[#allocation2 + $0x8] sm:$0xf]  ;;  %v2622_v36 = vrot.slane %v2558_v34, 4 }
 0x182   : > { %v2222_v42 = vld [vmem:[#allocation2] sm:$0xf8]  ;;  %v2050_v53 = vsel %vm1986_vm11, %v1872_v54, %v2018_v57  ;;  %vm1987_vm12 = vcmp.ge.f32.partialorder %v1875_v58, 0.0  ;;  %v2019_v63 = vmul.f32 0.1, %v1875_v58  ;;  %v10598_v0 = vadd.f32 %v10597_v35, %v10596_v60  ;;  %v10599_v4 = vpop.f32.mrb[14].mxu0 }
 0x183   : > { %v2223_v12 = vld [vmem:[#allocation2 + $0x8] sm:$0xf]  ;;  %v10600_v1 = vpop.f32.mrb[15].mxu0  ;;  %v2623_v2 = vrot.slane %v2559_v52, 4  ;;  %v2255_v3 = vshrl.u32 %v2222_v42, 16  ;;  %v2258_v9 = vshll.u32 %v2222_v42, 16 }
 0x184   : > { %v2263_v13 = vshrl.u32 %v2223_v12, 16  ;;  %v2051_v59 = vsel %vm1987_vm12, %v1875_v58, %v2019_v63  ;;  %v1719_v48 = vadd.f32 %v10598_v0, %v12507_v8  ;;  %v10601_v14 = vadd.f32 %v10600_v1, %v10599_v4  ;;  %v2702_v18 = vld [vmem:[#allocation2] sm:$0xf0]  ;;  %v2703_v23 = vld [vmem:[#allocation2 + $0x8] sm:$0x1f] }
 0x185   : > { %v2266_v15 = vshll.u32 %v2223_v12, 16  ;;  %v2080_v20 = vpack.c.bf16 %v2051_v59, %v2050_v53  ;;  %v2624_v11 = vsel %vm1045_vm8, %v2622_v36, %v2623_v2  ;;  %v2257_v27 = vrot.slane %v2255_v3, 3 }
 0x186   : > { %v2260_v16 = vrot.slane %v2258_v9, 4  ;;  %v1880_v17 = vadd.f32 %v11400_v39, %v1719_v48  ;;  %v1722_v62 = vadd.f32 %v10601_v14, %v12507_v8  ;;  %3267 = vmatprep.mubr.bf16.mxu1 %v2624_v11  ;;  %v2265_v7 = vrot.slane %v2263_v13, 3 }
 0x187   : > { %v2268_v21 = vrot.slane %v2266_v15, 4  ;;  %v2112_v24 = vrot.slane %v2080_v20, 4  ;;  %v2735_v6 = vshrl.u32 %v2702_v18, 16  ;;  %v2738_v22 = vshll.u32 %v2702_v18, 16 }
 0x188   : > { %v2261_v5 = vor.u32 %v2260_v16, %v2257_v27  ;;  %vm1988_vm13 = vcmp.ge.f32.partialorder %v1880_v17, 0.0  ;;  %v2020_v25 = vmul.f32 0.1, %v1880_v17  ;;  %v1883_v19 = vadd.f32 %v11401_v46, %v1722_v62  ;;  %v10602_v26 = vpop.f32.mrb[16].mxu0  ;;  %v2560_v61 = vld [vmem:[#allocation2 + $0x10] sm:$0xf0] }
 0x189   : > { %v2269_v29 = vor.u32 %v2268_v21, %v2265_v7  ;;  %2146 = vst [vmem:[#allocation2 + $0x28] ss:$-4 sps:$4 sm:$0xff] %v2112_v24   ;;  %v2737_v30 = vrot.slane %v2735_v6, 4  ;;  %v2740_v31 = vrot.slane %v2738_v22, 5  ;;  %v2743_v32 = vshrl.u32 %v2703_v23, 16  ;;  %v10603_v38 = vpop.f32.mrb[17].mxu0 }
 0x18a   : > { %v2746_v33 = vshll.u32 %v2703_v23, 16  ;;  %v2052_v10 = vsel %vm1988_vm13, %v1880_v17, %v2020_v25  ;;  %vm1989_vm14 = vcmp.ge.f32.partialorder %v1883_v19, 0.0  ;;  %v2021_v39 = vmul.f32 0.1, %v1883_v19  ;;  %v10605_v41 = vpop.f32.mrb[18].mxu0 }
 0x18b   : > { %v2270_v40 = vsel %vm676_vm15, %v2261_v5, %v2269_v29  ;;  %v2561_v44 = vld [vmem:[#allocation2 + $0x18] sm:$0xf]  ;;  %v2741_v45 = vor.u32 %v2740_v31, %v2737_v30  ;;  %v2745_v43 = vrot.slane %v2743_v32, 4  ;;  %v10604_v47 = vadd.f32 %v10603_v38, %v10602_v26  ;;  %v10606_v49 = vpop.f32.mrb[19].mxu0  ;;  %v2224_v50 = vld [vmem:[#allocation2 + $0x10] sm:$0xf8] }
 0x18c   : > { %3268 = vmatmul.mubr.bf16.vlgmr.msra.gmra.mrb[32].mxu1 %v2270_v40  ;;  %v2748_v46 = vrot.slane %v2746_v33, 5  ;;  %v2053_v28 = vsel %vm1989_vm14, %v1883_v19, %v2021_v39  ;;  %v10607_v37 = vadd.f32 %v10606_v49, %v10605_v41  ;;  %v2625_v51 = vrot.slane %v2560_v61, 4  ;;  %v2225_v55 = vld [vmem:[#allocation2 + $0x18] sm:$0xf]  ;;  %v2704_v34 = vld [vmem:[#allocation2 + $0x10] sm:$0xf0] }
 0x18d   : > { %v2626_v54 = vrot.slane %v2561_v44, 4  ;;  %v2081_v56 = vpack.c.bf16 %v2053_v28, %v2052_v10  ;;  %v1727_v58 = vadd.f32 %v10604_v47, %v12507_v8  ;;  %v2272_v60 = vshrl.u32 %v2224_v50, 16  ;;  %v2705_v63 = vld [vmem:[#allocation2 + $0x18] sm:$0x1f] }
 0x18e   : > { %v2749_v57 = vor.u32 %v2748_v46, %v2745_v43  ;;  %v1730_v52 = vadd.f32 %v10607_v37, %v12507_v8  ;;  %v2275_v42 = vshll.u32 %v2224_v50, 16  ;;  %v2280_v53 = vshrl.u32 %v2225_v55, 16 }
 0x18f   : > { %v12520_v35 = vpop.f32.mrb[8].mxu1  ;;  %v2627_v36 = vsel %vm1045_vm8, %v2625_v51, %v2626_v54  ;;  %v2113_v0 = vrot.slane %v2081_v56, 4  ;;  %v2274_v1 = vrot.slane %v2272_v60, 3  ;;  %v2283_v2 = vshll.u32 %v2225_v55, 16  ;;  %v11788_v60 = vld [vmem:[#allocation8 + $0x140] sm:$0xff]  }
 0x190   : > { %v2750_v4 = vsel %vm1158_vm0, %v2741_v45, %v2749_v57  ;;  %v1887_v12 = vpop.f32.mrb[9].mxu1  ;;  %3275 = vmatprep.mubr.bf16.mxu1 %v2627_v36  ;;  %v2277_v13 = vrot.slane %v2275_v42, 4  ;;  %v2282_v59 = vrot.slane %v2280_v53, 3  ;;  %v2752_v48 = vshrl.u32 %v2704_v34, 16  ;;  %v2562_v14 = vld [vmem:[#allocation2 + $0x20] sm:$0xf0]  ;;  %11474 = vmatprep.subr.bf16.mxu1 %v11788_v60 }
 0x191   : > { %11442 = vmatprep.mubr.bf16.mxu0 %v2750_v4  ;;  %v1888_v3 = vadd.f32 %v1887_v12, %v1727_v58  ;;  %v11405_v9 = vpop.f32.mrb[10].mxu1  ;;  %2148 = vst [vmem:[#allocation2 + $0x38] ss:$-4 sps:$4 sm:$0xff] %v2113_v0   ;;  %v2285_v18 = vrot.slane %v2283_v2, 4  ;;  %v2755_v20 = vshll.u32 %v2704_v34, 16  ;;  %v2760_v11 = vshrl.u32 %v2705_v63, 16  ;;  %11475 = vmatpush3.bf16.msra.mxu1 %v11788_v60 }
 0x192   : > { %v1890_v15 = vpop.f32.mrb[11].mxu1  ;;  %v2763_v27 = vshll.u32 %v2705_v63, 16  ;;  %v10608_v62 = vpop.f32.mrb[20].mxu0  ;;  %v2278_v7 = vor.u32 %v2277_v13, %v2274_v1  ;;  %v2563_v21 = vld [vmem:[#allocation2 + $0x28] sm:$0xf]  ;;  %v2754_v24 = vrot.slane %v2752_v48, 4 }
 0x193   : > { %vm1990_vm1 = vcmp.ge.f32.partialorder %v1888_v3, 0.0  ;;  %v2022_v16 = vmul.f32 0.1, %v1888_v3  ;;  %v1891_v17 = vadd.f32 %v1890_v15, %v1730_v52  ;;  %v2286_v23 = vor.u32 %v2285_v18, %v2282_v59  ;;  %v10609_v22 = vpop.f32.mrb[21].mxu0  ;;  %v2226_v25 = vld [vmem:[#allocation2 + $0x20] sm:$0xf8] }
 0x194   : > { %v2757_v5 = vrot.slane %v2755_v20, 5  ;;  %v2762_v6 = vrot.slane %v2760_v11, 4  ;;  %v2765_v29 = vrot.slane %v2763_v27, 5  ;;  %v10611_v61 = vpop.f32.mrb[22].mxu0  ;;  %v10610_v32 = vadd.f32 %v10609_v22, %v10608_v62  ;;  %v2227_v10 = vld [vmem:[#allocation2 + $0x28] sm:$0xf] }
 0x195   : > { %v2054_v19 = vsel %vm1990_vm1, %v1888_v3, %v2022_v16  ;;  %vm1991_vm2 = vcmp.ge.f32.partialorder %v1891_v17, 0.0  ;;  %v2023_v26 = vmul.f32 0.1, %v1891_v17  ;;  %v2287_v30 = vsel %vm676_vm15, %v2278_v7, %v2286_v23  ;;  %v10612_v33 = vpop.f32.mrb[23].mxu0  ;;  %v2706_v49 = vld [vmem:[#allocation2 + $0x20] sm:$0xf0] }
 0x196   : > { %v2758_v31 = vor.u32 %v2757_v5, %v2754_v24  ;;  %v2628_v38 = vrot.slane %v2562_v14, 4  ;;  %3276 = vmatmul.mubr.bf16.gmra.mrb[36].mxu1 %v2287_v30  ;;  %v2766_v40 = vor.u32 %v2765_v29, %v2762_v6  ;;  %v10613_v41 = vadd.f32 %v10612_v33, %v10611_v61  ;;  %v2707_v58 = vld [vmem:[#allocation2 + $0x28] sm:$0x1f]  ;;  %v11790_v16 = vld [vmem:[#allocation8 + $0x150] sm:$0xff]   ;;  %v11792_v29 = vld [vmem:[#allocation8 + $0x100] sm:$0xff]  }
 0x197   : > { %v2055_v39 = vsel %vm1991_vm2, %v1891_v17, %v2023_v26  ;;  %v2629_v44 = vrot.slane %v2563_v21, 4  ;;  %v1735_v43 = vadd.f32 %v10610_v32, %v12507_v8  ;;  %v2289_v46 = vshrl.u32 %v2226_v25, 16  ;;  %v11789_v0 = vld [vmem:[#allocation8 + $0x148] sm:$0xff]   ;;  %v11793_v61 = vld [vmem:[#allocation8 + $0xc0] sm:$0xff]   ;;  %10834 = vmatprep.subr.bf16.mxu0 %v11792_v29 }
 0x198   : > { %v2082_v45 = vpack.c.bf16 %v2055_v39, %v2054_v19  ;;  %v2292_v47 = vshll.u32 %v2226_v25, 16  ;;  %v2767_v50 = vsel %vm1158_vm0, %v2758_v31, %v2766_v40  ;;  %v1738_v28 = vadd.f32 %v10613_v41, %v12507_v8  ;;  %v2564_v3 = vld [vmem:[#allocation2 + $0x30] sm:$0xf0]  ;;  %11476 = vmatprep.subr.bf16.mxu1 %v11789_v0  ;;  %v2565_v24 = vld [vmem:[#allocation2 + $0x38] sm:$0xf] }
 0x199   : > { %v2630_v37 = vsel %vm1045_vm8, %v2628_v38, %v2629_v44  ;;  %v2297_v51 = vshrl.u32 %v2227_v10, 16  ;;  %11443 = vmatmul.mubr.bf16.vlgmr.msra.gmra.mrb[64].mxu0 %v2767_v50  ;;  %v1896_v55 = vadd.f32 %v12520_v35, %v1735_v43  ;;  %v2291_v56 = vrot.slane %v2289_v46, 3  ;;  %v2228_v5 = vld [vmem:[#allocation2 + $0x30] sm:$0xf8]  ;;  %v2229_v26 = vld [vmem:[#allocation2 + $0x38] sm:$0xf]  ;;  %11477 = vmatpush3.bf16.msra.mxu1 %v11789_v0 }
 0x19a   : > { %v2114_v54 = vrot.slane %v2082_v45, 4  ;;  %3283 = vmatprep.mubr.bf16.mxu1 %v2630_v37  ;;  %v2294_v57 = vrot.slane %v2292_v47, 4  ;;  %v1899_v34 = vadd.f32 %v11405_v9, %v1738_v28  ;;  %v10614_v52 = vpop.f32.mrb[24].mxu0  ;;  %v2300_v42 = vshll.u32 %v2227_v10, 16  ;;  %v2708_v41 = vld [vmem:[#allocation2 + $0x30] sm:$0xf0]  ;;  %11478 = vmatprep.subr.bf16.mxu1 %v11790_v16 }
 0x19b   : > { %v2299_v36 = vrot.slane %v2297_v51, 3  ;;  %v2769_v53 = vshrl.u32 %v2706_v49, 16  ;;  %v12531_v63 = vpop.f32.mrb[12].mxu1  ;;  %vm1992_vm3 = vcmp.ge.f32.partialorder %v1896_v55, 0.0  ;;  %v2024_v4 = vmul.f32 0.1, %v1896_v55  ;;  %10835 = vmatpush3.bf16.msra.mxu0 %v11793_v61 }
 0x19c   : > { %2150 = vst [vmem:[#allocation2 + $0x48] ss:$-4 sps:$4 sm:$0xff] %v2114_v54   ;;  %v2295_v12 = vor.u32 %v2294_v57, %v2291_v56  ;;  %v2772_v1 = vshll.u32 %v2706_v49, 16  ;;  %v10615_v2 = vpop.f32.mrb[25].mxu0  ;;  %v1903_v35 = vpop.f32.mrb[13].mxu1  ;;  %vm1993_vm4 = vcmp.ge.f32.partialorder %v1899_v34, 0.0 }
 0x19d   : > { %v2025_v13 = vmul.f32 0.1, %v1899_v34  ;;  %v2302_v59 = vrot.slane %v2300_v42, 4  ;;  %v2771_v9 = vrot.slane %v2769_v53, 4  ;;  %v10617_v48 = vpop.f32.mrb[26].mxu0  ;;  %v2056_v14 = vsel %vm1992_vm3, %v1896_v55, %v2024_v4  ;;  %v12533_v27 = vpop.f32.mrb[14].mxu1  ;;  %11479 = vmatpush3.bf16.msra.mxu1 %v11790_v16 }
 0x19e   : > { %v2774_v15 = vrot.slane %v2772_v1, 5  ;;  %v2777_v18 = vshrl.u32 %v2707_v58, 16  ;;  %v2780_v20 = vshll.u32 %v2707_v58, 16  ;;  %v10618_v11 = vpop.f32.mrb[27].mxu0  ;;  %v10616_v7 = vadd.f32 %v10615_v2, %v10614_v52  ;;  %v1906_v23 = vpop.f32.mrb[15].mxu1  ;;  %v11795_v44 = vld [vmem:[#allocation8 + $0x108] sm:$0xff]  }
 0x19f   : > { %v2057_v17 = vsel %vm1993_vm4, %v1899_v34, %v2025_v13  ;;  %v2303_v62 = vor.u32 %v2302_v59, %v2299_v36  ;;  %v10619_v21 = vadd.f32 %v10618_v11, %v10617_v48  ;;  %v2631_v33 = vrot.slane %v2564_v3, 4  ;;  %v2709_v50 = vld [vmem:[#allocation2 + $0x38] sm:$0x1f]  ;;  %v11796_v57 = vld [vmem:[#allocation8 + $0xc8] sm:$0xff]   ;;  %v11797_v58 = vld [vmem:[#allocation8 + $0x110] sm:$0xff]   ;;  %10836 = vmatprep.subr.bf16.mxu0 %v11795_v44 }
 0x1a0   : > { %v2083_v6 = vpack.c.bf16 %v2057_v17, %v2056_v14  ;;  %v2775_v22 = vor.u32 %v2774_v15, %v2771_v9  ;;  %v2779_v25 = vrot.slane %v2777_v18, 4  ;;  %v2782_v19 = vrot.slane %v2780_v20, 5  ;;  %v11791_v28 = vld [vmem:[#allocation8 + $0x158] sm:$0xff]   ;;  %v11794_v13 = vld [vmem:[#allocation8 + $0x160] sm:$0xff]   ;;  %10837 = vmatpush3.bf16.msra.mxu0 %v11796_v57  ;;  %v11798_v20 = vld [vmem:[#allocation8 + $0xd0] sm:$0xff]  }
 0x1a1   : > { %v2304_v30 = vsel %vm676_vm15, %v2295_v12, %v2303_v62  ;;  %v1743_v31 = vadd.f32 %v10616_v7, %v12507_v8  ;;  %v1746_v32 = vadd.f32 %v10619_v21, %v12507_v8  ;;  %v2632_v39 = vrot.slane %v2565_v24, 4  ;;  %11480 = vmatprep.subr.bf16.mxu1 %v11791_v28  ;;  %10838 = vmatprep.subr.bf16.mxu0 %v11797_v58  ;;  %v11800_v21 = vld [vmem:[#allocation8 + $0x118] sm:$0xff]   ;;  %v11799_v61 = vld [vmem:[#allocation8 + $0x168] sm:$0xff]  }
 0x1a2   : > { %v2115_v38 = vrot.slane %v2083_v6, 4  ;;  %3284 = vmatmul.mubr.bf16.gmra.mrb[40].mxu1 %v2304_v30  ;;  %v2783_v10 = vor.u32 %v2782_v19, %v2779_v25  ;;  %v2306_v40 = vshrl.u32 %v2228_v5, 16  ;;  %v10620_v46 = vpop.f32.mrb[28].mxu0  ;;  %v2309_v47 = vshll.u32 %v2228_v5, 16 }
 0x1a3   : > { %v1904_v45 = vadd.f32 %v1903_v35, %v1743_v31  ;;  %v1907_v43 = vadd.f32 %v1906_v23, %v1746_v32  ;;  %v2314_v49 = vshrl.u32 %v2229_v26, 16  ;;  %v2633_v51 = vsel %vm1045_vm8, %v2631_v33, %v2632_v39  ;;  %v10621_v56 = vpop.f32.mrb[29].mxu0  ;;  %v2566_v3 = vld [vmem:[#allocation2 + $0x40] sm:$0xf0]  ;;  %v2567_v15 = vld [vmem:[#allocation2 + $0x48] sm:$0xf]  ;;  %11481 = vmatpush3.bf16.msra.mxu1 %v11791_v28 }
 0x1a4   : > { %2152 = vst [vmem:[#allocation2 + $0x58] ss:$-4 sps:$4 sm:$0xff] %v2115_v38   ;;  %v2784_v37 = vsel %vm1158_vm0, %v2775_v22, %v2783_v10  ;;  %v2308_v54 = vrot.slane %v2306_v40, 3  ;;  %v2317_v55 = vshll.u32 %v2229_v26, 16  ;;  %3291 = vmatprep.mubr.bf16.mxu1 %v2633_v51  ;;  %v2311_v52 = vrot.slane %v2309_v47, 4  ;;  %v10623_v0 = vpop.f32.mrb[30].mxu0  ;;  %11482 = vmatprep.subr.bf16.mxu1 %v11794_v13 }
 0x1a5   : > { %11446 = vmatprep.mubr.bf16.mxu0 %v2784_v37  ;;  %vm1994_vm5 = vcmp.ge.f32.partialorder %v1904_v45, 0.0  ;;  %v2026_v60 = vmul.f32 0.1, %v1904_v45  ;;  %vm1995_vm6 = vcmp.ge.f32.partialorder %v1907_v43, 0.0  ;;  %v2027_v34 = vmul.f32 0.1, %v1907_v43  ;;  %10839 = vmatpush3.bf16.msra.mxu0 %v11798_v20 }
 0x1a6   : > { %v2316_v36 = vrot.slane %v2314_v49, 3  ;;  %v2319_v42 = vrot.slane %v2317_v55, 4  ;;  %v2786_v53 = vshrl.u32 %v2708_v41, 16  ;;  %v2789_v1 = vshll.u32 %v2708_v41, 16  ;;  %v10624_v35 = vpop.f32.mrb[31].mxu0  ;;  %10840 = vmatprep.subr.bf16.mxu0 %v11800_v21 }
 0x1a7   : > { %v2058_v4 = vsel %vm1994_vm5, %v1904_v45, %v2026_v60  ;;  %v2059_v12 = vsel %vm1995_vm6, %v1907_v43, %v2027_v34  ;;  %v2794_v2 = vshrl.u32 %v2709_v50, 16  ;;  %v2312_v9 = vor.u32 %v2311_v52, %v2308_v54  ;;  %v2230_v18 = vld [vmem:[#allocation2 + $0x40] sm:$0xf8]  ;;  %v2231_v7 = vld [vmem:[#allocation2 + $0x48] sm:$0xf]  ;;  %v11801_v43 = vld [vmem:[#allocation8 + $0xd8] sm:$0xff]   ;;  %11483 = vmatpush3.bf16.msra.mxu1 %v11794_v13 }
 0x1a8   : > { %v2084_v59 = vpack.c.bf16 %v2059_v12, %v2058_v4  ;;  %v2320_v48 = vor.u32 %v2319_v42, %v2316_v36  ;;  %v2788_v14 = vrot.slane %v2786_v53, 4  ;;  %v2791_v11 = vrot.slane %v2789_v1, 5  ;;  %v2710_v44 = vld [vmem:[#allocation2 + $0x40] sm:$0xf0]  ;;  %v2711_v28 = vld [vmem:[#allocation2 + $0x48] sm:$0x1f]  ;;  %11484 = vmatprep.subr.bf16.mxu1 %v11799_v61 }
 0x1a9   : > { %v2796_v17 = vrot.slane %v2794_v2, 4  ;;  %v2797_v16 = vshll.u32 %v2709_v50, 16  ;;  %v10622_v62 = vadd.f32 %v10621_v56, %v10620_v46  ;;  %v10625_v5 = vadd.f32 %v10624_v35, %v10623_v0  ;;  %10841 = vmatpush3.bf16.msra.mxu0 %v11801_v43 }
 0x1aa   : > { %v2116_v23 = vrot.slane %v2084_v59, 4  ;;  %v2321_v24 = vsel %vm676_vm15, %v2312_v9, %v2320_v48  ;;  %v2634_v6 = vrot.slane %v2566_v3, 4  ;;  %v2792_v22 = vor.u32 %v2791_v11, %v2788_v14  ;;  %v10626_v29 = vpop.f32.mrb[32].mxu0 }
 0x1ab   : > { %3292 = vmatmul.mubr.bf16.gmra.mrb[44].mxu1 %v2321_v24  ;;  %v2799_v25 = vrot.slane %v2797_v16, 5  ;;  %v1751_v19 = vadd.f32 %v10622_v62, %v12507_v8  ;;  %v2635_v26 = vrot.slane %v2567_v15, 4  ;;  %v1754_v30 = vadd.f32 %v10625_v5, %v12507_v8  ;;  %v10627_v38 = vpop.f32.mrb[33].mxu0  ;;  %v2568_v55 = vld [vmem:[#allocation2 + $0x50] sm:$0xf0] }
 0x1ac   : > { %2154 = vst [vmem:[#allocation2 + $0x68] ss:$-4 sps:$4 sm:$0xff] %v2116_v23   ;;  %v2323_v31 = vshrl.u32 %v2230_v18, 16  ;;  %v2326_v32 = vshll.u32 %v2230_v18, 16  ;;  %v2331_v33 = vshrl.u32 %v2231_v7, 16  ;;  %v2334_v41 = vshll.u32 %v2231_v7, 16  ;;  %11485 = vmatpush3.bf16.msra.mxu1 %v11799_v61 }
 0x1ad   : > { %v2800_v10 = vor.u32 %v2799_v25, %v2796_v17  ;;  %v1912_v39 = vadd.f32 %v12531_v63, %v1751_v19  ;;  %v2636_v40 = vsel %vm1045_vm8, %v2634_v6, %v2635_v26  ;;  %v10629_v45 = vpop.f32.mrb[34].mxu0  ;;  %v1915_v46 = vadd.f32 %v12533_v27, %v1754_v30  ;;  %v2569_v53 = vld [vmem:[#allocation2 + $0x58] sm:$0xf]  ;;  %v2232_v35 = vld [vmem:[#allocation2 + $0x50] sm:$0xf8] }
 0x1ae   : > { %3299 = vmatprep.mubr.bf16.mxu1 %v2636_v40  ;;  %v2325_v47 = vrot.slane %v2323_v31, 3  ;;  %v2328_v49 = vrot.slane %v2326_v32, 4  ;;  %v2333_v50 = vrot.slane %v2331_v33, 3  ;;  %v10630_v37 = vpop.f32.mrb[35].mxu0  ;;  %v2336_v54 = vrot.slane %v2334_v41, 4 }
 0x1af   : > { %v2801_v51 = vsel %vm1158_vm0, %v2792_v22, %v2800_v10  ;;  %vm1996_vm7 = vcmp.ge.f32.partialorder %v1912_v39, 0.0  ;;  %v2028_v63 = vmul.f32 0.1, %v1912_v39  ;;  %vm1997_vm9 = vcmp.ge.f32.partialorder %v1915_v46, 0.0  ;;  %v2233_v17 = vld [vmem:[#allocation2 + $0x58] sm:$0xf] }
 0x1b0   : > { %11447 = vmatmul.mubr.bf16.gmra.mrb[68].mxu0 %v2801_v51  ;;  %v2029_v56 = vmul.f32 0.1, %v1915_v46  ;;  %v2329_v57 = vor.u32 %v2328_v49, %v2325_v47  ;;  %v2803_v58 = vshrl.u32 %v2710_v44, 16  ;;  %v2337_v34 = vor.u32 %v2336_v54, %v2333_v50  ;;  %v2712_v25 = vld [vmem:[#allocation2 + $0x50] sm:$0xf0] }
 0x1b1   : > { %v12547_v27 = vpop.f32.mrb[16].mxu1  ;;  %v2060_v60 = vsel %vm1996_vm7, %v1912_v39, %v2028_v63  ;;  %v2806_v52 = vshll.u32 %v2710_v44, 16  ;;  %v2811_v36 = vshrl.u32 %v2711_v28, 16  ;;  %v2814_v12 = vshll.u32 %v2711_v28, 16  ;;  %v2713_v10 = vld [vmem:[#allocation2 + $0x58] sm:$0x1f] }
 0x1b2   : > { %v1919_v42 = vpop.f32.mrb[17].mxu1  ;;  %v2061_v0 = vsel %vm1997_vm9, %v1915_v46, %v2029_v56  ;;  %v2805_v4 = vrot.slane %v2803_v58, 4  ;;  %v10628_v1 = vadd.f32 %v10627_v38, %v10626_v29  ;;  %v2338_v13 = vsel %vm676_vm15, %v2329_v57, %v2337_v34 }
 0x1b3   : > { %v12549_v2 = vpop.f32.mrb[18].mxu1  ;;  %v2085_v3 = vpack.c.bf16 %v2061_v0, %v2060_v60  ;;  %v2808_v59 = vrot.slane %v2806_v52, 5  ;;  %v2813_v9 = vrot.slane %v2811_v36, 4  ;;  %3300 = vmatmul.mubr.bf16.gmra.mrb[48].mxu1 %v2338_v13  ;;  %v2816_v14 = vrot.slane %v2814_v12, 5  ;;  %v2571_v51 = vld [vmem:[#allocation2 + $0x68] sm:$0xf] }
 0x1b4   : > { %v1922_v48 = vpop.f32.mrb[19].mxu1  ;;  %v1759_v15 = vadd.f32 %v10628_v1, %v12507_v8  ;;  %v10631_v18 = vadd.f32 %v10630_v37, %v10629_v45  ;;  %v2637_v20 = vrot.slane %v2568_v55, 4  ;;  %v10632_v11 = vpop.f32.mrb[36].mxu0  ;;  %v2638_v7 = vrot.slane %v2569_v53, 4  ;;  %v2570_v37 = vld [vmem:[#allocation2 + $0x60] sm:$0xf0] }
 0x1b5   : > { %v2117_v16 = vrot.slane %v2085_v3, 4  ;;  %v2809_v62 = vor.u32 %v2808_v59, %v2805_v4  ;;  %v2340_v21 = vshrl.u32 %v2232_v35, 16  ;;  %v10633_v23 = vpop.f32.mrb[37].mxu0  ;;  %v2817_v24 = vor.u32 %v2816_v14, %v2813_v9  ;;  %v2234_v58 = vld [vmem:[#allocation2 + $0x60] sm:$0xf8] }
 0x1b6   : > { %v1920_v5 = vadd.f32 %v1919_v42, %v1759_v15  ;;  %v1762_v6 = vadd.f32 %v10631_v18, %v12507_v8  ;;  %v2343_v22 = vshll.u32 %v2232_v35, 16  ;;  %v10635_v19 = vpop.f32.mrb[38].mxu0  ;;  %v2639_v26 = vsel %vm1045_vm8, %v2637_v20, %v2638_v7  ;;  %v2235_v53 = vld [vmem:[#allocation2 + $0x68] sm:$0xf] }
 0x1b7   : > { %2156 = vst [vmem:[#allocation2 + $0x78] ss:$-4 sps:$4 sm:$0xff] %v2117_v16   ;;  %v2342_v29 = vrot.slane %v2340_v21, 3  ;;  %v2348_v61 = vshrl.u32 %v2233_v17, 16  ;;  %v2351_v30 = vshll.u32 %v2233_v17, 16  ;;  %v10636_v31 = vpop.f32.mrb[39].mxu0  ;;  %v2818_v32 = vsel %vm1158_vm0, %v2809_v62, %v2817_v24  ;;  %3307 = vmatprep.mubr.bf16.mxu1 %v2639_v26 }
 0x1b8   : > { %vm1998_vm10 = vcmp.ge.f32.partialorder %v1920_v5, 0.0  ;;  %v2030_v33 = vmul.f32 0.1, %v1920_v5  ;;  %v1923_v38 = vadd.f32 %v1922_v48, %v1762_v6  ;;  %11450 = vmatprep.mubr.bf16.mxu0 %v2818_v32  ;;  %v2345_v39 = vrot.slane %v2343_v22, 4 }
 0x1b9   : > { %v2350_v40 = vrot.slane %v2348_v61, 3  ;;  %v2353_v41 = vrot.slane %v2351_v30, 4  ;;  %v2820_v44 = vshrl.u32 %v2712_v25, 16  ;;  %v2823_v46 = vshll.u32 %v2712_v25, 16 }
 0x1ba   : > { %v2062_v45 = vsel %vm1998_vm10, %v1920_v5, %v2030_v33  ;;  %vm1999_vm11 = vcmp.ge.f32.partialorder %v1923_v38, 0.0  ;;  %v2031_v43 = vmul.f32 0.1, %v1923_v38  ;;  %v2346_v47 = vor.u32 %v2345_v39, %v2342_v29  ;;  %v2714_v5 = vld [vmem:[#allocation2 + $0x60] sm:$0xf0] }
 0x1bb   : > { %v2354_v49 = vor.u32 %v2353_v41, %v2350_v40  ;;  %v2822_v50 = vrot.slane %v2820_v44, 4  ;;  %v2828_v28 = vshrl.u32 %v2713_v10, 16  ;;  %v2825_v54 = vrot.slane %v2823_v46, 5 }
 0x1bc   : > { %v2063_v63 = vsel %vm1999_vm11, %v1923_v38, %v2031_v43  ;;  %v2831_v55 = vshll.u32 %v2713_v10, 16  ;;  %v10634_v56 = vadd.f32 %v10633_v23, %v10632_v11  ;;  %v10638_v57 = vpop.f32.mrb[40].mxu0  ;;  %v10637_v42 = vadd.f32 %v10636_v31, %v10635_v19  ;;  %v2715_v19 = vld [vmem:[#allocation2 + $0x68] sm:$0x1f] }
 0x1bd   : > { %v12556_v60 = vpop.f32.mrb[20].mxu1  ;;  %v2086_v34 = vpack.c.bf16 %v2063_v63, %v2062_v45  ;;  %v2355_v52 = vsel %vm676_vm15, %v2346_v47, %v2354_v49  ;;  %v2830_v36 = vrot.slane %v2828_v28, 4  ;;  %v10639_v0 = vpop.f32.mrb[41].mxu0  ;;  %v2826_v12 = vor.u32 %v2825_v54, %v2822_v50 }
 0x1be   : > { %v12559_v4 = vpop.f32.mrb[21].mxu1  ;;  %3308 = vmatmul.mubr.bf16.gmra.mrb[52].mxu1 %v2355_v52  ;;  %v2833_v1 = vrot.slane %v2831_v55, 5  ;;  %v1767_v35 = vadd.f32 %v10634_v56, %v12507_v8  ;;  %v2640_v3 = vrot.slane %v2570_v37, 4  ;;  %v10641_v13 = vpop.f32.mrb[42].mxu0  ;;  %v1770_v48 = vadd.f32 %v10637_v42, %v12507_v8  ;;  %v2572_v32 = vld [vmem:[#allocation2 + $0x70] sm:$0xf0] }
 0x1bf   : > { %v12562_v59 = vpop.f32.mrb[22].mxu1  ;;  %v2118_v9 = vrot.slane %v2086_v34, 4  ;;  %v2641_v14 = vrot.slane %v2571_v51, 4  ;;  %v2357_v15 = vshrl.u32 %v2234_v58, 16  ;;  %v10642_v18 = vpop.f32.mrb[43].mxu0  ;;  %v2360_v16 = vshll.u32 %v2234_v58, 16 }
 0x1c0   : > { %v12565_v20 = vpop.f32.mrb[23].mxu1  ;;  %v2834_v11 = vor.u32 %v2833_v1, %v2830_v36  ;;  %v1928_v17 = vadd.f32 %v12547_v27, %v1767_v35  ;;  %v2365_v62 = vshrl.u32 %v2235_v53, 16  ;;  %v1931_v7 = vadd.f32 %v12549_v2, %v1770_v48  ;;  %v2573_v41 = vld [vmem:[#allocation2 + $0x78] sm:$0xf]  ;;  %v2236_v49 = vld [vmem:[#allocation2 + $0x70] sm:$0xf8] }
 0x1c1   : > { %2158 = vst [vmem:[#allocation2 + $0x88] ss:$-4 sps:$4 sm:$0xff] %v2118_v9   ;;  %v2642_v21 = vsel %vm1045_vm8, %v2640_v3, %v2641_v14  ;;  %v2359_v23 = vrot.slane %v2357_v15, 3  ;;  %v2368_v24 = vshll.u32 %v2235_v53, 16  ;;  %v2362_v25 = vrot.slane %v2360_v16, 4 }
 0x1c2   : > { %v2835_v6 = vsel %vm1158_vm0, %v2826_v12, %v2834_v11  ;;  %vm2000_vm12 = vcmp.ge.f32.partialorder %v1928_v17, 0.0  ;;  %v2032_v22 = vmul.f32 0.1, %v1928_v17  ;;  %3315 = vmatprep.mubr.bf16.mxu1 %v2642_v21  ;;  %vm2001_vm13 = vcmp.ge.f32.partialorder %v1931_v7, 0.0  ;;  %v2237_v54 = vld [vmem:[#allocation2 + $0x78] sm:$0xf] }
 0x1c3   : > { %11451 = vmatmul.mubr.bf16.gmra.mrb[72].mxu0 %v2835_v6  ;;  %v2033_v27 = vmul.f32 0.1, %v1931_v7  ;;  %v2367_v26 = vrot.slane %v2365_v62, 3  ;;  %v2370_v29 = vrot.slane %v2368_v24, 4  ;;  %v2363_v30 = vor.u32 %v2362_v25, %v2359_v23  ;;  %v2716_v3 = vld [vmem:[#allocation2 + $0x70] sm:$0xf0] }
 0x1c4   : > { %v2064_v61 = vsel %vm2000_vm12, %v1928_v17, %v2032_v22  ;;  %v2837_v2 = vshrl.u32 %v2714_v5, 16  ;;  %v2840_v31 = vshll.u32 %v2714_v5, 16  ;;  %v12571_v33 = vpop.f32.mrb[44].mxu0  ;;  %v2845_v39 = vshrl.u32 %v2715_v19, 16  ;;  %v2717_v15 = vld [vmem:[#allocation2 + $0x78] sm:$0x1f] }
 0x1c5   : > { %v2065_v38 = vsel %vm2001_vm13, %v1931_v7, %v2033_v27  ;;  %v2371_v10 = vor.u32 %v2370_v29, %v2367_v26  ;;  %v2848_v40 = vshll.u32 %v2715_v19, 16  ;;  %v10645_v44 = vpop.f32.mrb[45].mxu0  ;;  %v10640_v47 = vadd.f32 %v10639_v0, %v10638_v57 }
 0x1c6   : > { %v2087_v45 = vpack.c.bf16 %v2065_v38, %v2064_v61  ;;  %v2839_v43 = vrot.slane %v2837_v2, 4  ;;  %v2842_v46 = vrot.slane %v2840_v31, 5  ;;  %v10647_v50 = vpop.f32.mrb[46].mxu0  ;;  %v2847_v37 = vrot.slane %v2845_v39, 4 }
 0x1c7   : > { %v2372_v28 = vsel %vm676_vm15, %v2363_v30, %v2371_v10  ;;  %v2850_v51 = vrot.slane %v2848_v40, 5  ;;  %v10643_v63 = vadd.f32 %v10642_v18, %v10641_v13  ;;  %v10648_v55 = vpop.f32.mrb[47].mxu0  ;;  %v1775_v34 = vadd.f32 %v10640_v47, %v12507_v8  ;;  %v12595_v47 = vld [vmem:[%s13729_s3] ss:$0 sm:$0xff] }
 0x1c8   : > { %v2119_v56 = vrot.slane %v2087_v45, 4  ;;  %3316 = vmatmul.mubr.bf16.gmra.mrb[56].mxu1 %v2372_v28  ;;  %v2843_v58 = vor.u32 %v2842_v46, %v2839_v43  ;;  %v2643_v52 = vrot.slane %v2572_v32, 4  ;;  %v2644_v53 = vrot.slane %v2573_v41, 4  ;;  %v2574_v5 = vld [vmem:[#allocation2 + $0x80] sm:$0xf0] }
 0x1c9   : > { %v2851_v36 = vor.u32 %v2850_v51, %v2847_v37  ;;  %v1778_v42 = vadd.f32 %v10643_v63, %v12507_v8  ;;  %v2374_v57 = vshrl.u32 %v2236_v49, 16  ;;  %v1936_v0 = vadd.f32 %v12559_v4, %v1775_v34  ;;  %v2575_v26 = vld [vmem:[#allocation2 + $0x88] sm:$0xf]  ;;  %v2238_v32 = vld [vmem:[#allocation2 + $0x80] sm:$0xf8] }
 0x1ca   : > { %2160 = vst [vmem:[#allocation2 + $0x98] ss:$-4 sps:$4 sm:$0xff] %v2119_v56   ;;  %v2377_v12 = vshll.u32 %v2236_v49, 16  ;;  %v2382_v1 = vshrl.u32 %v2237_v54, 16  ;;  %v2385_v35 = vshll.u32 %v2237_v54, 16  ;;  %v2645_v48 = vsel %vm1045_vm8, %v2643_v52, %v2644_v53 }
 0x1cb   : > { %v2852_v13 = vsel %vm1158_vm0, %v2843_v58, %v2851_v36  ;;  %v1939_v9 = vadd.f32 %v12565_v20, %v1778_v42  ;;  %v2376_v14 = vrot.slane %v2374_v57, 3  ;;  %vm2002_vm14 = vcmp.ge.f32.partialorder %v1936_v0, 0.0  ;;  %3323 = vmatprep.mubr.bf16.mxu1 %v2645_v48  ;;  %v2239_v41 = vld [vmem:[#allocation2 + $0x88] sm:$0xf]  ;;  %v2718_v34 = vld [vmem:[#allocation2 + $0x80] sm:$0xf0] }
 0x1cc   : > { %11454 = vmatprep.mubr.bf16.mxu0 %v2852_v13  ;;  %v2034_v8 = vmul.f32 0.1, %v1936_v0  ;;  %v2379_v18 = vrot.slane %v2377_v12, 4  ;;  %v2384_v11 = vrot.slane %v2382_v1, 3  ;;  %v12580_v17 = vpop.f32.mrb[48].mxu0  ;;  %v2387_v16 = vrot.slane %v2385_v35, 4 }
 0x1cd   : > { %vm2003_vm1 = vcmp.ge.f32.partialorder %v1939_v9, 0.0  ;;  %v2035_v4 = vmul.f32 0.1, %v1939_v9  ;;  %v2854_v62 = vshrl.u32 %v2716_v3, 16  ;;  %v12582_v7 = vpop.f32.mrb[49].mxu0  ;;  %v2857_v23 = vshll.u32 %v2716_v3, 16 }
 0x1ce   : > { %v2066_v21 = vsel %vm2002_vm14, %v1936_v0, %v2034_v8  ;;  %v2380_v20 = vor.u32 %v2379_v18, %v2376_v14  ;;  %v2862_v24 = vshrl.u32 %v2717_v15, 16  ;;  %v12584_v6 = vpop.f32.mrb[50].mxu0  ;;  %v2388_v25 = vor.u32 %v2387_v16, %v2384_v11  ;;  %v2719_v0 = vld [vmem:[#allocation2 + $0x88] sm:$0x1f] }
 0x1cf   : > { %v2067_v22 = vsel %vm2003_vm1, %v1939_v9, %v2035_v4  ;;  %v2856_v19 = vrot.slane %v2854_v62, 4  ;;  %v2865_v27 = vshll.u32 %v2717_v15, 16  ;;  %v12586_v29 = vpop.f32.mrb[51].mxu0  ;;  %v2859_v30 = vrot.slane %v2857_v23, 5 }
 0x1d0   : > { %v2088_v61 = vpack.c.bf16 %v2067_v22, %v2066_v21  ;;  %v2864_v2 = vrot.slane %v2862_v24, 4  ;;  %v10646_v31 = vadd.f32 %v10645_v44, %v12571_v33  ;;  %v2389_v38 = vsel %vm676_vm15, %v2380_v20, %v2388_v25 }
 0x1d1   : > { %v2867_v10 = vrot.slane %v2865_v27, 5  ;;  %v10649_v39 = vadd.f32 %v10648_v55, %v10647_v50  ;;  %v2646_v40 = vrot.slane %v2574_v5, 4  ;;  %3324 = vmatmul.mubr.bf16.gmra.mrb[60].mxu1 %v2389_v38  ;;  %v2860_v46 = vor.u32 %v2859_v30, %v2856_v19  ;;  %v2576_v14 = vld [vmem:[#allocation2 + $0x90] sm:$0xf0]  ;;  %v2577_v11 = vld [vmem:[#allocation2 + $0x98] sm:$0xf] }
 0x1d2   : > { %v2120_v43 = vrot.slane %v2088_v61, 4  ;;  %v1783_v49 = vadd.f32 %v12595_v47, %v10646_v31  ;;  %v2647_v33 = vrot.slane %v2575_v26, 4  ;;  %v2391_v50 = vshrl.u32 %v2238_v32, 16  ;;  %v2240_v23 = vld [vmem:[#allocation2 + $0x90] sm:$0xf8] }
 0x1d3   : > { %v12590_v45 = vpop.f32.mrb[24].mxu1  ;;  %v2868_v28 = vor.u32 %v2867_v10, %v2864_v2  ;;  %v1786_v37 = vadd.f32 %v12595_v47, %v10649_v39  ;;  %v2394_v51 = vshll.u32 %v2238_v32, 16  ;;  %v2399_v56 = vshrl.u32 %v2239_v41, 16  ;;  %v2241_v2 = vld [vmem:[#allocation2 + $0x98] sm:$0xf] }
 0x1d4   : > { %v1951_v44 = vpop.f32.mrb[25].mxu1  ;;  %2162 = vst [vmem:[#allocation2 + $0xa8] ss:$-4 sps:$4 sm:$0xff] %v2120_v43   ;;  %v1944_v54 = vadd.f32 %v12556_v60, %v1783_v49  ;;  %v2648_v55 = vsel %vm1045_vm8, %v2646_v40, %v2647_v33  ;;  %v2402_v58 = vshll.u32 %v2239_v41, 16  ;;  %v2393_v53 = vrot.slane %v2391_v50, 3 }
 0x1d5   : > { %v12599_v63 = vpop.f32.mrb[26].mxu1  ;;  %v2869_v36 = vsel %vm1158_vm0, %v2860_v46, %v2868_v28  ;;  %v1947_v42 = vadd.f32 %v12562_v59, %v1786_v37  ;;  %3331 = vmatprep.mubr.bf16.mxu1 %v2648_v55  ;;  %v2396_v57 = vrot.slane %v2394_v51, 4  ;;  %v2401_v60 = vrot.slane %v2399_v56, 3  ;;  %v2720_v41 = vld [vmem:[#allocation2 + $0x90] sm:$0xf0] }
 0x1d6   : > { %v1954_v52 = vpop.f32.mrb[27].mxu1  ;;  %v12605_v12 = vpop.f32.mrb[52].mxu0  ;;  %11455 = vmatmul.mubr.bf16.gmra.mrb[76].mxu0 %v2869_v36  ;;  %vm2004_vm2 = vcmp.ge.f32.partialorder %v1944_v54, 0.0  ;;  %v2036_v1 = vmul.f32 0.1, %v1944_v54  ;;  %v2404_v35 = vrot.slane %v2402_v58, 4  ;;  %v10652_v20 = vadd.f32 %v12582_v7, %v12580_v17 }
 0x1d7   : > { %v12607_v3 = vpop.f32.mrb[53].mxu0  ;;  %vm2005_vm3 = vcmp.ge.f32.partialorder %v1947_v42, 0.0  ;;  %v2037_v13 = vmul.f32 0.1, %v1947_v42  ;;  %v2397_v9 = vor.u32 %v2396_v57, %v2393_v53  ;;  %v2871_v48 = vshrl.u32 %v2718_v34, 16 }
 0x1d8   : > { %v2068_v15 = vsel %vm2004_vm2, %v1944_v54, %v2036_v1  ;;  %v2405_v59 = vor.u32 %v2404_v35, %v2401_v60  ;;  %v2874_v8 = vshll.u32 %v2718_v34, 16  ;;  %v2879_v18 = vshrl.u32 %v2719_v0, 16  ;;  %v12609_v4 = vpop.f32.mrb[54].mxu0 }
 0x1d9   : > { %v2069_v16 = vsel %vm2005_vm3, %v1947_v42, %v2037_v13  ;;  %v2873_v62 = vrot.slane %v2871_v48, 4  ;;  %v2882_v21 = vshll.u32 %v2719_v0, 16  ;;  %v12613_v24 = vpop.f32.mrb[55].mxu0  ;;  %v1791_v26 = vadd.f32 %v12595_v47, %v10652_v20 }
 0x1da   : > { %v2089_v5 = vpack.c.bf16 %v2069_v16, %v2068_v15  ;;  %v2406_v22 = vsel %vm676_vm15, %v2397_v9, %v2405_v59  ;;  %v2876_v25 = vrot.slane %v2874_v8, 5  ;;  %v2881_v19 = vrot.slane %v2879_v18, 4  ;;  %v11802_v16 = vld [vmem:[#allocation8 + $0x120] sm:$0xff]  }
 0x1db   : > { %3332 = vmatmul.mubr.bf16.gmra.mrb[64].mxu1 %v2406_v22  ;;  %v2884_v27 = vrot.slane %v2882_v21, 5  ;;  %v10655_v61 = vadd.f32 %v12586_v29, %v12584_v6  ;;  %v2649_v30 = vrot.slane %v2576_v14, 4  ;;  %v2650_v17 = vrot.slane %v2577_v11, 4  ;;  %v2721_v29 = vld [vmem:[#allocation2 + $0x98] sm:$0x1f]  ;;  %10842 = vmatprep.subr.bf16.mxu0 %v11802_v16 }
 0x1dc   : > { %v2121_v31 = vrot.slane %v2089_v5, 4  ;;  %v2877_v32 = vor.u32 %v2876_v25, %v2873_v62  ;;  %v2408_v7 = vshrl.u32 %v2240_v23, 16  ;;  %v1952_v10 = vadd.f32 %v1951_v44, %v1791_v26  ;;  %v2578_v36 = vld [vmem:[#allocation2 + $0xa0] sm:$0xf0]  ;;  %v2579_v48 = vld [vmem:[#allocation2 + $0xa8] sm:$0xf] }
 0x1dd   : > { %v2885_v38 = vor.u32 %v2884_v27, %v2881_v19  ;;  %v1794_v39 = vadd.f32 %v12595_v47, %v10655_v61  ;;  %v2411_v40 = vshll.u32 %v2240_v23, 16  ;;  %v2651_v46 = vsel %vm1045_vm8, %v2649_v30, %v2650_v17  ;;  %v2242_v11 = vld [vmem:[#allocation2 + $0xa0] sm:$0xf8]  ;;  %v2243_v22 = vld [vmem:[#allocation2 + $0xa8] sm:$0xf] }
 0x1de   : > { %v12620_v43 = vpop.f32.mrb[56].mxu0  ;;  %2164 = vst [vmem:[#allocation2 + $0xb8] ss:$-4 sps:$4 sm:$0xff] %v2121_v31   ;;  %v2410_v49 = vrot.slane %v2408_v7, 3  ;;  %v2416_v33 = vshrl.u32 %v2241_v2, 16  ;;  %v2419_v6 = vshll.u32 %v2241_v2, 16  ;;  %3339 = vmatprep.mubr.bf16.mxu1 %v2651_v46  ;;  %v10658_v18 = vadd.f32 %v12607_v3, %v12605_v12 }
 0x1df   : > { %v12623_v28 = vpop.f32.mrb[57].mxu0  ;;  %v2886_v37 = vsel %vm1158_vm0, %v2877_v32, %v2885_v38  ;;  %vm2006_vm4 = vcmp.ge.f32.partialorder %v1952_v10, 0.0  ;;  %v2038_v50 = vmul.f32 0.1, %v1952_v10  ;;  %v1955_v44 = vadd.f32 %v1954_v52, %v1794_v39  ;;  %v12626_v51 = vpop.f32.mrb[28].mxu1  ;;  %v11803_v62 = vld [vmem:[#allocation8 + $0xe0] sm:$0xff]  }
 0x1e0   : > { %v12628_v54 = vpop.f32.mrb[58].mxu0  ;;  %11458 = vmatprep.mubr.bf16.mxu0 %v2886_v37  ;;  %v2413_v55 = vrot.slane %v2411_v40, 4  ;;  %v2418_v56 = vrot.slane %v2416_v33, 3  ;;  %v2421_v58 = vrot.slane %v2419_v6, 4  ;;  %v2888_v34 = vshrl.u32 %v2720_v41, 16  ;;  %v12630_v42 = vpop.f32.mrb[29].mxu1  ;;  %10843 = vmatpush3.bf16.msra.mxu0 %v11803_v62 }
 0x1e1   : > { %v12632_v53 = vpop.f32.mrb[59].mxu0  ;;  %v2070_v57 = vsel %vm2006_vm4, %v1952_v10, %v2038_v50  ;;  %vm2007_vm5 = vcmp.ge.f32.partialorder %v1955_v44, 0.0  ;;  %v2039_v0 = vmul.f32 0.1, %v1955_v44  ;;  %v2891_v1 = vshll.u32 %v2720_v41, 16  ;;  %v12634_v52 = vpop.f32.mrb[30].mxu1 }
 0x1e2   : > { %v2414_v60 = vor.u32 %v2413_v55, %v2410_v49  ;;  %v2422_v35 = vor.u32 %v2421_v58, %v2418_v56  ;;  %v2890_v13 = vrot.slane %v2888_v34, 4  ;;  %v2896_v9 = vshrl.u32 %v2721_v29, 16  ;;  %v12636_v14 = vpop.f32.mrb[31].mxu1  ;;  %v2722_v17 = vld [vmem:[#allocation2 + $0xa0] sm:$0xf0] }
 0x1e3   : > { %v2071_v15 = vsel %vm2007_vm5, %v1955_v44, %v2039_v0  ;;  %v2893_v59 = vrot.slane %v2891_v1, 5  ;;  %v2899_v8 = vshll.u32 %v2721_v29, 16  ;;  %v10661_v5 = vadd.f32 %v12613_v24, %v12609_v4  ;;  %v2723_v40 = vld [vmem:[#allocation2 + $0xa8] sm:$0x1f] }
 0x1e4   : > { %v2090_v21 = vpack.c.bf16 %v2071_v15, %v2070_v57  ;;  %v2423_v20 = vsel %vm676_vm15, %v2414_v60, %v2422_v35  ;;  %v2898_v23 = vrot.slane %v2896_v9, 4  ;;  %v1799_v27 = vadd.f32 %v12595_v47, %v10658_v18 }
 0x1e5   : > { %3340 = vmatmul.mubr.bf16.gmra.mrb[68].mxu1 %v2423_v20  ;;  %v2894_v25 = vor.u32 %v2893_v59, %v2890_v13  ;;  %v2901_v19 = vrot.slane %v2899_v8, 5  ;;  %v2652_v26 = vrot.slane %v2578_v36, 4  ;;  %v1802_v12 = vadd.f32 %v12595_v47, %v10661_v5  ;;  %v2580_v0 = vld [vmem:[#allocation2 + $0xb0] sm:$0xf0]  ;;  %v2581_v9 = vld [vmem:[#allocation2 + $0xb8] sm:$0xf] }
 0x1e6   : > { %v2122_v61 = vrot.slane %v2090_v21, 4  ;;  %v2653_v3 = vrot.slane %v2579_v48, 4  ;;  %v2425_v30 = vshrl.u32 %v2242_v11, 16  ;;  %v12645_v2 = vpop.f32.mrb[60].mxu0  ;;  %v1960_v32 = vadd.f32 %v12590_v45, %v1799_v27  ;;  %v2244_v48 = vld [vmem:[#allocation2 + $0xb0] sm:$0xf8] }
 0x1e7   : > { %v2902_v31 = vor.u32 %v2901_v19, %v2898_v23  ;;  %v2428_v4 = vshll.u32 %v2242_v11, 16  ;;  %v2433_v24 = vshrl.u32 %v2243_v22, 16  ;;  %v1963_v7 = vadd.f32 %v12599_v63, %v1802_v12  ;;  %v12650_v41 = vpop.f32.mrb[61].mxu0  ;;  %v2245_v11 = vld [vmem:[#allocation2 + $0xb8] sm:$0xf] }
 0x1e8   : > { %2166 = vst [vmem:[#allocation2 + $0xc8] ss:$-4 sps:$4 sm:$0xff] %v2122_v61   ;;  %v2654_v38 = vsel %vm1045_vm8, %v2652_v26, %v2653_v3  ;;  %v2427_v10 = vrot.slane %v2425_v30, 3  ;;  %v2436_v39 = vshll.u32 %v2243_v22, 16  ;;  %vm2008_vm6 = vcmp.ge.f32.partialorder %v1960_v32, 0.0  ;;  %v12653_v45 = vpop.f32.mrb[62].mxu0 }
 0x1e9   : > { %v2903_v46 = vsel %vm1158_vm0, %v2894_v25, %v2902_v31  ;;  %v2040_v49 = vmul.f32 0.1, %v1960_v32  ;;  %3347 = vmatprep.mubr.bf16.mxu1 %v2654_v38  ;;  %v2430_v33 = vrot.slane %v2428_v4, 4  ;;  %vm2009_vm7 = vcmp.ge.f32.partialorder %v1963_v7, 0.0  ;;  %v12655_v37 = vpop.f32.mrb[63].mxu0 }
 0x1ea   : > { %11459 = vmatmul.mubr.bf16.gmra.mrb[80].mxu0 %v2903_v46  ;;  %v2041_v6 = vmul.f32 0.1, %v1963_v7  ;;  %v2435_v29 = vrot.slane %v2433_v24, 3  ;;  %v2438_v63 = vrot.slane %v2436_v39, 4  ;;  %v2905_v55 = vshrl.u32 %v2722_v17, 16 }
 0x1eb   : > { %v2072_v50 = vsel %vm2008_vm6, %v1960_v32, %v2040_v49  ;;  %v2431_v44 = vor.u32 %v2430_v33, %v2427_v10  ;;  %v2908_v56 = vshll.u32 %v2722_v17, 16  ;;  %v2913_v36 = vshrl.u32 %v2723_v40, 16  ;;  %v2724_v26 = vld [vmem:[#allocation2 + $0xb0] sm:$0xf0]  ;;  %v2725_v3 = vld [vmem:[#allocation2 + $0xb8] sm:$0x1f] }
 0x1ec   : > { %v2073_v58 = vsel %vm2009_vm7, %v1963_v7, %v2041_v6  ;;  %v2439_v34 = vor.u32 %v2438_v63, %v2435_v29  ;;  %v2916_v57 = vshll.u32 %v2723_v40, 16  ;;  %v2907_v60 = vrot.slane %v2905_v55, 4  ;;  %v11804_v6 = vld [vmem:[#allocation8 + $0x170] sm:$0xff]  }
 0x1ed   : > { %v2091_v1 = vpack.c.bf16 %v2073_v58, %v2072_v50  ;;  %v2910_v35 = vrot.slane %v2908_v56, 5  ;;  %v10664_v13 = vadd.f32 %v12623_v28, %v12620_v43  ;;  %v2915_v59 = vrot.slane %v2913_v36, 4  ;;  %11486 = vmatprep.subr.bf16.mxu1 %v11804_v6 }
 0x1ee   : > { %v2440_v15 = vsel %vm676_vm15, %v2431_v44, %v2439_v34  ;;  %v2918_v8 = vrot.slane %v2916_v57, 5  ;;  %v10667_v18 = vadd.f32 %v12632_v53, %v12628_v54  ;;  %v2655_v20 = vrot.slane %v2580_v0, 4  ;;  %11487 = vmatpush3.bf16.msra.mxu1 %v11804_v6 }
 0x1ef   : > { %v2123_v16 = vrot.slane %v2091_v1, 4  ;;  %3348 = vmatmul.mubr.bf16.gmra.mrb[72].mxu1 %v2440_v15  ;;  %v2911_v62 = vor.u32 %v2910_v35, %v2907_v60  ;;  %v1807_v21 = vadd.f32 %v12595_v47, %v10664_v13  ;;  %v2656_v43 = vrot.slane %v2581_v9, 4  ;;  %v2582_v39 = vld [vmem:[#allocation2 + $0xc0] sm:$0xf0]  ;;  %v2583_v33 = vld [vmem:[#allocation2 + $0xc8] sm:$0xf] }
 0x1f0   : > { %v2919_v23 = vor.u32 %v2918_v8, %v2915_v59  ;;  %v1810_v5 = vadd.f32 %v12595_v47, %v10667_v18  ;;  %v2442_v28 = vshrl.u32 %v2244_v48, 16  ;;  %v2445_v25 = vshll.u32 %v2244_v48, 16  ;;  %v2246_v55 = vld [vmem:[#allocation2 + $0xc0] sm:$0xf8]  ;;  %v2247_v57 = vld [vmem:[#allocation2 + $0xc8] sm:$0xf] }
 0x1f1   : > { %2168 = vst [vmem:[#allocation2 + $0xd8] ss:$-4 sps:$4 sm:$0xff] %v2123_v16   ;;  %v1968_v22 = vadd.f32 %v12630_v42, %v1807_v21  ;;  %v2450_v19 = vshrl.u32 %v2245_v11, 16  ;;  %v2453_v27 = vshll.u32 %v2245_v11, 16  ;;  %v2657_v61 = vsel %vm1045_vm8, %v2655_v20, %v2656_v43  ;;  %v2726_v59 = vld [vmem:[#allocation2 + $0xc0] sm:$0xf0] }
 0x1f2   : > { %v2920_v54 = vsel %vm1158_vm0, %v2911_v62, %v2919_v23  ;;  %v1971_v53 = vadd.f32 %v12636_v14, %v1810_v5  ;;  %v2444_v12 = vrot.slane %v2442_v28, 3  ;;  %3355 = vmatprep.mubr.bf16.mxu1 %v2657_v61  ;;  %v2447_v31 = vrot.slane %v2445_v25, 4  ;;  %v2727_v62 = vld [vmem:[#allocation2 + $0xc8] sm:$0x1f]  ;;  %v11807_v25 = vld [vmem:[#allocation8 + $0x130] sm:$0xff]  }
 0x1f3   : > { %11462 = vmatprep.mubr.bf16.mxu0 %v2920_v54  ;;  %vm2010_vm9 = vcmp.ge.f32.partialorder %v1968_v22, 0.0  ;;  %v2042_v30 = vmul.f32 0.1, %v1968_v22  ;;  %v2452_v32 = vrot.slane %v2450_v19, 3  ;;  %v2455_v4 = vrot.slane %v2453_v27, 4 }
 0x1f4   : > { %vm2011_vm10 = vcmp.ge.f32.partialorder %v1971_v53, 0.0  ;;  %v2043_v42 = vmul.f32 0.1, %v1971_v53  ;;  %v2922_v24 = vshrl.u32 %v2724_v26, 16  ;;  %v2448_v7 = vor.u32 %v2447_v31, %v2444_v12 }
 0x1f5   : > { %v2074_v17 = vsel %vm2010_vm9, %v1968_v22, %v2042_v30  ;;  %v2925_v38 = vshll.u32 %v2724_v26, 16  ;;  %v2930_v10 = vshrl.u32 %v2725_v3, 16  ;;  %v2456_v40 = vor.u32 %v2455_v4, %v2452_v32  ;;  %v11806_v22 = vld [vmem:[#allocation8 + $0xe8] sm:$0xff]   ;;  %v11808_v32 = vld [vmem:[#allocation8 + $0xf0] sm:$0xff]  }
 0x1f6   : > { %v2075_v14 = vsel %vm2011_vm10, %v1971_v53, %v2043_v42  ;;  %v2924_v46 = vrot.slane %v2922_v24, 4  ;;  %v2933_v49 = vshll.u32 %v2725_v3, 16  ;;  %v10670_v44 = vadd.f32 %v12650_v41, %v12645_v2 }
 0x1f7   : > { %v2092_v29 = vpack.c.bf16 %v2075_v14, %v2074_v17  ;;  %v2927_v63 = vrot.slane %v2925_v38, 5  ;;  %v2932_v50 = vrot.slane %v2930_v10, 4  ;;  %v2457_v56 = vsel %vm676_vm15, %v2448_v7, %v2456_v40 }
 0x1f8   : > { %v2935_v58 = vrot.slane %v2933_v49, 5  ;;  %v10673_v34 = vadd.f32 %v12655_v37, %v12653_v45  ;;  %v2658_v36 = vrot.slane %v2582_v39, 4  ;;  %3356 = vmatmul.mubr.bf16.gmra.mrb[76].mxu1 %v2457_v56  ;;  %v1815_v60 = vadd.f32 %v12595_v47, %v10670_v44  ;;  %v2585_v54 = vld [vmem:[#allocation2 + $0xd8] sm:$0xf]  ;;  %v2248_v53 = vld [vmem:[#allocation2 + $0xd0] sm:$0xf8] }
 0x1f9   : > { %v2124_v0 = vrot.slane %v2092_v29, 4  ;;  %v2928_v1 = vor.u32 %v2927_v63, %v2924_v46  ;;  %v2659_v35 = vrot.slane %v2583_v33, 4  ;;  %v2459_v2 = vshrl.u32 %v2246_v55, 16  ;;  %v2249_v31 = vld [vmem:[#allocation2 + $0xd8] sm:$0xf] }
 0x1fa   : > { %v2936_v13 = vor.u32 %v2935_v58, %v2932_v50  ;;  %v1818_v9 = vadd.f32 %v12595_v47, %v10673_v34  ;;  %v2462_v41 = vshll.u32 %v2246_v55, 16  ;;  %v1976_v48 = vadd.f32 %v12626_v51, %v1815_v60  ;;  %v2584_v47 = vld [vmem:[#allocation2 + $0xd0] sm:$0xf0]  ;;  %v11805_v51 = vld [vmem:[#allocation8 + $0x128] sm:$0xff]   ;;  %v2729_v6 = vld [vmem:[#allocation2 + $0xd8] sm:$0x1f] }
 0x1fb   : > { %2170 = vst [vmem:[#allocation2 + $0xe8] ss:$-4 sps:$4 sm:$0xff] %v2124_v0   ;;  %v2660_v45 = vsel %vm1045_vm8, %v2658_v36, %v2659_v35  ;;  %v2467_v37 = vshrl.u32 %v2247_v57, 16  ;;  %v2470_v15 = vshll.u32 %v2247_v57, 16  ;;  %v2461_v11 = vrot.slane %v2459_v2, 3  ;;  %10844 = vmatprep.subr.bf16.mxu0 %v11805_v51 }
 0x1fc   : > { %v2937_v8 = vsel %vm1158_vm0, %v2928_v1, %v2936_v13  ;;  %v1979_v18 = vadd.f32 %v12634_v52, %v1818_v9  ;;  %3363 = vmatprep.mubr.bf16.mxu1 %v2660_v45  ;;  %v2464_v16 = vrot.slane %v2462_v41, 4  ;;  %vm2012_vm11 = vcmp.ge.f32.partialorder %v1976_v48, 0.0  ;;  %10845 = vmatpush3.bf16.msra.mxu0 %v11806_v22  ;;  %v2728_v14 = vld [vmem:[#allocation2 + $0xd0] sm:$0xf0] }
 0x1fd   : > { %11463 = vmatmul.mubr.bf16.gmra.mrb[84].mxu0 %v2937_v8  ;;  %v2044_v21 = vmul.f32 0.1, %v1976_v48  ;;  %v2469_v20 = vrot.slane %v2467_v37, 3  ;;  %v2472_v23 = vrot.slane %v2470_v15, 4  ;;  %v2939_v28 = vshrl.u32 %v2726_v59, 16  ;;  %10846 = vmatprep.subr.bf16.mxu0 %v11807_v25 }
 0x1fe   : > { %vm2013_vm12 = vcmp.ge.f32.partialorder %v1979_v18, 0.0  ;;  %v2045_v5 = vmul.f32 0.1, %v1979_v18  ;;  %v2465_v43 = vor.u32 %v2464_v16, %v2461_v11  ;;  %v2942_v52 = vshll.u32 %v2726_v59, 16 }
 0x1ff   : > { %v2076_v19 = vsel %vm2012_vm11, %v1976_v48, %v2044_v21  ;;  %v2473_v27 = vor.u32 %v2472_v23, %v2469_v20  ;;  %v2947_v26 = vshrl.u32 %v2727_v62, 16  ;;  %v2941_v12 = vrot.slane %v2939_v28, 4 }
 0x200   : > { %v2077_v61 = vsel %vm2013_vm12, %v1979_v18, %v2045_v5  ;;  %v2950_v3 = vshll.u32 %v2727_v62, 16  ;;  %v2661_v30 = vrot.slane %v2584_v47, 4  ;;  %v2944_v24 = vrot.slane %v2942_v52, 5  ;;  %10847 = vmatpush3.bf16.msra.mxu0 %v11808_v32 }
 0x201   : > { %v2093_v42 = vpack.c.bf16 %v2077_v61, %v2076_v19  ;;  %v2474_v4 = vsel %vm676_vm15, %v2465_v43, %v2473_v27  ;;  %v2949_v17 = vrot.slane %v2947_v26, 4  ;;  %v2662_v38 = vrot.slane %v2585_v54, 4  ;;  %v11809_v19 = vld [vmem:[#allocation8 + $0x178] sm:$0xff]  }
 0x202   : > { %3364 = vmatmul.mubr.bf16.gmra.mrb[80].mxu1 %v2474_v4  ;;  %v2952_v7 = vrot.slane %v2950_v3, 5  ;;  %v2476_v10 = vshrl.u32 %v2248_v53, 16  ;;  %v2479_v39 = vshll.u32 %v2248_v53, 16  ;;  %v2945_v46 = vor.u32 %v2944_v24, %v2941_v12  ;;  %v2586_v55 = vld [vmem:[#allocation2 + $0xe0] sm:$0xf0]  ;;  %11488 = vmatprep.subr.bf16.mxu1 %v11809_v19 }
 0x203   : > { %v2125_v40 = vrot.slane %v2093_v42, 4  ;;  %v2484_v49 = vshrl.u32 %v2249_v31, 16  ;;  %v2487_v33 = vshll.u32 %v2249_v31, 16  ;;  %v2663_v63 = vsel %vm1045_vm8, %v2661_v30, %v2662_v38  ;;  %v2587_v56 = vld [vmem:[#allocation2 + $0xe8] sm:$0xf]  ;;  %11489 = vmatpush3.bf16.msra.mxu1 %v11809_v19 }
 0x204   : > { %v2953_v29 = vor.u32 %v2952_v7, %v2949_v17  ;;  %v2478_v50 = vrot.slane %v2476_v10, 3  ;;  %v2481_v44 = vrot.slane %v2479_v39, 4  ;;  %3371 = vmatprep.mubr.bf16.mxu1 %v2663_v63  ;;  %v2956_v36 = vshrl.u32 %v2728_v14, 16  ;;  %v2250_v0 = vld [vmem:[#allocation2 + $0xe0] sm:$0xf8] }
 0x205   : > { %2172 = vst [vmem:[#allocation2 + $0xf8] ss:$-4 sps:$4 sm:$0xff] %v2125_v40   ;;  %v2486_v58 = vrot.slane %v2484_v49, 3  ;;  %v2489_v34 = vrot.slane %v2487_v33, 4  ;;  %v2959_v57 = vshll.u32 %v2728_v14, 16  ;;  %v2964_v35 = vshrl.u32 %v2729_v6, 16 }
 0x206   : > { %v2954_v1 = vsel %vm1158_vm0, %v2945_v46, %v2953_v29  ;;  %v2482_v60 = vor.u32 %v2481_v44, %v2478_v50  ;;  %v2967_v13 = vshll.u32 %v2729_v6, 16  ;;  %v2251_v9 = vld [vmem:[#allocation2 + $0xe8] sm:$0xf]  ;;  %v2958_v41 = vrot.slane %v2956_v36, 4  ;;  %v2730_v18 = vld [vmem:[#allocation2 + $0xe0] sm:$0xf0] }
 0x207   : > { %11466 = vmatprep.mubr.bf16.mxu0 %v2954_v1  ;;  %v2490_v2 = vor.u32 %v2489_v34, %v2486_v58  ;;  %v2961_v48 = vrot.slane %v2959_v57, 5  ;;  %v2664_v45 = vrot.slane %v2586_v55, 4  ;;  %v2966_v37 = vrot.slane %v2964_v35, 4  ;;  %v2731_v21 = vld [vmem:[#allocation2 + $0xe8] sm:$0x1f]  ;;  %v11810_v36 = vld [vmem:[#allocation8 + $0x138] sm:$0xff]  }
 0x208   : > { %v2969_v15 = vrot.slane %v2967_v13, 5  ;;  %v2665_v59 = vrot.slane %v2587_v56, 4  ;;  %v2493_v8 = vshrl.u32 %v2250_v0, 16  ;;  %v2496_v62 = vshll.u32 %v2250_v0, 16  ;;  %v11811_v57 = vld [vmem:[#allocation8 + $0xf8] sm:$0xff]   ;;  %10848 = vmatprep.subr.bf16.mxu0 %v11810_v36 }
 0x209   : > { %v2491_v11 = vsel %vm676_vm15, %v2482_v60, %v2490_v2  ;;  %v2962_v16 = vor.u32 %v2961_v48, %v2958_v41  ;;  %v2501_v47 = vshrl.u32 %v2251_v9, 16  ;;  %v2504_v5 = vshll.u32 %v2251_v9, 16  ;;  %10849 = vmatpush3.bf16.msra.mxu0 %v11811_v57 }
 0x20a   : > { %3372 = vmatmul.mubr.bf16.gmra.mrb[84].mxu1 %v2491_v11  ;;  %v2970_v20 = vor.u32 %v2969_v15, %v2966_v37  ;;  %v2666_v23 = vsel %vm1045_vm8, %v2664_v45, %v2665_v59  ;;  %v2495_v51 = vrot.slane %v2493_v8, 3  ;;  %v2498_v43 = vrot.slane %v2496_v62, 4 }
 0x20b   : > { %3379 = vmatprep.mubr.bf16.mxu1 %v2666_v23  ;;  %v2503_v28 = vrot.slane %v2501_v47, 3  ;;  %v2973_v22 = vshrl.u32 %v2730_v18, 16  ;;  %v2976_v25 = vshll.u32 %v2730_v18, 16  ;;  %v2506_v52 = vrot.slane %v2504_v5, 4 }
 0x20c   : > { %v2971_v27 = vsel %vm1158_vm0, %v2962_v16, %v2970_v20  ;;  %v2981_v26 = vshrl.u32 %v2731_v21, 16  ;;  %v2984_v54 = vshll.u32 %v2731_v21, 16  ;;  %v2588_v53 = vld [vmem:[#allocation2 + $0xf0] sm:$0xf0]  ;;  %v2499_v61 = vor.u32 %v2498_v43, %v2495_v51  ;;  %v2589_v30 = vld [vmem:[#allocation2 + $0xf8] sm:$0xf] }
 0x20d   : > { %11467 = vmatmul.mubr.bf16.gmra.mrb[88].mxu0 %v2971_v27  ;;  %v2975_v12 = vrot.slane %v2973_v22, 4  ;;  %v2978_v3 = vrot.slane %v2976_v25, 5  ;;  %v2667_v31 = vrot.slane %v2588_v53, 4  ;;  %v2507_v32 = vor.u32 %v2506_v52, %v2503_v28  ;;  %v2252_v17 = vld [vmem:[#allocation2 + $0xf0] sm:$0xf8] }
 0x20e   : > { %v2983_v42 = vrot.slane %v2981_v26, 4  ;;  %v2986_v4 = vrot.slane %v2984_v54, 5  ;;  %v2668_v24 = vrot.slane %v2589_v30, 4  ;;  %v2253_v38 = vld [vmem:[#allocation2 + $0xf8] sm:$0xf]  ;;  %v2510_v10 = vshrl.u32 %v2252_v17, 16 }
 0x20f   : > { %v2979_v7 = vor.u32 %v2978_v3, %v2975_v12  ;;  %v2513_v39 = vshll.u32 %v2252_v17, 16  ;;  %v2732_v14 = vld [vmem:[#allocation2 + $0xf0] sm:$0xf0]  ;;  %v2508_v40 = vsel %vm676_vm15, %v2499_v61, %v2507_v32  ;;  %v2518_v33 = vshrl.u32 %v2253_v38, 16  ;;  %v2733_v6 = vld [vmem:[#allocation2 + $0xf8] sm:$0x1f] }
 0x210   : > { %v2987_v46 = vor.u32 %v2986_v4, %v2983_v42  ;;  %v2669_v49 = vsel %vm1045_vm8, %v2667_v31, %v2668_v24  ;;  %v2512_v29 = vrot.slane %v2510_v10, 3  ;;  %v2521_v50 = vshll.u32 %v2253_v38, 16  ;;  %v12693_v21 = vld [vmem:[%s13730_s4] ss:$0 sm:$0xff]  ;;  %v11886_v31 = vld [vmem:[%s12298_s6 + $0x10] sm:$0xff]  ;;  %v11887_v24 = vld [vmem:[%s12298_s6 + $0x8] sm:$0xff] }
 0x211   : > { %v2515_v63 = vrot.slane %v2513_v39, 4  ;;  %v2990_v44 = vshrl.u32 %v2732_v14, 16  ;;  %v2520_v56 = vrot.slane %v2518_v33, 3  ;;  %v2993_v58 = vshll.u32 %v2732_v14, 16  ;;  %v11885_v12 = vld [vmem:[%s12298_s6] sm:$0xff]  ;;  %v11888_v38 = vld [vmem:[%s12298_s6 + $0x18] sm:$0xff] }
 0x212   : > { %3380 = vmatmul.mubr.bf16.gmra.mrb[88].mxu1 %v2508_v40  ;;  %v2988_v55 = vsel %vm1158_vm0, %v2979_v7, %v2987_v46  ;;  %v2998_v34 = vshrl.u32 %v2733_v6, 16  ;;  %v2523_v1 = vrot.slane %v2521_v50, 4  ;;  %v3001_v35 = vshll.u32 %v2733_v6, 16 }
 0x213   : > { %11470 = vmatprep.mubr.bf16.mxu0 %v2988_v55  ;;  %3387 = vmatprep.mubr.bf16.mxu1 %v2669_v49  ;;  %v2516_v0 = vor.u32 %v2515_v63, %v2512_v29  ;;  %v2992_v60 = vrot.slane %v2990_v44, 4  ;;  %v2995_v13 = vrot.slane %v2993_v58, 5  ;;  %vm3958_vm3 = vsmask.f32 5376 }
 0x214   : > { %v3000_v9 = vrot.slane %v2998_v34, 4  ;;  %v2524_v2 = vor.u32 %v2523_v1, %v2520_v56  ;;  %v3003_v41 = vrot.slane %v3001_v35, 5  ;;  %vm4439_vm5 = vsmask.f32 2304 }
 0x215   : > { %v2996_v48 = vor.u32 %v2995_v13, %v2992_v60 }
 0x216   : > { %v2525_v45 = vsel %vm676_vm15, %v2516_v0, %v2524_v2  ;;  %v3004_v37 = vor.u32 %v3003_v41, %v3000_v9 }
 0x218   : > { %v3005_v15 = vsel %vm1158_vm0, %v2996_v48, %v3004_v37 }
 0x219   : > { %11471 = vmatmul.mubr.bf16.gmra.mrb[92].mxu0 %v3005_v15 }
 0x21a   : > { %3388 = vmatmul.mubr.bf16.gmra.mrb[92].mxu1 %v2525_v45 }
 0x25f   : > { %v10714_v59 = vpop.f32.mrb[32].mxu1 }
 0x260   : > { %v10715_v8 = vpop.f32.mrb[33].mxu1 }
 0x261   : > { %v10716_v18 = vadd.f32 %v10715_v8, %v10714_v59  ;;  %v10717_v11 = vpop.f32.mrb[34].mxu1 }
 0x262   : > { %v10718_v16 = vpop.f32.mrb[35].mxu1 }
 0x263   : > { %v10719_v62 = vadd.f32 %v10718_v16, %v10717_v11  ;;  %v3270_v43 = vadd.f32 %v10716_v18, %v12693_v21 }
 0x265   : > { %v3273_v26 = vadd.f32 %v10719_v62, %v12693_v21 }
 0x269   : > { %v10720_v47 = vpop.f32.mrb[36].mxu1 }
 0x26a   : > { %v10721_v20 = vpop.f32.mrb[37].mxu1 }
 0x26b   : > { %v10722_v23 = vadd.f32 %v10721_v20, %v10720_v47  ;;  %v10723_v51 = vpop.f32.mrb[38].mxu1 }
 0x26c   : > { %v11444_v5 = vpop.f32.mrb[64].mxu0  ;;  %v10724_v28 = vpop.f32.mrb[39].mxu1 }
 0x26d   : > { %v3278_v22 = vadd.f32 %v10722_v23, %v12693_v21  ;;  %v3430_v25 = vpop.f32.mrb[65].mxu0  ;;  %v10725_v19 = vadd.f32 %v10724_v28, %v10723_v51 }
 0x26e   : > { %v3431_v27 = vadd.f32 %v3430_v25, %v3270_v43  ;;  %v11445_v52 = vpop.f32.mrb[66].mxu0 }
 0x26f   : > { %v3439_v54 = vadd.f32 %v11444_v5, %v3278_v22  ;;  %v3281_v53 = vadd.f32 %v10725_v19, %v12693_v21  ;;  %v3433_v61 = vpop.f32.mrb[67].mxu0  ;;  %v11889_v5 = vld [vmem:[%s12298_s6 + $0x30] sm:$0xff] }
 0x270   : > { %v12700_v3 = vadd.f32 %v11885_v12, %v3431_v27  ;;  %v3434_v30 = vadd.f32 %v3433_v61, %v3273_v26  ;;  %v11890_v27 = vld [vmem:[%s12298_s6 + $0x20] sm:$0xff] }
 0x271   : > { %v12703_v32 = vadd.f32 %v11886_v31, %v3439_v54  ;;  %v3442_v42 = vadd.f32 %v11445_v52, %v3281_v53 }
 0x272   : > { %v3717_v4 = vmul.f32 0.1, %v12700_v3  ;;  %v12707_v17 = vadd.f32 %v11887_v24, %v3434_v30  ;;  %vm3685_vm13 = vcmp.ge.f32.partialorder %v12700_v3, 0.0  ;;  %v11891_v30 = vld [vmem:[%s12298_s6 + $0x38] sm:$0xff] }
 0x273   : > { %v3719_v7 = vmul.f32 0.1, %v12703_v32  ;;  %v12712_v10 = vadd.f32 %v11888_v38, %v3442_v42  ;;  %vm3687_vm14 = vcmp.ge.f32.partialorder %v12703_v32, 0.0 }
 0x274   : > { %vm3686_vm1 = vcmp.ge.f32.partialorder %v12707_v17, 0.0  ;;  %v3718_v39 = vmul.f32 0.1, %v12707_v17  ;;  %v3749_v49 = vsel %vm3685_vm13, %v12700_v3, %v3717_v4 }
 0x275   : > { %v10726_v14 = vpop.f32.mrb[40].mxu1  ;;  %vm3688_vm2 = vcmp.ge.f32.partialorder %v12712_v10, 0.0  ;;  %v3720_v40 = vmul.f32 0.1, %v12712_v10  ;;  %v3751_v63 = vsel %vm3687_vm14, %v12703_v32, %v3719_v7  ;;  %v11892_v7 = vld [vmem:[%s12298_s6 + $0x28] sm:$0xff] }
 0x276   : > { %v10727_v46 = vpop.f32.mrb[41].mxu1  ;;  %v3750_v33 = vsel %vm3686_vm1, %v12707_v17, %v3718_v39 }
 0x277   : > { %v10728_v6 = vadd.f32 %v10727_v46, %v10726_v14  ;;  %v10729_v29 = vpop.f32.mrb[42].mxu1  ;;  %v3752_v50 = vsel %vm3688_vm2, %v12712_v10, %v3720_v40  ;;  %v3781_v44 = vpack.c.bf16 %v3750_v33, %v3749_v49 }
 0x278   : > { %v10730_v55 = vpop.f32.mrb[43].mxu1  ;;  %v3782_v56 = vpack.c.bf16 %v3752_v50, %v3751_v63 }
 0x279   : > { %v10731_v58 = vadd.f32 %v10730_v55, %v10729_v29  ;;  %v3813_v34 = vrot.slane %v3781_v44, 4  ;;  %v3286_v41 = vadd.f32 %v10728_v6, %v12693_v21 }
 0x27a   : > { %v3814_v36 = vrot.slane %v3782_v56, 4 }
 0x27b   : > { %3845 = vst [vmem:[#allocation2 + $0x8] ss:$-4 sps:$4 sm:$0xff] %v3813_v34   ;;  %v3289_v47 = vadd.f32 %v10731_v58, %v12693_v21 }
 0x27c   : > { %3847 = vst [vmem:[#allocation2 + $0x18] ss:$-4 sps:$4 sm:$0xff] %v3814_v36  }
 0x27e   : > { %v10732_v57 = vpop.f32.mrb[44].mxu1 }
 0x27f   : > { %v10733_v0 = vpop.f32.mrb[45].mxu1 }
 0x280   : > { %v10734_v1 = vadd.f32 %v10733_v0, %v10732_v57  ;;  %v10735_v60 = vpop.f32.mrb[46].mxu1 }
 0x281   : > { %v10736_v35 = vpop.f32.mrb[47].mxu1 }
 0x282   : > { %v3294_v13 = vadd.f32 %v10734_v1, %v12693_v21  ;;  %v10737_v9 = vadd.f32 %v10736_v35, %v10735_v60  ;;  %v4263_v48 = vld [vmem:[#allocation2] sm:$0xf0]  ;;  %v4264_v45 = vld [vmem:[#allocation2 + $0x8] sm:$0xf] }
 0x283   : > { %v11448_v2 = vpop.f32.mrb[68].mxu0  ;;  %v4327_v8 = vrot.slane %v4263_v48, 4  ;;  %v4328_v18 = vrot.slane %v4264_v45, 4  ;;  %v3926_v11 = vld [vmem:[#allocation2] sm:$0xfc] }
 0x284   : > { %v3455_v37 = vadd.f32 %v11448_v2, %v3294_v13  ;;  %v3446_v15 = vpop.f32.mrb[69].mxu0  ;;  %v3297_v59 = vadd.f32 %v10737_v9, %v12693_v21  ;;  %v3927_v20 = vld [vmem:[#allocation2 + $0x8] sm:$0x7]  ;;  %v3960_v23 = vshrl.u32 %v3926_v11, 16  ;;  %v3963_v51 = vshll.u32 %v3926_v11, 16 }
 0x285   : > { %v3447_v16 = vadd.f32 %v3446_v15, %v3286_v41  ;;  %v11449_v62 = vpop.f32.mrb[70].mxu0  ;;  %v4329_v25 = vsel %vm1045_vm8, %v4327_v8, %v4328_v18  ;;  %v3968_v19 = vshrl.u32 %v3927_v20, 16  ;;  %v4407_v40 = vld [vmem:[#allocation2] sm:$0xe0]  ;;  %v4408_v29 = vld [vmem:[#allocation2 + $0x8] sm:$0x3f] }
 0x286   : > { %v12728_v43 = vadd.f32 %v11889_v5, %v3455_v37  ;;  %v3458_v28 = vadd.f32 %v11449_v62, %v3297_v59  ;;  %v3449_v22 = vpop.f32.mrb[71].mxu0  ;;  %v10738_v54 = vpop.f32.mrb[48].mxu1  ;;  %4973 = vmatprep.mubr.bf16.mxu0 %v4329_v25  ;;  %v3962_v53 = vrot.slane %v3960_v23, 2  ;;  %v3965_v61 = vrot.slane %v3963_v51, 3  ;;  %v4265_v36 = vld [vmem:[#allocation2 + $0x10] sm:$0xf0] }
 0x287   : > { %v12732_v52 = vadd.f32 %v11890_v27, %v3447_v16  ;;  %v3450_v26 = vadd.f32 %v3449_v22, %v3289_v47  ;;  %v10739_v42 = vpop.f32.mrb[49].mxu1  ;;  %v3970_v4 = vrot.slane %v3968_v19, 2  ;;  %v3971_v56 = vshll.u32 %v3927_v20, 16  ;;  %v4266_v35 = vld [vmem:[#allocation2 + $0x18] sm:$0xf] }
 0x288   : > { %vm3691_vm4 = vcmp.ge.f32.partialorder %v12728_v43, 0.0  ;;  %v3723_v12 = vmul.f32 0.1, %v12728_v43  ;;  %v12737_v31 = vadd.f32 %v11891_v30, %v3458_v28  ;;  %v10740_v39 = vadd.f32 %v10739_v42, %v10738_v54  ;;  %v10741_v14 = vpop.f32.mrb[50].mxu1  ;;  %v4409_v48 = vld [vmem:[#allocation2 + $0x10] sm:$0xe0] }
 0x289   : > { %vm3689_vm6 = vcmp.ge.f32.partialorder %v12732_v52, 0.0  ;;  %v3721_v24 = vmul.f32 0.1, %v12732_v52  ;;  %v12742_v38 = vadd.f32 %v11892_v7, %v3450_v26  ;;  %v10742_v33 = vpop.f32.mrb[51].mxu1  ;;  %v3966_v6 = vor.u32 %v3965_v61, %v3962_v53  ;;  %v4410_v8 = vld [vmem:[#allocation2 + $0x18] sm:$0x3f] }
 0x28a   : > { %v3755_v46 = vsel %vm3691_vm4, %v12728_v43, %v3723_v12  ;;  %vm3692_vm7 = vcmp.ge.f32.partialorder %v12737_v31, 0.0  ;;  %v3724_v49 = vmul.f32 0.1, %v12737_v31  ;;  %v12750_v44 = vadd.f32 %v10742_v33, %v10741_v14  ;;  %v3928_v5 = vld [vmem:[#allocation2 + $0x10] sm:$0xfc] }
 0x28b   : > { %v3753_v63 = vsel %vm3689_vm6, %v12732_v52, %v3721_v24  ;;  %vm3690_vm9 = vcmp.ge.f32.partialorder %v12742_v38, 0.0  ;;  %v3722_v50 = vmul.f32 0.1, %v12742_v38  ;;  %v4441_v58 = vshrl.u32 %v4407_v40, 16  ;;  %v3929_v30 = vld [vmem:[#allocation2 + $0x18] sm:$0x7] }
 0x28c   : > { %v3756_v55 = vsel %vm3692_vm7, %v12737_v31, %v3724_v49  ;;  %v4444_v34 = vshll.u32 %v4407_v40, 16  ;;  %v4449_v1 = vshrl.u32 %v4408_v29, 16  ;;  %v4452_v60 = vshll.u32 %v4408_v29, 16 }
 0x28d   : > { %v3784_v57 = vpack.c.bf16 %v3756_v55, %v3755_v46  ;;  %v3754_v0 = vsel %vm3690_vm9, %v12742_v38, %v3722_v50  ;;  %v3973_v9 = vrot.slane %v3971_v56, 3  ;;  %v4443_v2 = vrot.slane %v4441_v58, 5 }
 0x28e   : > { %v3783_v13 = vpack.c.bf16 %v3754_v0, %v3753_v63  ;;  %v4446_v41 = vrot.slane %v4444_v34, 6  ;;  %v4451_v37 = vrot.slane %v4449_v1, 5  ;;  %v4454_v15 = vrot.slane %v4452_v60, 6 }
 0x28f   : > { %v3816_v45 = vrot.slane %v3784_v57, 4  ;;  %v4330_v59 = vrot.slane %v4265_v36, 4  ;;  %v3974_v11 = vor.u32 %v3973_v9, %v3970_v4  ;;  %v4331_v62 = vrot.slane %v4266_v35, 4  ;;  %v11893_v9 = vld [vmem:[%s12298_s6 + $0x50] sm:$0xff] }
 0x290   : > { %v3815_v18 = vrot.slane %v3783_v13, 4  ;;  %v4447_v16 = vor.u32 %v4446_v41, %v4443_v2  ;;  %v4455_v47 = vor.u32 %v4454_v15, %v4451_v37  ;;  %v4458_v23 = vshrl.u32 %v4409_v48, 16 }
 0x291   : > { %3851 = vst [vmem:[#allocation2 + $0x38] ss:$-4 sps:$4 sm:$0xff] %v3816_v45   ;;  %v10744_v20 = vpop.f32.mrb[52].mxu1  ;;  %v4461_v51 = vshll.u32 %v4409_v48, 16  ;;  %v3975_v28 = vsel %vm3958_vm3, %v3966_v6, %v3974_v11  ;;  %v4332_v22 = vsel %vm1045_vm8, %v4330_v59, %v4331_v62  ;;  %v4466_v19 = vshrl.u32 %v4410_v8, 16  ;;  %v11894_v59 = vld [vmem:[%s12298_s6 + $0x40] sm:$0xff] }
 0x292   : > { %3849 = vst [vmem:[#allocation2 + $0x28] ss:$-4 sps:$4 sm:$0xff] %v3815_v18   ;;  %v10745_v25 = vpop.f32.mrb[53].mxu1  ;;  %v4469_v27 = vshll.u32 %v4410_v8, 16  ;;  %4974 = vmatmul.mubr.bf16.vlgmr.msra.gmra.mrb[96].mxu0 %v3975_v28  ;;  %v4456_v26 = vsel %vm4439_vm5, %v4447_v16, %v4455_v47  ;;  %v4460_v61 = vrot.slane %v4458_v23, 5  ;;  %v3302_v42 = vadd.f32 %v10740_v39, %v12693_v21  ;;  %v11895_v47 = vld [vmem:[%s12298_s6 + $0x58] sm:$0xff] }
 0x293   : > { %v10746_v54 = vadd.f32 %v10745_v25, %v10744_v20  ;;  %v10747_v53 = vpop.f32.mrb[54].mxu1  ;;  %v4463_v12 = vrot.slane %v4461_v51, 6  ;;  %11490 = vmatprep.mubr.bf16.mxu1 %v4456_v26  ;;  %4981 = vmatprep.mubr.bf16.mxu0 %v4332_v22  ;;  %v4468_v4 = vrot.slane %v4466_v19, 5  ;;  %v3977_v14 = vshrl.u32 %v3928_v5, 16  ;;  %v11896_v28 = vld [vmem:[%s12298_s6 + $0x48] sm:$0xff] }
 0x294   : > { %v4471_v24 = vrot.slane %v4469_v27, 6  ;;  %v10748_v7 = vpop.f32.mrb[55].mxu1  ;;  %v3980_v33 = vshll.u32 %v3928_v5, 16  ;;  %v3985_v50 = vshrl.u32 %v3929_v30, 16  ;;  %v3988_v55 = vshll.u32 %v3929_v30, 16 }
 0x295   : > { %v3310_v40 = vadd.f32 %v10746_v54, %v12693_v21  ;;  %v4464_v46 = vor.u32 %v4463_v12, %v4460_v61  ;;  %v10749_v49 = vadd.f32 %v10748_v7, %v10747_v53  ;;  %v3979_v63 = vrot.slane %v3977_v14, 2 }
 0x296   : > { %v11452_v6 = vpop.f32.mrb[72].mxu0  ;;  %v4472_v29 = vor.u32 %v4471_v24, %v4468_v4  ;;  %v3305_v39 = vadd.f32 %v12750_v44, %v12693_v21  ;;  %v3982_v36 = vrot.slane %v3980_v33, 3  ;;  %v3987_v60 = vrot.slane %v3985_v50, 2 }
 0x297   : > { %v3471_v56 = vadd.f32 %v11452_v6, %v3310_v40  ;;  %v3462_v58 = vpop.f32.mrb[73].mxu0  ;;  %v3313_v34 = vadd.f32 %v10749_v49, %v12693_v21  ;;  %v3990_v35 = vrot.slane %v3988_v55, 3 }
 0x298   : > { %v3463_v57 = vadd.f32 %v3462_v58, %v3302_v42  ;;  %v11453_v0 = vpop.f32.mrb[74].mxu0  ;;  %v4473_v1 = vsel %vm4439_vm5, %v4464_v46, %v4472_v29  ;;  %v12763_v13 = vld [vmem:[#allocation2 + $0x30] sm:$0xf0]  ;;  %v3983_v45 = vor.u32 %v3982_v36, %v3979_v63 }
 0x299   : > { %v12766_v2 = vadd.f32 %v11893_v9, %v3471_v56  ;;  %11491 = vmatmul.mubr.bf16.vlgmr.msra.gmra.mrb[96].mxu1 %v4473_v1  ;;  %v3474_v41 = vadd.f32 %v11453_v0, %v3313_v34  ;;  %v3465_v48 = vpop.f32.mrb[75].mxu0  ;;  %v4267_v37 = vld [vmem:[#allocation2 + $0x20] sm:$0xf0]  ;;  %v4268_v44 = vld [vmem:[#allocation2 + $0x28] sm:$0xf]  ;;  %v4336_v15 = vrot.slane %v12763_v13, 4  ;;  %v3991_v11 = vor.u32 %v3990_v35, %v3987_v60 }
 0x29a   : > { %v12770_v8 = vadd.f32 %v11894_v59, %v3463_v57  ;;  %v3466_v18 = vadd.f32 %v3465_v48, %v3305_v39  ;;  %v4333_v16 = vrot.slane %v4267_v37, 4  ;;  %v4334_v51 = vrot.slane %v4268_v44, 4  ;;  %v3930_v27 = vld [vmem:[#allocation2 + $0x20] sm:$0xfc]  ;;  %v3931_v12 = vld [vmem:[#allocation2 + $0x28] sm:$0x7] }
 0x29b   : > { %vm3695_vm10 = vcmp.ge.f32.partialorder %v12766_v2, 0.0  ;;  %v3727_v62 = vmul.f32 0.1, %v12766_v2  ;;  %v12775_v20 = vadd.f32 %v11895_v47, %v3474_v41  ;;  %v10750_v23 = vpop.f32.mrb[56].mxu1  ;;  %v3992_v25 = vsel %vm3958_vm3, %v3983_v45, %v3991_v11  ;;  %v4411_v7 = vld [vmem:[#allocation2 + $0x20] sm:$0xe0] }
 0x29c   : > { %vm3693_vm11 = vcmp.ge.f32.partialorder %v12770_v8, 0.0  ;;  %v3725_v5 = vmul.f32 0.1, %v12770_v8  ;;  %v12780_v22 = vadd.f32 %v11896_v28, %v3466_v18  ;;  %v10751_v19 = vpop.f32.mrb[57].mxu1  ;;  %4982 = vmatmul.mubr.bf16.gmra.mrb[100].mxu0 %v3992_v25  ;;  %v4335_v4 = vsel %vm1045_vm8, %v4333_v16, %v4334_v51  ;;  %v4412_v50 = vld [vmem:[#allocation2 + $0x28] sm:$0x3f] }
 0x29d   : > { %v3759_v26 = vsel %vm3695_vm10, %v12766_v2, %v3727_v62  ;;  %vm3696_vm12 = vcmp.ge.f32.partialorder %v12775_v20, 0.0  ;;  %v3728_v54 = vmul.f32 0.1, %v12775_v20  ;;  %v10752_v53 = vadd.f32 %v10751_v19, %v10750_v23  ;;  %v10753_v61 = vpop.f32.mrb[58].mxu1  ;;  %4989 = vmatprep.mubr.bf16.mxu0 %v4335_v4  ;;  %v4270_v39 = vld [vmem:[#allocation2 + $0x38] sm:$0xf] }
 0x29e   : > { %v3757_v30 = vsel %vm3693_vm11, %v12770_v8, %v3725_v5  ;;  %vm3694_vm13 = vcmp.ge.f32.partialorder %v12780_v22, 0.0  ;;  %v3726_v42 = vmul.f32 0.1, %v12780_v22  ;;  %v10754_v24 = vpop.f32.mrb[59].mxu1  ;;  %v3994_v46 = vshrl.u32 %v3930_v27, 16 }
 0x29f   : > { %v3760_v14 = vsel %vm3696_vm12, %v12775_v20, %v3728_v54  ;;  %v10755_v40 = vadd.f32 %v10754_v24, %v10753_v61  ;;  %v3997_v49 = vshll.u32 %v3930_v27, 16  ;;  %v4002_v29 = vshrl.u32 %v3931_v12, 16  ;;  %v4413_v60 = vld [vmem:[#allocation2 + $0x30] sm:$0xe0]  ;;  %v4414_v18 = vld [vmem:[#allocation2 + $0x38] sm:$0x3f] }
 0x2a0   : > { %v3786_v33 = vpack.c.bf16 %v3760_v14, %v3759_v26  ;;  %v3758_v6 = vsel %vm3694_vm13, %v12780_v22, %v3726_v42  ;;  %v4005_v63 = vshll.u32 %v3931_v12, 16  ;;  %v3996_v56 = vrot.slane %v3994_v46, 2  ;;  %v3932_v51 = vld [vmem:[#allocation2 + $0x30] sm:$0xfc]  ;;  %v3933_v42 = vld [vmem:[#allocation2 + $0x38] sm:$0x7] }
 0x2a1   : > { %v3785_v55 = vpack.c.bf16 %v3758_v6, %v3757_v30  ;;  %v3999_v58 = vrot.slane %v3997_v49, 3  ;;  %v4475_v34 = vshrl.u32 %v4411_v7, 16  ;;  %v4004_v57 = vrot.slane %v4002_v29, 2  ;;  %v11812_v46 = vld [vmem:[#allocation10 + $0x140] sm:$0xff]   ;;  %v11813_v49 = vld [vmem:[#allocation10 + $0x148] sm:$0xff]  }
 0x2a2   : > { %v3818_v36 = vrot.slane %v3786_v33, 4  ;;  %v4007_v0 = vrot.slane %v4005_v63, 3  ;;  %v4478_v1 = vshll.u32 %v4411_v7, 16  ;;  %v4483_v48 = vshrl.u32 %v4412_v50, 16  ;;  %v11816_v63 = vld [vmem:[#allocation10 + $0x100] sm:$0xff]   ;;  %11522 = vmatprep.subr.bf16.mxu0 %v11812_v46 }
 0x2a3   : > { %v3817_v35 = vrot.slane %v3785_v55, 4  ;;  %v4000_v9 = vor.u32 %v3999_v58, %v3996_v56  ;;  %v4477_v41 = vrot.slane %v4475_v34, 5  ;;  %v4486_v44 = vshll.u32 %v4412_v50, 16  ;;  %v11817_v50 = vld [vmem:[#allocation10 + $0xc0] sm:$0xff]   ;;  %11523 = vmatpush3.bf16.msra.mxu0 %v11812_v46  ;;  %10970 = vmatprep.subr.bf16.mxu1 %v11816_v63  ;;  %v11815_v46 = vld [vmem:[#allocation10 + $0x158] sm:$0xff]  }
 0x2a4   : > { %3855 = vst [vmem:[#allocation2 + $0x58] ss:$-4 sps:$4 sm:$0xff] %v3818_v36   ;;  %v4008_v45 = vor.u32 %v4007_v0, %v4004_v57  ;;  %v4480_v37 = vrot.slane %v4478_v1, 6  ;;  %v4337_v59 = vrot.slane %v4270_v39, 4  ;;  %v4485_v11 = vrot.slane %v4483_v48, 5  ;;  %v10756_v16 = vpop.f32.mrb[60].mxu1  ;;  %11524 = vmatprep.subr.bf16.mxu0 %v11813_v49  ;;  %10971 = vmatpush3.bf16.msra.mxu1 %v11817_v50 }
 0x2a5   : > { %3853 = vst [vmem:[#allocation2 + $0x48] ss:$-4 sps:$4 sm:$0xff] %v3817_v35   ;;  %v3318_v62 = vadd.f32 %v10752_v53, %v12693_v21  ;;  %v4492_v47 = vshrl.u32 %v4413_v60, 16  ;;  %v4495_v23 = vshll.u32 %v4413_v60, 16  ;;  %v4488_v25 = vrot.slane %v4486_v44, 6  ;;  %v10757_v27 = vpop.f32.mrb[61].mxu1 }
 0x2a6   : > { %v4009_v5 = vsel %vm3958_vm3, %v4000_v9, %v4008_v45  ;;  %v4481_v28 = vor.u32 %v4480_v37, %v4477_v41  ;;  %v4338_v19 = vsel %vm1045_vm8, %v4336_v15, %v4337_v59  ;;  %v10758_v26 = vadd.f32 %v10757_v27, %v10756_v16  ;;  %v10759_v54 = vpop.f32.mrb[62].mxu1  ;;  %v11814_v44 = vld [vmem:[#allocation10 + $0x150] sm:$0xff]  }
 0x2a7   : > { %4990 = vmatmul.mubr.bf16.gmra.mrb[104].mxu0 %v4009_v5  ;;  %v4494_v61 = vrot.slane %v4492_v47, 5  ;;  %v4497_v12 = vrot.slane %v4495_v23, 6  ;;  %v4500_v30 = vshrl.u32 %v4414_v18, 16  ;;  %v4489_v53 = vor.u32 %v4488_v25, %v4485_v11  ;;  %v10760_v24 = vpop.f32.mrb[63].mxu1  ;;  %v11897_v59 = vld [vmem:[%s12298_s6 + $0x70] sm:$0xff]  ;;  %v11898_v11 = vld [vmem:[%s12298_s6 + $0x60] sm:$0xff] }
 0x2a8   : > { %4997 = vmatprep.mubr.bf16.mxu0 %v4338_v19  ;;  %v4503_v4 = vshll.u32 %v4414_v18, 16  ;;  %v3321_v7 = vadd.f32 %v10755_v40, %v12693_v21  ;;  %v4011_v14 = vshrl.u32 %v3932_v51, 16  ;;  %v3326_v15 = vadd.f32 %v10758_v26, %v12693_v21  ;;  %v11818_v40 = vld [vmem:[#allocation10 + $0x108] sm:$0xff]   ;;  %11525 = vmatpush3.bf16.msra.mxu0 %v11813_v49 }
 0x2a9   : > { %v11456_v13 = vpop.f32.mrb[76].mxu0  ;;  %v4498_v33 = vor.u32 %v4497_v12, %v4494_v61  ;;  %v4502_v6 = vrot.slane %v4500_v30, 5  ;;  %v10761_v29 = vadd.f32 %v10760_v24, %v10759_v54  ;;  %v4490_v55 = vsel %vm4439_vm5, %v4481_v28, %v4489_v53  ;;  %10972 = vmatprep.subr.bf16.mxu1 %v11818_v40  ;;  %v11820_v26 = vld [vmem:[#allocation10 + $0xc8] sm:$0xff]   ;;  %v11899_v12 = vld [vmem:[%s12298_s6 + $0x78] sm:$0xff]  ;;  %11526 = vmatprep.subr.bf16.mxu0 %v11814_v44 }
 0x2aa   : > { %v3478_v56 = vpop.f32.mrb[77].mxu0  ;;  %v4505_v58 = vrot.slane %v4503_v4, 6  ;;  %v12800_v34 = vrot.slane %v4011_v14, 2  ;;  %v4014_v39 = vshll.u32 %v3932_v51, 16  ;;  %11494 = vmatprep.mubr.bf16.mxu1 %v4490_v55  ;;  %v3487_v36 = vadd.f32 %v11456_v13, %v3326_v15  ;;  %10973 = vmatpush3.bf16.msra.mxu1 %v11820_v26  ;;  %v12832_v55 = vld [vmem:[#allocation10 + $0x160] sm:$0xff]  }
 0x2ab   : > { %v3479_v57 = vadd.f32 %v3478_v56, %v3318_v62  ;;  %v11457_v0 = vpop.f32.mrb[78].mxu0  ;;  %v3329_v1 = vadd.f32 %v10761_v29, %v12693_v21  ;;  %v4019_v60 = vshrl.u32 %v3933_v42, 16  ;;  %v12803_v35 = vld [vmem:[#allocation2 + $0x50] sm:$0xf0]  ;;  %v4022_v45 = vshll.u32 %v3933_v42, 16  ;;  %v11900_v42 = vld [vmem:[%s12298_s6 + $0x68] sm:$0xff] }
 0x2ac   : > { %v4506_v9 = vor.u32 %v4505_v58, %v4502_v6  ;;  %v3481_v41 = vpop.f32.mrb[79].mxu0  ;;  %v4016_v48 = vrot.slane %v4014_v39, 3  ;;  %v4342_v37 = vrot.slane %v12803_v35, 4  ;;  %v12807_v18 = vadd.f32 %v11897_v59, %v3487_v36  ;;  %v4271_v23 = vld [vmem:[#allocation2 + $0x40] sm:$0xf0]  ;;  %11527 = vmatpush3.bf16.msra.mxu0 %v11814_v44 }
 0x2ad   : > { %v12810_v16 = vadd.f32 %v11898_v11, %v3479_v57  ;;  %v3490_v62 = vadd.f32 %v11457_v0, %v3329_v1  ;;  %v3482_v47 = vadd.f32 %v3481_v41, %v3321_v7  ;;  %v4021_v28 = vrot.slane %v4019_v60, 2  ;;  %v4272_v27 = vld [vmem:[#allocation2 + $0x48] sm:$0xf]  ;;  %v3934_v14 = vld [vmem:[#allocation2 + $0x40] sm:$0xfc]  ;;  %v11821_v57 = vld [vmem:[#allocation10 + $0x110] sm:$0xff]   ;;  %11528 = vmatprep.subr.bf16.mxu0 %v11815_v46 }
 0x2ae   : > { %v4507_v51 = vsel %vm4439_vm5, %v4498_v33, %v4506_v9  ;;  %v4017_v5 = vor.u32 %v4016_v48, %v12800_v34  ;;  %v4024_v25 = vrot.slane %v4022_v45, 3  ;;  %v10762_v19 = vpop.f32.mrb[64].mxu1  ;;  %vm3699_vm14 = vcmp.ge.f32.partialorder %v12807_v18, 0.0  ;;  %v3935_v29 = vld [vmem:[#allocation2 + $0x48] sm:$0x7]  ;;  %v11822_v48 = vld [vmem:[#allocation10 + $0xd0] sm:$0xff]   ;;  %10974 = vmatprep.subr.bf16.mxu1 %v11821_v57 }
 0x2af   : > { %v3731_v54 = vmul.f32 0.1, %v12807_v18  ;;  %vm3697_vm1 = vcmp.ge.f32.partialorder %v12810_v16, 0.0  ;;  %v3729_v61 = vmul.f32 0.1, %v12810_v16  ;;  %11495 = vmatmul.mubr.bf16.gmra.mrb[100].mxu1 %v4507_v51  ;;  %v12819_v30 = vadd.f32 %v11899_v12, %v3490_v62  ;;  %v10763_v24 = vpop.f32.mrb[65].mxu1 }
 0x2b0   : > { %v12822_v53 = vadd.f32 %v11900_v42, %v3482_v47  ;;  %v4025_v4 = vor.u32 %v4024_v25, %v4021_v28  ;;  %v4339_v7 = vrot.slane %v4271_v23, 4  ;;  %v10764_v33 = vadd.f32 %v10763_v24, %v10762_v19  ;;  %v10765_v49 = vpop.f32.mrb[66].mxu1  ;;  %v4415_v36 = vld [vmem:[#allocation2 + $0x40] sm:$0xe0]  ;;  %v4416_v41 = vld [vmem:[#allocation2 + $0x48] sm:$0x3f]  ;;  %10975 = vmatpush3.bf16.msra.mxu1 %v11822_v48  ;;  %11529 = vmatpush3.bf16.msra.mxu0 %v11815_v46 }
 0x2b1   : > { %v3763_v13 = vsel %vm3699_vm14, %v12807_v18, %v3731_v54  ;;  %v3761_v15 = vsel %vm3697_vm1, %v12810_v16, %v3729_v61  ;;  %v4340_v6 = vrot.slane %v4272_v27, 4  ;;  %vm3700_vm2 = vcmp.ge.f32.partialorder %v12819_v30, 0.0  ;;  %v10766_v34 = vpop.f32.mrb[67].mxu1  ;;  %v11823_v45 = vld [vmem:[#allocation10 + $0x118] sm:$0xff]   ;;  %v4417_v44 = vld [vmem:[#allocation2 + $0x50] sm:$0xe0]  ;;  %11530 = vmatprep.subr.bf16.mxu0 %v12832_v55 }
 0x2b2   : > { %v3732_v63 = vmul.f32 0.1, %v12819_v30  ;;  %vm3698_vm4 = vcmp.ge.f32.partialorder %v12822_v53, 0.0  ;;  %v3730_v50 = vmul.f32 0.1, %v12822_v53  ;;  %v4026_v56 = vsel %vm3958_vm3, %v4017_v5, %v4025_v4  ;;  %v11825_v19 = vld [vmem:[#allocation10 + $0xd8] sm:$0xff]   ;;  %10976 = vmatprep.subr.bf16.mxu1 %v11823_v45 }
 0x2b3   : > { %v4341_v58 = vsel %vm1045_vm8, %v4339_v7, %v4340_v6  ;;  %v4028_v39 = vshrl.u32 %v3934_v14, 16  ;;  %v4031_v40 = vshll.u32 %v3934_v14, 16  ;;  %4998 = vmatmul.mubr.bf16.gmra.mrb[108].mxu0 %v4026_v56  ;;  %v12838_v60 = vadd.f32 %v10766_v34, %v10765_v49  ;;  %v4274_v23 = vld [vmem:[#allocation2 + $0x58] sm:$0xf]  ;;  %v11826_v42 = vld [vmem:[#allocation10 + $0x120] sm:$0xff]  }
 0x2b4   : > { %v3764_v0 = vsel %vm3700_vm2, %v12819_v30, %v3732_v63  ;;  %v3762_v1 = vsel %vm3698_vm4, %v12822_v53, %v3730_v50  ;;  %v4036_v9 = vshrl.u32 %v3935_v29, 16  ;;  %5005 = vmatprep.mubr.bf16.mxu0 %v4341_v58  ;;  %v4039_v5 = vshll.u32 %v3935_v29, 16  ;;  %v4418_v12 = vld [vmem:[#allocation2 + $0x58] sm:$0x3f]  ;;  %10977 = vmatpush3.bf16.msra.mxu1 %v11825_v19 }
 0x2b5   : > { %v3788_v59 = vpack.c.bf16 %v3764_v0, %v3763_v13  ;;  %v3787_v11 = vpack.c.bf16 %v3762_v1, %v3761_v15  ;;  %v4030_v62 = vrot.slane %v4028_v39, 2  ;;  %v4033_v47 = vrot.slane %v4031_v40, 3  ;;  %v11824_v15 = vld [vmem:[#allocation10 + $0x168] sm:$0xff]   ;;  %11531 = vmatpush3.bf16.msra.mxu0 %v12832_v55  ;;  %10978 = vmatprep.subr.bf16.mxu1 %v11826_v42 }
 0x2b6   : > { %v4038_v51 = vrot.slane %v4036_v9, 2  ;;  %v4509_v28 = vshrl.u32 %v4415_v36, 16  ;;  %v4512_v25 = vshll.u32 %v4415_v36, 16  ;;  %v4517_v61 = vshrl.u32 %v4416_v41, 16  ;;  %v3936_v9 = vld [vmem:[#allocation2 + $0x50] sm:$0xfc]  ;;  %11532 = vmatprep.subr.bf16.mxu0 %v11824_v15 }
 0x2b7   : > { %v3820_v27 = vrot.slane %v3788_v59, 4  ;;  %v3819_v26 = vrot.slane %v3787_v11, 4  ;;  %v4034_v54 = vor.u32 %v4033_v47, %v4030_v62  ;;  %v4041_v4 = vrot.slane %v4039_v5, 3  ;;  %v3937_v47 = vld [vmem:[#allocation2 + $0x58] sm:$0x7] }
 0x2b8   : > { %v4511_v24 = vrot.slane %v4509_v28, 5  ;;  %v4514_v7 = vrot.slane %v4512_v25, 6  ;;  %v4520_v14 = vshll.u32 %v4416_v41, 16  ;;  %v10768_v13 = vpop.f32.mrb[68].mxu1  ;;  %v4519_v49 = vrot.slane %v4517_v61, 5 }
 0x2b9   : > { %3859 = vst [vmem:[#allocation2 + $0x78] ss:$-4 sps:$4 sm:$0xff] %v3820_v27   ;;  %3857 = vst [vmem:[#allocation2 + $0x68] ss:$-4 sps:$4 sm:$0xff] %v3819_v26   ;;  %v4343_v6 = vrot.slane %v4274_v23, 4  ;;  %v10769_v29 = vpop.f32.mrb[69].mxu1  ;;  %v3334_v63 = vadd.f32 %v10764_v33, %v12693_v21  ;;  %v4042_v56 = vor.u32 %v4041_v4, %v4038_v51  ;;  %v3337_v62 = vadd.f32 %v12838_v60, %v12693_v21 }
 0x2ba   : > { %v4526_v50 = vshrl.u32 %v4417_v44, 16  ;;  %v4515_v46 = vor.u32 %v4514_v7, %v4511_v24  ;;  %v4522_v58 = vrot.slane %v4520_v14, 6  ;;  %v10770_v34 = vadd.f32 %v10769_v29, %v10768_v13  ;;  %v10771_v39 = vpop.f32.mrb[70].mxu1  ;;  %11533 = vmatpush3.bf16.msra.mxu0 %v11824_v15  ;;  %v11902_v24 = vld [vmem:[%s12298_s6 + $0x80] sm:$0xff] }
 0x2bb   : > { %v4344_v40 = vsel %vm1045_vm8, %v4342_v37, %v4343_v6  ;;  %v4529_v57 = vshll.u32 %v4417_v44, 16  ;;  %v4534_v0 = vshrl.u32 %v4418_v12, 16  ;;  %v10772_v1 = vpop.f32.mrb[71].mxu1  ;;  %v4043_v33 = vsel %vm3958_vm3, %v4034_v54, %v4042_v56  ;;  %v11901_v54 = vld [vmem:[%s12298_s6 + $0x90] sm:$0xff] }
 0x2bc   : > { %v4528_v36 = vrot.slane %v4526_v50, 5  ;;  %v4523_v41 = vor.u32 %v4522_v58, %v4519_v49  ;;  %v3342_v48 = vadd.f32 %v10770_v34, %v12693_v21  ;;  %v4537_v45 = vshll.u32 %v4418_v12, 16  ;;  %5006 = vmatmul.mubr.bf16.gmra.mrb[112].mxu0 %v4043_v33  ;;  %v11904_v34 = vld [vmem:[%s12298_s6 + $0x88] sm:$0xff] }
 0x2bd   : > { %v11460_v59 = vpop.f32.mrb[80].mxu0  ;;  %v4531_v35 = vrot.slane %v4529_v57, 6  ;;  %v4536_v11 = vrot.slane %v4534_v0, 5  ;;  %v10773_v37 = vadd.f32 %v10772_v1, %v10771_v39  ;;  %5013 = vmatprep.mubr.bf16.mxu0 %v4344_v40  ;;  %v4045_v5 = vshrl.u32 %v3936_v9, 16 }
 0x2be   : > { %v4524_v55 = vsel %vm4439_vm5, %v4515_v46, %v4523_v41  ;;  %v3503_v23 = vadd.f32 %v11460_v59, %v3342_v48  ;;  %v3494_v44 = vpop.f32.mrb[81].mxu0  ;;  %v4539_v51 = vrot.slane %v4537_v45, 6  ;;  %v4048_v26 = vshll.u32 %v3936_v9, 16  ;;  %v11903_v46 = vld [vmem:[%s12298_s6 + $0x98] sm:$0xff] }
 0x2bf   : > { %11498 = vmatprep.mubr.bf16.mxu1 %v4524_v55  ;;  %v3495_v28 = vadd.f32 %v3494_v44, %v3334_v63  ;;  %v11461_v25 = vpop.f32.mrb[82].mxu0  ;;  %v4532_v19 = vor.u32 %v4531_v35, %v4528_v36  ;;  %v3345_v27 = vadd.f32 %v10773_v37, %v12693_v21  ;;  %v4047_v42 = vrot.slane %v4045_v5, 2 }
 0x2c0   : > { %v12853_v61 = vadd.f32 %v11901_v54, %v3503_v23  ;;  %v4540_v60 = vor.u32 %v4539_v51, %v4536_v11  ;;  %v3497_v12 = vpop.f32.mrb[83].mxu0  ;;  %v4053_v4 = vshrl.u32 %v3937_v47, 16  ;;  %v4050_v49 = vrot.slane %v4048_v26, 3  ;;  %v4275_v6 = vld [vmem:[#allocation2 + $0x60] sm:$0xf0] }
 0x2c1   : > { %v12856_v7 = vadd.f32 %v11902_v24, %v3495_v28  ;;  %v3506_v14 = vadd.f32 %v11461_v25, %v3345_v27  ;;  %v3498_v13 = vadd.f32 %v3497_v12, %v3337_v62  ;;  %v4276_v36 = vld [vmem:[#allocation2 + $0x68] sm:$0xf]  ;;  %v4056_v1 = vshll.u32 %v3937_v47, 16  ;;  %v3938_v41 = vld [vmem:[#allocation2 + $0x60] sm:$0xfc] }
 0x2c2   : > { %vm3703_vm6 = vcmp.ge.f32.partialorder %v12853_v61, 0.0  ;;  %v3735_v15 = vmul.f32 0.1, %v12853_v61  ;;  %v4541_v29 = vsel %vm4439_vm5, %v4532_v19, %v4540_v60  ;;  %v4055_v63 = vrot.slane %v4053_v4, 2  ;;  %v10774_v50 = vpop.f32.mrb[72].mxu1 }
 0x2c3   : > { %vm3701_vm7 = vcmp.ge.f32.partialorder %v12856_v7, 0.0  ;;  %v3733_v56 = vmul.f32 0.1, %v12856_v7  ;;  %11499 = vmatmul.mubr.bf16.gmra.mrb[104].mxu1 %v4541_v29  ;;  %v12864_v58 = vadd.f32 %v11903_v46, %v3506_v14  ;;  %v12867_v39 = vadd.f32 %v11904_v34, %v3498_v13  ;;  %v10775_v40 = vpop.f32.mrb[73].mxu1  ;;  %v3939_v48 = vld [vmem:[#allocation2 + $0x68] sm:$0x7] }
 0x2c4   : > { %v3767_v57 = vsel %vm3703_vm6, %v12853_v61, %v3735_v15  ;;  %v4051_v0 = vor.u32 %v4050_v49, %v4047_v42  ;;  %v10776_v9 = vadd.f32 %v10775_v40, %v10774_v50  ;;  %v10777_v33 = vpop.f32.mrb[74].mxu1  ;;  %v4058_v37 = vrot.slane %v4056_v1, 3  ;;  %v4419_v5 = vld [vmem:[#allocation2 + $0x60] sm:$0xe0]  ;;  %v4420_v26 = vld [vmem:[#allocation2 + $0x68] sm:$0x3f] }
 0x2c5   : > { %v3765_v45 = vsel %vm3701_vm7, %v12856_v7, %v3733_v56  ;;  %vm3704_vm9 = vcmp.ge.f32.partialorder %v12864_v58, 0.0  ;;  %v3736_v59 = vmul.f32 0.1, %v12864_v58  ;;  %vm3702_vm10 = vcmp.ge.f32.partialorder %v12867_v39, 0.0  ;;  %v10778_v35 = vpop.f32.mrb[75].mxu1 }
 0x2c6   : > { %v3734_v11 = vmul.f32 0.1, %v12867_v39  ;;  %v4345_v62 = vrot.slane %v4275_v6, 4  ;;  %v4346_v47 = vrot.slane %v4276_v36, 4  ;;  %v12878_v23 = vadd.f32 %v10778_v35, %v10777_v33  ;;  %v4277_v4 = vld [vmem:[#allocation2 + $0x70] sm:$0xf0] }
 0x2c7   : > { %v3768_v55 = vsel %vm3704_vm9, %v12864_v58, %v3736_v59  ;;  %v4062_v44 = vshrl.u32 %v3938_v41, 16  ;;  %v4065_v51 = vshll.u32 %v3938_v41, 16  ;;  %v4059_v19 = vor.u32 %v4058_v37, %v4055_v63  ;;  %v4278_v6 = vld [vmem:[#allocation2 + $0x78] sm:$0xf]  ;;  %v4421_v63 = vld [vmem:[#allocation2 + $0x70] sm:$0xe0] }
 0x2c8   : > { %v3790_v28 = vpack.c.bf16 %v3768_v55, %v3767_v57  ;;  %v3766_v25 = vsel %vm3702_vm10, %v12867_v39, %v3734_v11  ;;  %v4347_v27 = vsel %vm1045_vm8, %v4345_v62, %v4346_v47  ;;  %v4070_v42 = vshrl.u32 %v3939_v48, 16 }
 0x2c9   : > { %v3789_v54 = vpack.c.bf16 %v3766_v25, %v3765_v45  ;;  %v4064_v60 = vrot.slane %v4062_v44, 2  ;;  %v4067_v12 = vrot.slane %v4065_v51, 3  ;;  %v4060_v14 = vsel %vm3958_vm3, %v4051_v0, %v4059_v19  ;;  %v4422_v45 = vld [vmem:[#allocation2 + $0x78] sm:$0x3f] }
 0x2ca   : > { %v3822_v24 = vrot.slane %v3790_v28, 4  ;;  %v4073_v13 = vshll.u32 %v3939_v48, 16  ;;  %v4543_v49 = vshrl.u32 %v4419_v5, 16  ;;  %5014 = vmatmul.mubr.bf16.gmra.mrb[116].mxu0 %v4060_v14  ;;  %v4072_v50 = vrot.slane %v4070_v42, 2 }
 0x2cb   : > { %v3821_v15 = vrot.slane %v3789_v54, 4  ;;  %v4068_v29 = vor.u32 %v4067_v12, %v4064_v60  ;;  %v4546_v56 = vshll.u32 %v4419_v5, 16  ;;  %5021 = vmatprep.mubr.bf16.mxu0 %v4347_v27  ;;  %v4551_v40 = vshrl.u32 %v4420_v26, 16  ;;  %v10780_v57 = vpop.f32.mrb[76].mxu1 }
 0x2cc   : > { %3863 = vst [vmem:[#allocation2 + $0x98] ss:$-4 sps:$4 sm:$0xff] %v3822_v24   ;;  %v4075_v46 = vrot.slane %v4073_v13, 3  ;;  %v4545_v34 = vrot.slane %v4543_v49, 5  ;;  %v4554_v36 = vshll.u32 %v4420_v26, 16  ;;  %v4348_v33 = vrot.slane %v4277_v4, 4 }
 0x2cd   : > { %3861 = vst [vmem:[#allocation2 + $0x88] ss:$-4 sps:$4 sm:$0xff] %v3821_v15   ;;  %v4548_v1 = vrot.slane %v4546_v56, 6  ;;  %v4349_v0 = vrot.slane %v4278_v6, 4  ;;  %v10781_v41 = vpop.f32.mrb[77].mxu1  ;;  %v3350_v48 = vadd.f32 %v10776_v9, %v12693_v21  ;;  %v4553_v35 = vrot.slane %v4551_v40, 5 }
 0x2ce   : > { %v4076_v59 = vor.u32 %v4075_v46, %v4072_v50  ;;  %v4556_v11 = vrot.slane %v4554_v36, 6  ;;  %v10782_v37 = vadd.f32 %v10781_v41, %v10780_v57  ;;  %v10783_v62 = vpop.f32.mrb[78].mxu1  ;;  %v4560_v44 = vshrl.u32 %v4421_v63, 16  ;;  %v12889_v21 = vld [vmem:[%s13730_s4] ss:$0 sm:$0xff] }
 0x2cf   : > { %v4549_v47 = vor.u32 %v4548_v1, %v4545_v34  ;;  %v4350_v55 = vsel %vm1045_vm8, %v4348_v33, %v4349_v0  ;;  %v4563_v51 = vshll.u32 %v4421_v63, 16  ;;  %v10784_v5 = vpop.f32.mrb[79].mxu1  ;;  %v4568_v27 = vshrl.u32 %v4422_v45, 16  ;;  %v3940_v4 = vld [vmem:[#allocation2 + $0x70] sm:$0xfc]  ;;  %v11907_v36 = vld [vmem:[%s12298_s6 + $0xa0] sm:$0xff] }
 0x2d0   : > { %v4077_v28 = vsel %vm3958_vm3, %v4068_v29, %v4076_v59  ;;  %v4557_v25 = vor.u32 %v4556_v11, %v4553_v35  ;;  %v11464_v19 = vpop.f32.mrb[84].mxu0  ;;  %v3358_v9 = vadd.f32 %v12889_v21, %v10782_v37  ;;  %v4562_v54 = vrot.slane %v4560_v44, 5  ;;  %v3941_v15 = vld [vmem:[#allocation2 + $0x78] sm:$0x7]  ;;  %v11906_v34 = vld [vmem:[%s12298_s6 + $0xb0] sm:$0xff] }
 0x2d1   : > { %v3510_v26 = vpop.f32.mrb[85].mxu0  ;;  %v4565_v60 = vrot.slane %v4563_v51, 6  ;;  %v4571_v12 = vshll.u32 %v4422_v45, 16  ;;  %v10785_v42 = vadd.f32 %v10784_v5, %v10783_v62  ;;  %v4570_v6 = vrot.slane %v4568_v27, 5  ;;  %v11908_v37 = vld [vmem:[%s12298_s6 + $0xb8] sm:$0xff] }
 0x2d2   : > { %v4558_v24 = vsel %vm4439_vm5, %v4549_v47, %v4557_v25  ;;  %v3519_v14 = vadd.f32 %v11464_v19, %v3358_v9  ;;  %v3511_v13 = vadd.f32 %v3510_v26, %v3350_v48  ;;  %v11465_v49 = vpop.f32.mrb[86].mxu0  ;;  %5022 = vmatmul.mubr.bf16.gmra.mrb[120].mxu0 %v4077_v28  ;;  %v3353_v63 = vadd.f32 %v12889_v21, %v12878_v23  ;;  %v11909_v47 = vld [vmem:[%s12298_s6 + $0xa8] sm:$0xff] }
 0x2d3   : > { %11502 = vmatprep.mubr.bf16.mxu1 %v4558_v24  ;;  %v4566_v29 = vor.u32 %v4565_v60, %v4562_v54  ;;  %v4573_v50 = vrot.slane %v4571_v12, 6  ;;  %v3361_v56 = vadd.f32 %v12889_v21, %v10785_v42  ;;  %v3513_v46 = vpop.f32.mrb[87].mxu0  ;;  %5029 = vmatprep.mubr.bf16.mxu0 %v4350_v55  ;;  %v4079_v1 = vshrl.u32 %v3940_v4, 16 }
 0x2d4   : > { %v12897_v40 = vadd.f32 %v11906_v34, %v3519_v14  ;;  %v12900_v57 = vadd.f32 %v11907_v36, %v3511_v13  ;;  %v4082_v33 = vshll.u32 %v3940_v4, 16  ;;  %v3514_v48 = vadd.f32 %v3513_v46, %v3353_v63  ;;  %v4279_v5 = vld [vmem:[#allocation2 + $0x80] sm:$0xf0]  ;;  %v4280_v28 = vld [vmem:[#allocation2 + $0x88] sm:$0xf] }
 0x2d5   : > { %v4574_v0 = vor.u32 %v4573_v50, %v4570_v6  ;;  %v3522_v41 = vadd.f32 %v11465_v49, %v3361_v56  ;;  %v4087_v45 = vshrl.u32 %v3941_v15, 16  ;;  %v10786_v59 = vpop.f32.mrb[80].mxu1  ;;  %v4081_v44 = vrot.slane %v4079_v1, 2  ;;  %v3942_v54 = vld [vmem:[#allocation2 + $0x80] sm:$0xfc] }
 0x2d6   : > { %vm3707_vm11 = vcmp.ge.f32.partialorder %v12897_v40, 0.0  ;;  %v3739_v23 = vmul.f32 0.1, %v12897_v40  ;;  %vm3705_vm12 = vcmp.ge.f32.partialorder %v12900_v57, 0.0  ;;  %v3737_v35 = vmul.f32 0.1, %v12900_v57 }
 0x2d7   : > { %v4575_v11 = vsel %vm4439_vm5, %v4566_v29, %v4574_v0  ;;  %v12908_v62 = vadd.f32 %v11908_v37, %v3522_v41  ;;  %v12911_v55 = vadd.f32 %v11909_v47, %v3514_v48  ;;  %v10787_v51 = vpop.f32.mrb[81].mxu1  ;;  %v4084_v9 = vrot.slane %v4082_v33, 3  ;;  %v3943_v49 = vld [vmem:[#allocation2 + $0x88] sm:$0x7]  ;;  %v4423_v1 = vld [vmem:[#allocation2 + $0x80] sm:$0xe0] }
 0x2d8   : > { %v3771_v25 = vsel %vm3707_vm11, %v12897_v40, %v3739_v23  ;;  %v3769_v19 = vsel %vm3705_vm12, %v12900_v57, %v3737_v35  ;;  %11503 = vmatmul.mubr.bf16.gmra.mrb[108].mxu1 %v4575_v11  ;;  %v4089_v27 = vrot.slane %v4087_v45, 2  ;;  %v10789_v26 = vpop.f32.mrb[82].mxu1  ;;  %v4090_v4 = vshll.u32 %v3941_v15, 16  ;;  %v4281_v33 = vld [vmem:[#allocation2 + $0x90] sm:$0xf0] }
 0x2d9   : > { %vm3708_vm13 = vcmp.ge.f32.partialorder %v12908_v62, 0.0  ;;  %v3740_v60 = vmul.f32 0.1, %v12908_v62  ;;  %vm3706_vm14 = vcmp.ge.f32.partialorder %v12911_v55, 0.0  ;;  %v3738_v12 = vmul.f32 0.1, %v12911_v55 }
 0x2da   : > { %v4085_v42 = vor.u32 %v4084_v9, %v4081_v44  ;;  %v10788_v24 = vadd.f32 %v10787_v51, %v10786_v59  ;;  %v4351_v14 = vrot.slane %v4279_v5, 4  ;;  %v10790_v13 = vpop.f32.mrb[83].mxu1  ;;  %v4352_v50 = vrot.slane %v4280_v28, 4  ;;  %v4424_v45 = vld [vmem:[#allocation2 + $0x88] sm:$0x3f] }
 0x2db   : > { %v3772_v6 = vsel %vm3708_vm13, %v12908_v62, %v3740_v60  ;;  %v3770_v29 = vsel %vm3706_vm14, %v12911_v55, %v3738_v12  ;;  %v12921_v56 = vadd.f32 %v10790_v13, %v10789_v26  ;;  %v4092_v34 = vrot.slane %v4090_v4, 3  ;;  %v4282_v59 = vld [vmem:[#allocation2 + $0x98] sm:$0xf]  ;;  %v4425_v51 = vld [vmem:[#allocation2 + $0x90] sm:$0xe0] }
 0x2dc   : > { %v3792_v63 = vpack.c.bf16 %v3772_v6, %v3771_v25  ;;  %v3791_v46 = vpack.c.bf16 %v3770_v29, %v3769_v19  ;;  %v4096_v36 = vshrl.u32 %v3942_v54, 16  ;;  %v4353_v0 = vsel %vm1045_vm8, %v4351_v14, %v4352_v50  ;;  %v4426_v50 = vld [vmem:[#allocation2 + $0x98] sm:$0x3f] }
 0x2dd   : > { %v4099_v15 = vshll.u32 %v3942_v54, 16  ;;  %v4104_v41 = vshrl.u32 %v3943_v49, 16  ;;  %v4107_v48 = vshll.u32 %v3943_v49, 16  ;;  %v10792_v23 = vpop.f32.mrb[84].mxu1  ;;  %v4093_v37 = vor.u32 %v4092_v34, %v4089_v27 }
 0x2de   : > { %v3824_v35 = vrot.slane %v3792_v63, 4  ;;  %v3823_v11 = vrot.slane %v3791_v46, 4  ;;  %v4098_v47 = vrot.slane %v4096_v36, 2  ;;  %v10793_v44 = vpop.f32.mrb[85].mxu1  ;;  %v4577_v19 = vshrl.u32 %v4423_v1, 16 }
 0x2df   : > { %v4101_v5 = vrot.slane %v4099_v15, 3  ;;  %v4106_v28 = vrot.slane %v4104_v41, 2  ;;  %v4109_v25 = vrot.slane %v4107_v48, 3  ;;  %v10795_v9 = vpop.f32.mrb[86].mxu1  ;;  %v4094_v26 = vsel %vm3958_vm3, %v4085_v42, %v4093_v37 }
 0x2e0   : > { %3867 = vst [vmem:[#allocation2 + $0xb8] ss:$-4 sps:$4 sm:$0xff] %v3824_v35   ;;  %3865 = vst [vmem:[#allocation2 + $0xa8] ss:$-4 sps:$4 sm:$0xff] %v3823_v11   ;;  %v4580_v54 = vshll.u32 %v4423_v1, 16  ;;  %v4585_v60 = vshrl.u32 %v4424_v45, 16  ;;  %5030 = vmatmul.mubr.bf16.gmra.mrb[124].mxu0 %v4094_v26  ;;  %v10794_v1 = vadd.f32 %v10793_v44, %v10792_v23  ;;  %v3366_v41 = vadd.f32 %v12889_v21, %v10788_v24 }
 0x2e1   : > { %v4588_v12 = vshll.u32 %v4424_v45, 16  ;;  %v11468_v4 = vpop.f32.mrb[88].mxu0  ;;  %v10796_v14 = vpop.f32.mrb[87].mxu1  ;;  %v4102_v13 = vor.u32 %v4101_v5, %v4098_v47  ;;  %v4110_v27 = vor.u32 %v4109_v25, %v4106_v28  ;;  %v4579_v49 = vrot.slane %v4577_v19, 5  ;;  %5037 = vmatprep.mubr.bf16.mxu0 %v4353_v0 }
 0x2e2   : > { %v4354_v6 = vrot.slane %v4281_v33, 4  ;;  %v3526_v29 = vpop.f32.mrb[89].mxu0  ;;  %v4582_v63 = vrot.slane %v4580_v54, 6  ;;  %v4587_v46 = vrot.slane %v4585_v60, 5  ;;  %v4355_v36 = vrot.slane %v4282_v59, 4  ;;  %v11827_v54 = vld [vmem:[#allocation10 + $0xe0] sm:$0xff]  }
 0x2e3   : > { %v4590_v34 = vrot.slane %v4588_v12, 6  ;;  %v11469_v15 = vpop.f32.mrb[90].mxu0  ;;  %v4111_v42 = vsel %vm3958_vm3, %v4102_v13, %v4110_v27  ;;  %v4594_v48 = vshrl.u32 %v4425_v51, 16  ;;  %v4597_v33 = vshll.u32 %v4425_v51, 16  ;;  %v3944_v59 = vld [vmem:[#allocation2 + $0x90] sm:$0xfc]  ;;  %10979 = vmatpush3.bf16.msra.mxu1 %v11827_v54 }
 0x2e4   : > { %v3529_v45 = vpop.f32.mrb[91].mxu0  ;;  %v4583_v35 = vor.u32 %v4582_v63, %v4579_v49  ;;  %v4356_v37 = vsel %vm1045_vm8, %v4354_v6, %v4355_v36  ;;  %v3374_v0 = vadd.f32 %v12889_v21, %v10794_v1  ;;  %v3527_v47 = vadd.f32 %v3526_v29, %v3366_v41  ;;  %v11910_v12 = vld [vmem:[%s12298_s6 + $0xc0] sm:$0xff] }
 0x2e5   : > { %v4591_v11 = vor.u32 %v4590_v34, %v4587_v46  ;;  %v4596_v5 = vrot.slane %v4594_v48, 5  ;;  %v4602_v28 = vshrl.u32 %v4426_v50, 16  ;;  %v10798_v25 = vpop.f32.mrb[88].mxu1  ;;  %v4599_v23 = vrot.slane %v4597_v33, 6 }
 0x2e6   : > { %v4605_v44 = vshll.u32 %v4426_v50, 16  ;;  %v10797_v24 = vadd.f32 %v10796_v14, %v10795_v9  ;;  %v10799_v26 = vpop.f32.mrb[89].mxu1  ;;  %v3535_v60 = vadd.f32 %v11468_v4, %v3374_v0  ;;  %v12931_v13 = vadd.f32 %v11910_v12, %v3527_v47  ;;  %v11911_v9 = vld [vmem:[%s12298_s6 + $0xd0] sm:$0xff] }
 0x2e7   : > { %v4592_v19 = vsel %vm4439_vm5, %v4583_v35, %v4591_v11  ;;  %v4604_v51 = vrot.slane %v4602_v28, 5  ;;  %v3369_v27 = vadd.f32 %v12889_v21, %v12921_v56  ;;  %v10801_v49 = vpop.f32.mrb[90].mxu1  ;;  %v4600_v6 = vor.u32 %v4599_v23, %v4596_v5  ;;  %v3945_v56 = vld [vmem:[#allocation2 + $0x98] sm:$0x7]  ;;  %v11912_v11 = vld [vmem:[%s12298_s6 + $0xc8] sm:$0xff] }
 0x2e8   : > { %11506 = vmatprep.mubr.bf16.mxu1 %v4592_v19  ;;  %v4607_v29 = vrot.slane %v4605_v44, 6  ;;  %v3377_v63 = vadd.f32 %v12889_v21, %v10797_v24  ;;  %v4113_v46 = vshrl.u32 %v3944_v59, 16  ;;  %v10802_v50 = vpop.f32.mrb[91].mxu1  ;;  %5038 = vmatmul.mubr.bf16.gmra.mrb[128].mxu0 %v4111_v42  ;;  %v12937_v14 = vadd.f32 %v11911_v9, %v3535_v60  ;;  %v4283_v0 = vld [vmem:[#allocation2 + $0xa0] sm:$0xf0]  ;;  %v11913_v5 = vld [vmem:[%s12298_s6 + $0xd8] sm:$0xff] }
 0x2e9   : > { %vm3709_vm1 = vcmp.ge.f32.partialorder %v12931_v13, 0.0  ;;  %v3741_v4 = vmul.f32 0.1, %v12931_v13  ;;  %v3530_v34 = vadd.f32 %v3529_v45, %v3369_v27  ;;  %5045 = vmatprep.mubr.bf16.mxu0 %v4356_v37  ;;  %v4116_v48 = vshll.u32 %v3944_v59, 16  ;;  %v3946_v19 = vld [vmem:[#allocation2 + $0xa0] sm:$0xfc] }
 0x2ea   : > { %13755 = vst [vmem:[#allocation15_spill] sm:$0xff] %v12937_v14  ;;  %v4608_v36 = vor.u32 %v4607_v29, %v4604_v51  ;;  %v3538_v1 = vadd.f32 %v11469_v15, %v3377_v63  ;;  %v4115_v41 = vrot.slane %v4113_v46, 2  ;;  %vm3711_vm2 = vcmp.ge.f32.partialorder %v12937_v14, 0.0  ;;  %v4284_v15 = vld [vmem:[#allocation2 + $0xa8] sm:$0xf] }
 0x2eb   : > { %v3743_v35 = vmul.f32 0.1, %v12937_v14  ;;  %v3773_v42 = vsel %vm3709_vm1, %v12931_v13, %v3741_v4  ;;  %v12945_v33 = vadd.f32 %v11912_v11, %v3530_v34  ;;  %v4118_v37 = vrot.slane %v4116_v48, 3  ;;  %v3947_v4 = vld [vmem:[#allocation2 + $0xa8] sm:$0x7] }
 0x2ec   : > { %v4609_v47 = vsel %vm4439_vm5, %v4600_v6, %v4608_v36  ;;  %v12949_v45 = vadd.f32 %v11913_v5, %v3538_v1  ;;  %v4121_v28 = vshrl.u32 %v3945_v56, 16  ;;  %v4124_v44 = vshll.u32 %v3945_v56, 16  ;;  %v12954_v54 = vpop.f32.mrb[92].mxu0 }
 0x2ed   : > { %13756 = vst [vmem:[#allocation16_spill] sm:$0xff] %v12945_v33  ;;  %v3775_v59 = vsel %vm3711_vm2, %v12937_v14, %v3743_v35  ;;  %11507 = vmatmul.mubr.bf16.gmra.mrb[112].mxu1 %v4609_v47  ;;  %vm3710_vm4 = vcmp.ge.f32.partialorder %v12945_v33, 0.0  ;;  %v3742_v23 = vmul.f32 0.1, %v12945_v33  ;;  %v10804_v24 = vpop.f32.mrb[92].mxu1  ;;  %v4119_v12 = vor.u32 %v4118_v37, %v4115_v41  ;;  %v3542_v6 = vpop.f32.mrb[93].mxu0 }
 0x2ee   : > { %13757 = vst [vmem:[#allocation17_spill] sm:$0xff] %v12949_v45  ;;  %vm3712_vm6 = vcmp.ge.f32.partialorder %v12949_v45, 0.0  ;;  %v3744_v60 = vmul.f32 0.1, %v12949_v45  ;;  %v4123_v51 = vrot.slane %v4121_v28, 2  ;;  %v10805_v27 = vpop.f32.mrb[93].mxu1  ;;  %v10800_v46 = vadd.f32 %v10799_v26, %v10798_v25 }
 0x2ef   : > { %v3774_v29 = vsel %vm3710_vm4, %v12945_v33, %v3742_v23  ;;  %v4126_v63 = vrot.slane %v4124_v44, 3  ;;  %v4357_v9 = vrot.slane %v4283_v0, 4  ;;  %v10807_v34 = vpop.f32.mrb[94].mxu1  ;;  %v12959_v36 = vpop.f32.mrb[94].mxu0  ;;  %v4358_v48 = vrot.slane %v4284_v15, 4 }
 0x2f0   : > { %v3776_v56 = vsel %vm3712_vm6, %v12949_v45, %v3744_v60  ;;  %v3793_v1 = vpack.c.bf16 %v3774_v29, %v3773_v42  ;;  %v12962_v35 = vadd.f32 %v10802_v50, %v10801_v49  ;;  %v10808_v11 = vpop.f32.mrb[95].mxu1  ;;  %v12964_v41 = vpop.f32.mrb[95].mxu0  ;;  %v4130_v37 = vshrl.u32 %v3946_v19, 16  ;;  %v4427_v23 = vld [vmem:[#allocation2 + $0xa0] sm:$0xe0] }
 0x2f1   : > { %v3794_v47 = vpack.c.bf16 %v3776_v56, %v3775_v59  ;;  %v4127_v5 = vor.u32 %v4126_v63, %v4123_v51  ;;  %v4133_v28 = vshll.u32 %v3946_v19, 16  ;;  %v4428_v25 = vld [vmem:[#allocation2 + $0xa8] sm:$0x3f]  ;;  %v4359_v0 = vsel %vm1045_vm8, %v4357_v9, %v4358_v48  ;;  %v4285_v14 = vld [vmem:[#allocation2 + $0xb0] sm:$0xf0] }
 0x2f2   : > { %v3825_v26 = vrot.slane %v3793_v1, 4  ;;  %v4138_v44 = vshrl.u32 %v3947_v4, 16  ;;  %v4141_v33 = vshll.u32 %v3947_v4, 16  ;;  %v4132_v49 = vrot.slane %v4130_v37, 2  ;;  %v4286_v15 = vld [vmem:[#allocation2 + $0xb8] sm:$0xf] }
 0x2f3   : > { %v3826_v60 = vrot.slane %v3794_v47, 4  ;;  %v4128_v42 = vsel %vm3958_vm3, %v4119_v12, %v4127_v5  ;;  %v4135_v50 = vrot.slane %v4133_v28, 3  ;;  %v4611_v29 = vshrl.u32 %v4427_v23, 16  ;;  %v4429_v4 = vld [vmem:[#allocation2 + $0xb0] sm:$0xe0] }
 0x2f4   : > { %3869 = vst [vmem:[#allocation2 + $0xc8] ss:$-4 sps:$4 sm:$0xff] %v3825_v26   ;;  %5046 = vmatmul.mubr.bf16.gmra.mrb[132].mxu0 %v4128_v42  ;;  %v4140_v59 = vrot.slane %v4138_v44, 2  ;;  %v4143_v51 = vrot.slane %v4141_v33, 3  ;;  %v4614_v19 = vshll.u32 %v4427_v23, 16  ;;  %v4619_v56 = vshrl.u32 %v4428_v25, 16 }
 0x2f5   : > { %3871 = vst [vmem:[#allocation2 + $0xd8] ss:$-4 sps:$4 sm:$0xff] %v3826_v60   ;;  %5053 = vmatprep.mubr.bf16.mxu0 %v4359_v0  ;;  %v4136_v63 = vor.u32 %v4135_v50, %v4132_v49  ;;  %v4622_v9 = vshll.u32 %v4428_v25, 16  ;;  %v4360_v1 = vrot.slane %v4285_v14, 4  ;;  %v4613_v47 = vrot.slane %v4611_v29, 5  ;;  %v11828_v50 = vld [vmem:[#allocation10 + $0x128] sm:$0xff]  }
 0x2f6   : > { %v4144_v48 = vor.u32 %v4143_v51, %v4140_v59  ;;  %v4616_v45 = vrot.slane %v4614_v19, 6  ;;  %v4361_v12 = vrot.slane %v4286_v15, 4  ;;  %v4621_v5 = vrot.slane %v4619_v56, 5  ;;  %v4430_v44 = vld [vmem:[#allocation2 + $0xb8] sm:$0x3f]  ;;  %v11829_v15 = vld [vmem:[#allocation10 + $0x170] sm:$0xff]   ;;  %10980 = vmatprep.subr.bf16.mxu1 %v11828_v50 }
 0x2f7   : > { %v4624_v37 = vrot.slane %v4622_v9, 6  ;;  %v10806_v28 = vadd.f32 %v10805_v27, %v10804_v24  ;;  %v3382_v26 = vadd.f32 %v12889_v21, %v10800_v46  ;;  %v4628_v60 = vshrl.u32 %v4429_v4, 16  ;;  %v11830_v59 = vld [vmem:[#allocation10 + $0xe8] sm:$0xff]   ;;  %v11914_v19 = vld [vmem:[%s12298_s6 + $0xe0] sm:$0xff]  ;;  %v3948_v9 = vld [vmem:[#allocation2 + $0xb0] sm:$0xfc]  ;;  %11534 = vmatprep.subr.bf16.mxu0 %v11829_v15 }
 0x2f8   : > { %v4145_v33 = vsel %vm3958_vm3, %v4136_v63, %v4144_v48  ;;  %v4617_v23 = vor.u32 %v4616_v45, %v4613_v47  ;;  %v4362_v0 = vsel %vm1045_vm8, %v4360_v1, %v4361_v12  ;;  %v4631_v49 = vshll.u32 %v4429_v4, 16  ;;  %10981 = vmatpush3.bf16.msra.mxu1 %v11830_v59  ;;  %11535 = vmatpush3.bf16.msra.mxu0 %v11829_v15 }
 0x2f9   : > { %v4625_v25 = vor.u32 %v4624_v37, %v4621_v5  ;;  %v3390_v14 = vadd.f32 %v12889_v21, %v10806_v28  ;;  %v3543_v42 = vadd.f32 %v3542_v6, %v3382_v26  ;;  %v4630_v51 = vrot.slane %v4628_v60, 5  ;;  %v3949_v28 = vld [vmem:[#allocation2 + $0xb8] sm:$0x7]  ;;  %v11917_v60 = vld [vmem:[%s12298_s6 + $0xe8] sm:$0xff] }
 0x2fa   : > { %v4636_v24 = vshrl.u32 %v4430_v44, 16  ;;  %v4639_v27 = vshll.u32 %v4430_v44, 16  ;;  %v10809_v46 = vadd.f32 %v10808_v11, %v10807_v34  ;;  %v4633_v56 = vrot.slane %v4631_v49, 6  ;;  %v11915_v11 = vld [vmem:[%s12298_s6 + $0xf0] sm:$0xff] }
 0x2fb   : > { %v4626_v29 = vsel %vm4439_vm5, %v4617_v23, %v4625_v25  ;;  %v3551_v45 = vadd.f32 %v12954_v54, %v3390_v14  ;;  %v12975_v63 = vadd.f32 %v11914_v19, %v3543_v42  ;;  %v3385_v34 = vadd.f32 %v12889_v21, %v12962_v35  ;;  %v11916_v23 = vld [vmem:[%s12298_s6 + $0xf8] sm:$0xff]  ;;  %v4288_v14 = vld [vmem:[#allocation2 + $0xc8] sm:$0xf]  ;;  %v3950_v59 = vld [vmem:[#allocation2 + $0xc0] sm:$0xfc]  ;;  %s12007_s6 = scalar_lea.vmem %s13679_s9, 4096 }
 0x2fc   : > { %5054 = vmatmul.mubr.bf16.gmra.mrb[136].mxu0 %v4145_v33  ;;  %11510 = vmatprep.mubr.bf16.mxu1 %v4626_v29  ;;  %v4638_v6 = vrot.slane %v4636_v24, 5  ;;  %v4641_v1 = vrot.slane %v4639_v27, 6  ;;  %v3393_v4 = vadd.f32 %v12889_v21, %v10809_v46  ;;  %v4634_v47 = vor.u32 %v4633_v56, %v4630_v51  ;;  %v11831_v51 = vld [vmem:[#allocation10 + $0x130] sm:$0xff]   ;;  %v3951_v56 = vld [vmem:[#allocation2 + $0xc8] sm:$0x7]  ;;  %p12008_p11 = scmp.ne.s32.totalorder %s13679_s9, %s12007_s6  ;;  %p12015_p9 = scmp.lt.s32.totalorder %s12013_s8, %s12007_s6 }
 0x2fd   : > { %5061 = vmatprep.mubr.bf16.mxu0 %v4362_v0  ;;  %v12981_v48 = vadd.f32 %v11915_v11, %v3551_v45  ;;  %vm3713_vm7 = vcmp.ge.f32.partialorder %v12975_v63, 0.0  ;;  %v3745_v54 = vmul.f32 0.1, %v12975_v63  ;;  %v3546_v37 = vadd.f32 %v12964_v41, %v3385_v34  ;;  %v4287_v41 = vld [vmem:[#allocation2 + $0xc0] sm:$0xf0]  ;;  %10982 = vmatprep.subr.bf16.mxu1 %v11831_v51 }
 0x2fe   : > { %v4642_v12 = vor.u32 %v4641_v1, %v4638_v6  ;;  %v3554_v5 = vadd.f32 %v12959_v36, %v3393_v4  ;;  %v4147_v26 = vshrl.u32 %v3948_v9, 16  ;;  %v4150_v44 = vshll.u32 %v3948_v9, 16  ;;  %v11832_v9 = vld [vmem:[#allocation10 + $0xf0] sm:$0xff]   ;;  %p12009_p1 = pnand %p12008_p11, %p13775_p0  ;;  %p12016_p12 = por %p12015_p9, %p12014_p7 }
 0x2ff   : > { %vm3715_vm9 = vcmp.ge.f32.partialorder %v12981_v48, 0.0  ;;  %v3747_v21 = vmul.f32 0.1, %v12981_v48  ;;  %v3777_v35 = vsel %vm3713_vm7, %v12975_v63, %v3745_v54  ;;  %v12995_v25 = vadd.f32 %v11917_v60, %v3546_v37  ;;  %v4432_v37 = vld [vmem:[#allocation2 + $0xc8] sm:$0x3f]  ;;  %10983 = vmatpush3.bf16.msra.mxu1 %v11832_v9 }
 0x300   : > { %v4643_v33 = vsel %vm4439_vm5, %v4634_v47, %v4642_v12  ;;  %v12992_v0 = vadd.f32 %v11916_v23, %v3554_v5  ;;  %v4149_v36 = vrot.slane %v4147_v26, 2  ;;  %v4152_v49 = vrot.slane %v4150_v44, 3  ;;  %v4431_v5 = vld [vmem:[#allocation2 + $0xc0] sm:$0xe0]  ;;  %v3952_v9 = vld [vmem:[#allocation2 + $0xd0] sm:$0xfc]  ;;  %p12010_p3 = pneg %p12009_p1 }
 0x301   : > { %v3779_v42 = vsel %vm3715_vm9, %v12981_v48, %v3747_v21  ;;  %11511 = vmatmul.mubr.bf16.gmra.mrb[116].mxu1 %v4643_v33  ;;  %v4155_v50 = vshrl.u32 %v3949_v28, 16  ;;  %v4158_v15 = vshll.u32 %v3949_v28, 16  ;;  %vm3714_vm11 = vcmp.ge.f32.partialorder %v12995_v25, 0.0  ;;  %v4289_v33 = vld [vmem:[#allocation2 + $0xd0] sm:$0xf0] }
 0x302   : > { %13758 = vst [vmem:[#allocation18_spill] sm:$0xff] %v12992_v0  ;;  %vm3716_vm10 = vcmp.ge.f32.partialorder %v12992_v0, 0.0  ;;  %v3748_v24 = vmul.f32 0.1, %v12992_v0  ;;  %v3746_v27 = vmul.f32 0.1, %v12995_v25  ;;  %v4153_v46 = vor.u32 %v4152_v49, %v4149_v36  ;;  %p12017_p2 = pnand %p12016_p12, %p12010_p3 }
 0x303   : > { %v4157_v29 = vrot.slane %v4155_v50, 2  ;;  %v4160_v45 = vrot.slane %v4158_v15, 3  ;;  %v4363_v19 = vrot.slane %v4287_v41, 4  ;;  %v4364_v4 = vrot.slane %v4288_v14, 4  ;;  %v4290_v14 = vld [vmem:[#allocation2 + $0xd8] sm:$0xf] }
 0x304   : > { %v3780_v6 = vsel %vm3716_vm10, %v12992_v0, %v3748_v24  ;;  %v3778_v1 = vsel %vm3714_vm11, %v12995_v25, %v3746_v27  ;;  %v4164_v34 = vshrl.u32 %v3950_v59, 16  ;;  %v4167_v12 = vshll.u32 %v3950_v59, 16  ;;  %v4433_v15 = vld [vmem:[#allocation2 + $0xd0] sm:$0xe0] }
 0x305   : > { %v3796_v11 = vpack.c.bf16 %v3780_v6, %v3779_v42  ;;  %v3795_v54 = vpack.c.bf16 %v3778_v1, %v3777_v35  ;;  %v4161_v47 = vor.u32 %v4160_v45, %v4157_v29  ;;  %v4365_v28 = vsel %vm1045_vm8, %v4363_v19, %v4364_v4  ;;  %v4434_v29 = vld [vmem:[#allocation2 + $0xd8] sm:$0x3f] }
 0x306   : > { %v4166_v26 = vrot.slane %v4164_v34, 2  ;;  %v4172_v21 = vshrl.u32 %v3951_v56, 16  ;;  %v4175_v44 = vshll.u32 %v3951_v56, 16  ;;  %v4169_v41 = vrot.slane %v4167_v12, 3 }
 0x307   : > { %v3828_v23 = vrot.slane %v3796_v11, 4  ;;  %v3827_v60 = vrot.slane %v3795_v54, 4  ;;  %v4162_v36 = vsel %vm3958_vm3, %v4153_v46, %v4161_v47  ;;  %v4645_v49 = vshrl.u32 %v4431_v5, 16  ;;  %v3953_v11 = vld [vmem:[#allocation2 + $0xd8] sm:$0x7] }
 0x308   : > { %5062 = vmatmul.mubr.bf16.gmra.mrb[140].mxu0 %v4162_v36  ;;  %v4174_v42 = vrot.slane %v4172_v21, 2  ;;  %v4177_v35 = vrot.slane %v4175_v44, 3  ;;  %v4648_v50 = vshll.u32 %v4431_v5, 16  ;;  %v4170_v59 = vor.u32 %v4169_v41, %v4166_v26 }
 0x309   : > { %3875 = vst [vmem:[#allocation2 + $0xf8] ss:$-4 sps:$4 sm:$0xff] %v3828_v23   ;;  %3873 = vst [vmem:[#allocation2 + $0xe8] ss:$-4 sps:$4 sm:$0xff] %v3827_v60   ;;  %5069 = vmatprep.mubr.bf16.mxu0 %v4365_v28  ;;  %v4653_v51 = vshrl.u32 %v4432_v37, 16  ;;  %v4656_v24 = vshll.u32 %v4432_v37, 16 }
 0x30a   : > { %v4366_v27 = vrot.slane %v4289_v33, 4  ;;  %v4178_v45 = vor.u32 %v4177_v35, %v4174_v42  ;;  %v4647_v19 = vrot.slane %v4645_v49, 5  ;;  %v4650_v56 = vrot.slane %v4648_v50, 6  ;;  %v11833_v35 = vld [vmem:[#allocation10 + $0x138] sm:$0xff]  }
 0x30b   : > { %v4367_v46 = vrot.slane %v4290_v14, 4  ;;  %v4655_v6 = vrot.slane %v4653_v51, 5  ;;  %v4658_v1 = vrot.slane %v4656_v24, 6  ;;  %v4662_v4 = vshrl.u32 %v4433_v15, 16  ;;  %v11834_v49 = vld [vmem:[#allocation10 + $0x178] sm:$0xff]   ;;  %10984 = vmatprep.subr.bf16.mxu1 %v11833_v35 }
 0x30c   : > { %v4665_v34 = vshll.u32 %v4433_v15, 16  ;;  %v4179_v54 = vsel %vm3958_vm3, %v4170_v59, %v4178_v45  ;;  %v4651_v47 = vor.u32 %v4650_v56, %v4647_v19  ;;  %v4670_v5 = vshrl.u32 %v4434_v29, 16  ;;  %v11835_v50 = vld [vmem:[#allocation10 + $0xf8] sm:$0xff]   ;;  %11536 = vmatprep.subr.bf16.mxu0 %v11834_v49 }
 0x30d   : > { %v4368_v12 = vsel %vm1045_vm8, %v4366_v27, %v4367_v46  ;;  %v4659_v28 = vor.u32 %v4658_v1, %v4655_v6  ;;  %v4664_v37 = vrot.slane %v4662_v4, 5  ;;  %v4673_v21 = vshll.u32 %v4434_v29, 16  ;;  %10985 = vmatpush3.bf16.msra.mxu1 %v11835_v50  ;;  %11537 = vmatpush3.bf16.msra.mxu0 %v11834_v49 }
 0x30e   : > { %v4667_v26 = vrot.slane %v4665_v34, 6  ;;  %v4672_v44 = vrot.slane %v4670_v5, 5  ;;  %v4181_v33 = vshrl.u32 %v3952_v9, 16  ;;  %v4184_v23 = vshll.u32 %v3952_v9, 16 }
 0x30f   : > { %v4189_v60 = vshrl.u32 %v3953_v11, 16  ;;  %v4660_v36 = vsel %vm4439_vm5, %v4651_v47, %v4659_v28  ;;  %v4675_v14 = vrot.slane %v4673_v21, 6  ;;  %v4192_v42 = vshll.u32 %v3953_v11, 16 }
 0x310   : > { %v4668_v41 = vor.u32 %v4667_v26, %v4664_v37  ;;  %5070 = vmatmul.mubr.bf16.gmra.mrb[144].mxu0 %v4179_v54  ;;  %11514 = vmatprep.mubr.bf16.mxu1 %v4660_v36  ;;  %v4183_v15 = vrot.slane %v4181_v33, 2  ;;  %v4186_v59 = vrot.slane %v4184_v23, 3  ;;  %v4291_v24 = vld [vmem:[#allocation2 + $0xe0] sm:$0xf0]  ;;  %v4292_v45 = vld [vmem:[#allocation2 + $0xe8] sm:$0xf] }
 0x311   : > { %v4191_v51 = vrot.slane %v4189_v60, 2  ;;  %5077 = vmatprep.mubr.bf16.mxu0 %v4368_v12  ;;  %v4676_v27 = vor.u32 %v4675_v14, %v4672_v44  ;;  %v4194_v29 = vrot.slane %v4192_v42, 3  ;;  %v4369_v19 = vrot.slane %v4291_v24, 4  ;;  %v3954_v56 = vld [vmem:[#allocation2 + $0xe0] sm:$0xfc] }
 0x312   : > { %v4187_v46 = vor.u32 %v4186_v59, %v4183_v15  ;;  %v4370_v9 = vrot.slane %v4292_v45, 4  ;;  %v3955_v6 = vld [vmem:[#allocation2 + $0xe8] sm:$0x7]  ;;  %v4198_v1 = vshrl.u32 %v3954_v56, 16  ;;  %v4201_v4 = vshll.u32 %v3954_v56, 16 }
 0x313   : > { %v4677_v34 = vsel %vm4439_vm5, %v4668_v41, %v4676_v27  ;;  %v4195_v11 = vor.u32 %v4194_v29, %v4191_v51  ;;  %v4206_v54 = vshrl.u32 %v3955_v6, 16  ;;  %v4209_v47 = vshll.u32 %v3955_v6, 16  ;;  %v4435_v5 = vld [vmem:[#allocation2 + $0xe0] sm:$0xe0]  ;;  %v4436_v12 = vld [vmem:[#allocation2 + $0xe8] sm:$0x3f] }
 0x314   : > { %11515 = vmatmul.mubr.bf16.gmra.mrb[120].mxu1 %v4677_v34  ;;  %v4200_v28 = vrot.slane %v4198_v1, 2  ;;  %v4203_v37 = vrot.slane %v4201_v4, 3  ;;  %v4679_v26 = vshrl.u32 %v4435_v5, 16  ;;  %v4293_v21 = vld [vmem:[#allocation2 + $0xf0] sm:$0xf0]  ;;  %v4682_v23 = vshll.u32 %v4435_v5, 16 }
 0x315   : > { %v4208_v44 = vrot.slane %v4206_v54, 2  ;;  %v4211_v33 = vrot.slane %v4209_v47, 3  ;;  %v4294_v60 = vld [vmem:[#allocation2 + $0xf8] sm:$0xf]  ;;  %v4371_v36 = vsel %vm1045_vm8, %v4369_v19, %v4370_v9  ;;  %v4687_v42 = vshrl.u32 %v4436_v12, 16 }
 0x316   : > { %v4681_v14 = vrot.slane %v4679_v26, 5  ;;  %v4690_v41 = vshll.u32 %v4436_v12, 16  ;;  %v4437_v35 = vld [vmem:[#allocation2 + $0xf0] sm:$0xe0]  ;;  %v4196_v50 = vsel %vm3958_vm3, %v4187_v46, %v4195_v11  ;;  %v4204_v15 = vor.u32 %v4203_v37, %v4200_v28  ;;  %v4438_v51 = vld [vmem:[#allocation2 + $0xf8] sm:$0x3f] }
 0x317   : > { %v4212_v59 = vor.u32 %v4211_v33, %v4208_v44  ;;  %v4684_v49 = vrot.slane %v4682_v23, 6  ;;  %v4689_v24 = vrot.slane %v4687_v42, 5  ;;  %v4696_v29 = vshrl.u32 %v4437_v35, 16  ;;  %v3956_v56 = vld [vmem:[#allocation2 + $0xf0] sm:$0xfc] }
 0x318   : > { %5078 = vmatmul.mubr.bf16.gmra.mrb[148].mxu0 %v4196_v50  ;;  %v4692_v27 = vrot.slane %v4690_v41, 6  ;;  %v4699_v45 = vshll.u32 %v4437_v35, 16  ;;  %v4372_v1 = vrot.slane %v4293_v21, 4  ;;  %v4373_v19 = vrot.slane %v4294_v60, 4  ;;  %v3957_v4 = vld [vmem:[#allocation2 + $0xf8] sm:$0x7] }
 0x319   : > { %5085 = vmatprep.mubr.bf16.mxu0 %v4371_v36  ;;  %v4685_v6 = vor.u32 %v4684_v49, %v4681_v14  ;;  %v4704_v9 = vshrl.u32 %v4438_v51, 16  ;;  %v4698_v54 = vrot.slane %v4696_v29, 5  ;;  %v4707_v46 = vshll.u32 %v4438_v51, 16 }
 0x31a   : > { %v4693_v34 = vor.u32 %v4692_v27, %v4689_v24  ;;  %v4701_v47 = vrot.slane %v4699_v45, 6  ;;  %v4215_v5 = vshrl.u32 %v3956_v56, 16  ;;  %v4218_v12 = vshll.u32 %v3956_v56, 16 }
 0x31b   : > { %v4706_v11 = vrot.slane %v4704_v9, 5  ;;  %v4223_v28 = vshrl.u32 %v3957_v4, 16  ;;  %v4709_v44 = vrot.slane %v4707_v46, 6  ;;  %v4226_v33 = vshll.u32 %v3957_v4, 16 }
 0x31c   : > { %v4694_v37 = vsel %vm4439_vm5, %v4685_v6, %v4693_v34  ;;  %v4702_v26 = vor.u32 %v4701_v47, %v4698_v54  ;;  %v4213_v23 = vsel %vm3958_vm3, %v4204_v15, %v4212_v59  ;;  %v4374_v21 = vsel %vm1045_vm8, %v4372_v1, %v4373_v19  ;;  %v13020_v59 = vld [vmem:[%s13729_s3 + $0x1] ss:$0 sm:$0xff] }
 0x31d   : > { %11518 = vmatprep.mubr.bf16.mxu1 %v4694_v37  ;;  %v4710_v60 = vor.u32 %v4709_v44, %v4706_v11  ;;  %v4217_v36 = vrot.slane %v4215_v5, 2  ;;  %v4220_v14 = vrot.slane %v4218_v12, 3  ;;  %v4225_v42 = vrot.slane %v4223_v28, 2 }
 0x31e   : > { %v4228_v41 = vrot.slane %v4226_v33, 3 }
 0x31f   : > { %v4711_v35 = vsel %vm4439_vm5, %v4702_v26, %v4710_v60  ;;  %v4221_v50 = vor.u32 %v4220_v14, %v4217_v36 }
 0x320   : > { %5086 = vmatmul.mubr.bf16.gmra.mrb[152].mxu0 %v4213_v23  ;;  %11519 = vmatmul.mubr.bf16.gmra.mrb[124].mxu1 %v4711_v35  ;;  %v4229_v49 = vor.u32 %v4228_v41, %v4225_v42 }
 0x321   : > { %5093 = vmatprep.mubr.bf16.mxu0 %v4374_v21 }
 0x322   : > { %v4230_v51 = vsel %vm3958_vm3, %v4221_v50, %v4229_v49 }
 0x328   : > { %5094 = vmatmul.mubr.bf16.gmra.mrb[156].mxu0 %v4230_v51 }
 0x365   : > { %v10850_v24 = vpop.f32.mrb[96].mxu0 }
 0x366   : > { %v10851_v15 = vpop.f32.mrb[97].mxu0 }
 0x367   : > { %v10852_v27 = vadd.f32 %v10851_v15, %v10850_v24  ;;  %v10853_v29 = vpop.f32.mrb[98].mxu0 }
 0x368   : > { %v10854_v45 = vpop.f32.mrb[99].mxu0 }
 0x369   : > { %v10855_v56 = vadd.f32 %v10854_v45, %v10853_v29  ;;  %v4976_v6 = vadd.f32 %v10852_v27, %v13020_v59 }
 0x36b   : > { %v4979_v19 = vadd.f32 %v10855_v56, %v13020_v59 }
 0x36c   : > { %v11492_v1 = vpop.f32.mrb[96].mxu1 }
 0x36d   : > { %v5136_v9 = vpop.f32.mrb[97].mxu1 }
 0x36e   : > { %v5137_v4 = vadd.f32 %v5136_v9, %v4976_v6  ;;  %v11493_v34 = vpop.f32.mrb[98].mxu1 }
 0x36f   : > { %v5139_v54 = vpop.f32.mrb[99].mxu1  ;;  %v10856_v11 = vpop.f32.mrb[100].mxu0 }
 0x370   : > { %v5295_v47 = vmul.f32 0.1, %v5137_v4  ;;  %v5140_v46 = vadd.f32 %v5139_v54, %v4979_v19  ;;  %vm5263_vm3 = vcmp.ge.f32.partialorder %v5137_v4, 0.0  ;;  %v10857_v5 = vpop.f32.mrb[101].mxu0 }
 0x371   : > { %v10858_v28 = vadd.f32 %v10857_v5, %v10856_v11  ;;  %v10859_v37 = vpop.f32.mrb[102].mxu0 }
 0x372   : > { %vm5264_vm5 = vcmp.ge.f32.partialorder %v5140_v46, 0.0  ;;  %v5296_v12 = vmul.f32 0.1, %v5140_v46  ;;  %v10860_v26 = vpop.f32.mrb[103].mxu0  ;;  %v5327_v44 = vsel %vm5263_vm3, %v5137_v4, %v5295_v47 }
 0x373   : > { %v4984_v23 = vadd.f32 %v10858_v28, %v13020_v59  ;;  %v10861_v21 = vadd.f32 %v10860_v26, %v10859_v37 }
 0x374   : > { %v5328_v33 = vsel %vm5264_vm5, %v5140_v46, %v5296_v12 }
 0x375   : > { %v5359_v60 = vpack.c.bf16 %v5328_v33, %v5327_v44  ;;  %v5145_v36 = vadd.f32 %v11492_v1, %v4984_v23  ;;  %v4987_v14 = vadd.f32 %v10861_v21, %v13020_v59 }
 0x377   : > { %v5391_v42 = vrot.slane %v5359_v60, 4  ;;  %v5297_v41 = vmul.f32 0.1, %v5145_v36  ;;  %v5148_v35 = vadd.f32 %v11493_v34, %v4987_v14  ;;  %vm5265_vm12 = vcmp.ge.f32.partialorder %v5145_v36, 0.0 }
 0x379   : > { %5423 = vst [vmem:[#allocation2 + $0x8] ss:$-4 sps:$4 sm:$0xff] %v5391_v42   ;;  %vm5266_vm13 = vcmp.ge.f32.partialorder %v5148_v35, 0.0  ;;  %v5298_v50 = vmul.f32 0.1, %v5148_v35  ;;  %v5329_v24 = vsel %vm5265_vm12, %v5145_v36, %v5297_v41 }
 0x37a   : > { %v10862_v49 = vpop.f32.mrb[104].mxu0 }
 0x37b   : > { %v10863_v51 = vpop.f32.mrb[105].mxu0  ;;  %v5330_v15 = vsel %vm5266_vm13, %v5148_v35, %v5298_v50 }
 0x37c   : > { %v10864_v27 = vadd.f32 %v10863_v51, %v10862_v49  ;;  %v10865_v29 = vpop.f32.mrb[106].mxu0  ;;  %v5360_v45 = vpack.c.bf16 %v5330_v15, %v5329_v24 }
 0x37d   : > { %v10866_v56 = vpop.f32.mrb[107].mxu0 }
 0x37e   : > { %v10867_v6 = vadd.f32 %v10866_v56, %v10865_v29  ;;  %v5392_v19 = vrot.slane %v5360_v45, 4  ;;  %v4992_v1 = vadd.f32 %v10864_v27, %v13020_v59 }
 0x380   : > { %v5840_v9 = vld [vmem:[#allocation2] sm:$0xf0]  ;;  %v5841_v4 = vld [vmem:[#allocation2 + $0x8] sm:$0xf]  ;;  %5425 = vst [vmem:[#allocation2 + $0x18] ss:$-4 sps:$4 sm:$0xff] %v5392_v19   ;;  %v4995_v28 = vadd.f32 %v10867_v6, %v13020_v59 }
 0x381   : > { %v5504_v54 = vld [vmem:[#allocation2] sm:$0xf8]  ;;  %v5904_v34 = vrot.slane %v5840_v9, 4  ;;  %v5905_v47 = vrot.slane %v5841_v4, 4  ;;  %v5505_v46 = vld [vmem:[#allocation2 + $0x8] sm:$0xf] }
 0x382   : > { %v5537_v11 = vshrl.u32 %v5504_v54, 16  ;;  %v5540_v5 = vshll.u32 %v5504_v54, 16  ;;  %v11496_v12 = vpop.f32.mrb[100].mxu1  ;;  %v5545_v37 = vshrl.u32 %v5505_v46, 16  ;;  %v5548_v26 = vshll.u32 %v5505_v46, 16 }
 0x383   : > { %v5984_v44 = vld [vmem:[#allocation2] sm:$0xf0]  ;;  %v5152_v33 = vpop.f32.mrb[101].mxu1  ;;  %v5906_v23 = vsel %vm1045_vm8, %v5904_v34, %v5905_v47  ;;  %v5985_v36 = vld [vmem:[#allocation2 + $0x8] sm:$0x1f] }
 0x384   : > { %v5539_v21 = vrot.slane %v5537_v11, 3  ;;  %v5542_v60 = vrot.slane %v5540_v5, 4  ;;  %v6017_v14 = vshrl.u32 %v5984_v44, 16  ;;  %v5153_v42 = vadd.f32 %v5152_v33, %v4992_v1  ;;  %v11497_v41 = vpop.f32.mrb[102].mxu1  ;;  %6549 = vmatprep.mubr.bf16.mxu1 %v5906_v23 }
 0x385   : > { %v5547_v35 = vrot.slane %v5545_v37, 3  ;;  %v5550_v50 = vrot.slane %v5548_v26, 4  ;;  %v6020_v49 = vshll.u32 %v5984_v44, 16  ;;  %v5155_v51 = vpop.f32.mrb[103].mxu1  ;;  %v6025_v27 = vshrl.u32 %v5985_v36, 16 }
 0x386   : > { %v5543_v24 = vor.u32 %v5542_v60, %v5539_v21  ;;  %v6019_v15 = vrot.slane %v6017_v14, 4  ;;  %v6028_v29 = vshll.u32 %v5985_v36, 16  ;;  %vm5267_vm14 = vcmp.ge.f32.partialorder %v5153_v42, 0.0  ;;  %v10868_v19 = vpop.f32.mrb[108].mxu0 }
 0x387   : > { %v5299_v45 = vmul.f32 0.1, %v5153_v42  ;;  %v5156_v56 = vadd.f32 %v5155_v51, %v4995_v28  ;;  %v5551_v6 = vor.u32 %v5550_v50, %v5547_v35  ;;  %v6022_v9 = vrot.slane %v6020_v49, 5  ;;  %v10869_v47 = vpop.f32.mrb[109].mxu0  ;;  %v5842_v11 = vld [vmem:[#allocation2 + $0x10] sm:$0xf0] }
 0x388   : > { %v6027_v4 = vrot.slane %v6025_v27, 4  ;;  %v6030_v54 = vrot.slane %v6028_v29, 5  ;;  %v10870_v5 = vadd.f32 %v10869_v47, %v10868_v19  ;;  %v10871_v37 = vpop.f32.mrb[110].mxu0  ;;  %v5843_v33 = vld [vmem:[#allocation2 + $0x18] sm:$0xf]  ;;  %v5907_v23 = vrot.slane %v5842_v11, 4 }
 0x389   : > { %v5331_v34 = vsel %vm5267_vm14, %v5153_v42, %v5299_v45  ;;  %vm5268_vm1 = vcmp.ge.f32.partialorder %v5156_v56, 0.0  ;;  %v5300_v1 = vmul.f32 0.1, %v5156_v56  ;;  %v5552_v46 = vsel %vm676_vm15, %v5543_v24, %v5551_v6  ;;  %v5506_v28 = vld [vmem:[#allocation2 + $0x10] sm:$0xf8]  ;;  %v10872_v60 = vpop.f32.mrb[111].mxu0 }
 0x38a   : > { %6550 = vmatmul.mubr.bf16.vlgmr.msra.gmra.mrb[128].mxu1 %v5552_v46  ;;  %v6023_v26 = vor.u32 %v6022_v9, %v6019_v15  ;;  %v6031_v44 = vor.u32 %v6030_v54, %v6027_v4  ;;  %v5908_v36 = vrot.slane %v5843_v33, 4  ;;  %v5507_v14 = vld [vmem:[#allocation2 + $0x18] sm:$0xf]  ;;  %v5554_v35 = vshrl.u32 %v5506_v28, 16  ;;  %v5986_v27 = vld [vmem:[#allocation2 + $0x10] sm:$0xf0] }
 0x38b   : > { %v5332_v21 = vsel %vm5268_vm1, %v5156_v56, %v5300_v1  ;;  %v5557_v42 = vshll.u32 %v5506_v28, 16  ;;  %v5000_v49 = vadd.f32 %v10870_v5, %v13020_v59  ;;  %v10873_v51 = vadd.f32 %v10872_v60, %v10871_v37  ;;  %v5987_v54 = vld [vmem:[#allocation2 + $0x18] sm:$0x1f] }
 0x38c   : > { %v5361_v50 = vpack.c.bf16 %v5332_v21, %v5331_v34  ;;  %v6032_v24 = vsel %vm1158_vm0, %v6023_v26, %v6031_v44  ;;  %v5909_v15 = vsel %vm1045_vm8, %v5907_v23, %v5908_v36  ;;  %v5556_v29 = vrot.slane %v5554_v35, 3 }
 0x38d   : > { %11538 = vmatprep.mubr.bf16.mxu0 %v6032_v24  ;;  %v5559_v45 = vrot.slane %v5557_v42, 4  ;;  %v5562_v6 = vshrl.u32 %v5507_v14, 16  ;;  %v5161_v56 = vadd.f32 %v11496_v12, %v5000_v49  ;;  %v5003_v9 = vadd.f32 %v10873_v51, %v13020_v59  ;;  %6557 = vmatprep.mubr.bf16.mxu1 %v5909_v15 }
 0x38e   : > { %v5393_v19 = vrot.slane %v5361_v50, 4  ;;  %v5565_v4 = vshll.u32 %v5507_v14, 16  ;;  %v6034_v47 = vshrl.u32 %v5986_v27, 16  ;;  %v6037_v46 = vshll.u32 %v5986_v27, 16 }
 0x38f   : > { %v5560_v34 = vor.u32 %v5559_v45, %v5556_v29  ;;  %v5564_v1 = vrot.slane %v5562_v6, 3  ;;  %vm5269_vm2 = vcmp.ge.f32.partialorder %v5161_v56, 0.0  ;;  %v5301_v11 = vmul.f32 0.1, %v5161_v56  ;;  %v10874_v26 = vpop.f32.mrb[112].mxu0 }
 0x390   : > { %5427 = vst [vmem:[#allocation2 + $0x28] ss:$-4 sps:$4 sm:$0xff] %v5393_v19   ;;  %v5164_v5 = vadd.f32 %v11497_v41, %v5003_v9  ;;  %v5567_v37 = vrot.slane %v5565_v4, 4  ;;  %v6036_v44 = vrot.slane %v6034_v47, 4  ;;  %v6039_v33 = vrot.slane %v6037_v46, 5  ;;  %v10875_v21 = vpop.f32.mrb[113].mxu0 }
 0x391   : > { %v6042_v23 = vshrl.u32 %v5987_v54, 16  ;;  %v6045_v28 = vshll.u32 %v5987_v54, 16  ;;  %v10876_v36 = vadd.f32 %v10875_v21, %v10874_v26  ;;  %v10877_v14 = vpop.f32.mrb[114].mxu0  ;;  %v5333_v49 = vsel %vm5269_vm2, %v5161_v56, %v5301_v11 }
 0x392   : > { %vm5270_vm4 = vcmp.ge.f32.partialorder %v5164_v5, 0.0  ;;  %v5302_v12 = vmul.f32 0.1, %v5164_v5  ;;  %v5568_v60 = vor.u32 %v5567_v37, %v5564_v1  ;;  %v6040_v35 = vor.u32 %v6039_v33, %v6036_v44  ;;  %v10878_v24 = vpop.f32.mrb[115].mxu0 }
 0x393   : > { %v6044_v42 = vrot.slane %v6042_v23, 4  ;;  %v6047_v50 = vrot.slane %v6045_v28, 5  ;;  %v10879_v15 = vadd.f32 %v10878_v24, %v10877_v14  ;;  %v5008_v29 = vadd.f32 %v10876_v36, %v13020_v59 }
 0x394   : > { %v5334_v51 = vsel %vm5270_vm4, %v5164_v5, %v5302_v12  ;;  %v5569_v41 = vsel %vm676_vm15, %v5560_v34, %v5568_v60 }
 0x395   : > { %v5362_v27 = vpack.c.bf16 %v5334_v51, %v5333_v49  ;;  %6558 = vmatmul.mubr.bf16.gmra.mrb[132].mxu1 %v5569_v41  ;;  %v6048_v45 = vor.u32 %v6047_v50, %v6044_v42  ;;  %v5011_v9 = vadd.f32 %v10879_v15, %v13020_v59 }
 0x396   : > { %v13037_v19 = vpop.f32.mrb[104].mxu1 }
 0x397   : > { %v5394_v6 = vrot.slane %v5362_v27, 4  ;;  %v6049_v4 = vsel %vm1158_vm0, %v6040_v35, %v6048_v45  ;;  %v5844_v54 = vld [vmem:[#allocation2 + $0x20] sm:$0xf0]  ;;  %v5845_v1 = vld [vmem:[#allocation2 + $0x28] sm:$0xf]  ;;  %v5168_v56 = vpop.f32.mrb[105].mxu1 }
 0x398   : > { %11539 = vmatmul.mubr.bf16.vlgmr.msra.gmra.mrb[160].mxu0 %v6049_v4  ;;  %v5910_v47 = vrot.slane %v5844_v54, 4  ;;  %v5911_v46 = vrot.slane %v5845_v1, 4  ;;  %v5508_v34 = vld [vmem:[#allocation2 + $0x20] sm:$0xf8]  ;;  %v5169_v11 = vadd.f32 %v5168_v56, %v5008_v29  ;;  %v13041_v5 = vpop.f32.mrb[106].mxu1 }
 0x399   : > { %5429 = vst [vmem:[#allocation2 + $0x38] ss:$-4 sps:$4 sm:$0xff] %v5394_v6   ;;  %v5509_v37 = vld [vmem:[#allocation2 + $0x28] sm:$0xf]  ;;  %v5571_v26 = vshrl.u32 %v5508_v34, 16  ;;  %v5574_v44 = vshll.u32 %v5508_v34, 16 }
 0x39a   : > { %v5171_v33 = vpop.f32.mrb[107].mxu1  ;;  %v5912_v23 = vsel %vm1045_vm8, %v5910_v47, %v5911_v46  ;;  %v5579_v28 = vshrl.u32 %v5509_v37, 16  ;;  %v5582_v12 = vshll.u32 %v5509_v37, 16  ;;  %v5988_v21 = vld [vmem:[#allocation2 + $0x20] sm:$0xf0]  ;;  %vm5271_vm6 = vcmp.ge.f32.partialorder %v5169_v11, 0.0 }
 0x39b   : > { %v5303_v60 = vmul.f32 0.1, %v5169_v11  ;;  %v5172_v36 = vadd.f32 %v5171_v33, %v5011_v9  ;;  %6565 = vmatprep.mubr.bf16.mxu1 %v5912_v23  ;;  %v5573_v14 = vrot.slane %v5571_v26, 3  ;;  %v5989_v35 = vld [vmem:[#allocation2 + $0x28] sm:$0x1f]  ;;  %v5576_v42 = vrot.slane %v5574_v44, 4 }
 0x39c   : > { %v5581_v50 = vrot.slane %v5579_v28, 3  ;;  %v5584_v49 = vrot.slane %v5582_v12, 4  ;;  %v6051_v51 = vshrl.u32 %v5988_v21, 16  ;;  %v6054_v41 = vshll.u32 %v5988_v21, 16 }
 0x39d   : > { %vm5272_vm7 = vcmp.ge.f32.partialorder %v5172_v36, 0.0  ;;  %v5304_v24 = vmul.f32 0.1, %v5172_v36  ;;  %v5577_v27 = vor.u32 %v5576_v42, %v5573_v14  ;;  %v6059_v45 = vshrl.u32 %v5989_v35, 16  ;;  %v10880_v54 = vpop.f32.mrb[116].mxu0 }
 0x39e   : > { %v5585_v15 = vor.u32 %v5584_v49, %v5581_v50  ;;  %v6053_v29 = vrot.slane %v6051_v51, 4  ;;  %v5335_v6 = vsel %vm5271_vm6, %v5169_v11, %v5303_v60  ;;  %v6056_v1 = vrot.slane %v6054_v41, 5  ;;  %v10881_v47 = vpop.f32.mrb[117].mxu0 }
 0x39f   : > { %v5336_v4 = vsel %vm5272_vm7, %v5172_v36, %v5304_v24  ;;  %v6062_v9 = vshll.u32 %v5989_v35, 16  ;;  %v6061_v34 = vrot.slane %v6059_v45, 4  ;;  %v10882_v44 = vadd.f32 %v10881_v47, %v10880_v54  ;;  %v10883_v33 = vpop.f32.mrb[118].mxu0  ;;  %v11836_v45 = vld [vmem:[#allocation8 + $0x200] sm:$0xff]  }
 0x3a0   : > { %v5363_v56 = vpack.c.bf16 %v5336_v4, %v5335_v6  ;;  %v5586_v46 = vsel %vm676_vm15, %v5577_v27, %v5585_v15  ;;  %v5846_v37 = vld [vmem:[#allocation2 + $0x30] sm:$0xf0]  ;;  %v5847_v26 = vld [vmem:[#allocation2 + $0x38] sm:$0xf]  ;;  %v6057_v23 = vor.u32 %v6056_v1, %v6053_v29  ;;  %v10884_v11 = vpop.f32.mrb[119].mxu0  ;;  %v11837_v6 = vld [vmem:[#allocation8 + $0x208] sm:$0xff]   ;;  %11570 = vmatprep.subr.bf16.mxu1 %v11836_v45 }
 0x3a1   : > { %6566 = vmatmul.mubr.bf16.gmra.mrb[136].mxu1 %v5586_v46  ;;  %v6064_v28 = vrot.slane %v6062_v9, 5  ;;  %v5913_v12 = vrot.slane %v5846_v37, 4  ;;  %v5510_v21 = vld [vmem:[#allocation2 + $0x30] sm:$0xf8]  ;;  %v5914_v60 = vrot.slane %v5847_v26, 4  ;;  %v5016_v35 = vadd.f32 %v10882_v44, %v13020_v59  ;;  %v11840_v47 = vld [vmem:[#allocation8 + $0x1c0] sm:$0xff]  }
 0x3a2   : > { %v5395_v14 = vrot.slane %v5363_v56, 4  ;;  %v5511_v36 = vld [vmem:[#allocation2 + $0x38] sm:$0xf]  ;;  %v5588_v42 = vshrl.u32 %v5510_v21, 16  ;;  %v10885_v50 = vadd.f32 %v10884_v11, %v10883_v33  ;;  %v5591_v51 = vshll.u32 %v5510_v21, 16  ;;  %v11841_v46 = vld [vmem:[#allocation8 + $0x180] sm:$0xff]   ;;  %11571 = vmatpush3.bf16.msra.mxu1 %v11836_v45  ;;  %11106 = vmatprep.subr.bf16.mxu0 %v11840_v47 }
 0x3a3   : > { %v6065_v49 = vor.u32 %v6064_v28, %v6061_v34  ;;  %v5990_v24 = vld [vmem:[#allocation2 + $0x30] sm:$0xf0]  ;;  %v5915_v41 = vsel %vm1045_vm8, %v5913_v12, %v5914_v60  ;;  %v5596_v15 = vshrl.u32 %v5511_v36, 16  ;;  %v5599_v29 = vshll.u32 %v5511_v36, 16  ;;  %v5991_v56 = vld [vmem:[#allocation2 + $0x38] sm:$0x1f]  ;;  %11572 = vmatprep.subr.bf16.mxu1 %v11837_v6  ;;  %11107 = vmatpush3.bf16.msra.mxu0 %v11841_v46 }
 0x3a4   : > { %5431 = vst [vmem:[#allocation2 + $0x48] ss:$-4 sps:$4 sm:$0xff] %v5395_v14   ;;  %v5590_v27 = vrot.slane %v5588_v42, 3  ;;  %v5177_v4 = vadd.f32 %v13037_v19, %v5016_v35  ;;  %v5019_v54 = vadd.f32 %v10885_v50, %v13020_v59  ;;  %6573 = vmatprep.mubr.bf16.mxu1 %v5915_v41  ;;  %v5593_v9 = vrot.slane %v5591_v51, 4  ;;  %v11843_v33 = vld [vmem:[#allocation8 + $0x1c8] sm:$0xff]   ;;  %v11838_v51 = vld [vmem:[#allocation8 + $0x210] sm:$0xff]  }
 0x3a5   : > { %v6066_v1 = vsel %vm1158_vm0, %v6057_v23, %v6065_v49  ;;  %v5598_v34 = vrot.slane %v5596_v15, 3  ;;  %v5601_v37 = vrot.slane %v5599_v29, 4  ;;  %v6068_v26 = vshrl.u32 %v5990_v24, 16  ;;  %v10886_v12 = vpop.f32.mrb[120].mxu0  ;;  %v11844_v42 = vld [vmem:[#allocation8 + $0x188] sm:$0xff]   ;;  %11108 = vmatprep.subr.bf16.mxu0 %v11843_v33  ;;  %v11846_v45 = vld [vmem:[#allocation8 + $0x190] sm:$0xff]  }
 0x3a6   : > { %11542 = vmatprep.mubr.bf16.mxu0 %v6066_v1  ;;  %v6071_v44 = vshll.u32 %v5990_v24, 16  ;;  %vm5273_vm9 = vcmp.ge.f32.partialorder %v5177_v4, 0.0  ;;  %v5305_v28 = vmul.f32 0.1, %v5177_v4  ;;  %v5180_v19 = vadd.f32 %v13041_v5, %v5019_v54  ;;  %v10887_v23 = vpop.f32.mrb[121].mxu0  ;;  %v11845_v5 = vld [vmem:[#allocation8 + $0x1d0] sm:$0xff]   ;;  %11573 = vmatpush3.bf16.msra.mxu1 %v11837_v6 }
 0x3a7   : > { %v5594_v21 = vor.u32 %v5593_v9, %v5590_v27  ;;  %v5602_v14 = vor.u32 %v5601_v37, %v5598_v34  ;;  %v13052_v11 = vrot.slane %v6068_v26, 4  ;;  %v6076_v36 = vshrl.u32 %v5991_v56, 16  ;;  %v10889_v49 = vpop.f32.mrb[122].mxu0  ;;  %11109 = vmatpush3.bf16.msra.mxu0 %v11844_v42  ;;  %11574 = vmatprep.subr.bf16.mxu1 %v11838_v51 }
 0x3a8   : > { %v6073_v60 = vrot.slane %v6071_v44, 5  ;;  %vm5274_vm10 = vcmp.ge.f32.partialorder %v5180_v19, 0.0  ;;  %v5306_v35 = vmul.f32 0.1, %v5180_v19  ;;  %v10888_v50 = vadd.f32 %v10887_v23, %v10886_v12  ;;  %v10890_v41 = vpop.f32.mrb[123].mxu0  ;;  %11110 = vmatprep.subr.bf16.mxu0 %v11845_v5 }
 0x3a9   : > { %v5337_v24 = vsel %vm5273_vm9, %v5177_v4, %v5305_v28  ;;  %v5603_v27 = vsel %vm676_vm15, %v5594_v21, %v5602_v14  ;;  %v6078_v15 = vrot.slane %v6076_v36, 4  ;;  %v6079_v29 = vshll.u32 %v5991_v56, 16 }
 0x3aa   : > { %v5338_v54 = vsel %vm5274_vm10, %v5180_v19, %v5306_v35  ;;  %v10891_v1 = vadd.f32 %v10890_v41, %v10889_v49  ;;  %v5024_v9 = vadd.f32 %v10888_v50, %v13020_v59  ;;  %6574 = vmatmul.mubr.bf16.gmra.mrb[140].mxu1 %v5603_v27  ;;  %v6074_v47 = vor.u32 %v6073_v60, %v13052_v11  ;;  %v11839_v11 = vld [vmem:[#allocation8 + $0x218] sm:$0xff]  }
 0x3ab   : > { %v5848_v46 = vld [vmem:[#allocation2 + $0x40] sm:$0xf0]  ;;  %v5849_v34 = vld [vmem:[#allocation2 + $0x48] sm:$0xf]  ;;  %v5364_v26 = vpack.c.bf16 %v5338_v54, %v5337_v24  ;;  %v13058_v44 = vpop.f32.mrb[108].mxu1  ;;  %v6081_v4 = vrot.slane %v6079_v29, 5  ;;  %11575 = vmatpush3.bf16.msra.mxu1 %v11838_v51  ;;  %11111 = vmatpush3.bf16.msra.mxu0 %v11846_v45 }
 0x3ac   : > { %v5512_v37 = vld [vmem:[#allocation2 + $0x40] sm:$0xf8]  ;;  %v5916_v33 = vrot.slane %v5848_v46, 4  ;;  %v5917_v28 = vrot.slane %v5849_v34, 4  ;;  %v5513_v12 = vld [vmem:[#allocation2 + $0x48] sm:$0xf]  ;;  %v5027_v19 = vadd.f32 %v10891_v1, %v13020_v59  ;;  %11576 = vmatprep.subr.bf16.mxu1 %v11839_v11 }
 0x3ad   : > { %v5184_v56 = vpop.f32.mrb[109].mxu1  ;;  %v5605_v21 = vshrl.u32 %v5512_v37, 16  ;;  %v5608_v23 = vshll.u32 %v5512_v37, 16  ;;  %v5613_v14 = vshrl.u32 %v5513_v12, 16  ;;  %v11848_v60 = vld [vmem:[#allocation8 + $0x1d8] sm:$0xff]   ;;  %v5396_v36 = vrot.slane %v5364_v26, 4 }
 0x3ae   : > { %v5185_v35 = vadd.f32 %v5184_v56, %v5024_v9  ;;  %v13061_v50 = vpop.f32.mrb[110].mxu1  ;;  %v6082_v49 = vor.u32 %v6081_v4, %v6078_v15  ;;  %v5918_v24 = vsel %vm1045_vm8, %v5916_v33, %v5917_v28  ;;  %v5992_v41 = vld [vmem:[#allocation2 + $0x40] sm:$0xf0]  ;;  %v5993_v6 = vld [vmem:[#allocation2 + $0x48] sm:$0x1f]  ;;  %v5616_v1 = vshll.u32 %v5513_v12, 16  ;;  %11112 = vmatprep.subr.bf16.mxu0 %v11848_v60 }
 0x3af   : > { %v5187_v42 = vpop.f32.mrb[111].mxu1  ;;  %6581 = vmatprep.mubr.bf16.mxu1 %v5918_v24  ;;  %v5607_v27 = vrot.slane %v5605_v21, 3  ;;  %v5610_v29 = vrot.slane %v5608_v23, 4  ;;  %v5615_v54 = vrot.slane %v5613_v14, 3  ;;  %5433 = vst [vmem:[#allocation2 + $0x58] ss:$-4 sps:$4 sm:$0xff] %v5396_v36   ;;  %11577 = vmatpush3.bf16.msra.mxu1 %v11839_v11 }
 0x3b0   : > { %vm5275_vm11 = vcmp.ge.f32.partialorder %v5185_v35, 0.0  ;;  %v5307_v46 = vmul.f32 0.1, %v5185_v35  ;;  %v5188_v5 = vadd.f32 %v5187_v42, %v5027_v19  ;;  %v6083_v34 = vsel %vm1158_vm0, %v6074_v47, %v6082_v49  ;;  %v11849_v9 = vld [vmem:[#allocation8 + $0x198] sm:$0xff]   ;;  %v11842_v33 = vld [vmem:[#allocation8 + $0x220] sm:$0xff]   ;;  %v11847_v42 = vld [vmem:[#allocation8 + $0x228] sm:$0xff]  }
 0x3b1   : > { %11543 = vmatmul.mubr.bf16.gmra.mrb[164].mxu0 %v6083_v34  ;;  %v5611_v15 = vor.u32 %v5610_v29, %v5607_v27  ;;  %v5618_v37 = vrot.slane %v5616_v1, 4  ;;  %v6085_v26 = vshrl.u32 %v5992_v41, 16  ;;  %v6088_v4 = vshll.u32 %v5992_v41, 16  ;;  %11578 = vmatprep.subr.bf16.mxu1 %v11842_v33 }
 0x3b2   : > { %vm5276_vm3 = vcmp.ge.f32.partialorder %v5188_v5, 0.0  ;;  %v5308_v28 = vmul.f32 0.1, %v5188_v5  ;;  %v6093_v56 = vshrl.u32 %v5993_v6, 16  ;;  %v6096_v19 = vshll.u32 %v5993_v6, 16  ;;  %11113 = vmatpush3.bf16.msra.mxu0 %v11849_v9 }
 0x3b3   : > { %v5619_v12 = vor.u32 %v5618_v37, %v5615_v54  ;;  %v6087_v21 = vrot.slane %v6085_v26, 4  ;;  %v6090_v23 = vrot.slane %v6088_v4, 5  ;;  %v5339_v47 = vsel %vm5275_vm11, %v5185_v35, %v5307_v46  ;;  %v10892_v36 = vpop.f32.mrb[124].mxu0  ;;  %11579 = vmatpush3.bf16.msra.mxu1 %v11842_v33 }
 0x3b4   : > { %v5340_v51 = vsel %vm5276_vm3, %v5188_v5, %v5308_v28  ;;  %v6095_v45 = vrot.slane %v6093_v56, 4  ;;  %v6098_v41 = vrot.slane %v6096_v19, 5  ;;  %v10893_v27 = vpop.f32.mrb[125].mxu0  ;;  %11580 = vmatprep.subr.bf16.mxu1 %v11847_v42 }
 0x3b5   : > { %v5365_v14 = vpack.c.bf16 %v5340_v51, %v5339_v47  ;;  %v5620_v49 = vsel %vm676_vm15, %v5611_v15, %v5619_v12  ;;  %v6091_v24 = vor.u32 %v6090_v23, %v6087_v21  ;;  %v10894_v29 = vadd.f32 %v10893_v27, %v10892_v36  ;;  %v10895_v54 = vpop.f32.mrb[126].mxu0 }
 0x3b6   : > { %6582 = vmatmul.mubr.bf16.gmra.mrb[144].mxu1 %v5620_v49  ;;  %v6099_v6 = vor.u32 %v6098_v41, %v6095_v45  ;;  %v5850_v1 = vld [vmem:[#allocation2 + $0x50] sm:$0xf0]  ;;  %v5851_v35 = vld [vmem:[#allocation2 + $0x58] sm:$0xf]  ;;  %v10896_v46 = vpop.f32.mrb[127].mxu0 }
 0x3b7   : > { %v5397_v60 = vrot.slane %v5365_v14, 4  ;;  %v5919_v5 = vrot.slane %v5850_v1, 4  ;;  %v5920_v11 = vrot.slane %v5851_v35, 4  ;;  %v5514_v34 = vld [vmem:[#allocation2 + $0x50] sm:$0xf8]  ;;  %v5032_v9 = vadd.f32 %v10894_v29, %v13020_v59  ;;  %11581 = vmatpush3.bf16.msra.mxu1 %v11847_v42 }
 0x3b8   : > { %v10897_v15 = vadd.f32 %v10896_v46, %v10895_v54  ;;  %v6100_v37 = vsel %vm1158_vm0, %v6091_v24, %v6099_v6  ;;  %v5515_v26 = vld [vmem:[#allocation2 + $0x58] sm:$0xf]  ;;  %v5622_v4 = vshrl.u32 %v5514_v34, 16  ;;  %v5994_v28 = vld [vmem:[#allocation2 + $0x50] sm:$0xf0]  ;;  %v5625_v12 = vshll.u32 %v5514_v34, 16 }
 0x3b9   : > { %5435 = vst [vmem:[#allocation2 + $0x68] ss:$-4 sps:$4 sm:$0xff] %v5397_v60   ;;  %11546 = vmatprep.mubr.bf16.mxu0 %v6100_v37  ;;  %v5921_v56 = vsel %vm1045_vm8, %v5919_v5, %v5920_v11  ;;  %v5630_v21 = vshrl.u32 %v5515_v26, 16  ;;  %v5633_v23 = vshll.u32 %v5515_v26, 16  ;;  %v5193_v19 = vadd.f32 %v13058_v44, %v5032_v9  ;;  %v5995_v51 = vld [vmem:[#allocation2 + $0x58] sm:$0x1f] }
 0x3ba   : > { %v5035_v33 = vadd.f32 %v10897_v15, %v13020_v59  ;;  %6589 = vmatprep.mubr.bf16.mxu1 %v5921_v56  ;;  %v5624_v47 = vrot.slane %v5622_v4, 3  ;;  %v6102_v45 = vshrl.u32 %v5994_v28, 16  ;;  %v5627_v14 = vrot.slane %v5625_v12, 4 }
 0x3bb   : > { %v5632_v36 = vrot.slane %v5630_v21, 3  ;;  %v5635_v49 = vrot.slane %v5633_v23, 4  ;;  %v6105_v24 = vshll.u32 %v5994_v28, 16  ;;  %vm5277_vm5 = vcmp.ge.f32.partialorder %v5193_v19, 0.0  ;;  %v10898_v60 = vpop.f32.mrb[128].mxu0 }
 0x3bc   : > { %v5309_v41 = vmul.f32 0.1, %v5193_v19  ;;  %v5196_v27 = vadd.f32 %v13061_v50, %v5035_v33  ;;  %v6104_v29 = vrot.slane %v6102_v45, 4  ;;  %v10899_v54 = vpop.f32.mrb[129].mxu0  ;;  %v5628_v6 = vor.u32 %v5627_v14, %v5624_v47 }
 0x3bd   : > { %v5636_v44 = vor.u32 %v5635_v49, %v5632_v36  ;;  %v6107_v1 = vrot.slane %v6105_v24, 5  ;;  %v6110_v35 = vshrl.u32 %v5995_v51, 16  ;;  %v10900_v11 = vadd.f32 %v10899_v54, %v10898_v60  ;;  %v10901_v34 = vpop.f32.mrb[130].mxu0 }
 0x3be   : > { %v5341_v46 = vsel %vm5277_vm5, %v5193_v19, %v5309_v41  ;;  %vm5278_vm12 = vcmp.ge.f32.partialorder %v5196_v27, 0.0  ;;  %v5310_v5 = vmul.f32 0.1, %v5196_v27  ;;  %v10902_v9 = vpop.f32.mrb[131].mxu0  ;;  %v6113_v26 = vshll.u32 %v5995_v51, 16 }
 0x3bf   : > { %v5637_v15 = vsel %vm676_vm15, %v5628_v6, %v5636_v44  ;;  %v6108_v42 = vor.u32 %v6107_v1, %v6104_v29  ;;  %v6112_v37 = vrot.slane %v6110_v35, 4  ;;  %v10903_v28 = vadd.f32 %v10902_v9, %v10901_v34 }
 0x3c0   : > { %v5852_v4 = vld [vmem:[#allocation2 + $0x60] sm:$0xf0]  ;;  %v5342_v50 = vsel %vm5278_vm12, %v5196_v27, %v5310_v5  ;;  %v13074_v56 = vpop.f32.mrb[112].mxu1  ;;  %v5040_v12 = vadd.f32 %v10900_v11, %v13020_v59  ;;  %6590 = vmatmul.mubr.bf16.gmra.mrb[148].mxu1 %v5637_v15  ;;  %v5853_v21 = vld [vmem:[#allocation2 + $0x68] sm:$0xf]  ;;  %v6115_v45 = vrot.slane %v6113_v26, 5 }
 0x3c1   : > { %v5922_v23 = vrot.slane %v5852_v4, 4  ;;  %v5516_v19 = vld [vmem:[#allocation2 + $0x60] sm:$0xf8]  ;;  %v5366_v33 = vpack.c.bf16 %v5342_v50, %v5341_v46  ;;  %v5200_v47 = vpop.f32.mrb[113].mxu1  ;;  %v5923_v14 = vrot.slane %v5853_v21, 4  ;;  %v5043_v51 = vadd.f32 %v10903_v28, %v13020_v59 }
 0x3c2   : > { %v5517_v36 = vld [vmem:[#allocation2 + $0x68] sm:$0xf]  ;;  %v5639_v49 = vshrl.u32 %v5516_v19, 16  ;;  %v5201_v24 = vadd.f32 %v5200_v47, %v5040_v12  ;;  %v13077_v41 = vpop.f32.mrb[114].mxu1  ;;  %v5642_v27 = vshll.u32 %v5516_v19, 16  ;;  %v6116_v44 = vor.u32 %v6115_v45, %v6112_v37 }
 0x3c3   : > { %v5647_v60 = vshrl.u32 %v5517_v36, 16  ;;  %v5996_v29 = vld [vmem:[#allocation2 + $0x60] sm:$0xf0]  ;;  %v5398_v54 = vrot.slane %v5366_v33, 4  ;;  %v5203_v6 = vpop.f32.mrb[115].mxu1  ;;  %v5924_v1 = vsel %vm1045_vm8, %v5922_v23, %v5923_v14  ;;  %v5650_v26 = vshll.u32 %v5517_v36, 16 }
 0x3c4   : > { %v5641_v35 = vrot.slane %v5639_v49, 3  ;;  %vm5279_vm13 = vcmp.ge.f32.partialorder %v5201_v24, 0.0  ;;  %v5311_v46 = vmul.f32 0.1, %v5201_v24  ;;  %v5204_v5 = vadd.f32 %v5203_v6, %v5043_v51  ;;  %6597 = vmatprep.mubr.bf16.mxu1 %v5924_v1  ;;  %v5997_v34 = vld [vmem:[#allocation2 + $0x68] sm:$0x1f] }
 0x3c5   : > { %v5644_v11 = vrot.slane %v5642_v27, 4  ;;  %5437 = vst [vmem:[#allocation2 + $0x78] ss:$-4 sps:$4 sm:$0xff] %v5398_v54   ;;  %v6117_v9 = vsel %vm1158_vm0, %v6108_v42, %v6116_v44  ;;  %v5649_v15 = vrot.slane %v5647_v60, 3  ;;  %v6119_v4 = vshrl.u32 %v5996_v29, 16 }
 0x3c6   : > { %vm5280_vm14 = vcmp.ge.f32.partialorder %v5204_v5, 0.0  ;;  %v5312_v50 = vmul.f32 0.1, %v5204_v5  ;;  %11547 = vmatmul.mubr.bf16.gmra.mrb[168].mxu0 %v6117_v9  ;;  %v5652_v12 = vrot.slane %v5650_v26, 4  ;;  %v6122_v21 = vshll.u32 %v5996_v29, 16 }
 0x3c7   : > { %v10904_v28 = vpop.f32.mrb[132].mxu0  ;;  %v5645_v37 = vor.u32 %v5644_v11, %v5641_v35  ;;  %v6127_v23 = vshrl.u32 %v5997_v34, 16  ;;  %v5343_v19 = vsel %vm5279_vm13, %v5201_v24, %v5311_v46  ;;  %v6121_v45 = vrot.slane %v6119_v4, 4 }
 0x3c8   : > { %v5344_v33 = vsel %vm5280_vm14, %v5204_v5, %v5312_v50  ;;  %v10905_v47 = vpop.f32.mrb[133].mxu0  ;;  %v6130_v14 = vshll.u32 %v5997_v34, 16  ;;  %v5653_v27 = vor.u32 %v5652_v12, %v5649_v15  ;;  %v6124_v36 = vrot.slane %v6122_v21, 5 }
 0x3c9   : > { %v5367_v49 = vpack.c.bf16 %v5344_v33, %v5343_v19  ;;  %v10906_v51 = vadd.f32 %v10905_v47, %v10904_v28  ;;  %v10907_v42 = vpop.f32.mrb[134].mxu0  ;;  %v6129_v54 = vrot.slane %v6127_v23, 4 }
 0x3ca   : > { %v10908_v60 = vpop.f32.mrb[135].mxu0  ;;  %v6132_v6 = vrot.slane %v6130_v14, 5  ;;  %v5654_v29 = vsel %vm676_vm15, %v5645_v37, %v5653_v27  ;;  %v6125_v24 = vor.u32 %v6124_v36, %v6121_v45 }
 0x3cb   : > { %v5399_v44 = vrot.slane %v5367_v49, 4  ;;  %v5048_v1 = vadd.f32 %v10906_v51, %v13020_v59  ;;  %v10909_v35 = vadd.f32 %v10908_v60, %v10907_v42  ;;  %6598 = vmatmul.mubr.bf16.gmra.mrb[152].mxu1 %v5654_v29 }
 0x3cc   : > { %v6133_v46 = vor.u32 %v6132_v6, %v6129_v54  ;;  %v5854_v5 = vld [vmem:[#allocation2 + $0x70] sm:$0xf0]  ;;  %v5855_v11 = vld [vmem:[#allocation2 + $0x78] sm:$0xf] }
 0x3cd   : > { %v5518_v34 = vld [vmem:[#allocation2 + $0x70] sm:$0xf8]  ;;  %5439 = vst [vmem:[#allocation2 + $0x88] ss:$-4 sps:$4 sm:$0xff] %v5399_v44   ;;  %v5209_v9 = vadd.f32 %v13074_v56, %v5048_v1  ;;  %v5051_v15 = vadd.f32 %v10909_v35, %v13020_v59  ;;  %v5925_v26 = vrot.slane %v5854_v5, 4  ;;  %v5926_v4 = vrot.slane %v5855_v11, 4 }
 0x3ce   : > { %v5519_v50 = vld [vmem:[#allocation2 + $0x78] sm:$0xf]  ;;  %v6134_v28 = vsel %vm1158_vm0, %v6125_v24, %v6133_v46  ;;  %v5656_v12 = vshrl.u32 %v5518_v34, 16  ;;  %v5659_v21 = vshll.u32 %v5518_v34, 16  ;;  %v5998_v37 = vld [vmem:[#allocation2 + $0x70] sm:$0xf0] }
 0x3cf   : > { %v5664_v23 = vshrl.u32 %v5519_v50, 16  ;;  %vm5281_vm1 = vcmp.ge.f32.partialorder %v5209_v9, 0.0  ;;  %v5313_v19 = vmul.f32 0.1, %v5209_v9  ;;  %v5212_v33 = vadd.f32 %v13077_v41, %v5051_v15  ;;  %v10910_v47 = vpop.f32.mrb[136].mxu0  ;;  %11550 = vmatprep.mubr.bf16.mxu0 %v6134_v28 }
 0x3d0   : > { %v5927_v45 = vsel %vm1045_vm8, %v5925_v26, %v5926_v4  ;;  %v5999_v56 = vld [vmem:[#allocation2 + $0x78] sm:$0x1f]  ;;  %v10911_v14 = vpop.f32.mrb[137].mxu0  ;;  %v5658_v49 = vrot.slane %v5656_v12, 3  ;;  %v5661_v51 = vrot.slane %v5659_v21, 4  ;;  %v5667_v27 = vshll.u32 %v5519_v50, 16 }
 0x3d1   : > { %6605 = vmatprep.mubr.bf16.mxu1 %v5927_v45  ;;  %v5666_v42 = vrot.slane %v5664_v23, 3  ;;  %v5345_v36 = vsel %vm5281_vm1, %v5209_v9, %v5313_v19  ;;  %vm5282_vm2 = vcmp.ge.f32.partialorder %v5212_v33, 0.0  ;;  %v5314_v60 = vmul.f32 0.1, %v5212_v33  ;;  %v10913_v6 = vpop.f32.mrb[138].mxu0 }
 0x3d2   : > { %v10912_v54 = vadd.f32 %v10911_v14, %v10910_v47  ;;  %v10914_v44 = vpop.f32.mrb[139].mxu0  ;;  %v5662_v1 = vor.u32 %v5661_v51, %v5658_v49  ;;  %v5669_v35 = vrot.slane %v5667_v27, 4  ;;  %v6136_v41 = vshrl.u32 %v5998_v37, 16  ;;  %v13096_v12 = vld [vmem:[%s13729_s3 + $0x1] ss:$0 sm:$0xff] }
 0x3d3   : > { %v6139_v29 = vshll.u32 %v5998_v37, 16  ;;  %v5346_v24 = vsel %vm5282_vm2, %v5212_v33, %v5314_v60  ;;  %v10915_v46 = vadd.f32 %v10914_v44, %v10913_v6  ;;  %v6144_v11 = vshrl.u32 %v5999_v56, 16 }
 0x3d4   : > { %v5056_v5 = vadd.f32 %v10912_v54, %v13020_v59  ;;  %v5368_v34 = vpack.c.bf16 %v5346_v24, %v5345_v36  ;;  %v13091_v15 = vpop.f32.mrb[116].mxu1  ;;  %v5670_v26 = vor.u32 %v5669_v35, %v5666_v42  ;;  %v6138_v4 = vrot.slane %v6136_v41, 4  ;;  %v5856_v50 = vld [vmem:[#allocation2 + $0x80] sm:$0xf0]  ;;  %v5857_v19 = vld [vmem:[#allocation2 + $0x88] sm:$0xf] }
 0x3d5   : > { %v6141_v9 = vrot.slane %v6139_v29, 5  ;;  %v5216_v28 = vpop.f32.mrb[117].mxu1  ;;  %v5059_v21 = vadd.f32 %v13096_v12, %v10915_v46  ;;  %v6146_v23 = vrot.slane %v6144_v11, 4  ;;  %v6147_v37 = vshll.u32 %v5999_v56, 16  ;;  %v5520_v51 = vld [vmem:[#allocation2 + $0x80] sm:$0xf8] }
 0x3d6   : > { %v5928_v59 = vrot.slane %v5856_v50, 4  ;;  %v5400_v33 = vrot.slane %v5368_v34, 4  ;;  %v5217_v47 = vadd.f32 %v5216_v28, %v5056_v5  ;;  %v13099_v45 = vpop.f32.mrb[118].mxu1  ;;  %v5671_v14 = vsel %vm676_vm15, %v5662_v1, %v5670_v26  ;;  %v5521_v42 = vld [vmem:[#allocation2 + $0x88] sm:$0xf] }
 0x3d7   : > { %v6142_v49 = vor.u32 %v6141_v9, %v6138_v4  ;;  %v5219_v27 = vpop.f32.mrb[119].mxu1  ;;  %6606 = vmatmul.mubr.bf16.gmra.mrb[156].mxu1 %v5671_v14  ;;  %v6149_v36 = vrot.slane %v6147_v37, 5  ;;  %v5929_v60 = vrot.slane %v5857_v19, 4  ;;  %v5673_v54 = vshrl.u32 %v5520_v51, 16  ;;  %v6000_v41 = vld [vmem:[#allocation2 + $0x80] sm:$0xf0] }
 0x3d8   : > { %v5676_v6 = vshll.u32 %v5520_v51, 16  ;;  %5441 = vst [vmem:[#allocation2 + $0x98] ss:$-4 sps:$4 sm:$0xff] %v5400_v33   ;;  %vm5283_vm4 = vcmp.ge.f32.partialorder %v5217_v47, 0.0  ;;  %v5315_v56 = vmul.f32 0.1, %v5217_v47  ;;  %v5220_v44 = vadd.f32 %v5219_v27, %v5059_v21 }
 0x3d9   : > { %v5681_v35 = vshrl.u32 %v5521_v42, 16  ;;  %v6150_v29 = vor.u32 %v6149_v36, %v6146_v23  ;;  %v5930_v24 = vsel %vm1045_vm8, %v5928_v59, %v5929_v60  ;;  %v5675_v46 = vrot.slane %v5673_v54, 3  ;;  %v6001_v5 = vld [vmem:[#allocation2 + $0x88] sm:$0x1f] }
 0x3da   : > { %v5678_v1 = vrot.slane %v5676_v6, 4  ;;  %v5347_v11 = vsel %vm5283_vm4, %v5217_v47, %v5315_v56  ;;  %vm5284_vm6 = vcmp.ge.f32.partialorder %v5220_v44, 0.0  ;;  %v5316_v34 = vmul.f32 0.1, %v5220_v44  ;;  %6613 = vmatprep.mubr.bf16.mxu1 %v5930_v24 }
 0x3db   : > { %v5683_v26 = vrot.slane %v5681_v35, 3  ;;  %v10916_v4 = vpop.f32.mrb[140].mxu0  ;;  %v6151_v9 = vsel %vm1158_vm0, %v6142_v49, %v6150_v29  ;;  %v5684_v28 = vshll.u32 %v5521_v42, 16  ;;  %v6153_v37 = vshrl.u32 %v6000_v41, 16 }
 0x3dc   : > { %v5679_v50 = vor.u32 %v5678_v1, %v5675_v46  ;;  %v5348_v21 = vsel %vm5284_vm6, %v5220_v44, %v5316_v34  ;;  %11551 = vmatmul.mubr.bf16.gmra.mrb[172].mxu0 %v6151_v9  ;;  %v10917_v19 = vpop.f32.mrb[141].mxu0  ;;  %v6156_v23 = vshll.u32 %v6000_v41, 16  ;;  %v6161_v33 = vshrl.u32 %v6001_v5, 16 }
 0x3dd   : > { %v6164_v59 = vshll.u32 %v6001_v5, 16  ;;  %v5369_v14 = vpack.c.bf16 %v5348_v21, %v5347_v11  ;;  %v10918_v51 = vadd.f32 %v10917_v19, %v10916_v4  ;;  %v10919_v27 = vpop.f32.mrb[142].mxu0  ;;  %v5686_v47 = vrot.slane %v5684_v28, 4  ;;  %v11850_v19 = vld [vmem:[#allocation8 + $0x1e0] sm:$0xff]  }
 0x3de   : > { %v6155_v36 = vrot.slane %v6153_v37, 4  ;;  %v10920_v60 = vpop.f32.mrb[143].mxu0  ;;  %v6158_v54 = vrot.slane %v6156_v23, 5  ;;  %v6163_v6 = vrot.slane %v6161_v33, 4  ;;  %11114 = vmatprep.subr.bf16.mxu0 %v11850_v19 }
 0x3df   : > { %v6166_v56 = vrot.slane %v6164_v59, 5  ;;  %v5401_v35 = vrot.slane %v5369_v14, 4  ;;  %v5064_v49 = vadd.f32 %v13096_v12, %v10918_v51  ;;  %v10921_v42 = vadd.f32 %v10920_v60, %v10919_v27  ;;  %v5858_v44 = vld [vmem:[#allocation2 + $0x90] sm:$0xf0]  ;;  %v5859_v24 = vld [vmem:[#allocation2 + $0x98] sm:$0xf] }
 0x3e0   : > { %v5687_v29 = vor.u32 %v5686_v47, %v5683_v26  ;;  %v6159_v46 = vor.u32 %v6158_v54, %v6155_v36  ;;  %v5931_v1 = vrot.slane %v5858_v44, 4  ;;  %v5932_v5 = vrot.slane %v5859_v24, 4  ;;  %v5522_v11 = vld [vmem:[#allocation2 + $0x90] sm:$0xf8]  ;;  %v5523_v34 = vld [vmem:[#allocation2 + $0x98] sm:$0xf] }
 0x3e1   : > { %v6167_v41 = vor.u32 %v6166_v56, %v6163_v6  ;;  %5443 = vst [vmem:[#allocation2 + $0xa8] ss:$-4 sps:$4 sm:$0xff] %v5401_v35   ;;  %v5225_v4 = vadd.f32 %v13091_v15, %v5064_v49  ;;  %v5067_v9 = vadd.f32 %v13096_v12, %v10921_v42  ;;  %v5690_v37 = vshrl.u32 %v5522_v11, 16  ;;  %v6002_v21 = vld [vmem:[#allocation2 + $0x90] sm:$0xf0]  ;;  %v11851_v51 = vld [vmem:[#allocation8 + $0x1a0] sm:$0xff]  }
 0x3e2   : > { %v5688_v28 = vsel %vm676_vm15, %v5679_v50, %v5687_v29  ;;  %v5933_v23 = vsel %vm1045_vm8, %v5931_v1, %v5932_v5  ;;  %v5693_v33 = vshll.u32 %v5522_v11, 16  ;;  %v5698_v59 = vshrl.u32 %v5523_v34, 16  ;;  %v6003_v14 = vld [vmem:[#allocation2 + $0x98] sm:$0x1f]  ;;  %11115 = vmatpush3.bf16.msra.mxu0 %v11851_v51 }
 0x3e3   : > { %6614 = vmatmul.mubr.bf16.gmra.mrb[160].mxu1 %v5688_v28  ;;  %v6168_v26 = vsel %vm1158_vm0, %v6159_v46, %v6167_v41  ;;  %vm5285_vm7 = vcmp.ge.f32.partialorder %v5225_v4, 0.0  ;;  %v5317_v27 = vmul.f32 0.1, %v5225_v4  ;;  %v5228_v15 = vadd.f32 %v13099_v45, %v5067_v9  ;;  %v10922_v47 = vpop.f32.mrb[144].mxu0 }
 0x3e4   : > { %11554 = vmatprep.mubr.bf16.mxu0 %v6168_v26  ;;  %6621 = vmatprep.mubr.bf16.mxu1 %v5933_v23  ;;  %v5692_v50 = vrot.slane %v5690_v37, 3  ;;  %v10923_v36 = vpop.f32.mrb[145].mxu0  ;;  %v5695_v60 = vrot.slane %v5693_v33, 4  ;;  %v5700_v54 = vrot.slane %v5698_v59, 3  ;;  %v5701_v6 = vshll.u32 %v5523_v34, 16 }
 0x3e5   : > { %v6170_v56 = vshrl.u32 %v6002_v21, 16  ;;  %v5349_v35 = vsel %vm5285_vm7, %v5225_v4, %v5317_v27  ;;  %vm5286_vm9 = vcmp.ge.f32.partialorder %v5228_v15, 0.0  ;;  %v5318_v49 = vmul.f32 0.1, %v5228_v15  ;;  %v10925_v29 = vpop.f32.mrb[146].mxu0 }
 0x3e6   : > { %v10924_v42 = vadd.f32 %v10923_v36, %v10922_v47  ;;  %v10926_v44 = vpop.f32.mrb[147].mxu0  ;;  %v5696_v24 = vor.u32 %v5695_v60, %v5692_v50  ;;  %v5703_v46 = vrot.slane %v5701_v6, 4  ;;  %v6173_v41 = vshll.u32 %v6002_v21, 16 }
 0x3e7   : > { %v6172_v45 = vrot.slane %v6170_v56, 4  ;;  %v5350_v1 = vsel %vm5286_vm9, %v5228_v15, %v5318_v49  ;;  %v10927_v5 = vadd.f32 %v10926_v44, %v10925_v29  ;;  %v11516_v11 = vpop.f32.mrb[120].mxu1  ;;  %v6178_v28 = vshrl.u32 %v6003_v14, 16 }
 0x3e8   : > { %v5072_v9 = vadd.f32 %v13096_v12, %v10924_v42  ;;  %v5370_v34 = vpack.c.bf16 %v5350_v1, %v5349_v35  ;;  %v5232_v37 = vpop.f32.mrb[121].mxu1  ;;  %v5704_v19 = vor.u32 %v5703_v46, %v5700_v54  ;;  %v6175_v4 = vrot.slane %v6173_v41, 5  ;;  %v5860_v23 = vld [vmem:[#allocation2 + $0xa0] sm:$0xf0]  ;;  %v5861_v47 = vld [vmem:[#allocation2 + $0xa8] sm:$0xf] }
 0x3e9   : > { %v6181_v26 = vshll.u32 %v6003_v14, 16  ;;  %v11517_v59 = vpop.f32.mrb[122].mxu1  ;;  %v5075_v51 = vadd.f32 %v13096_v12, %v10927_v5  ;;  %v6180_v27 = vrot.slane %v6178_v28, 4  ;;  %v5934_v50 = vrot.slane %v5860_v23, 4  ;;  %v5524_v56 = vld [vmem:[#allocation2 + $0xa0] sm:$0xf8] }
 0x3ea   : > { %v5233_v33 = vadd.f32 %v5232_v37, %v5072_v9  ;;  %v5402_v21 = vrot.slane %v5370_v34, 4  ;;  %v5235_v15 = vpop.f32.mrb[123].mxu1  ;;  %v5705_v36 = vsel %vm676_vm15, %v5696_v24, %v5704_v19  ;;  %v6176_v60 = vor.u32 %v6175_v4, %v6172_v45  ;;  %v5525_v44 = vld [vmem:[#allocation2 + $0xa8] sm:$0xf]  ;;  %v6004_v45 = vld [vmem:[#allocation2 + $0xa0] sm:$0xf0] }
 0x3eb   : > { %v6183_v6 = vrot.slane %v6181_v26, 5  ;;  %v5236_v54 = vadd.f32 %v5235_v15, %v5075_v51  ;;  %v10928_v49 = vpop.f32.mrb[148].mxu0  ;;  %6622 = vmatmul.mubr.bf16.gmra.mrb[164].mxu1 %v5705_v36  ;;  %v5935_v14 = vrot.slane %v5861_v47, 4  ;;  %v5707_v46 = vshrl.u32 %v5524_v56, 16 }
 0x3ec   : > { %vm5287_vm10 = vcmp.ge.f32.partialorder %v5233_v33, 0.0  ;;  %v5319_v35 = vmul.f32 0.1, %v5233_v33  ;;  %5445 = vst [vmem:[#allocation2 + $0xb8] ss:$-4 sps:$4 sm:$0xff] %v5402_v21   ;;  %v10929_v29 = vpop.f32.mrb[149].mxu0 }
 0x3ed   : > { %v6184_v42 = vor.u32 %v6183_v6, %v6180_v27  ;;  %v5710_v41 = vshll.u32 %v5524_v56, 16  ;;  %vm5288_vm11 = vcmp.ge.f32.partialorder %v5236_v54, 0.0  ;;  %v5320_v5 = vmul.f32 0.1, %v5236_v54  ;;  %v10931_v24 = vpop.f32.mrb[150].mxu0 }
 0x3ee   : > { %v5351_v1 = vsel %vm5287_vm10, %v5233_v33, %v5319_v35  ;;  %v10930_v9 = vadd.f32 %v10929_v29, %v10928_v49  ;;  %v10932_v34 = vpop.f32.mrb[151].mxu0  ;;  %v5936_v37 = vsel %vm1045_vm8, %v5934_v50, %v5935_v14  ;;  %v5709_v19 = vrot.slane %v5707_v46, 3  ;;  %v6005_v33 = vld [vmem:[#allocation2 + $0xa8] sm:$0x1f] }
 0x3ef   : > { %v6185_v28 = vsel %vm1158_vm0, %v6176_v60, %v6184_v42  ;;  %v5712_v4 = vrot.slane %v5710_v41, 4  ;;  %v5352_v26 = vsel %vm5288_vm11, %v5236_v54, %v5320_v5  ;;  %v10933_v51 = vadd.f32 %v10932_v34, %v10931_v24  ;;  %6629 = vmatprep.mubr.bf16.mxu1 %v5936_v37  ;;  %v11852_v5 = vld [vmem:[#allocation8 + $0x230] sm:$0xff]  }
 0x3f0   : > { %11555 = vmatmul.mubr.bf16.gmra.mrb[176].mxu0 %v6185_v28  ;;  %v5080_v23 = vadd.f32 %v13096_v12, %v10930_v9  ;;  %v5715_v27 = vshrl.u32 %v5525_v44, 16  ;;  %v5371_v47 = vpack.c.bf16 %v5352_v26, %v5351_v1  ;;  %v5718_v15 = vshll.u32 %v5525_v44, 16  ;;  %11582 = vmatprep.subr.bf16.mxu1 %v11852_v5 }
 0x3f1   : > { %v5713_v21 = vor.u32 %v5712_v4, %v5709_v19  ;;  %v6187_v36 = vshrl.u32 %v6004_v45, 16  ;;  %v5083_v60 = vadd.f32 %v13096_v12, %v10933_v51  ;;  %v6190_v35 = vshll.u32 %v6004_v45, 16  ;;  %11583 = vmatpush3.bf16.msra.mxu1 %v11852_v5 }
 0x3f2   : > { %v5241_v6 = vadd.f32 %v11516_v11, %v5080_v23  ;;  %v5717_v56 = vrot.slane %v5715_v27, 3  ;;  %v5403_v50 = vrot.slane %v5371_v47, 4  ;;  %v5720_v49 = vrot.slane %v5718_v15, 4 }
 0x3f3   : > { %v6189_v14 = vrot.slane %v6187_v36, 4  ;;  %v6195_v54 = vshrl.u32 %v6005_v33, 16  ;;  %v5244_v29 = vadd.f32 %v11517_v59, %v5083_v60  ;;  %v10934_v46 = vpop.f32.mrb[152].mxu0  ;;  %v6192_v41 = vrot.slane %v6190_v35, 5  ;;  %v13118_v11 = vpop.f32.mrb[124].mxu1 }
 0x3f4   : > { %vm5289_vm3 = vcmp.ge.f32.partialorder %v5241_v6, 0.0  ;;  %v5321_v42 = vmul.f32 0.1, %v5241_v6  ;;  %5447 = vst [vmem:[#allocation2 + $0xc8] ss:$-4 sps:$4 sm:$0xff] %v5403_v50   ;;  %v5721_v1 = vor.u32 %v5720_v49, %v5717_v56  ;;  %v6198_v44 = vshll.u32 %v6005_v33, 16 }
 0x3f5   : > { %v6197_v9 = vrot.slane %v6195_v54, 4  ;;  %v10935_v24 = vpop.f32.mrb[153].mxu0  ;;  %v5862_v28 = vld [vmem:[#allocation2 + $0xb0] sm:$0xf0]  ;;  %vm5290_vm5 = vcmp.ge.f32.partialorder %v5244_v29, 0.0  ;;  %v6193_v37 = vor.u32 %v6192_v41, %v6189_v14  ;;  %v5248_v47 = vpop.f32.mrb[125].mxu1 }
 0x3f6   : > { %v5353_v34 = vsel %vm5289_vm3, %v5241_v6, %v5321_v42  ;;  %v5322_v45 = vmul.f32 0.1, %v5244_v29  ;;  %v10937_v19 = vpop.f32.mrb[154].mxu0  ;;  %v5863_v4 = vld [vmem:[#allocation2 + $0xb8] sm:$0xf]  ;;  %v5722_v59 = vsel %vm676_vm15, %v5713_v21, %v5721_v1  ;;  %v6200_v26 = vrot.slane %v6198_v44, 5 }
 0x3f7   : > { %v10936_v23 = vadd.f32 %v10935_v24, %v10934_v46  ;;  %v10938_v51 = vpop.f32.mrb[155].mxu0  ;;  %v5937_v27 = vrot.slane %v5862_v28, 4  ;;  %v5526_v15 = vld [vmem:[#allocation2 + $0xb0] sm:$0xf8]  ;;  %6630 = vmatmul.mubr.bf16.gmra.mrb[168].mxu1 %v5722_v59  ;;  %v5938_v60 = vrot.slane %v5863_v4, 4  ;;  %v13121_v6 = vpop.f32.mrb[126].mxu1 }
 0x3f8   : > { %v5354_v33 = vsel %vm5290_vm5, %v5244_v29, %v5322_v45  ;;  %v10939_v36 = vadd.f32 %v10938_v51, %v10937_v19  ;;  %v5527_v56 = vld [vmem:[#allocation2 + $0xb8] sm:$0xf]  ;;  %v5724_v35 = vshrl.u32 %v5526_v15, 16  ;;  %v6201_v49 = vor.u32 %v6200_v26, %v6197_v9  ;;  %v5251_v21 = vpop.f32.mrb[127].mxu1  ;;  %v6006_v42 = vld [vmem:[#allocation2 + $0xb0] sm:$0xf0] }
 0x3f9   : > { %v5372_v50 = vpack.c.bf16 %v5354_v33, %v5353_v34  ;;  %v5088_v14 = vadd.f32 %v13096_v12, %v10936_v23  ;;  %v5727_v54 = vshll.u32 %v5526_v15, 16  ;;  %v5939_v46 = vsel %vm1045_vm8, %v5937_v27, %v5938_v60  ;;  %v11853_v45 = vld [vmem:[#allocation8 + $0x1e8] sm:$0xff]   ;;  %v11855_v9 = vld [vmem:[#allocation8 + $0x1f0] sm:$0xff]   ;;  %v6007_v23 = vld [vmem:[#allocation2 + $0xb8] sm:$0x1f] }
 0x3fa   : > { %v5091_v41 = vadd.f32 %v13096_v12, %v10939_v36  ;;  %v5726_v5 = vrot.slane %v5724_v35, 3  ;;  %v5732_v29 = vshrl.u32 %v5527_v56, 16  ;;  %v6202_v44 = vsel %vm1158_vm0, %v6193_v37, %v6201_v49  ;;  %6637 = vmatprep.mubr.bf16.mxu1 %v5939_v46  ;;  %v11854_v34 = vld [vmem:[#allocation8 + $0x1a8] sm:$0xff]   ;;  %11116 = vmatprep.subr.bf16.mxu0 %v11853_v45  ;;  %v11856_v37 = vld [vmem:[#allocation8 + $0x1b0] sm:$0xff]  }
 0x3fb   : > { %v5404_v1 = vrot.slane %v5372_v50, 4  ;;  %v5249_v24 = vadd.f32 %v5248_v47, %v5088_v14  ;;  %v5729_v28 = vrot.slane %v5727_v54, 4  ;;  %11558 = vmatprep.mubr.bf16.mxu0 %v6202_v44  ;;  %v10940_v4 = vpop.f32.mrb[156].mxu0  ;;  %v5735_v26 = vshll.u32 %v5527_v56, 16  ;;  %11117 = vmatpush3.bf16.msra.mxu0 %v11854_v34  ;;  %v5864_v46 = vld [vmem:[#allocation2 + $0xc0] sm:$0xf0] }
 0x3fc   : > { %v5252_v19 = vadd.f32 %v5251_v21, %v5091_v41  ;;  %v5734_v59 = vrot.slane %v5732_v29, 3  ;;  %v6204_v51 = vshrl.u32 %v6006_v42, 16  ;;  %v6207_v33 = vshll.u32 %v6006_v42, 16  ;;  %v10941_v36 = vpop.f32.mrb[157].mxu0  ;;  %11118 = vmatprep.subr.bf16.mxu0 %v11855_v9  ;;  %v5528_v44 = vld [vmem:[#allocation2 + $0xc0] sm:$0xf8] }
 0x3fd   : > { %5449 = vst [vmem:[#allocation2 + $0xd8] ss:$-4 sps:$4 sm:$0xff] %v5404_v1   ;;  %vm5291_vm12 = vcmp.ge.f32.partialorder %v5249_v24, 0.0  ;;  %v5323_v27 = vmul.f32 0.1, %v5249_v24  ;;  %v5730_v15 = vor.u32 %v5729_v28, %v5726_v5  ;;  %v5737_v60 = vrot.slane %v5735_v26, 4 }
 0x3fe   : > { %vm5292_vm13 = vcmp.ge.f32.partialorder %v5252_v19, 0.0  ;;  %v5324_v47 = vmul.f32 0.1, %v5252_v19  ;;  %v6206_v35 = vrot.slane %v6204_v51, 4  ;;  %v10943_v50 = vpop.f32.mrb[158].mxu0  ;;  %v6209_v14 = vrot.slane %v6207_v33, 5 }
 0x3ff   : > { %v5355_v49 = vsel %vm5291_vm12, %v5249_v24, %v5323_v27  ;;  %v6212_v21 = vshrl.u32 %v6007_v23, 16  ;;  %v6215_v56 = vshll.u32 %v6007_v23, 16  ;;  %v10944_v54 = vpop.f32.mrb[159].mxu0  ;;  %v5738_v29 = vor.u32 %v5737_v60, %v5734_v59  ;;  %v5865_v1 = vld [vmem:[#allocation2 + $0xc8] sm:$0xf]  ;;  %11119 = vmatpush3.bf16.msra.mxu0 %v11856_v37 }
 0x400   : > { %v5356_v41 = vsel %vm5292_vm13, %v5252_v19, %v5324_v47  ;;  %v10942_v5 = vadd.f32 %v10941_v36, %v10940_v4  ;;  %v10945_v42 = vadd.f32 %v10944_v54, %v10943_v50  ;;  %v6210_v45 = vor.u32 %v6209_v14, %v6206_v35  ;;  %v5529_v51 = vld [vmem:[#allocation2 + $0xc8] sm:$0xf]  ;;  %v6008_v35 = vld [vmem:[#allocation2 + $0xc0] sm:$0xf0] }
 0x401   : > { %v5373_v28 = vpack.c.bf16 %v5356_v41, %v5355_v49  ;;  %v6214_v0 = vrot.slane %v6212_v21, 4  ;;  %v6217_v26 = vrot.slane %v6215_v56, 5  ;;  %v5739_v34 = vsel %vm676_vm15, %v5730_v15, %v5738_v29  ;;  %v6009_v37 = vld [vmem:[#allocation2 + $0xc8] sm:$0x1f] }
 0x402   : > { %v5096_v24 = vadd.f32 %v13096_v12, %v10942_v5  ;;  %v5099_v23 = vadd.f32 %v13096_v12, %v10945_v42  ;;  %v5940_v27 = vrot.slane %v5864_v46, 4  ;;  %6638 = vmatmul.mubr.bf16.gmra.mrb[172].mxu1 %v5739_v34  ;;  %v5941_v4 = vrot.slane %v5865_v1, 4 }
 0x403   : > { %v5405_v9 = vrot.slane %v5373_v28, 4  ;;  %v6218_v19 = vor.u32 %v6217_v26, %v6214_v0  ;;  %v5741_v59 = vshrl.u32 %v5528_v44, 16  ;;  %v5744_v47 = vshll.u32 %v5528_v44, 16 }
 0x404   : > { %v5257_v33 = vadd.f32 %v13118_v11, %v5096_v24  ;;  %v5260_v36 = vadd.f32 %v13121_v6, %v5099_v23  ;;  %v5749_v60 = vshrl.u32 %v5529_v51, 16  ;;  %v5942_v50 = vsel %vm1045_vm8, %v5940_v27, %v5941_v4  ;;  %v5866_v54 = vld [vmem:[#allocation2 + $0xd0] sm:$0xf0]  ;;  %v5867_v42 = vld [vmem:[#allocation2 + $0xd8] sm:$0xf] }
 0x405   : > { %5451 = vst [vmem:[#allocation2 + $0xe8] ss:$-4 sps:$4 sm:$0xff] %v5405_v9   ;;  %v6219_v15 = vsel %vm1158_vm0, %v6210_v45, %v6218_v19  ;;  %v5743_v12 = vrot.slane %v5741_v59, 3  ;;  %v5752_v49 = vshll.u32 %v5529_v51, 16  ;;  %6645 = vmatprep.mubr.bf16.mxu1 %v5942_v50  ;;  %v5746_v11 = vrot.slane %v5744_v47, 4 }
 0x406   : > { %11559 = vmatmul.mubr.bf16.gmra.mrb[180].mxu0 %v6219_v15  ;;  %vm5293_vm14 = vcmp.ge.f32.partialorder %v5257_v33, 0.0  ;;  %v5325_v0 = vmul.f32 0.1, %v5257_v33  ;;  %vm5294_vm1 = vcmp.ge.f32.partialorder %v5260_v36, 0.0  ;;  %v5326_v14 = vmul.f32 0.1, %v5260_v36 }
 0x407   : > { %v5751_v21 = vrot.slane %v5749_v60, 3  ;;  %v5754_v6 = vrot.slane %v5752_v49, 4  ;;  %v6221_v56 = vshrl.u32 %v6008_v35, 16  ;;  %v6224_v29 = vshll.u32 %v6008_v35, 16  ;;  %v5530_v1 = vld [vmem:[#allocation2 + $0xd0] sm:$0xf8] }
 0x408   : > { %v5357_v46 = vsel %vm5293_vm14, %v5257_v33, %v5325_v0  ;;  %v5358_v41 = vsel %vm5294_vm1, %v5260_v36, %v5326_v14  ;;  %v6229_v5 = vshrl.u32 %v6009_v37, 16  ;;  %v5747_v28 = vor.u32 %v5746_v11, %v5743_v12  ;;  %v5531_v51 = vld [vmem:[#allocation2 + $0xd8] sm:$0xf]  ;;  %v6010_v9 = vld [vmem:[#allocation2 + $0xd0] sm:$0xf0] }
 0x409   : > { %v5374_v44 = vpack.c.bf16 %v5358_v41, %v5357_v46  ;;  %v5755_v45 = vor.u32 %v5754_v6, %v5751_v21  ;;  %v6223_v26 = vrot.slane %v6221_v56, 4  ;;  %v6226_v34 = vrot.slane %v6224_v29, 5  ;;  %v6011_v36 = vld [vmem:[#allocation2 + $0xd8] sm:$0x1f] }
 0x40a   : > { %v6231_v24 = vrot.slane %v6229_v5, 4  ;;  %v6232_v23 = vshll.u32 %v6009_v37, 16  ;;  %v5943_v27 = vrot.slane %v5866_v54, 4  ;;  %v5944_v59 = vrot.slane %v5867_v42, 4  ;;  %v11857_v12 = vld [vmem:[#allocation8 + $0x238] sm:$0xff]  }
 0x40b   : > { %v5406_v19 = vrot.slane %v5374_v44, 4  ;;  %v5756_v4 = vsel %vm676_vm15, %v5747_v28, %v5755_v45  ;;  %v5758_v33 = vshrl.u32 %v5530_v1, 16  ;;  %v6227_v47 = vor.u32 %v6226_v34, %v6223_v26  ;;  %11584 = vmatprep.subr.bf16.mxu1 %v11857_v12 }
 0x40c   : > { %6646 = vmatmul.mubr.bf16.gmra.mrb[176].mxu1 %v5756_v4  ;;  %v6234_v60 = vrot.slane %v6232_v23, 5  ;;  %v5761_v35 = vshll.u32 %v5530_v1, 16  ;;  %v5766_v15 = vshrl.u32 %v5531_v51, 16  ;;  %v5868_v50 = vld [vmem:[#allocation2 + $0xe0] sm:$0xf0]  ;;  %v5945_v49 = vsel %vm1045_vm8, %v5943_v27, %v5944_v59 }
 0x40d   : > { %5453 = vst [vmem:[#allocation2 + $0xf8] ss:$-4 sps:$4 sm:$0xff] %v5406_v19   ;;  %v5760_v0 = vrot.slane %v5758_v33, 3  ;;  %v5769_v37 = vshll.u32 %v5531_v51, 16  ;;  %v6238_v14 = vshrl.u32 %v6010_v9, 16  ;;  %6653 = vmatprep.mubr.bf16.mxu1 %v5945_v49  ;;  %v6241_v54 = vshll.u32 %v6010_v9, 16  ;;  %11585 = vmatpush3.bf16.msra.mxu1 %v11857_v12 }
 0x40e   : > { %v5869_v11 = vld [vmem:[#allocation2 + $0xe8] sm:$0xf]  ;;  %v6235_v21 = vor.u32 %v6234_v60, %v6231_v24  ;;  %v5763_v6 = vrot.slane %v5761_v35, 4  ;;  %v5768_v56 = vrot.slane %v5766_v15, 3  ;;  %v5532_v46 = vld [vmem:[#allocation2 + $0xe0] sm:$0xf8] }
 0x40f   : > { %v5771_v41 = vrot.slane %v5769_v37, 4  ;;  %v6240_v29 = vrot.slane %v6238_v14, 4  ;;  %v6246_v5 = vshrl.u32 %v6011_v36, 16  ;;  %v6249_v42 = vshll.u32 %v6011_v36, 16  ;;  %v5533_v1 = vld [vmem:[#allocation2 + $0xe8] sm:$0xf] }
 0x410   : > { %v6236_v44 = vsel %vm1158_vm0, %v6227_v47, %v6235_v21  ;;  %v5764_v28 = vor.u32 %v5763_v6, %v5760_v0  ;;  %v6243_v45 = vrot.slane %v6241_v54, 5  ;;  %v5946_v26 = vrot.slane %v5868_v50, 4  ;;  %v6012_v27 = vld [vmem:[#allocation2 + $0xe0] sm:$0xf0]  ;;  %v6013_v33 = vld [vmem:[#allocation2 + $0xe8] sm:$0x1f] }
 0x411   : > { %11562 = vmatprep.mubr.bf16.mxu0 %v6236_v44  ;;  %v5772_v51 = vor.u32 %v5771_v41, %v5768_v56  ;;  %v6248_v34 = vrot.slane %v6246_v5, 4  ;;  %v6251_v24 = vrot.slane %v6249_v42, 5  ;;  %v5947_v23 = vrot.slane %v5869_v11, 4  ;;  %v11858_v15 = vld [vmem:[#allocation8 + $0x1f8] sm:$0xff]  }
 0x412   : > { %v6244_v9 = vor.u32 %v6243_v45, %v6240_v29  ;;  %v5775_v19 = vshrl.u32 %v5532_v46, 16  ;;  %v5778_v4 = vshll.u32 %v5532_v46, 16  ;;  %v5783_v59 = vshrl.u32 %v5533_v1, 16  ;;  %v11859_v12 = vld [vmem:[#allocation8 + $0x1b8] sm:$0xff]   ;;  %11120 = vmatprep.subr.bf16.mxu0 %v11858_v15 }
 0x413   : > { %v5773_v36 = vsel %vm676_vm15, %v5764_v28, %v5772_v51  ;;  %v6252_v60 = vor.u32 %v6251_v24, %v6248_v34  ;;  %v5948_v35 = vsel %vm1045_vm8, %v5946_v26, %v5947_v23  ;;  %v5786_v47 = vshll.u32 %v5533_v1, 16  ;;  %11121 = vmatpush3.bf16.msra.mxu0 %v11859_v12 }
 0x414   : > { %6654 = vmatmul.mubr.bf16.gmra.mrb[180].mxu1 %v5773_v36  ;;  %v5777_v50 = vrot.slane %v5775_v19, 3  ;;  %v5780_v49 = vrot.slane %v5778_v4, 4  ;;  %v5785_v0 = vrot.slane %v5783_v59, 3  ;;  %v6255_v37 = vshrl.u32 %v6012_v27, 16  ;;  %v5870_v14 = vld [vmem:[#allocation2 + $0xf0] sm:$0xf0] }
 0x415   : > { %v6253_v11 = vsel %vm1158_vm0, %v6244_v9, %v6252_v60  ;;  %6661 = vmatprep.mubr.bf16.mxu1 %v5948_v35  ;;  %v5788_v21 = vrot.slane %v5786_v47, 4  ;;  %v6258_v6 = vshll.u32 %v6012_v27, 16  ;;  %v6263_v56 = vshrl.u32 %v6013_v33, 16  ;;  %v5871_v54 = vld [vmem:[#allocation2 + $0xf8] sm:$0xf] }
 0x416   : > { %11563 = vmatmul.mubr.bf16.gmra.mrb[184].mxu0 %v6253_v11  ;;  %v5781_v46 = vor.u32 %v5780_v49, %v5777_v50  ;;  %v6257_v41 = vrot.slane %v6255_v37, 4  ;;  %v6266_v29 = vshll.u32 %v6013_v33, 16  ;;  %v5949_v5 = vrot.slane %v5870_v14, 4  ;;  %v5534_v42 = vld [vmem:[#allocation2 + $0xf0] sm:$0xf8] }
 0x417   : > { %v5789_v1 = vor.u32 %v5788_v21, %v5785_v0  ;;  %v6260_v44 = vrot.slane %v6258_v6, 5  ;;  %v6265_v28 = vrot.slane %v6263_v56, 4  ;;  %v5950_v45 = vrot.slane %v5871_v54, 4  ;;  %v5535_v26 = vld [vmem:[#allocation2 + $0xf8] sm:$0xf] }
 0x418   : > { %v6268_v51 = vrot.slane %v6266_v29, 5  ;;  %v5792_v34 = vshrl.u32 %v5534_v42, 16  ;;  %v5795_v24 = vshll.u32 %v5534_v42, 16  ;;  %v5800_v23 = vshrl.u32 %v5535_v26, 16  ;;  %v6014_v27 = vld [vmem:[#allocation2 + $0xf0] sm:$0xf0] }
 0x419   : > { %v5790_v9 = vsel %vm676_vm15, %v5781_v46, %v5789_v1  ;;  %v6261_v19 = vor.u32 %v6260_v44, %v6257_v41  ;;  %v5951_v4 = vsel %vm1045_vm8, %v5949_v5, %v5950_v45  ;;  %v5803_v59 = vshll.u32 %v5535_v26, 16  ;;  %v6015_v33 = vld [vmem:[#allocation2 + $0xf8] sm:$0x1f] }
 0x41a   : > { %v6269_v36 = vor.u32 %v6268_v51, %v6265_v28  ;;  %v5794_v60 = vrot.slane %v5792_v34, 3  ;;  %v5797_v35 = vrot.slane %v5795_v24, 4  ;;  %v5802_v47 = vrot.slane %v5800_v23, 3  ;;  %v13148_v34 = vld [vmem:[%s13730_s4 + $0x1] ss:$0 sm:$0xff] }
 0x41b   : > { %v5805_v15 = vrot.slane %v5803_v59, 4  ;;  %v6272_v50 = vshrl.u32 %v6014_v27, 16  ;;  %v6275_v49 = vshll.u32 %v6014_v27, 16  ;;  %v6280_v12 = vshrl.u32 %v6015_v33, 16 }
 0x41c   : > { %6662 = vmatmul.mubr.bf16.gmra.mrb[184].mxu1 %v5790_v9  ;;  %v6270_v0 = vsel %vm1158_vm0, %v6261_v19, %v6269_v36  ;;  %v5798_v37 = vor.u32 %v5797_v35, %v5794_v60  ;;  %v6283_v14 = vshll.u32 %v6015_v33, 16  ;;  %vm7240_vm9 = vsmask.f32 6400 }
 0x41d   : > { %11566 = vmatprep.mubr.bf16.mxu0 %v6270_v0  ;;  %6669 = vmatprep.mubr.bf16.mxu1 %v5951_v4  ;;  %v5806_v11 = vor.u32 %v5805_v15, %v5802_v47  ;;  %v6274_v21 = vrot.slane %v6272_v50, 4  ;;  %v6277_v6 = vrot.slane %v6275_v49, 5  ;;  %v6282_v56 = vrot.slane %v6280_v12, 4 }
 0x41e   : > { %v6285_v54 = vrot.slane %v6283_v14, 5  ;;  %vm7721_vm10 = vsmask.f32 1280 }
 0x41f   : > { %v6278_v46 = vor.u32 %v6277_v6, %v6274_v21  ;;  %v5807_v29 = vsel %vm676_vm15, %v5798_v37, %v5806_v11 }
 0x420   : > { %v6286_v41 = vor.u32 %v6285_v54, %v6282_v56 }
 0x422   : > { %v6287_v5 = vsel %vm1158_vm0, %v6278_v46, %v6286_v41 }
 0x423   : > { %11567 = vmatmul.mubr.bf16.gmra.mrb[188].mxu0 %v6287_v5 }
 0x424   : > { %6670 = vmatmul.mubr.bf16.gmra.mrb[188].mxu1 %v5807_v29 }
 0x45d   : > { %v10986_v42 = vpop.f32.mrb[128].mxu1 }
 0x45e   : > { %v10987_v1 = vpop.f32.mrb[129].mxu1 }
 0x45f   : > { %v10988_v44 = vadd.f32 %v10987_v1, %v10986_v42  ;;  %v10989_v28 = vpop.f32.mrb[130].mxu1 }
 0x460   : > { %v10990_v45 = vpop.f32.mrb[131].mxu1 }
 0x461   : > { %v10991_v26 = vadd.f32 %v10990_v45, %v10989_v28  ;;  %v6552_v19 = vadd.f32 %v10988_v44, %v13148_v34 }
 0x463   : > { %v6555_v47 = vadd.f32 %v10991_v26, %v13148_v34 }
 0x468   : > { %v10992_v51 = vpop.f32.mrb[132].mxu1 }
 0x469   : > { %v10993_v24 = vpop.f32.mrb[133].mxu1 }
 0x46a   : > { %v10994_v23 = vadd.f32 %v10993_v24, %v10992_v51  ;;  %v10995_v27 = vpop.f32.mrb[134].mxu1 }
 0x46b   : > { %v11540_v9 = vpop.f32.mrb[160].mxu0  ;;  %v10996_v4 = vpop.f32.mrb[135].mxu1 }
 0x46c   : > { %v6560_v59 = vadd.f32 %v10994_v23, %v13148_v34  ;;  %v6712_v33 = vpop.f32.mrb[161].mxu0  ;;  %v10997_v36 = vadd.f32 %v10996_v4, %v10995_v27 }
 0x46d   : > { %v6713_v60 = vadd.f32 %v6712_v33, %v6552_v19  ;;  %v11541_v35 = vpop.f32.mrb[162].mxu0 }
 0x46e   : > { %v6721_v15 = vadd.f32 %v11540_v9, %v6560_v59  ;;  %v6563_v50 = vadd.f32 %v10997_v36, %v13148_v34  ;;  %v6715_v49 = vpop.f32.mrb[163].mxu0 }
 0x46f   : > { %v13155_v12 = vadd.f32 %v6713_v60, %v12700_v3  ;;  %v6716_v0 = vadd.f32 %v6715_v49, %v6555_v47 }
 0x470   : > { %v13158_v37 = vadd.f32 %v6721_v15, %v12703_v32  ;;  %v6724_v14 = vadd.f32 %v11541_v35, %v6563_v50 }
 0x471   : > { %v6999_v11 = vmul.f32 0.1, %v13155_v12  ;;  %v13162_v21 = vadd.f32 %v6716_v0, %v12707_v17  ;;  %vm6967_vm2 = vcmp.ge.f32.partialorder %v13155_v12, 0.0 }
 0x472   : > { %v7001_v6 = vmul.f32 0.1, %v13158_v37  ;;  %v13167_v56 = vadd.f32 %v6724_v14, %v12712_v10  ;;  %vm6969_vm4 = vcmp.ge.f32.partialorder %v13158_v37, 0.0 }
 0x473   : > { %vm6968_vm6 = vcmp.ge.f32.partialorder %v13162_v21, 0.0  ;;  %v7000_v3 = vmul.f32 0.1, %v13162_v21  ;;  %v7031_v17 = vsel %vm6967_vm2, %v13155_v12, %v6999_v11 }
 0x474   : > { %vm6970_vm7 = vcmp.ge.f32.partialorder %v13167_v56, 0.0  ;;  %v7002_v32 = vmul.f32 0.1, %v13167_v56  ;;  %v10998_v54 = vpop.f32.mrb[136].mxu1  ;;  %v7033_v29 = vsel %vm6969_vm4, %v13158_v37, %v7001_v6 }
 0x475   : > { %v7032_v46 = vsel %vm6968_vm6, %v13162_v21, %v7000_v3  ;;  %v10999_v41 = vpop.f32.mrb[137].mxu1 }
 0x476   : > { %v7034_v10 = vsel %vm6970_vm7, %v13167_v56, %v7002_v32  ;;  %v7063_v5 = vpack.c.bf16 %v7032_v46, %v7031_v17  ;;  %v11000_v42 = vadd.f32 %v10999_v41, %v10998_v54  ;;  %v11001_v1 = vpop.f32.mrb[138].mxu1 }
 0x477   : > { %v7064_v44 = vpack.c.bf16 %v7034_v10, %v7033_v29  ;;  %v11002_v28 = vpop.f32.mrb[139].mxu1 }
 0x478   : > { %v7095_v45 = vrot.slane %v7063_v5, 4  ;;  %v11003_v26 = vadd.f32 %v11002_v28, %v11001_v1  ;;  %v6568_v19 = vadd.f32 %v11000_v42, %v13148_v34 }
 0x479   : > { %v7096_v51 = vrot.slane %v7064_v44, 4 }
 0x47a   : > { %7127 = vst [vmem:[#allocation2 + $0x8] ss:$-4 sps:$4 sm:$0xff] %v7095_v45   ;;  %v6571_v59 = vadd.f32 %v11003_v26, %v13148_v34 }
 0x47b   : > { %7129 = vst [vmem:[#allocation2 + $0x18] ss:$-4 sps:$4 sm:$0xff] %v7096_v51  }
 0x47d   : > { %v11004_v24 = vpop.f32.mrb[140].mxu1 }
 0x47e   : > { %v11005_v23 = vpop.f32.mrb[141].mxu1 }
 0x47f   : > { %v11006_v27 = vadd.f32 %v11005_v23, %v11004_v24  ;;  %v11007_v9 = vpop.f32.mrb[142].mxu1 }
 0x480   : > { %v11008_v4 = vpop.f32.mrb[143].mxu1 }
 0x481   : > { %v7545_v33 = vld [vmem:[#allocation2] sm:$0xf0]  ;;  %v7546_v36 = vld [vmem:[#allocation2 + $0x8] sm:$0xf]  ;;  %v6576_v60 = vadd.f32 %v11006_v27, %v13148_v34  ;;  %v11009_v35 = vadd.f32 %v11008_v4, %v11007_v9 }
 0x482   : > { %v7609_v47 = vrot.slane %v7545_v33, 4  ;;  %v7610_v15 = vrot.slane %v7546_v36, 4  ;;  %v7208_v50 = vld [vmem:[#allocation2] sm:$0xfe]  ;;  %v7209_v49 = vld [vmem:[#allocation2 + $0x8] sm:$0x3] }
 0x483   : > { %v7242_v0 = vshrl.u32 %v7208_v50, 16  ;;  %v7245_v14 = vshll.u32 %v7208_v50, 16  ;;  %v7250_v11 = vshrl.u32 %v7209_v49, 16  ;;  %v7253_v6 = vshll.u32 %v7209_v49, 16  ;;  %v7689_v3 = vld [vmem:[#allocation2] sm:$0xc0] }
 0x484   : > { %v11544_v32 = vpop.f32.mrb[164].mxu0  ;;  %v6579_v54 = vadd.f32 %v11009_v35, %v13148_v34  ;;  %v7611_v17 = vsel %vm1045_vm8, %v7609_v47, %v7610_v15  ;;  %v7690_v46 = vld [vmem:[#allocation2 + $0x8] sm:$0x7f]  ;;  %v7723_v41 = vshrl.u32 %v7689_v3, 16  ;;  %v7726_v29 = vshll.u32 %v7689_v3, 16 }
 0x485   : > { %v6737_v10 = vadd.f32 %v11544_v32, %v6576_v60  ;;  %v6728_v5 = vpop.f32.mrb[165].mxu0  ;;  %8255 = vmatprep.mubr.bf16.mxu0 %v7611_v17  ;;  %v7244_v42 = vrot.slane %v7242_v0, 1  ;;  %v7247_v1 = vrot.slane %v7245_v14, 2  ;;  %v7252_v44 = vrot.slane %v7250_v11, 1  ;;  %v7547_v47 = vld [vmem:[#allocation2 + $0x10] sm:$0xf0] }
 0x486   : > { %v6729_v28 = vadd.f32 %v6728_v5, %v6568_v19  ;;  %v11545_v45 = vpop.f32.mrb[166].mxu0  ;;  %v7255_v26 = vrot.slane %v7253_v6, 2  ;;  %v7725_v51 = vrot.slane %v7723_v41, 6  ;;  %v7728_v24 = vrot.slane %v7726_v29, 7  ;;  %v7548_v49 = vld [vmem:[#allocation2 + $0x18] sm:$0xf] }
 0x487   : > { %v13184_v23 = vadd.f32 %v6737_v10, %v12728_v43  ;;  %v6740_v27 = vadd.f32 %v11545_v45, %v6579_v54  ;;  %v6731_v9 = vpop.f32.mrb[167].mxu0  ;;  %v7248_v4 = vor.u32 %v7247_v1, %v7244_v42  ;;  %v7731_v33 = vshrl.u32 %v7690_v46, 16  ;;  %v7691_v6 = vld [vmem:[#allocation2 + $0x10] sm:$0xc0]  ;;  %v7692_v1 = vld [vmem:[#allocation2 + $0x18] sm:$0x7f] }
 0x488   : > { %v13187_v36 = vadd.f32 %v6729_v28, %v12732_v52  ;;  %v6732_v60 = vadd.f32 %v6731_v9, %v6571_v59  ;;  %v7256_v35 = vor.u32 %v7255_v26, %v7252_v44  ;;  %v7729_v50 = vor.u32 %v7728_v24, %v7725_v51 }
 0x489   : > { %vm6973_vm11 = vcmp.ge.f32.partialorder %v13184_v23, 0.0  ;;  %v7005_v19 = vmul.f32 0.1, %v13184_v23  ;;  %v13192_v15 = vadd.f32 %v6740_v27, %v12737_v31  ;;  %v11010_v43 = vpop.f32.mrb[144].mxu1  ;;  %v7733_v11 = vrot.slane %v7731_v33, 6 }
 0x48a   : > { %v7003_v0 = vmul.f32 0.1, %v13187_v36  ;;  %v13196_v14 = vadd.f32 %v6732_v60, %v12742_v38  ;;  %v11011_v52 = vpop.f32.mrb[145].mxu1  ;;  %v7257_v59 = vsel %vm7240_vm9, %v7248_v4, %v7256_v35  ;;  %vm6971_vm3 = vcmp.ge.f32.partialorder %v13187_v36, 0.0 }
 0x48b   : > { %vm6974_vm5 = vcmp.ge.f32.partialorder %v13192_v15, 0.0  ;;  %v7006_v31 = vmul.f32 0.1, %v13192_v15  ;;  %v13202_v3 = vadd.f32 %v11011_v52, %v11010_v43  ;;  %v11013_v32 = vpop.f32.mrb[146].mxu1  ;;  %8256 = vmatmul.mubr.bf16.vlgmr.msra.gmra.mrb[192].mxu0 %v7257_v59  ;;  %v7037_v38 = vsel %vm6973_vm11, %v13184_v23, %v7005_v19 }
 0x48c   : > { %vm6972_vm12 = vcmp.ge.f32.partialorder %v13196_v14, 0.0  ;;  %v7004_v54 = vmul.f32 0.1, %v13196_v14  ;;  %v11014_v17 = vpop.f32.mrb[147].mxu1  ;;  %v7734_v41 = vshll.u32 %v7690_v46, 16  ;;  %v7612_v5 = vrot.slane %v7547_v47, 4 }
 0x48d   : > { %v7038_v29 = vsel %vm6974_vm5, %v13192_v15, %v7006_v31  ;;  %v11015_v10 = vadd.f32 %v11014_v17, %v11013_v32  ;;  %v7613_v42 = vrot.slane %v7548_v49, 4  ;;  %v7035_v44 = vsel %vm6971_vm3, %v13187_v36, %v7003_v0  ;;  %v7210_v46 = vld [vmem:[#allocation2 + $0x10] sm:$0xfe]  ;;  %v7211_v47 = vld [vmem:[#allocation2 + $0x18] sm:$0x3] }
 0x48e   : > { %v7066_v28 = vpack.c.bf16 %v7038_v29, %v7037_v38  ;;  %v7036_v45 = vsel %vm6972_vm12, %v13196_v14, %v7004_v54  ;;  %v7736_v26 = vrot.slane %v7734_v41, 7  ;;  %v7740_v27 = vshrl.u32 %v7691_v6, 16 }
 0x48f   : > { %v7065_v51 = vpack.c.bf16 %v7036_v45, %v7035_v44  ;;  %v7614_v24 = vsel %vm1045_vm8, %v7612_v5, %v7613_v42  ;;  %v7743_v9 = vshll.u32 %v7691_v6, 16  ;;  %v7748_v60 = vshrl.u32 %v7692_v1, 16 }
 0x490   : > { %v7098_v4 = vrot.slane %v7066_v28, 4  ;;  %v7737_v33 = vor.u32 %v7736_v26, %v7733_v11  ;;  %8263 = vmatprep.mubr.bf16.mxu0 %v7614_v24  ;;  %v7751_v35 = vshll.u32 %v7692_v1, 16  ;;  %v7742_v43 = vrot.slane %v7740_v27, 6 }
 0x491   : > { %v7097_v19 = vrot.slane %v7065_v51, 4  ;;  %v7745_v49 = vrot.slane %v7743_v9, 7  ;;  %v7750_v52 = vrot.slane %v7748_v60, 6  ;;  %v7259_v31 = vshrl.u32 %v7210_v46, 16 }
 0x492   : > { %7133 = vst [vmem:[#allocation2 + $0x38] ss:$-4 sps:$4 sm:$0xff] %v7098_v4   ;;  %v7738_v0 = vsel %vm7721_vm10, %v7729_v50, %v7737_v33  ;;  %v7753_v59 = vrot.slane %v7751_v35, 7  ;;  %v7262_v6 = vshll.u32 %v7210_v46, 16  ;;  %v7267_v38 = vshrl.u32 %v7211_v47, 16 }
 0x493   : > { %7131 = vst [vmem:[#allocation2 + $0x28] ss:$-4 sps:$4 sm:$0xff] %v7097_v19   ;;  %11586 = vmatprep.mubr.bf16.mxu1 %v7738_v0  ;;  %v7746_v32 = vor.u32 %v7745_v49, %v7742_v43  ;;  %v7270_v54 = vshll.u32 %v7211_v47, 16  ;;  %v11016_v11 = vpop.f32.mrb[148].mxu1  ;;  %v7261_v41 = vrot.slane %v7259_v31, 1  ;;  %v6584_v35 = vadd.f32 %v13202_v3, %v13148_v34 }
 0x494   : > { %v7754_v17 = vor.u32 %v7753_v59, %v7750_v52  ;;  %v11017_v29 = vpop.f32.mrb[149].mxu1  ;;  %v7264_v5 = vrot.slane %v7262_v6, 2  ;;  %v7269_v42 = vrot.slane %v7267_v38, 1  ;;  %v6587_v19 = vadd.f32 %v11015_v10, %v13148_v34 }
 0x495   : > { %v7272_v1 = vrot.slane %v7270_v54, 2  ;;  %v11018_v44 = vadd.f32 %v11017_v29, %v11016_v11  ;;  %v11019_v28 = vpop.f32.mrb[150].mxu1 }
 0x496   : > { %v7755_v50 = vsel %vm7721_vm10, %v7746_v32, %v7754_v17  ;;  %v11020_v45 = vpop.f32.mrb[151].mxu1  ;;  %v7265_v26 = vor.u32 %v7264_v5, %v7261_v41 }
 0x497   : > { %11587 = vmatmul.mubr.bf16.vlgmr.msra.gmra.mrb[192].mxu1 %v7755_v50  ;;  %v7273_v51 = vor.u32 %v7272_v1, %v7269_v42  ;;  %v6592_v24 = vadd.f32 %v11018_v44, %v13148_v34  ;;  %v11021_v27 = vadd.f32 %v11020_v45, %v11019_v28 }
 0x499   : > { %v7274_v9 = vsel %vm7240_vm9, %v7265_v26, %v7273_v51  ;;  %v13219_v46 = vld [vmem:[#allocation2 + $0x30] sm:$0xf0]  ;;  %v13221_v4 = vld [vmem:[#allocation2 + $0x38] sm:$0xf]  ;;  %v11548_v60 = vpop.f32.mrb[168].mxu0  ;;  %v6595_v47 = vadd.f32 %v11021_v27, %v13148_v34 }
 0x49a   : > { %v13223_v33 = vld [vmem:[#allocation2 + $0x30] sm:$0xc0]  ;;  %8264 = vmatmul.mubr.bf16.gmra.mrb[196].mxu0 %v7274_v9  ;;  %v7549_v43 = vld [vmem:[#allocation2 + $0x20] sm:$0xf0]  ;;  %v7550_v49 = vld [vmem:[#allocation2 + $0x28] sm:$0xf]  ;;  %v6753_v52 = vadd.f32 %v11548_v60, %v6592_v24 }
 0x49b   : > { %v7618_v0 = vrot.slane %v13219_v46, 4  ;;  %v6744_v59 = vpop.f32.mrb[169].mxu0  ;;  %v7615_v31 = vrot.slane %v7549_v43, 4  ;;  %v7616_v32 = vrot.slane %v7550_v49, 4  ;;  %v7212_v6 = vld [vmem:[#allocation2 + $0x20] sm:$0xfe] }
 0x49c   : > { %v7619_v38 = vrot.slane %v13221_v4, 4  ;;  %v6745_v54 = vadd.f32 %v6744_v59, %v6584_v35  ;;  %v11549_v11 = vpop.f32.mrb[170].mxu0  ;;  %v7213_v17 = vld [vmem:[#allocation2 + $0x28] sm:$0x3]  ;;  %v7276_v3 = vshrl.u32 %v7212_v6, 16  ;;  %v7279_v41 = vshll.u32 %v7212_v6, 16 }
 0x49d   : > { %v7774_v29 = vshrl.u32 %v13223_v33, 16  ;;  %v13233_v10 = vadd.f32 %v6753_v52, %v12766_v2  ;;  %v6756_v5 = vadd.f32 %v11549_v11, %v6595_v47  ;;  %v6747_v42 = vpop.f32.mrb[171].mxu0  ;;  %v7617_v1 = vsel %vm1045_vm8, %v7615_v31, %v7616_v32  ;;  %v7693_v27 = vld [vmem:[#allocation2 + $0x20] sm:$0xc0]  ;;  %v7694_v60 = vld [vmem:[#allocation2 + $0x28] sm:$0x7f] }
 0x49e   : > { %v7284_v44 = vshrl.u32 %v7213_v17, 16  ;;  %v13237_v28 = vadd.f32 %v6745_v54, %v12770_v8  ;;  %v6748_v50 = vadd.f32 %v6747_v42, %v6587_v19  ;;  %8271 = vmatprep.mubr.bf16.mxu0 %v7617_v1  ;;  %v7278_v45 = vrot.slane %v7276_v3, 1  ;;  %v11022_v46 = vpop.f32.mrb[152].mxu1 }
 0x49f   : > { %v7281_v26 = vrot.slane %v7279_v41, 2  ;;  %vm6977_vm13 = vcmp.ge.f32.partialorder %v13233_v10, 0.0  ;;  %v7009_v51 = vmul.f32 0.1, %v13233_v10  ;;  %v13242_v24 = vadd.f32 %v6756_v5, %v12775_v20  ;;  %v11023_v20 = vpop.f32.mrb[153].mxu1 }
 0x4a0   : > { %v7286_v2 = vrot.slane %v7284_v44, 1  ;;  %vm6975_vm14 = vcmp.ge.f32.partialorder %v13237_v28, 0.0  ;;  %v7007_v9 = vmul.f32 0.1, %v13237_v28  ;;  %v13247_v8 = vadd.f32 %v6748_v50, %v12780_v22  ;;  %v11025_v22 = vpop.f32.mrb[154].mxu1 }
 0x4a1   : > { %v7282_v4 = vor.u32 %v7281_v26, %v7278_v45  ;;  %v7041_v35 = vsel %vm6977_vm13, %v13233_v10, %v7009_v51  ;;  %vm6978_vm1 = vcmp.ge.f32.partialorder %v13242_v24, 0.0  ;;  %v7010_v47 = vmul.f32 0.1, %v13242_v24  ;;  %v11026_v31 = vpop.f32.mrb[155].mxu1  ;;  %v7696_v50 = vld [vmem:[#allocation2 + $0x38] sm:$0x7f] }
 0x4a2   : > { %v7287_v19 = vshll.u32 %v7213_v17, 16  ;;  %v7039_v43 = vsel %vm6975_vm14, %v13237_v28, %v7007_v9  ;;  %vm6976_vm2 = vcmp.ge.f32.partialorder %v13247_v8, 0.0  ;;  %v7008_v49 = vmul.f32 0.1, %v13247_v8 }
 0x4a3   : > { %v13255_v52 = vadd.f32 %v11023_v20, %v11022_v46  ;;  %v7042_v59 = vsel %vm6978_vm1, %v13242_v24, %v7010_v47  ;;  %v7757_v6 = vshrl.u32 %v7693_v27, 16  ;;  %v7760_v54 = vshll.u32 %v7693_v27, 16  ;;  %v7214_v46 = vld [vmem:[#allocation2 + $0x30] sm:$0xfe] }
 0x4a4   : > { %v7289_v32 = vrot.slane %v7287_v19, 2  ;;  %v7068_v11 = vpack.c.bf16 %v7042_v59, %v7041_v35  ;;  %v7040_v3 = vsel %vm6976_vm2, %v13247_v8, %v7008_v49  ;;  %v11027_v41 = vadd.f32 %v11026_v31, %v11025_v22  ;;  %v7215_v35 = vld [vmem:[#allocation2 + $0x38] sm:$0x3] }
 0x4a5   : > { %v7765_v17 = vshrl.u32 %v7694_v60, 16  ;;  %v7067_v5 = vpack.c.bf16 %v7040_v3, %v7039_v43  ;;  %v7759_v1 = vrot.slane %v7757_v6, 6  ;;  %v7762_v44 = vrot.slane %v7760_v54, 7 }
 0x4a6   : > { %v7290_v42 = vor.u32 %v7289_v32, %v7286_v2  ;;  %v7100_v45 = vrot.slane %v7068_v11, 4  ;;  %v7768_v51 = vshll.u32 %v7694_v60, 16  ;;  %v7620_v9 = vsel %vm1045_vm8, %v7618_v0, %v7619_v38 }
 0x4a7   : > { %v7767_v26 = vrot.slane %v7765_v17, 6  ;;  %v7099_v47 = vrot.slane %v7067_v5, 4  ;;  %v7763_v27 = vor.u32 %v7762_v44, %v7759_v1  ;;  %v7776_v49 = vrot.slane %v7774_v29, 6 }
 0x4a8   : > { %v7291_v20 = vsel %vm7240_vm9, %v7282_v4, %v7290_v42  ;;  %7137 = vst [vmem:[#allocation2 + $0x58] ss:$-4 sps:$4 sm:$0xff] %v7100_v45   ;;  %v7770_v19 = vrot.slane %v7768_v51, 7  ;;  %v7777_v2 = vshll.u32 %v13223_v33, 16  ;;  %v7782_v43 = vshrl.u32 %v7696_v50, 16  ;;  %v11861_v51 = vld [vmem:[#allocation10 + $0x180] sm:$0xff]  }
 0x4a9   : > { %8272 = vmatmul.mubr.bf16.gmra.mrb[200].mxu0 %v7291_v20  ;;  %7135 = vst [vmem:[#allocation2 + $0x48] ss:$-4 sps:$4 sm:$0xff] %v7099_v47   ;;  %v7785_v22 = vshll.u32 %v7696_v50, 16  ;;  %v7293_v59 = vshrl.u32 %v7214_v46, 16  ;;  %v7296_v60 = vshll.u32 %v7214_v46, 16  ;;  %v7301_v32 = vshrl.u32 %v7215_v35, 16 }
 0x4aa   : > { %8279 = vmatprep.mubr.bf16.mxu0 %v7620_v9  ;;  %v7771_v31 = vor.u32 %v7770_v19, %v7767_v26  ;;  %v7779_v0 = vrot.slane %v7777_v2, 7  ;;  %v7784_v38 = vrot.slane %v7782_v43, 6  ;;  %v11028_v6 = vpop.f32.mrb[156].mxu1  ;;  %v7304_v3 = vshll.u32 %v7215_v35, 16  ;;  %v11860_v26 = vld [vmem:[#allocation10 + $0x1c0] sm:$0xff]   ;;  %v11863_v47 = vld [vmem:[#allocation10 + $0x1c8] sm:$0xff]  }
 0x4ab   : > { %v7787_v4 = vrot.slane %v7785_v22, 7  ;;  %v7295_v54 = vrot.slane %v7293_v59, 1  ;;  %v7298_v11 = vrot.slane %v7296_v60, 2  ;;  %v11029_v29 = vpop.f32.mrb[157].mxu1  ;;  %v7303_v33 = vrot.slane %v7301_v32, 1  ;;  %v11862_v9 = vld [vmem:[#allocation10 + $0x200] sm:$0xff]   ;;  %11242 = vmatprep.subr.bf16.mxu1 %v11860_v26 }
 0x4ac   : > { %v7772_v17 = vsel %vm7721_vm10, %v7763_v27, %v7771_v31  ;;  %v7780_v5 = vor.u32 %v7779_v0, %v7776_v49  ;;  %v11030_v42 = vadd.f32 %v11029_v29, %v11028_v6  ;;  %v11031_v1 = vpop.f32.mrb[158].mxu1  ;;  %v7306_v45 = vrot.slane %v7304_v3, 2  ;;  %v11864_v49 = vld [vmem:[#allocation10 + $0x188] sm:$0xff]   ;;  %11618 = vmatprep.subr.bf16.mxu0 %v11862_v9  ;;  %11243 = vmatpush3.bf16.msra.mxu1 %v11861_v51 }
 0x4ad   : > { %11590 = vmatprep.mubr.bf16.mxu1 %v7772_v17  ;;  %v7788_v44 = vor.u32 %v7787_v4, %v7784_v38  ;;  %v7299_v50 = vor.u32 %v7298_v11, %v7295_v54  ;;  %v11032_v46 = vpop.f32.mrb[159].mxu1  ;;  %v6600_v22 = vadd.f32 %v13255_v52, %v13148_v34  ;;  %v6603_v59 = vadd.f32 %v11027_v41, %v13148_v34 }
 0x4ae   : > { %v6608_v20 = vadd.f32 %v11030_v42, %v13148_v34  ;;  %v11033_v19 = vadd.f32 %v11032_v46, %v11031_v1  ;;  %v7307_v27 = vor.u32 %v7306_v45, %v7303_v33  ;;  %11619 = vmatpush3.bf16.msra.mxu0 %v11862_v9  ;;  %11244 = vmatprep.subr.bf16.mxu1 %v11863_v47  ;;  %v11865_v33 = vld [vmem:[#allocation10 + $0x1d0] sm:$0xff]  }
 0x4af   : > { %v7789_v35 = vsel %vm7721_vm10, %v7780_v5, %v7788_v44  ;;  %v13265_v2 = vld [vmem:[#allocation2 + $0x50] sm:$0xf0]  ;;  %v11552_v43 = vpop.f32.mrb[172].mxu0 }
 0x4b0   : > { %11591 = vmatmul.mubr.bf16.gmra.mrb[196].mxu1 %v7789_v35  ;;  %v7553_v60 = vld [vmem:[#allocation2 + $0x40] sm:$0xf0]  ;;  %v7554_v31 = vld [vmem:[#allocation2 + $0x48] sm:$0xf]  ;;  %v7624_v0 = vrot.slane %v13265_v2, 4  ;;  %v6769_v38 = vadd.f32 %v11552_v43, %v6608_v20  ;;  %v6760_v32 = vpop.f32.mrb[173].mxu0  ;;  %v6611_v6 = vadd.f32 %v11033_v19, %v13148_v34  ;;  %v7308_v4 = vsel %vm7240_vm9, %v7299_v50, %v7307_v27 }
 0x4b1   : > { %v7621_v54 = vrot.slane %v7553_v60, 4  ;;  %v7216_v11 = vld [vmem:[#allocation2 + $0x40] sm:$0xfe]  ;;  %v7217_v3 = vld [vmem:[#allocation2 + $0x48] sm:$0x3]  ;;  %v6761_v52 = vadd.f32 %v6760_v32, %v6600_v22  ;;  %v11553_v17 = vpop.f32.mrb[174].mxu0  ;;  %8280 = vmatmul.mubr.bf16.gmra.mrb[204].mxu0 %v7308_v4  ;;  %11245 = vmatpush3.bf16.msra.mxu1 %v11864_v49 }
 0x4b2   : > { %v7622_v41 = vrot.slane %v7554_v31, 4  ;;  %v7310_v29 = vshrl.u32 %v7216_v11, 16  ;;  %v7313_v5 = vshll.u32 %v7216_v11, 16  ;;  %v13274_v42 = vadd.f32 %v6769_v38, %v12807_v18  ;;  %v6763_v44 = vpop.f32.mrb[175].mxu0  ;;  %v7697_v20 = vld [vmem:[#allocation2 + $0x40] sm:$0xc0]  ;;  %11246 = vmatprep.subr.bf16.mxu1 %v11865_v33 }
 0x4b3   : > { %v6772_v1 = vadd.f32 %v11553_v17, %v6611_v6  ;;  %v7318_v45 = vshrl.u32 %v7217_v3, 16  ;;  %v7321_v50 = vshll.u32 %v7217_v3, 16  ;;  %v13277_v26 = vadd.f32 %v6761_v52, %v12810_v16  ;;  %v11867_v35 = vld [vmem:[#allocation10 + $0x208] sm:$0xff]   ;;  %v11866_v27 = vld [vmem:[#allocation10 + $0x190] sm:$0xff]   ;;  %v11868_v60 = vld [vmem:[#allocation10 + $0x1d8] sm:$0xff]  }
 0x4b4   : > { %v6764_v51 = vadd.f32 %v6763_v44, %v6603_v59  ;;  %v7623_v9 = vsel %vm1045_vm8, %v7621_v54, %v7622_v41  ;;  %v7312_v46 = vrot.slane %v7310_v29, 1  ;;  %vm6981_vm4 = vcmp.ge.f32.partialorder %v13274_v42, 0.0  ;;  %11620 = vmatprep.subr.bf16.mxu0 %v11867_v35  ;;  %v7698_v32 = vld [vmem:[#allocation2 + $0x48] sm:$0x7f]  ;;  %v7556_v11 = vld [vmem:[#allocation2 + $0x58] sm:$0xf] }
 0x4b5   : > { %v7013_v47 = vmul.f32 0.1, %v13274_v42  ;;  %v13283_v18 = vadd.f32 %v6772_v1, %v12819_v30  ;;  %8287 = vmatprep.mubr.bf16.mxu0 %v7623_v9  ;;  %v7315_v19 = vrot.slane %v7313_v5, 2  ;;  %vm6979_vm6 = vcmp.ge.f32.partialorder %v13277_v26, 0.0  ;;  %11621 = vmatpush3.bf16.msra.mxu0 %v11867_v35  ;;  %v11869_v5 = vld [vmem:[#allocation10 + $0x198] sm:$0xff]  }
 0x4b6   : > { %v7011_v16 = vmul.f32 0.1, %v13277_v26  ;;  %v13288_v43 = vadd.f32 %v6764_v51, %v12822_v53  ;;  %v11034_v22 = vpop.f32.mrb[160].mxu1  ;;  %v7320_v59 = vrot.slane %v7318_v45, 1  ;;  %v7323_v17 = vrot.slane %v7321_v50, 2  ;;  %11247 = vmatpush3.bf16.msra.mxu1 %v11866_v27  ;;  %v11870_v51 = vld [vmem:[#allocation10 + $0x1e0] sm:$0xff]  }
 0x4b7   : > { %v7045_v31 = vsel %vm6981_vm4, %v13274_v42, %v7013_v47  ;;  %vm6982_vm7 = vcmp.ge.f32.partialorder %v13283_v18, 0.0  ;;  %v7014_v30 = vmul.f32 0.1, %v13283_v18  ;;  %v11035_v49 = vpop.f32.mrb[161].mxu1  ;;  %v7316_v38 = vor.u32 %v7315_v19, %v7312_v46  ;;  %11248 = vmatprep.subr.bf16.mxu1 %v11868_v60  ;;  %v7699_v19 = vld [vmem:[#allocation2 + $0x50] sm:$0xc0] }
 0x4b8   : > { %v7043_v6 = vsel %vm6979_vm6, %v13277_v26, %v7011_v16  ;;  %vm6980_vm11 = vcmp.ge.f32.partialorder %v13288_v43, 0.0  ;;  %v7012_v53 = vmul.f32 0.1, %v13288_v43  ;;  %v11036_v4 = vadd.f32 %v11035_v49, %v11034_v22  ;;  %v11037_v54 = vpop.f32.mrb[162].mxu1  ;;  %v7700_v16 = vld [vmem:[#allocation2 + $0x58] sm:$0x7f] }
 0x4b9   : > { %v7046_v3 = vsel %vm6982_vm7, %v13283_v18, %v7014_v30  ;;  %v11038_v52 = vpop.f32.mrb[163].mxu1  ;;  %v7791_v41 = vshrl.u32 %v7697_v20, 16  ;;  %v7794_v29 = vshll.u32 %v7697_v20, 16  ;;  %v7799_v45 = vshrl.u32 %v7698_v32, 16  ;;  %v7218_v20 = vld [vmem:[#allocation2 + $0x50] sm:$0xfe] }
 0x4ba   : > { %v7070_v33 = vpack.c.bf16 %v7046_v3, %v7045_v31  ;;  %v7044_v1 = vsel %vm6980_vm11, %v13288_v43, %v7012_v53  ;;  %v11039_v44 = vadd.f32 %v11038_v52, %v11037_v54  ;;  %v7324_v46 = vor.u32 %v7323_v17, %v7320_v59  ;;  %11249 = vmatpush3.bf16.msra.mxu1 %v11869_v5 }
 0x4bb   : > { %v7069_v9 = vpack.c.bf16 %v7044_v1, %v7043_v6  ;;  %v7793_v35 = vrot.slane %v7791_v41, 6  ;;  %v7796_v47 = vrot.slane %v7794_v29, 7  ;;  %v7801_v30 = vrot.slane %v7799_v45, 6  ;;  %11250 = vmatprep.subr.bf16.mxu1 %v11870_v51 }
 0x4bc   : > { %v7102_v22 = vrot.slane %v7070_v33, 4  ;;  %v7802_v50 = vshll.u32 %v7698_v32, 16  ;;  %v7625_v49 = vrot.slane %v7556_v11, 4  ;;  %v7325_v31 = vsel %vm7240_vm9, %v7316_v38, %v7324_v46  ;;  %v7219_v38 = vld [vmem:[#allocation2 + $0x58] sm:$0x3] }
 0x4bd   : > { %v7101_v27 = vrot.slane %v7069_v9, 4  ;;  %v7797_v3 = vor.u32 %v7796_v47, %v7793_v35  ;;  %8288 = vmatmul.mubr.bf16.gmra.mrb[208].mxu0 %v7325_v31  ;;  %v7808_v6 = vshrl.u32 %v7699_v19, 16  ;;  %v7811_v53 = vshll.u32 %v7699_v19, 16 }
 0x4be   : > { %7141 = vst [vmem:[#allocation2 + $0x78] ss:$-4 sps:$4 sm:$0xff] %v7102_v22   ;;  %v7804_v60 = vrot.slane %v7802_v50, 7  ;;  %v7626_v59 = vsel %vm1045_vm8, %v7624_v0, %v7625_v49  ;;  %v11040_v32 = vpop.f32.mrb[164].mxu1  ;;  %v6616_v54 = vadd.f32 %v11036_v4, %v13148_v34  ;;  %v7816_v11 = vshrl.u32 %v7700_v16, 16 }
 0x4bf   : > { %7139 = vst [vmem:[#allocation2 + $0x68] ss:$-4 sps:$4 sm:$0xff] %v7101_v27   ;;  %8295 = vmatprep.mubr.bf16.mxu0 %v7626_v59  ;;  %v7819_v52 = vshll.u32 %v7700_v16, 16  ;;  %v7327_v17 = vshrl.u32 %v7218_v20, 16  ;;  %v11041_v29 = vpop.f32.mrb[165].mxu1  ;;  %v7810_v5 = vrot.slane %v7808_v6, 6 }
 0x4c0   : > { %v7805_v41 = vor.u32 %v7804_v60, %v7801_v30  ;;  %v7813_v33 = vrot.slane %v7811_v53, 7  ;;  %v7330_v1 = vshll.u32 %v7218_v20, 16  ;;  %v11042_v2 = vadd.f32 %v11041_v29, %v11040_v32  ;;  %v11043_v45 = vpop.f32.mrb[166].mxu1 }
 0x4c1   : > { %v7818_v0 = vrot.slane %v7816_v11, 6  ;;  %v7821_v9 = vrot.slane %v7819_v52, 7  ;;  %v7329_v46 = vrot.slane %v7327_v17, 1  ;;  %v11044_v47 = vpop.f32.mrb[167].mxu1  ;;  %v7335_v4 = vshrl.u32 %v7219_v38, 16 }
 0x4c2   : > { %v7806_v51 = vsel %vm7721_vm10, %v7797_v3, %v7805_v41  ;;  %v7814_v35 = vor.u32 %v7813_v33, %v7810_v5  ;;  %v7332_v19 = vrot.slane %v7330_v1, 2  ;;  %v6624_v22 = vadd.f32 %v11042_v2, %v13148_v34 }
 0x4c3   : > { %11594 = vmatprep.mubr.bf16.mxu1 %v7806_v51  ;;  %v11556_v16 = vpop.f32.mrb[176].mxu0  ;;  %v7822_v30 = vor.u32 %v7821_v9, %v7818_v0  ;;  %v11045_v50 = vadd.f32 %v11044_v47, %v11043_v45  ;;  %v7338_v49 = vshll.u32 %v7219_v38, 16  ;;  %v6619_v20 = vadd.f32 %v11039_v44, %v13148_v34 }
 0x4c4   : > { %v6776_v27 = vpop.f32.mrb[177].mxu0  ;;  %v7337_v31 = vrot.slane %v7335_v4, 1  ;;  %v6785_v60 = vadd.f32 %v11556_v16, %v6624_v22  ;;  %v7333_v11 = vor.u32 %v7332_v19, %v7329_v46 }
 0x4c5   : > { %v6777_v59 = vadd.f32 %v6776_v27, %v6616_v54  ;;  %v11557_v6 = vpop.f32.mrb[178].mxu0  ;;  %v7823_v3 = vsel %vm7721_vm10, %v7814_v35, %v7822_v30  ;;  %v6627_v53 = vadd.f32 %v11045_v50, %v13148_v34  ;;  %v7340_v52 = vrot.slane %v7338_v49, 2 }
 0x4c6   : > { %11595 = vmatmul.mubr.bf16.gmra.mrb[200].mxu1 %v7823_v3  ;;  %v6779_v32 = vpop.f32.mrb[179].mxu0  ;;  %v7557_v17 = vld [vmem:[#allocation2 + $0x60] sm:$0xf0]  ;;  %v7558_v41 = vld [vmem:[#allocation2 + $0x68] sm:$0xf]  ;;  %v13309_v29 = vadd.f32 %v6785_v60, %v12853_v61 }
 0x4c7   : > { %v13312_v38 = vadd.f32 %v6777_v59, %v12856_v7  ;;  %v6788_v44 = vadd.f32 %v11557_v6, %v6627_v53  ;;  %v6780_v5 = vadd.f32 %v6779_v32, %v6619_v20  ;;  %v7220_v54 = vld [vmem:[#allocation2 + $0x60] sm:$0xfe]  ;;  %v7341_v33 = vor.u32 %v7340_v52, %v7337_v31  ;;  %v7221_v51 = vld [vmem:[#allocation2 + $0x68] sm:$0x3] }
 0x4c8   : > { %v7627_v1 = vrot.slane %v7557_v17, 4  ;;  %v7628_v2 = vrot.slane %v7558_v41, 4  ;;  %v7344_v45 = vshrl.u32 %v7220_v54, 16  ;;  %vm6985_vm3 = vcmp.ge.f32.partialorder %v13309_v29, 0.0  ;;  %v7701_v35 = vld [vmem:[#allocation2 + $0x60] sm:$0xc0] }
 0x4c9   : > { %v7017_v34 = vmul.f32 0.1, %v13309_v29  ;;  %vm6983_vm5 = vcmp.ge.f32.partialorder %v13312_v38, 0.0  ;;  %v7015_v0 = vmul.f32 0.1, %v13312_v38  ;;  %v13319_v61 = vadd.f32 %v6788_v44, %v12864_v58 }
 0x4ca   : > { %v13322_v7 = vadd.f32 %v6780_v5, %v12867_v39  ;;  %v7342_v9 = vsel %vm7240_vm9, %v7333_v11, %v7341_v33  ;;  %v7629_v46 = vsel %vm1045_vm8, %v7627_v1, %v7628_v2  ;;  %v11046_v4 = vpop.f32.mrb[168].mxu1  ;;  %v7346_v16 = vrot.slane %v7344_v45, 1  ;;  %v7702_v3 = vld [vmem:[#allocation2 + $0x68] sm:$0x7f]  ;;  %v7559_v44 = vld [vmem:[#allocation2 + $0x70] sm:$0xf0] }
 0x4cb   : > { %v7049_v47 = vsel %vm6985_vm3, %v13309_v29, %v7017_v34  ;;  %v7047_v19 = vsel %vm6983_vm5, %v13312_v38, %v7015_v0  ;;  %8296 = vmatmul.mubr.bf16.gmra.mrb[212].mxu0 %v7342_v9  ;;  %v7347_v22 = vshll.u32 %v7220_v54, 16  ;;  %vm6986_vm12 = vcmp.ge.f32.partialorder %v13319_v61, 0.0  ;;  %v11047_v30 = vpop.f32.mrb[169].mxu1  ;;  %v7560_v5 = vld [vmem:[#allocation2 + $0x78] sm:$0xf] }
 0x4cc   : > { %v7018_v58 = vmul.f32 0.1, %v13319_v61  ;;  %vm6984_vm13 = vcmp.ge.f32.partialorder %v13322_v7, 0.0  ;;  %v7016_v39 = vmul.f32 0.1, %v13322_v7  ;;  %8303 = vmatprep.mubr.bf16.mxu0 %v7629_v46  ;;  %v7352_v49 = vshrl.u32 %v7221_v51, 16 }
 0x4cd   : > { %v7349_v50 = vrot.slane %v7347_v22, 2  ;;  %v7355_v27 = vshll.u32 %v7221_v51, 16  ;;  %v7825_v20 = vshrl.u32 %v7701_v35, 16  ;;  %v11048_v59 = vadd.f32 %v11047_v30, %v11046_v4  ;;  %v11049_v6 = vpop.f32.mrb[170].mxu1  ;;  %v7703_v45 = vld [vmem:[#allocation2 + $0x70] sm:$0xc0] }
 0x4ce   : > { %v7050_v31 = vsel %vm6986_vm12, %v13319_v61, %v7018_v58  ;;  %v7048_v60 = vsel %vm6984_vm13, %v13322_v7, %v7016_v39  ;;  %v7828_v53 = vshll.u32 %v7701_v35, 16  ;;  %v11050_v52 = vpop.f32.mrb[171].mxu1  ;;  %v7354_v41 = vrot.slane %v7352_v49, 1  ;;  %v7704_v51 = vld [vmem:[#allocation2 + $0x78] sm:$0x7f] }
 0x4cf   : > { %v7072_v32 = vpack.c.bf16 %v7050_v31, %v7049_v47  ;;  %v7071_v11 = vpack.c.bf16 %v7048_v60, %v7047_v19  ;;  %v7350_v17 = vor.u32 %v7349_v50, %v7346_v16  ;;  %v11051_v54 = vadd.f32 %v11050_v52, %v11049_v6  ;;  %v7222_v39 = vld [vmem:[#allocation2 + $0x70] sm:$0xfe] }
 0x4d0   : > { %v7357_v33 = vrot.slane %v7355_v27, 2  ;;  %v7827_v1 = vrot.slane %v7825_v20, 6  ;;  %v7830_v2 = vrot.slane %v7828_v53, 7  ;;  %v7833_v9 = vshrl.u32 %v7702_v3, 16  ;;  %v7223_v20 = vld [vmem:[#allocation2 + $0x78] sm:$0x3] }
 0x4d1   : > { %v7104_v34 = vrot.slane %v7072_v32, 4  ;;  %v7103_v0 = vrot.slane %v7071_v11, 4  ;;  %v7836_v46 = vshll.u32 %v7702_v3, 16  ;;  %v7630_v22 = vrot.slane %v7559_v44, 4 }
 0x4d2   : > { %v7358_v4 = vor.u32 %v7357_v33, %v7354_v41  ;;  %v7631_v35 = vrot.slane %v7560_v5, 4  ;;  %v7831_v47 = vor.u32 %v7830_v2, %v7827_v1  ;;  %v7835_v19 = vrot.slane %v7833_v9, 6 }
 0x4d3   : > { %7145 = vst [vmem:[#allocation2 + $0x98] ss:$-4 sps:$4 sm:$0xff] %v7104_v34   ;;  %7143 = vst [vmem:[#allocation2 + $0x88] ss:$-4 sps:$4 sm:$0xff] %v7103_v0   ;;  %v7838_v16 = vrot.slane %v7836_v46, 7  ;;  %v7842_v58 = vshrl.u32 %v7703_v45, 16 }
 0x4d4   : > { %v7359_v30 = vsel %vm7240_vm9, %v7350_v17, %v7358_v4  ;;  %v7632_v50 = vsel %vm1045_vm8, %v7630_v22, %v7631_v35  ;;  %v7845_v49 = vshll.u32 %v7703_v45, 16  ;;  %v7850_v27 = vshrl.u32 %v7704_v51, 16  ;;  %v13340_v46 = vld [vmem:[%s13730_s4 + $0x1] ss:$0 sm:$0xff] }
 0x4d5   : > { %8304 = vmatmul.mubr.bf16.gmra.mrb[216].mxu0 %v7359_v30  ;;  %v7839_v31 = vor.u32 %v7838_v16, %v7835_v19  ;;  %v7844_v60 = vrot.slane %v7842_v58, 6  ;;  %v7853_v6 = vshll.u32 %v7704_v51, 16  ;;  %v11052_v3 = vpop.f32.mrb[172].mxu1  ;;  %v7361_v11 = vshrl.u32 %v7222_v39, 16 }
 0x4d6   : > { %8311 = vmatprep.mubr.bf16.mxu0 %v7632_v50  ;;  %v7847_v53 = vrot.slane %v7845_v49, 7  ;;  %v7852_v32 = vrot.slane %v7850_v27, 6  ;;  %v7364_v52 = vshll.u32 %v7222_v39, 16  ;;  %v11053_v44 = vpop.f32.mrb[173].mxu1  ;;  %v7369_v17 = vshrl.u32 %v7223_v20, 16 }
 0x4d7   : > { %v7840_v41 = vsel %vm7721_vm10, %v7831_v47, %v7839_v31  ;;  %v7855_v5 = vrot.slane %v7853_v6, 7  ;;  %v7372_v33 = vshll.u32 %v7223_v20, 16  ;;  %v11054_v1 = vadd.f32 %v11053_v44, %v11052_v3  ;;  %v11055_v2 = vpop.f32.mrb[174].mxu1 }
 0x4d8   : > { %11598 = vmatprep.mubr.bf16.mxu1 %v7840_v41  ;;  %v7848_v45 = vor.u32 %v7847_v53, %v7844_v60  ;;  %v7363_v34 = vrot.slane %v7361_v11, 1  ;;  %v7366_v0 = vrot.slane %v7364_v52, 2  ;;  %v6632_v51 = vadd.f32 %v13340_v46, %v11048_v59  ;;  %v11056_v22 = vpop.f32.mrb[175].mxu1 }
 0x4d9   : > { %v11560_v9 = vpop.f32.mrb[180].mxu0  ;;  %v7856_v4 = vor.u32 %v7855_v5, %v7852_v32  ;;  %v7371_v35 = vrot.slane %v7369_v17, 1  ;;  %v7374_v47 = vrot.slane %v7372_v33, 2  ;;  %v6640_v19 = vadd.f32 %v13340_v46, %v11054_v1 }
 0x4da   : > { %v6792_v16 = vpop.f32.mrb[181].mxu0  ;;  %v11057_v58 = vadd.f32 %v11056_v22, %v11055_v2  ;;  %v6635_v39 = vadd.f32 %v13340_v46, %v11051_v54  ;;  %v7367_v30 = vor.u32 %v7366_v0, %v7363_v34  ;;  %v7561_v50 = vld [vmem:[#allocation2 + $0x80] sm:$0xf0]  ;;  %v7562_v49 = vld [vmem:[#allocation2 + $0x88] sm:$0xf] }
 0x4db   : > { %v6793_v27 = vadd.f32 %v6792_v16, %v6632_v51  ;;  %v11561_v20 = vpop.f32.mrb[182].mxu0  ;;  %v7857_v31 = vsel %vm7721_vm10, %v7848_v45, %v7856_v4  ;;  %v7375_v60 = vor.u32 %v7374_v47, %v7371_v35  ;;  %v7633_v6 = vrot.slane %v7561_v50, 4  ;;  %v7224_v59 = vld [vmem:[#allocation2 + $0x80] sm:$0xfe]  ;;  %v7225_v5 = vld [vmem:[#allocation2 + $0x88] sm:$0x3] }
 0x4dc   : > { %v6801_v3 = vadd.f32 %v11560_v9, %v6640_v19  ;;  %11599 = vmatmul.mubr.bf16.gmra.mrb[204].mxu1 %v7857_v31  ;;  %v6643_v53 = vadd.f32 %v13340_v46, %v11057_v58  ;;  %v6795_v32 = vpop.f32.mrb[183].mxu0  ;;  %v7634_v11 = vrot.slane %v7562_v49, 4  ;;  %v7378_v52 = vshrl.u32 %v7224_v59, 16  ;;  %v11871_v34 = vld [vmem:[#allocation10 + $0x1a0] sm:$0xff]   ;;  %v7706_v49 = vld [vmem:[#allocation2 + $0x88] sm:$0x7f] }
 0x4dd   : > { %v13348_v41 = vadd.f32 %v6793_v27, %v12900_v57  ;;  %v6796_v54 = vadd.f32 %v6795_v32, %v6635_v39  ;;  %v7376_v44 = vsel %vm7240_vm9, %v7367_v30, %v7375_v60  ;;  %v7381_v17 = vshll.u32 %v7224_v59, 16  ;;  %11251 = vmatpush3.bf16.msra.mxu1 %v11871_v34  ;;  %v7705_v58 = vld [vmem:[#allocation2 + $0x80] sm:$0xc0]  ;;  %v11872_v59 = vld [vmem:[#allocation10 + $0x210] sm:$0xff]  }
 0x4de   : > { %v13352_v33 = vadd.f32 %v6801_v3, %v12897_v40  ;;  %v6804_v1 = vadd.f32 %v11561_v20, %v6643_v53  ;;  %8312 = vmatmul.mubr.bf16.gmra.mrb[220].mxu0 %v7376_v44  ;;  %v7635_v2 = vsel %vm1045_vm8, %v7633_v6, %v7634_v11  ;;  %v13355_v45 = vrot.slane %v7378_v52, 1  ;;  %v7563_v6 = vld [vmem:[#allocation2 + $0x90] sm:$0xf0]  ;;  %v7564_v52 = vld [vmem:[#allocation2 + $0x98] sm:$0xf]  ;;  %11622 = vmatprep.subr.bf16.mxu0 %v11872_v59 }
 0x4df   : > { %vm6987_vm14 = vcmp.ge.f32.partialorder %v13348_v41, 0.0  ;;  %v7019_v57 = vmul.f32 0.1, %v13348_v41  ;;  %v13360_v0 = vadd.f32 %v6796_v54, %v12911_v55  ;;  %v11058_v9 = vpop.f32.mrb[176].mxu1  ;;  %8319 = vmatprep.mubr.bf16.mxu0 %v7635_v2  ;;  %v7383_v51 = vrot.slane %v7381_v17, 2  ;;  %11623 = vmatpush3.bf16.msra.mxu0 %v11872_v59 }
 0x4e0   : > { %vm6989_vm1 = vcmp.ge.f32.partialorder %v13352_v33, 0.0  ;;  %v7021_v40 = vmul.f32 0.1, %v13352_v33  ;;  %v13365_v4 = vadd.f32 %v6804_v1, %v12908_v62  ;;  %v11059_v22 = vpop.f32.mrb[177].mxu1  ;;  %v7386_v35 = vshrl.u32 %v7225_v5, 16 }
 0x4e1   : > { %13759 = vst [vmem:[#allocation19_spill] sm:$0xff] %v13360_v0  ;;  %v7051_v47 = vsel %vm6987_vm14, %v13348_v41, %v7019_v57  ;;  %vm6988_vm2 = vcmp.ge.f32.partialorder %v13360_v0, 0.0  ;;  %v7020_v55 = vmul.f32 0.1, %v13360_v0  ;;  %v11060_v19 = vadd.f32 %v11059_v22, %v11058_v9  ;;  %v11061_v16 = vpop.f32.mrb[178].mxu1 }
 0x4e2   : > { %13760 = vst [vmem:[#allocation20_spill] sm:$0xff] %v13365_v4  ;;  %v7053_v39 = vsel %vm6989_vm1, %v13352_v33, %v7021_v40  ;;  %vm6990_vm4 = vcmp.ge.f32.partialorder %v13365_v4, 0.0  ;;  %v7022_v30 = vmul.f32 0.1, %v13365_v4  ;;  %v11062_v62 = vpop.f32.mrb[179].mxu1  ;;  %v7384_v50 = vor.u32 %v7383_v51, %v13355_v45 }
 0x4e3   : > { %v7052_v27 = vsel %vm6988_vm2, %v13360_v0, %v7020_v55  ;;  %v11063_v20 = vadd.f32 %v11062_v62, %v11061_v16  ;;  %v7388_v31 = vrot.slane %v7386_v35, 1  ;;  %v7389_v60 = vshll.u32 %v7225_v5, 16  ;;  %v7707_v2 = vld [vmem:[#allocation2 + $0x90] sm:$0xc0] }
 0x4e4   : > { %v7054_v3 = vsel %vm6990_vm4, %v13365_v4, %v7022_v30  ;;  %v7073_v53 = vpack.c.bf16 %v7052_v27, %v7051_v47  ;;  %v7859_v32 = vshrl.u32 %v7705_v58, 16  ;;  %v7862_v11 = vshll.u32 %v7705_v58, 16  ;;  %v7708_v47 = vld [vmem:[#allocation2 + $0x98] sm:$0x7f] }
 0x4e5   : > { %v7074_v54 = vpack.c.bf16 %v7054_v3, %v7053_v39  ;;  %v7391_v44 = vrot.slane %v7389_v60, 2  ;;  %v7867_v17 = vshrl.u32 %v7706_v49, 16  ;;  %v7870_v1 = vshll.u32 %v7706_v49, 16 }
 0x4e6   : > { %v7105_v45 = vrot.slane %v7073_v53, 4  ;;  %v7861_v34 = vrot.slane %v7859_v32, 6  ;;  %v7864_v57 = vrot.slane %v7862_v11, 7  ;;  %v7636_v9 = vrot.slane %v7563_v6, 4 }
 0x4e7   : > { %v7106_v5 = vrot.slane %v7074_v54, 4  ;;  %v7392_v51 = vor.u32 %v7391_v44, %v7388_v31  ;;  %v7869_v40 = vrot.slane %v7867_v17, 6  ;;  %v7872_v22 = vrot.slane %v7870_v1, 7  ;;  %v11064_v35 = vpop.f32.mrb[180].mxu1  ;;  %v7226_v31 = vld [vmem:[#allocation2 + $0x90] sm:$0xfe] }
 0x4e8   : > { %7147 = vst [vmem:[#allocation2 + $0xa8] ss:$-4 sps:$4 sm:$0xff] %v7105_v45   ;;  %v7865_v55 = vor.u32 %v7864_v57, %v7861_v34  ;;  %v7637_v16 = vrot.slane %v7564_v52, 4  ;;  %v11065_v58 = vpop.f32.mrb[181].mxu1  ;;  %v6648_v39 = vadd.f32 %v13340_v46, %v11060_v19  ;;  %v7876_v30 = vshrl.u32 %v7707_v2, 16 }
 0x4e9   : > { %7149 = vst [vmem:[#allocation2 + $0xb8] ss:$-4 sps:$4 sm:$0xff] %v7106_v5   ;;  %v7393_v62 = vsel %vm7240_vm9, %v7384_v50, %v7392_v51  ;;  %v7873_v49 = vor.u32 %v7872_v22, %v7869_v40  ;;  %v11564_v27 = vpop.f32.mrb[184].mxu0  ;;  %v11066_v60 = vadd.f32 %v11065_v58, %v11064_v35  ;;  %v11067_v6 = vpop.f32.mrb[182].mxu1  ;;  %v7879_v59 = vshll.u32 %v7707_v2, 16 }
 0x4ea   : > { %8320 = vmatmul.mubr.bf16.gmra.mrb[224].mxu0 %v7393_v62  ;;  %v7638_v3 = vsel %vm1045_vm8, %v7636_v9, %v7637_v16  ;;  %v6808_v53 = vpop.f32.mrb[185].mxu0  ;;  %v7878_v32 = vrot.slane %v7876_v30, 6  ;;  %v7884_v11 = vshrl.u32 %v7708_v47, 16  ;;  %v7887_v52 = vshll.u32 %v7708_v47, 16  ;;  %v11068_v54 = vpop.f32.mrb[183].mxu1 }
 0x4eb   : > { %v7874_v19 = vsel %vm7721_vm10, %v7865_v55, %v7873_v49  ;;  %8327 = vmatprep.mubr.bf16.mxu0 %v7638_v3  ;;  %v6656_v44 = vadd.f32 %v13340_v46, %v11066_v60  ;;  %v6809_v50 = vadd.f32 %v6808_v53, %v6648_v39  ;;  %v11565_v17 = vpop.f32.mrb[186].mxu0  ;;  %v7881_v1 = vrot.slane %v7879_v59, 7  ;;  %v7227_v16 = vld [vmem:[#allocation2 + $0x98] sm:$0x3]  ;;  %v13762_v39 = vld [vmem:[#allocation15_spill] sm:$0xff]  ;;  %v13764_v60 = vld [vmem:[#allocation16_spill] sm:$0xff] }
 0x4ec   : > { %11602 = vmatprep.mubr.bf16.mxu1 %v7874_v19  ;;  %v7886_v45 = vrot.slane %v7884_v11, 6  ;;  %v7889_v2 = vrot.slane %v7887_v52, 7  ;;  %v11069_v34 = vadd.f32 %v11068_v54, %v11067_v6  ;;  %v6651_v57 = vadd.f32 %v13340_v46, %v11063_v20  ;;  %v6811_v9 = vpop.f32.mrb[187].mxu0  ;;  %v13766_v54 = vld [vmem:[#allocation17_spill] sm:$0xff] }
 0x4ed   : > { %v6817_v5 = vadd.f32 %v11564_v27, %v6656_v44  ;;  %v13383_v51 = vadd.f32 %v6809_v50, %v12931_v13  ;;  %v7882_v40 = vor.u32 %v7881_v1, %v7878_v32  ;;  %v7395_v22 = vshrl.u32 %v7226_v31, 16 }
 0x4ee   : > { %v7890_v35 = vor.u32 %v7889_v2, %v7886_v45  ;;  %v6659_v47 = vadd.f32 %v13340_v46, %v11069_v34  ;;  %v6812_v55 = vadd.f32 %v6811_v9, %v6651_v57  ;;  %v7398_v58 = vshll.u32 %v7226_v31, 16 }
 0x4ef   : > { %13761 = vst [vmem:[#allocation21_spill] sm:$0xff] %v13383_v51  ;;  %v13387_v30 = vadd.f32 %v6817_v5, %v13762_v39  ;;  %vm6991_vm6 = vcmp.ge.f32.partialorder %v13383_v51, 0.0  ;;  %v7023_v20 = vmul.f32 0.1, %v13383_v51  ;;  %v7397_v62 = vrot.slane %v7395_v22, 1  ;;  %v11070_v49 = vpop.f32.mrb[184].mxu1 }
 0x4f0   : > { %v7891_v13 = vsel %vm7721_vm10, %v7882_v40, %v7890_v35  ;;  %v6820_v27 = vadd.f32 %v11565_v17, %v6659_v47  ;;  %v13393_v6 = vadd.f32 %v6812_v55, %v13764_v60  ;;  %v7400_v59 = vrot.slane %v7398_v58, 2  ;;  %v11071_v3 = vpop.f32.mrb[185].mxu1  ;;  %v7565_v53 = vld [vmem:[#allocation2 + $0xa0] sm:$0xf0]  ;;  %v7566_v17 = vld [vmem:[#allocation2 + $0xa8] sm:$0xf] }
 0x4f1   : > { %13763 = vst [vmem:[#allocation15_spill] sm:$0xff] %v13387_v30  ;;  %vm6993_vm7 = vcmp.ge.f32.partialorder %v13387_v30, 0.0  ;;  %v7025_v31 = vmul.f32 0.1, %v13387_v30  ;;  %v7055_v32 = vsel %vm6991_vm6, %v13383_v51, %v7023_v20  ;;  %11603 = vmatmul.mubr.bf16.gmra.mrb[208].mxu1 %v7891_v13  ;;  %v7403_v11 = vshrl.u32 %v7227_v16, 16  ;;  %v11073_v52 = vpop.f32.mrb[186].mxu1 }
 0x4f2   : > { %13765 = vst [vmem:[#allocation16_spill] sm:$0xff] %v13393_v6  ;;  %v13399_v19 = vadd.f32 %v6820_v27, %v13766_v54  ;;  %vm6992_vm11 = vcmp.ge.f32.partialorder %v13393_v6, 0.0  ;;  %v7024_v44 = vmul.f32 0.1, %v13393_v6  ;;  %v7401_v50 = vor.u32 %v7400_v59, %v7397_v62  ;;  %v11074_v1 = vpop.f32.mrb[187].mxu1 }
 0x4f3   : > { %v7057_v45 = vsel %vm6993_vm7, %v13387_v30, %v7025_v31  ;;  %v7405_v2 = vrot.slane %v7403_v11, 1  ;;  %v7406_v34 = vshll.u32 %v7227_v16, 16  ;;  %v13404_v57 = vadd.f32 %v11071_v3, %v11070_v49  ;;  %v7228_v9 = vld [vmem:[#allocation2 + $0xa0] sm:$0xfe]  ;;  %v7229_v5 = vld [vmem:[#allocation2 + $0xa8] sm:$0x3] }
 0x4f4   : > { %13767 = vst [vmem:[#allocation17_spill] sm:$0xff] %v13399_v19  ;;  %vm6994_vm3 = vcmp.ge.f32.partialorder %v13399_v19, 0.0  ;;  %v7026_v40 = vmul.f32 0.1, %v13399_v19  ;;  %v7056_v22 = vsel %vm6992_vm11, %v13393_v6, %v7024_v44  ;;  %v7639_v35 = vrot.slane %v7565_v53, 4 }
 0x4f5   : > { %v7075_v47 = vpack.c.bf16 %v7056_v22, %v7055_v32  ;;  %v7408_v55 = vrot.slane %v7406_v34, 2  ;;  %v7640_v58 = vrot.slane %v7566_v17, 4  ;;  %v13409_v39 = vadd.f32 %v11074_v1, %v11073_v52  ;;  %v7709_v20 = vld [vmem:[#allocation2 + $0xa0] sm:$0xc0]  ;;  %v7710_v62 = vld [vmem:[#allocation2 + $0xa8] sm:$0x7f] }
 0x4f6   : > { %v7058_v16 = vsel %vm6994_vm3, %v13399_v19, %v7026_v40  ;;  %v7412_v49 = vshrl.u32 %v7228_v9, 16  ;;  %v7415_v13 = vshll.u32 %v7228_v9, 16  ;;  %v7420_v27 = vshrl.u32 %v7229_v5, 16  ;;  %v7567_v60 = vld [vmem:[#allocation2 + $0xb0] sm:$0xf0]  ;;  %v11568_v59 = vpop.f32.mrb[188].mxu0 }
 0x4f7   : > { %v7076_v3 = vpack.c.bf16 %v7058_v16, %v7057_v45  ;;  %v7107_v31 = vrot.slane %v7075_v47, 4  ;;  %v7409_v11 = vor.u32 %v7408_v55, %v7405_v2  ;;  %v7641_v54 = vsel %vm1045_vm8, %v7639_v35, %v7640_v58  ;;  %v7568_v53 = vld [vmem:[#allocation2 + $0xb8] sm:$0xf]  ;;  %v11076_v32 = vpop.f32.mrb[188].mxu1  ;;  %v6824_v44 = vpop.f32.mrb[189].mxu0  ;;  %v11873_v17 = vld [vmem:[#allocation10 + $0x1e8] sm:$0xff]  }
 0x4f8   : > { %v7414_v52 = vrot.slane %v7412_v49, 1  ;;  %v7417_v1 = vrot.slane %v7415_v13, 2  ;;  %v7422_v34 = vrot.slane %v7420_v27, 1  ;;  %v7423_v22 = vshll.u32 %v7229_v5, 16  ;;  %v11077_v6 = vpop.f32.mrb[189].mxu1  ;;  %v13413_v40 = vpop.f32.mrb[190].mxu0  ;;  %11252 = vmatprep.subr.bf16.mxu1 %v11873_v17 }
 0x4f9   : > { %v7108_v9 = vrot.slane %v7076_v3, 4  ;;  %7151 = vst [vmem:[#allocation2 + $0xc8] ss:$-4 sps:$4 sm:$0xff] %v7107_v31   ;;  %v7410_v19 = vsel %vm7240_vm9, %v7401_v50, %v7409_v11  ;;  %v7893_v45 = vshrl.u32 %v7709_v20, 16  ;;  %v7896_v47 = vshll.u32 %v7709_v20, 16  ;;  %v11079_v2 = vpop.f32.mrb[190].mxu1 }
 0x4fa   : > { %v6827_v55 = vpop.f32.mrb[191].mxu0  ;;  %v11874_v35 = vld [vmem:[#allocation10 + $0x1a8] sm:$0xff]   ;;  %8328 = vmatmul.mubr.bf16.gmra.mrb[228].mxu0 %v7410_v19  ;;  %v7418_v58 = vor.u32 %v7417_v1, %v7414_v52  ;;  %v7425_v16 = vrot.slane %v7423_v22, 2  ;;  %v7901_v49 = vshrl.u32 %v7710_v62, 16  ;;  %v7904_v13 = vshll.u32 %v7710_v62, 16  ;;  %v11080_v5 = vpop.f32.mrb[191].mxu1 }
 0x4fb   : > { %v7711_v27 = vld [vmem:[#allocation2 + $0xb0] sm:$0xc0]  ;;  %7153 = vst [vmem:[#allocation2 + $0xd8] ss:$-4 sps:$4 sm:$0xff] %v7108_v9   ;;  %8335 = vmatprep.mubr.bf16.mxu0 %v7641_v54  ;;  %v7895_v30 = vrot.slane %v7893_v45, 6  ;;  %v7898_v3 = vrot.slane %v7896_v47, 7  ;;  %11253 = vmatpush3.bf16.msra.mxu1 %v11874_v35  ;;  %v11078_v4 = vadd.f32 %v11077_v6, %v11076_v32  ;;  %v6664_v62 = vadd.f32 %v13340_v46, %v13404_v57 }
 0x4fc   : > { %v7642_v31 = vrot.slane %v7567_v60, 4  ;;  %v7643_v51 = vrot.slane %v7568_v53, 4  ;;  %v7426_v50 = vor.u32 %v7425_v16, %v7422_v34  ;;  %v7903_v20 = vrot.slane %v7901_v49, 6  ;;  %v7712_v17 = vld [vmem:[#allocation2 + $0xb8] sm:$0x7f]  ;;  %v11875_v53 = vld [vmem:[#allocation10 + $0x1f0] sm:$0xff]  }
 0x4fd   : > { %v7906_v11 = vrot.slane %v7904_v13, 7  ;;  %v7899_v0 = vor.u32 %v7898_v3, %v7895_v30  ;;  %v7910_v52 = vshrl.u32 %v7711_v27, 16  ;;  %v6672_v22 = vadd.f32 %v13340_v46, %v11078_v4  ;;  %v11876_v9 = vld [vmem:[#allocation10 + $0x1b0] sm:$0xff]   ;;  %v11877_v30 = vld [vmem:[#allocation10 + $0x218] sm:$0xff]   ;;  %11254 = vmatprep.subr.bf16.mxu1 %v11875_v53 }
 0x4fe   : > { %v7644_v19 = vsel %vm1045_vm8, %v7642_v31, %v7643_v51  ;;  %v7427_v1 = vsel %vm7240_vm9, %v7418_v58, %v7426_v50  ;;  %v7913_v60 = vshll.u32 %v7711_v27, 16  ;;  %v6825_v34 = vadd.f32 %v6824_v44, %v6664_v62  ;;  %v7230_v32 = vld [vmem:[#allocation2 + $0xb0] sm:$0xfe]  ;;  %11624 = vmatprep.subr.bf16.mxu0 %v11877_v30  ;;  %v7231_v3 = vld [vmem:[#allocation2 + $0xb8] sm:$0x3] }
 0x4ff   : > { %v7907_v54 = vor.u32 %v7906_v11, %v7903_v20  ;;  %v7912_v45 = vrot.slane %v7910_v52, 6  ;;  %v7918_v47 = vshrl.u32 %v7712_v17, 16  ;;  %v7921_v6 = vshll.u32 %v7712_v17, 16  ;;  %11255 = vmatpush3.bf16.msra.mxu1 %v11876_v9  ;;  %11625 = vmatpush3.bf16.msra.mxu0 %v11877_v30  ;;  %v13768_v62 = vld [vmem:[#allocation18_spill] sm:$0xff] }
 0x500   : > { %v6833_v35 = vadd.f32 %v11568_v59, %v6672_v22  ;;  %v7915_v16 = vrot.slane %v7913_v60, 7  ;;  %v11081_v57 = vadd.f32 %v11080_v5, %v11079_v2  ;;  %v13423_v58 = vadd.f32 %v6825_v34, %v12975_v63  ;;  %v7569_v50 = vld [vmem:[#allocation2 + $0xc0] sm:$0xf0]  ;;  %v7233_v22 = vld [vmem:[#allocation2 + $0xc8] sm:$0x3] }
 0x501   : > { %v7908_v51 = vsel %vm7721_vm10, %v7899_v0, %v7907_v54  ;;  %v7920_v4 = vrot.slane %v7918_v47, 6  ;;  %v7923_v49 = vrot.slane %v7921_v6, 7  ;;  %v6667_v44 = vadd.f32 %v13340_v46, %v13409_v39 }
 0x502   : > { %11606 = vmatprep.mubr.bf16.mxu1 %v7908_v51  ;;  %8336 = vmatmul.mubr.bf16.gmra.mrb[232].mxu0 %v7427_v1  ;;  %v13428_v13 = vadd.f32 %v6833_v35, %v12981_v48  ;;  %v7916_v27 = vor.u32 %v7915_v16, %v7912_v45  ;;  %v6675_v0 = vadd.f32 %v13340_v46, %v11081_v57  ;;  %v7429_v59 = vshrl.u32 %v7230_v32, 16 }
 0x503   : > { %8343 = vmatprep.mubr.bf16.mxu0 %v7644_v19  ;;  %vm6995_vm5 = vcmp.ge.f32.partialorder %v13423_v58, 0.0  ;;  %v7027_v63 = vmul.f32 0.1, %v13423_v58  ;;  %v7924_v2 = vor.u32 %v7923_v49, %v7920_v4  ;;  %v6828_v5 = vadd.f32 %v6827_v55, %v6667_v44  ;;  %v7570_v19 = vld [vmem:[#allocation2 + $0xc8] sm:$0xf] }
 0x504   : > { %vm6997_vm12 = vcmp.ge.f32.partialorder %v13428_v13, 0.0  ;;  %v7029_v39 = vmul.f32 0.1, %v13428_v13  ;;  %v6836_v48 = vadd.f32 %v13413_v40, %v6675_v0  ;;  %v7431_v31 = vrot.slane %v7429_v59, 1  ;;  %v7232_v40 = vld [vmem:[#allocation2 + $0xc0] sm:$0xfe] }
 0x505   : > { %v7059_v46 = vsel %vm6995_vm5, %v13423_v58, %v7027_v63  ;;  %v7925_v20 = vsel %vm7721_vm10, %v7916_v27, %v7924_v2  ;;  %v13439_v11 = vadd.f32 %v6828_v5, %v12995_v25  ;;  %v7432_v17 = vshll.u32 %v7230_v32, 16  ;;  %v7713_v4 = vld [vmem:[#allocation2 + $0xc0] sm:$0xc0]  ;;  %v7714_v59 = vld [vmem:[#allocation2 + $0xc8] sm:$0x7f] }
 0x506   : > { %v7061_v55 = vsel %vm6997_vm12, %v13428_v13, %v7029_v39  ;;  %11607 = vmatmul.mubr.bf16.gmra.mrb[212].mxu1 %v7925_v20  ;;  %v13443_v52 = vadd.f32 %v6836_v48, %v13768_v62  ;;  %v7437_v1 = vshrl.u32 %v7231_v3, 16  ;;  %v7440_v54 = vshll.u32 %v7231_v3, 16  ;;  %v7571_v63 = vld [vmem:[#allocation2 + $0xd0] sm:$0xf0]  ;;  %v7572_v48 = vld [vmem:[#allocation2 + $0xd8] sm:$0xf] }
 0x507   : > { %vm6996_vm13 = vcmp.ge.f32.partialorder %v13439_v11, 0.0  ;;  %v7028_v60 = vmul.f32 0.1, %v13439_v11  ;;  %v7434_v53 = vrot.slane %v7432_v17, 2  ;;  %v7645_v9 = vrot.slane %v7569_v50, 4 }
 0x508   : > { %vm6998_vm14 = vcmp.ge.f32.partialorder %v13443_v52, 0.0  ;;  %v7030_v25 = vmul.f32 0.1, %v13443_v52  ;;  %v7439_v34 = vrot.slane %v7437_v1, 1  ;;  %v7442_v45 = vrot.slane %v7440_v54, 2 }
 0x509   : > { %v7060_v47 = vsel %vm6996_vm13, %v13439_v11, %v7028_v60  ;;  %v7435_v6 = vor.u32 %v7434_v53, %v7431_v31  ;;  %v7646_v32 = vrot.slane %v7570_v19, 4  ;;  %v7446_v30 = vshrl.u32 %v7232_v40, 16  ;;  %v7715_v17 = vld [vmem:[#allocation2 + $0xd0] sm:$0xc0]  ;;  %v7716_v54 = vld [vmem:[#allocation2 + $0xd8] sm:$0x7f] }
 0x50a   : > { %v7062_v51 = vsel %vm6998_vm14, %v13443_v52, %v7030_v25  ;;  %v7077_v35 = vpack.c.bf16 %v7060_v47, %v7059_v46  ;;  %v7443_v16 = vor.u32 %v7442_v45, %v7439_v34  ;;  %v7449_v57 = vshll.u32 %v7232_v40, 16 }
 0x50b   : > { %v7078_v49 = vpack.c.bf16 %v7062_v51, %v7061_v55  ;;  %v7647_v44 = vsel %vm1045_vm8, %v7645_v9, %v7646_v32  ;;  %v7448_v27 = vrot.slane %v7446_v30, 1  ;;  %v7454_v0 = vshrl.u32 %v7233_v22, 16  ;;  %v11879_v32 = vld [vmem:[#allocation10 + $0x1b8] sm:$0xff]   ;;  %v11880_v30 = vld [vmem:[#allocation10 + $0x220] sm:$0xff]  }
 0x50c   : > { %v7109_v2 = vrot.slane %v7077_v35, 4  ;;  %v7444_v5 = vsel %vm7240_vm9, %v7435_v6, %v7443_v16  ;;  %v7451_v3 = vrot.slane %v7449_v57, 2  ;;  %v7457_v39 = vshll.u32 %v7233_v22, 16  ;;  %v7234_v22 = vld [vmem:[#allocation2 + $0xd0] sm:$0xfe]  ;;  %v11878_v6 = vld [vmem:[#allocation10 + $0x1f8] sm:$0xff]   ;;  %11626 = vmatprep.subr.bf16.mxu0 %v11880_v30 }
 0x50d   : > { %v7110_v31 = vrot.slane %v7078_v49, 4  ;;  %8344 = vmatmul.mubr.bf16.gmra.mrb[236].mxu0 %v7444_v5  ;;  %v7456_v50 = vrot.slane %v7454_v0, 1  ;;  %v7927_v46 = vshrl.u32 %v7713_v4, 16  ;;  %v7930_v20 = vshll.u32 %v7713_v4, 16  ;;  %v7235_v4 = vld [vmem:[#allocation2 + $0xd8] sm:$0x3]  ;;  %11256 = vmatprep.subr.bf16.mxu1 %v11878_v6 }
 0x50e   : > { %7155 = vst [vmem:[#allocation2 + $0xe8] ss:$-4 sps:$4 sm:$0xff] %v7109_v2   ;;  %8351 = vmatprep.mubr.bf16.mxu0 %v7647_v44  ;;  %v7452_v19 = vor.u32 %v7451_v3, %v7448_v27  ;;  %v7459_v55 = vrot.slane %v7457_v39, 2  ;;  %v7935_v62 = vshrl.u32 %v7714_v59, 16  ;;  %v7938_v1 = vshll.u32 %v7714_v59, 16  ;;  %11257 = vmatpush3.bf16.msra.mxu1 %v11879_v32 }
 0x50f   : > { %7157 = vst [vmem:[#allocation2 + $0xf8] ss:$-4 sps:$4 sm:$0xff] %v7110_v31   ;;  %v7929_v40 = vrot.slane %v7927_v46, 6  ;;  %v7932_v60 = vrot.slane %v7930_v20, 7  ;;  %v7648_v53 = vrot.slane %v7571_v63, 4  ;;  %v7649_v9 = vrot.slane %v7572_v48, 4  ;;  %11627 = vmatpush3.bf16.msra.mxu0 %v11880_v30 }
 0x510   : > { %v7460_v25 = vor.u32 %v7459_v55, %v7456_v50  ;;  %v7937_v34 = vrot.slane %v7935_v62, 6  ;;  %v7940_v45 = vrot.slane %v7938_v1, 7  ;;  %v7944_v47 = vshrl.u32 %v7715_v17, 16 }
 0x511   : > { %v7933_v51 = vor.u32 %v7932_v60, %v7929_v40  ;;  %v7650_v35 = vsel %vm1045_vm8, %v7648_v53, %v7649_v9  ;;  %v7947_v16 = vshll.u32 %v7715_v17, 16  ;;  %v7952_v57 = vshrl.u32 %v7716_v54, 16 }
 0x512   : > { %v7461_v49 = vsel %vm7240_vm9, %v7452_v19, %v7460_v25  ;;  %v7941_v44 = vor.u32 %v7940_v45, %v7937_v34  ;;  %v7946_v27 = vrot.slane %v7944_v47, 6  ;;  %v7955_v0 = vshll.u32 %v7716_v54, 16  ;;  %v11881_v34 = vld [vmem:[#allocation10 + $0x228] sm:$0xff]  }
 0x513   : > { %v7949_v59 = vrot.slane %v7947_v16, 7  ;;  %v7954_v63 = vrot.slane %v7952_v57, 6  ;;  %v7463_v2 = vshrl.u32 %v7234_v22, 16  ;;  %v7466_v5 = vshll.u32 %v7234_v22, 16  ;;  %11628 = vmatprep.subr.bf16.mxu0 %v11881_v34 }
 0x514   : > { %v7942_v3 = vsel %vm7721_vm10, %v7933_v51, %v7941_v44  ;;  %v7957_v39 = vrot.slane %v7955_v0, 7  ;;  %v7471_v48 = vshrl.u32 %v7235_v4, 16  ;;  %v7474_v31 = vshll.u32 %v7235_v4, 16  ;;  %11629 = vmatpush3.bf16.msra.mxu0 %v11881_v34 }
 0x515   : > { %8352 = vmatmul.mubr.bf16.gmra.mrb[240].mxu0 %v7461_v49  ;;  %11610 = vmatprep.mubr.bf16.mxu1 %v7942_v3  ;;  %v7950_v50 = vor.u32 %v7949_v59, %v7946_v27  ;;  %v7465_v46 = vrot.slane %v7463_v2, 1  ;;  %v7468_v20 = vrot.slane %v7466_v5, 2  ;;  %v7573_v17 = vld [vmem:[#allocation2 + $0xe0] sm:$0xf0]  ;;  %v7574_v19 = vld [vmem:[#allocation2 + $0xe8] sm:$0xf] }
 0x516   : > { %8359 = vmatprep.mubr.bf16.mxu0 %v7650_v35  ;;  %v7958_v55 = vor.u32 %v7957_v39, %v7954_v63  ;;  %v7473_v62 = vrot.slane %v7471_v48, 1  ;;  %v7476_v1 = vrot.slane %v7474_v31, 2  ;;  %v7651_v54 = vrot.slane %v7573_v17, 4  ;;  %v7236_v40 = vld [vmem:[#allocation2 + $0xe0] sm:$0xfe]  ;;  %v11882_v49 = vld [vmem:[#allocation10 + $0x230] sm:$0xff]  }
 0x517   : > { %v7469_v60 = vor.u32 %v7468_v20, %v7465_v46  ;;  %v7652_v53 = vrot.slane %v7574_v19, 4  ;;  %v7237_v9 = vld [vmem:[#allocation2 + $0xe8] sm:$0x3]  ;;  %v7480_v22 = vshrl.u32 %v7236_v40, 16  ;;  %v7483_v25 = vshll.u32 %v7236_v40, 16  ;;  %11630 = vmatprep.subr.bf16.mxu0 %v11882_v49  ;;  %v11883_v48 = vld [vmem:[#allocation10 + $0x238] sm:$0xff]  }
 0x518   : > { %v7959_v45 = vsel %vm7721_vm10, %v7950_v50, %v7958_v55  ;;  %v7477_v47 = vor.u32 %v7476_v1, %v7473_v62  ;;  %v7488_v6 = vshrl.u32 %v7237_v9, 16  ;;  %v7491_v32 = vshll.u32 %v7237_v9, 16  ;;  %v7717_v30 = vld [vmem:[#allocation2 + $0xe0] sm:$0xc0]  ;;  %v7718_v51 = vld [vmem:[#allocation2 + $0xe8] sm:$0x7f]  ;;  %11631 = vmatpush3.bf16.msra.mxu0 %v11882_v49 }
 0x519   : > { %11611 = vmatmul.mubr.bf16.gmra.mrb[216].mxu1 %v7959_v45  ;;  %v7482_v35 = vrot.slane %v7480_v22, 1  ;;  %v7485_v16 = vrot.slane %v7483_v25, 2  ;;  %v7961_v57 = vshrl.u32 %v7717_v30, 16  ;;  %v7575_v4 = vld [vmem:[#allocation2 + $0xf0] sm:$0xf0]  ;;  %v7964_v0 = vshll.u32 %v7717_v30, 16  ;;  %11632 = vmatprep.subr.bf16.mxu0 %v11883_v48 }
 0x51a   : > { %v7490_v44 = vrot.slane %v7488_v6, 1  ;;  %v7493_v27 = vrot.slane %v7491_v32, 2  ;;  %v7576_v59 = vld [vmem:[#allocation2 + $0xf8] sm:$0xf]  ;;  %v7653_v63 = vsel %vm1045_vm8, %v7651_v54, %v7652_v53  ;;  %v7969_v5 = vshrl.u32 %v7718_v51, 16 }
 0x51b   : > { %v7963_v2 = vrot.slane %v7961_v57, 6  ;;  %v7972_v3 = vshll.u32 %v7718_v51, 16  ;;  %v7719_v39 = vld [vmem:[#allocation2 + $0xf0] sm:$0xc0]  ;;  %v7478_v31 = vsel %vm7240_vm9, %v7469_v60, %v7477_v47  ;;  %v7486_v50 = vor.u32 %v7485_v16, %v7482_v35  ;;  %v7720_v17 = vld [vmem:[#allocation2 + $0xf8] sm:$0x7f] }
 0x51c   : > { %v7494_v46 = vor.u32 %v7493_v27, %v7490_v44  ;;  %v7966_v20 = vrot.slane %v7964_v0, 7  ;;  %v7971_v19 = vrot.slane %v7969_v5, 6  ;;  %v7978_v62 = vshrl.u32 %v7719_v39, 16  ;;  %v7238_v40 = vld [vmem:[#allocation2 + $0xf0] sm:$0xfe]  ;;  %11633 = vmatpush3.bf16.msra.mxu0 %v11883_v48 }
 0x51d   : > { %8360 = vmatmul.mubr.bf16.gmra.mrb[244].mxu0 %v7478_v31  ;;  %v7974_v55 = vrot.slane %v7972_v3, 7  ;;  %v7981_v1 = vshll.u32 %v7719_v39, 16  ;;  %v7654_v53 = vrot.slane %v7575_v4, 4  ;;  %v7655_v9 = vrot.slane %v7576_v59, 4  ;;  %v7239_v25 = vld [vmem:[#allocation2 + $0xf8] sm:$0x3] }
 0x51e   : > { %8367 = vmatprep.mubr.bf16.mxu0 %v7653_v63  ;;  %v7967_v54 = vor.u32 %v7966_v20, %v7963_v2  ;;  %v7986_v22 = vshrl.u32 %v7720_v17, 16  ;;  %v7980_v45 = vrot.slane %v7978_v62, 6  ;;  %v7989_v47 = vshll.u32 %v7720_v17, 16 }
 0x51f   : > { %v7975_v34 = vor.u32 %v7974_v55, %v7971_v19  ;;  %v7983_v60 = vrot.slane %v7981_v1, 7  ;;  %v7497_v32 = vshrl.u32 %v7238_v40, 16  ;;  %v7500_v30 = vshll.u32 %v7238_v40, 16  ;;  %v13467_v55 = vld [vmem:[%s13729_s3 + $0x2] ss:$0 sm:$0xff] }
 0x520   : > { %v7988_v6 = vrot.slane %v7986_v22, 6  ;;  %v7505_v51 = vshrl.u32 %v7239_v25, 16  ;;  %v7991_v57 = vrot.slane %v7989_v47, 7  ;;  %v7508_v44 = vshll.u32 %v7239_v25, 16 }
 0x521   : > { %v7976_v35 = vsel %vm7721_vm10, %v7967_v54, %v7975_v34  ;;  %v7984_v16 = vor.u32 %v7983_v60, %v7980_v45  ;;  %v7495_v4 = vsel %vm7240_vm9, %v7486_v50, %v7494_v46  ;;  %v7656_v49 = vsel %vm1045_vm8, %v7654_v53, %v7655_v9 }
 0x522   : > { %11614 = vmatprep.mubr.bf16.mxu1 %v7976_v35  ;;  %v7992_v27 = vor.u32 %v7991_v57, %v7988_v6  ;;  %v7499_v0 = vrot.slane %v7497_v32, 1  ;;  %v7502_v59 = vrot.slane %v7500_v30, 2  ;;  %v7507_v63 = vrot.slane %v7505_v51, 1 }
 0x523   : > { %v7510_v2 = vrot.slane %v7508_v44, 2 }
 0x524   : > { %v7993_v5 = vsel %vm7721_vm10, %v7984_v16, %v7992_v27  ;;  %v7503_v3 = vor.u32 %v7502_v59, %v7499_v0 }
 0x525   : > { %8368 = vmatmul.mubr.bf16.gmra.mrb[248].mxu0 %v7495_v4  ;;  %11615 = vmatmul.mubr.bf16.gmra.mrb[220].mxu1 %v7993_v5  ;;  %v7511_v39 = vor.u32 %v7510_v2, %v7507_v63 }
 0x526   : > { %8375 = vmatprep.mubr.bf16.mxu0 %v7656_v49 }
 0x527   : > { %v7512_v31 = vsel %vm7240_vm9, %v7503_v3, %v7511_v39 }
 0x52d   : > { %8376 = vmatmul.mubr.bf16.gmra.mrb[252].mxu0 %v7512_v31 }
 0x55e   : > { %v11122_v50 = vpop.f32.mrb[192].mxu0 }
 0x55f   : > { %v11123_v46 = vpop.f32.mrb[193].mxu0 }
 0x560   : > { %v11124_v48 = vadd.f32 %v11123_v46, %v11122_v50  ;;  %v11125_v20 = vpop.f32.mrb[194].mxu0 }
 0x561   : > { %v11126_v17 = vpop.f32.mrb[195].mxu0 }
 0x562   : > { %v11127_v19 = vadd.f32 %v11126_v17, %v11125_v20  ;;  %v8258_v62 = vadd.f32 %v11124_v48, %v13467_v55 }
 0x564   : > { %v8261_v40 = vadd.f32 %v11127_v19, %v13467_v55 }
 0x56a   : > { %v11588_v1 = vpop.f32.mrb[192].mxu1 }
 0x56b   : > { %v8418_v54 = vpop.f32.mrb[193].mxu1 }
 0x56c   : > { %v8419_v53 = vadd.f32 %v8418_v54, %v8258_v62  ;;  %v11589_v9 = vpop.f32.mrb[194].mxu1 }
 0x56d   : > { %v8421_v22 = vpop.f32.mrb[195].mxu1  ;;  %v11128_v25 = vpop.f32.mrb[196].mxu0 }
 0x56e   : > { %v8577_v34 = vmul.f32 0.1, %v8419_v53  ;;  %v8422_v45 = vadd.f32 %v8421_v22, %v8261_v40  ;;  %v11129_v60 = vpop.f32.mrb[197].mxu0  ;;  %vm8545_vm9 = vcmp.ge.f32.partialorder %v8419_v53, 0.0 }
 0x56f   : > { %v11130_v47 = vadd.f32 %v11129_v60, %v11128_v25  ;;  %v11131_v6 = vpop.f32.mrb[198].mxu0 }
 0x570   : > { %vm8546_vm10 = vcmp.ge.f32.partialorder %v8422_v45, 0.0  ;;  %v8578_v32 = vmul.f32 0.1, %v8422_v45  ;;  %v11132_v30 = vpop.f32.mrb[199].mxu0  ;;  %v8609_v16 = vsel %vm8545_vm9, %v8419_v53, %v8577_v34 }
 0x571   : > { %v8266_v51 = vadd.f32 %v11130_v47, %v13467_v55  ;;  %v11133_v35 = vadd.f32 %v11132_v30, %v11131_v6 }
 0x572   : > { %v8610_v57 = vsel %vm8546_vm10, %v8422_v45, %v8578_v32 }
 0x573   : > { %v8641_v44 = vpack.c.bf16 %v8610_v57, %v8609_v16  ;;  %v8427_v4 = vadd.f32 %v11588_v1, %v8266_v51  ;;  %v8269_v49 = vadd.f32 %v11133_v35, %v13467_v55 }
 0x575   : > { %v8673_v27 = vrot.slane %v8641_v44, 4  ;;  %v8579_v0 = vmul.f32 0.1, %v8427_v4  ;;  %v8430_v59 = vadd.f32 %v11589_v9, %v8269_v49  ;;  %vm8547_vm1 = vcmp.ge.f32.partialorder %v8427_v4, 0.0 }
 0x577   : > { %8705 = vst [vmem:[#allocation2 + $0x8] ss:$-4 sps:$4 sm:$0xff] %v8673_v27   ;;  %vm8548_vm2 = vcmp.ge.f32.partialorder %v8430_v59, 0.0  ;;  %v8580_v63 = vmul.f32 0.1, %v8430_v59  ;;  %v8611_v2 = vsel %vm8547_vm1, %v8427_v4, %v8579_v0 }
 0x579   : > { %v8612_v5 = vsel %vm8548_vm2, %v8430_v59, %v8580_v63 }
 0x57a   : > { %v8642_v3 = vpack.c.bf16 %v8612_v5, %v8611_v2 }
 0x57c   : > { %v11134_v39 = vpop.f32.mrb[200].mxu0  ;;  %v8674_v31 = vrot.slane %v8642_v3, 4 }
 0x57d   : > { %v11135_v50 = vpop.f32.mrb[201].mxu0 }
 0x57e   : > { %v11136_v46 = vadd.f32 %v11135_v50, %v11134_v39  ;;  %v11137_v48 = vpop.f32.mrb[202].mxu0  ;;  %8707 = vst [vmem:[#allocation2 + $0x18] ss:$-4 sps:$4 sm:$0xff] %v8674_v31   ;;  %v9122_v17 = vld [vmem:[#allocation2] sm:$0xf0] }
 0x57f   : > { %v11138_v20 = vpop.f32.mrb[203].mxu0  ;;  %v9123_v19 = vld [vmem:[#allocation2 + $0x8] sm:$0xf]  ;;  %v9186_v40 = vrot.slane %v9122_v17, 4  ;;  %v8786_v53 = vld [vmem:[#allocation2] sm:$0xf8] }
 0x580   : > { %v11139_v62 = vadd.f32 %v11138_v20, %v11137_v48  ;;  %v8274_v1 = vadd.f32 %v11136_v46, %v13467_v55  ;;  %v9187_v54 = vrot.slane %v9123_v19, 4  ;;  %v8787_v9 = vld [vmem:[#allocation2 + $0x8] sm:$0xf]  ;;  %v8819_v22 = vshrl.u32 %v8786_v53, 16  ;;  %v9266_v60 = vld [vmem:[#allocation2] sm:$0xf0] }
 0x581   : > { %v8822_v25 = vshll.u32 %v8786_v53, 16  ;;  %v8827_v34 = vshrl.u32 %v8787_v9, 16  ;;  %v8830_v45 = vshll.u32 %v8787_v9, 16  ;;  %v9267_v32 = vld [vmem:[#allocation2 + $0x8] sm:$0x1f]  ;;  %v9299_v30 = vshrl.u32 %v9266_v60, 16 }
 0x582   : > { %v8277_v47 = vadd.f32 %v11139_v62, %v13467_v55  ;;  %v9188_v6 = vsel %vm1045_vm8, %v9186_v40, %v9187_v54  ;;  %v9302_v51 = vshll.u32 %v9266_v60, 16  ;;  %v8821_v35 = vrot.slane %v8819_v22, 3 }
 0x583   : > { %9831 = vmatprep.mubr.bf16.mxu1 %v9188_v6  ;;  %v8824_v16 = vrot.slane %v8822_v25, 4  ;;  %v8829_v57 = vrot.slane %v8827_v34, 3  ;;  %v8832_v44 = vrot.slane %v8830_v45, 4  ;;  %v11592_v4 = vpop.f32.mrb[196].mxu1  ;;  %v9301_v49 = vrot.slane %v9299_v30, 4 }
 0x584   : > { %v9304_v27 = vrot.slane %v9302_v51, 5  ;;  %v9307_v0 = vshrl.u32 %v9267_v32, 16  ;;  %v9310_v59 = vshll.u32 %v9267_v32, 16  ;;  %v8434_v63 = vpop.f32.mrb[197].mxu1  ;;  %v11140_v31 = vpop.f32.mrb[204].mxu0 }
 0x585   : > { %v8825_v2 = vor.u32 %v8824_v16, %v8821_v35  ;;  %v8833_v5 = vor.u32 %v8832_v44, %v8829_v57  ;;  %v8435_v3 = vadd.f32 %v8434_v63, %v8274_v1  ;;  %v11593_v39 = vpop.f32.mrb[198].mxu1  ;;  %v9124_v48 = vld [vmem:[#allocation2 + $0x10] sm:$0xf0]  ;;  %v11141_v17 = vpop.f32.mrb[205].mxu0  ;;  %v9125_v40 = vld [vmem:[#allocation2 + $0x18] sm:$0xf] }
 0x586   : > { %v9309_v50 = vrot.slane %v9307_v0, 4  ;;  %v9312_v46 = vrot.slane %v9310_v59, 5  ;;  %v8437_v20 = vpop.f32.mrb[199].mxu1  ;;  %v9305_v62 = vor.u32 %v9304_v27, %v9301_v49  ;;  %v9189_v54 = vrot.slane %v9124_v48, 4  ;;  %v11143_v25 = vpop.f32.mrb[206].mxu0 }
 0x587   : > { %v8834_v19 = vsel %vm676_vm15, %v8825_v2, %v8833_v5  ;;  %vm8549_vm4 = vcmp.ge.f32.partialorder %v8435_v3, 0.0  ;;  %v8581_v53 = vmul.f32 0.1, %v8435_v3  ;;  %v8438_v9 = vadd.f32 %v8437_v20, %v8277_v47  ;;  %v8788_v34 = vld [vmem:[#allocation2 + $0x10] sm:$0xf8]  ;;  %v11144_v1 = vpop.f32.mrb[207].mxu0 }
 0x588   : > { %v11142_v22 = vadd.f32 %v11141_v17, %v11140_v31  ;;  %9832 = vmatmul.mubr.bf16.vlgmr.msra.gmra.mrb[224].mxu1 %v8834_v19  ;;  %v9313_v45 = vor.u32 %v9312_v46, %v9309_v50  ;;  %v9190_v60 = vrot.slane %v9125_v40, 4  ;;  %v8789_v6 = vld [vmem:[#allocation2 + $0x18] sm:$0xf]  ;;  %v8836_v32 = vshrl.u32 %v8788_v34, 16  ;;  %v9268_v57 = vld [vmem:[#allocation2 + $0x10] sm:$0xf0] }
 0x589   : > { %v8839_v30 = vshll.u32 %v8788_v34, 16  ;;  %v8613_v51 = vsel %vm8549_vm4, %v8435_v3, %v8581_v53  ;;  %vm8550_vm6 = vcmp.ge.f32.partialorder %v8438_v9, 0.0  ;;  %v8582_v35 = vmul.f32 0.1, %v8438_v9  ;;  %v9269_v50 = vld [vmem:[#allocation2 + $0x18] sm:$0x1f] }
 0x58a   : > { %v8282_v16 = vadd.f32 %v11142_v22, %v13467_v55  ;;  %v11145_v44 = vadd.f32 %v11144_v1, %v11143_v25  ;;  %v9314_v49 = vsel %vm1158_vm0, %v9305_v62, %v9313_v45  ;;  %v9191_v47 = vsel %vm1045_vm8, %v9189_v54, %v9190_v60 }
 0x58b   : > { %v8838_v27 = vrot.slane %v8836_v32, 3  ;;  %v8614_v0 = vsel %vm8550_vm6, %v8438_v9, %v8582_v35  ;;  %11634 = vmatprep.mubr.bf16.mxu0 %v9314_v49  ;;  %9839 = vmatprep.mubr.bf16.mxu1 %v9191_v47  ;;  %v8841_v63 = vrot.slane %v8839_v30, 4  ;;  %v8844_v2 = vshrl.u32 %v8789_v6, 16 }
 0x58c   : > { %v8443_v59 = vadd.f32 %v11592_v4, %v8282_v16  ;;  %v8643_v5 = vpack.c.bf16 %v8614_v0, %v8613_v51  ;;  %v8285_v3 = vadd.f32 %v11145_v44, %v13467_v55  ;;  %v8847_v31 = vshll.u32 %v8789_v6, 16 }
 0x58d   : > { %v9316_v46 = vshrl.u32 %v9268_v57, 16  ;;  %v8846_v20 = vrot.slane %v8844_v2, 3  ;;  %v8842_v62 = vor.u32 %v8841_v63, %v8838_v27  ;;  %v9319_v53 = vshll.u32 %v9268_v57, 16 }
 0x58e   : > { %vm8551_vm7 = vcmp.ge.f32.partialorder %v8443_v59, 0.0  ;;  %v8583_v48 = vmul.f32 0.1, %v8443_v59  ;;  %v8675_v17 = vrot.slane %v8643_v5, 4  ;;  %v8446_v19 = vadd.f32 %v11593_v39, %v8285_v3 }
 0x58f   : > { %v8849_v40 = vrot.slane %v8847_v31, 4  ;;  %v9318_v54 = vrot.slane %v9316_v46, 4  ;;  %v9324_v4 = vshrl.u32 %v9269_v50, 16  ;;  %v9327_v9 = vshll.u32 %v9269_v50, 16 }
 0x590   : > { %8709 = vst [vmem:[#allocation2 + $0x28] ss:$-4 sps:$4 sm:$0xff] %v8675_v17   ;;  %vm8552_vm11 = vcmp.ge.f32.partialorder %v8446_v19, 0.0  ;;  %v8584_v22 = vmul.f32 0.1, %v8446_v19  ;;  %v11146_v34 = vpop.f32.mrb[208].mxu0  ;;  %v8615_v6 = vsel %vm8551_vm7, %v8443_v59, %v8583_v48 }
 0x591   : > { %v8850_v25 = vor.u32 %v8849_v40, %v8846_v20  ;;  %v9321_v1 = vrot.slane %v9319_v53, 5  ;;  %v9326_v45 = vrot.slane %v9324_v4, 4  ;;  %v9329_v60 = vrot.slane %v9327_v9, 5  ;;  %v11147_v30 = vpop.f32.mrb[209].mxu0 }
 0x592   : > { %v8616_v32 = vsel %vm8552_vm11, %v8446_v19, %v8584_v22  ;;  %v11148_v35 = vadd.f32 %v11147_v30, %v11146_v34  ;;  %v11149_v16 = vpop.f32.mrb[210].mxu0 }
 0x593   : > { %v8851_v39 = vsel %vm676_vm15, %v8842_v62, %v8850_v25  ;;  %v8644_v51 = vpack.c.bf16 %v8616_v32, %v8615_v6  ;;  %v9322_v57 = vor.u32 %v9321_v1, %v9318_v54  ;;  %v9330_v44 = vor.u32 %v9329_v60, %v9326_v45  ;;  %v11150_v49 = vpop.f32.mrb[211].mxu0 }
 0x594   : > { %9840 = vmatmul.mubr.bf16.gmra.mrb[228].mxu1 %v8851_v39  ;;  %v11151_v27 = vadd.f32 %v11150_v49, %v11149_v16  ;;  %v8290_v63 = vadd.f32 %v11148_v35, %v13467_v55 }
 0x595   : > { %v8676_v47 = vrot.slane %v8644_v51, 4  ;;  %v9331_v0 = vsel %vm1158_vm0, %v9322_v57, %v9330_v44 }
 0x596   : > { %11635 = vmatmul.mubr.bf16.vlgmr.msra.gmra.mrb[0].mxu0 %v9331_v0  ;;  %v8293_v17 = vadd.f32 %v11151_v27, %v13467_v55 }
 0x597   : > { %8711 = vst [vmem:[#allocation2 + $0x38] ss:$-4 sps:$4 sm:$0xff] %v8676_v47   ;;  %v9126_v59 = vld [vmem:[#allocation2 + $0x20] sm:$0xf0]  ;;  %v9127_v2 = vld [vmem:[#allocation2 + $0x28] sm:$0xf] }
 0x598   : > { %v8790_v5 = vld [vmem:[#allocation2 + $0x20] sm:$0xf8]  ;;  %v9192_v3 = vrot.slane %v9126_v59, 4  ;;  %v9193_v31 = vrot.slane %v9127_v2, 4  ;;  %v8791_v50 = vld [vmem:[#allocation2 + $0x28] sm:$0xf] }
 0x599   : > { %v8853_v46 = vshrl.u32 %v8790_v5, 16  ;;  %v8856_v48 = vshll.u32 %v8790_v5, 16  ;;  %v11596_v20 = vpop.f32.mrb[200].mxu1  ;;  %v8861_v19 = vshrl.u32 %v8791_v50, 16  ;;  %v8864_v62 = vshll.u32 %v8791_v50, 16 }
 0x59a   : > { %v9270_v40 = vld [vmem:[#allocation2 + $0x20] sm:$0xf0]  ;;  %v8450_v54 = vpop.f32.mrb[201].mxu1  ;;  %v9194_v53 = vsel %vm1045_vm8, %v9192_v3, %v9193_v31  ;;  %v9271_v22 = vld [vmem:[#allocation2 + $0x28] sm:$0x1f] }
 0x59b   : > { %v8855_v4 = vrot.slane %v8853_v46, 3  ;;  %v8858_v9 = vrot.slane %v8856_v48, 4  ;;  %v9333_v25 = vshrl.u32 %v9270_v40, 16  ;;  %v8451_v34 = vadd.f32 %v8450_v54, %v8290_v63  ;;  %v11597_v1 = vpop.f32.mrb[202].mxu1  ;;  %9847 = vmatprep.mubr.bf16.mxu1 %v9194_v53 }
 0x59c   : > { %v8863_v45 = vrot.slane %v8861_v19, 3  ;;  %v8866_v60 = vrot.slane %v8864_v62, 4  ;;  %v9336_v6 = vshll.u32 %v9270_v40, 16  ;;  %v8453_v32 = vpop.f32.mrb[203].mxu1  ;;  %v9341_v51 = vshrl.u32 %v9271_v22, 16 }
 0x59d   : > { %v8859_v30 = vor.u32 %v8858_v9, %v8855_v4  ;;  %v9335_v39 = vrot.slane %v9333_v25, 4  ;;  %v9344_v35 = vshll.u32 %v9271_v22, 16  ;;  %vm8553_vm3 = vcmp.ge.f32.partialorder %v8451_v34, 0.0 }
 0x59e   : > { %v8585_v16 = vmul.f32 0.1, %v8451_v34  ;;  %v8454_v57 = vadd.f32 %v8453_v32, %v8293_v17  ;;  %v8867_v44 = vor.u32 %v8866_v60, %v8863_v45  ;;  %v11152_v49 = vpop.f32.mrb[212].mxu0  ;;  %v9338_v47 = vrot.slane %v9336_v6, 5  ;;  %v9128_v59 = vld [vmem:[#allocation2 + $0x30] sm:$0xf0] }
 0x59f   : > { %v9343_v27 = vrot.slane %v9341_v51, 4  ;;  %v9346_v0 = vrot.slane %v9344_v35, 5  ;;  %v11153_v5 = vpop.f32.mrb[213].mxu0  ;;  %v9129_v31 = vld [vmem:[#allocation2 + $0x38] sm:$0xf]  ;;  %v9195_v62 = vrot.slane %v9128_v59, 4 }
 0x5a0   : > { %v8617_v63 = vsel %vm8553_vm3, %v8451_v34, %v8585_v16  ;;  %vm8554_vm5 = vcmp.ge.f32.partialorder %v8454_v57, 0.0  ;;  %v8586_v2 = vmul.f32 0.1, %v8454_v57  ;;  %v8868_v3 = vsel %vm676_vm15, %v8859_v30, %v8867_v44  ;;  %v11155_v46 = vpop.f32.mrb[214].mxu0  ;;  %v8792_v17 = vld [vmem:[#allocation2 + $0x30] sm:$0xf8] }
 0x5a1   : > { %v11154_v50 = vadd.f32 %v11153_v5, %v11152_v49  ;;  %9848 = vmatmul.mubr.bf16.gmra.mrb[232].mxu1 %v8868_v3  ;;  %v9339_v48 = vor.u32 %v9338_v47, %v9335_v39  ;;  %v9347_v19 = vor.u32 %v9346_v0, %v9343_v27  ;;  %v8793_v40 = vld [vmem:[#allocation2 + $0x38] sm:$0xf]  ;;  %v11156_v53 = vpop.f32.mrb[215].mxu0  ;;  %v9196_v4 = vrot.slane %v9129_v31, 4  ;;  %v9272_v6 = vld [vmem:[#allocation2 + $0x30] sm:$0xf0] }
 0x5a2   : > { %v8618_v54 = vsel %vm8554_vm5, %v8454_v57, %v8586_v2  ;;  %v8870_v9 = vshrl.u32 %v8792_v17, 16  ;;  %v8873_v22 = vshll.u32 %v8792_v17, 16  ;;  %v11157_v45 = vadd.f32 %v11156_v53, %v11155_v46  ;;  %v9273_v49 = vld [vmem:[#allocation2 + $0x38] sm:$0x1f] }
 0x5a3   : > { %v8645_v25 = vpack.c.bf16 %v8618_v54, %v8617_v63  ;;  %v8298_v34 = vadd.f32 %v11154_v50, %v13467_v55  ;;  %v9348_v60 = vsel %vm1158_vm0, %v9339_v48, %v9347_v19  ;;  %v9197_v32 = vsel %vm1045_vm8, %v9195_v62, %v9196_v4 }
 0x5a4   : > { %11638 = vmatprep.mubr.bf16.mxu0 %v9348_v60  ;;  %v8872_v30 = vrot.slane %v8870_v9, 3  ;;  %v8875_v39 = vrot.slane %v8873_v22, 4  ;;  %v8878_v51 = vshrl.u32 %v8793_v40, 16  ;;  %v8301_v57 = vadd.f32 %v11157_v45, %v13467_v55  ;;  %9855 = vmatprep.mubr.bf16.mxu1 %v9197_v32 }
 0x5a5   : > { %v8677_v35 = vrot.slane %v8645_v25, 4  ;;  %v8459_v16 = vadd.f32 %v11596_v20, %v8298_v34  ;;  %v8881_v44 = vshll.u32 %v8793_v40, 16  ;;  %v9350_v0 = vshrl.u32 %v9272_v6, 16 }
 0x5a6   : > { %v8876_v47 = vor.u32 %v8875_v39, %v8872_v30  ;;  %v8880_v27 = vrot.slane %v8878_v51, 3  ;;  %v9353_v59 = vshll.u32 %v9272_v6, 16  ;;  %v8462_v2 = vadd.f32 %v11597_v1, %v8301_v57 }
 0x5a7   : > { %8713 = vst [vmem:[#allocation2 + $0x48] ss:$-4 sps:$4 sm:$0xff] %v8677_v35   ;;  %vm8555_vm12 = vcmp.ge.f32.partialorder %v8459_v16, 0.0  ;;  %v8587_v63 = vmul.f32 0.1, %v8459_v16  ;;  %v8883_v5 = vrot.slane %v8881_v44, 4 }
 0x5a8   : > { %v9352_v3 = vrot.slane %v9350_v0, 4  ;;  %v9355_v31 = vrot.slane %v9353_v59, 5  ;;  %v9358_v50 = vshrl.u32 %v9273_v49, 16  ;;  %v9361_v46 = vshll.u32 %v9273_v49, 16  ;;  %v11158_v48 = vpop.f32.mrb[216].mxu0 }
 0x5a9   : > { %vm8556_vm13 = vcmp.ge.f32.partialorder %v8462_v2, 0.0  ;;  %v8588_v20 = vmul.f32 0.1, %v8462_v2  ;;  %v8884_v19 = vor.u32 %v8883_v5, %v8880_v27  ;;  %v11159_v62 = vpop.f32.mrb[217].mxu0  ;;  %v8619_v53 = vsel %vm8555_vm12, %v8459_v16, %v8587_v63 }
 0x5aa   : > { %v9356_v17 = vor.u32 %v9355_v31, %v9352_v3  ;;  %v9360_v40 = vrot.slane %v9358_v50, 4  ;;  %v9363_v54 = vrot.slane %v9361_v46, 5  ;;  %v11160_v9 = vadd.f32 %v11159_v62, %v11158_v48  ;;  %v11161_v22 = vpop.f32.mrb[218].mxu0 }
 0x5ab   : > { %v8620_v4 = vsel %vm8556_vm13, %v8462_v2, %v8588_v20  ;;  %v8885_v1 = vsel %vm676_vm15, %v8876_v47, %v8884_v19  ;;  %v11162_v34 = vpop.f32.mrb[219].mxu0 }
 0x5ac   : > { %v8646_v25 = vpack.c.bf16 %v8620_v4, %v8619_v53  ;;  %9856 = vmatmul.mubr.bf16.gmra.mrb[236].mxu1 %v8885_v1  ;;  %v9364_v45 = vor.u32 %v9363_v54, %v9360_v40  ;;  %v11163_v60 = vadd.f32 %v11162_v34, %v11161_v22  ;;  %v8306_v32 = vadd.f32 %v11160_v9, %v13467_v55 }
 0x5ae   : > { %v8678_v6 = vrot.slane %v8646_v25, 4  ;;  %v9365_v30 = vsel %vm1158_vm0, %v9356_v17, %v9364_v45  ;;  %v9130_v39 = vld [vmem:[#allocation2 + $0x40] sm:$0xf0]  ;;  %v9131_v51 = vld [vmem:[#allocation2 + $0x48] sm:$0xf]  ;;  %v8309_v35 = vadd.f32 %v11163_v60, %v13467_v55 }
 0x5af   : > { %11639 = vmatmul.mubr.bf16.gmra.mrb[4].mxu0 %v9365_v30  ;;  %v9198_v16 = vrot.slane %v9130_v39, 4  ;;  %v9199_v57 = vrot.slane %v9131_v51, 4  ;;  %v8794_v44 = vld [vmem:[#allocation2 + $0x40] sm:$0xf8]  ;;  %v8795_v49 = vld [vmem:[#allocation2 + $0x48] sm:$0xf] }
 0x5b0   : > { %8715 = vst [vmem:[#allocation2 + $0x58] ss:$-4 sps:$4 sm:$0xff] %v8678_v6   ;;  %v11600_v47 = vpop.f32.mrb[204].mxu1  ;;  %v8887_v27 = vshrl.u32 %v8794_v44, 16  ;;  %v8890_v0 = vshll.u32 %v8794_v44, 16  ;;  %v8895_v59 = vshrl.u32 %v8795_v49, 16 }
 0x5b1   : > { %v8898_v63 = vshll.u32 %v8795_v49, 16  ;;  %v8466_v2 = vpop.f32.mrb[205].mxu1  ;;  %v9200_v5 = vsel %vm1045_vm8, %v9198_v16, %v9199_v57  ;;  %v9274_v3 = vld [vmem:[#allocation2 + $0x40] sm:$0xf0]  ;;  %v9275_v31 = vld [vmem:[#allocation2 + $0x48] sm:$0x1f] }
 0x5b2   : > { %v8467_v50 = vadd.f32 %v8466_v2, %v8306_v32  ;;  %v11601_v46 = vpop.f32.mrb[206].mxu1  ;;  %v11164_v20 = vpop.f32.mrb[220].mxu0  ;;  %9863 = vmatprep.mubr.bf16.mxu1 %v9200_v5  ;;  %v8889_v48 = vrot.slane %v8887_v27, 3  ;;  %v8892_v19 = vrot.slane %v8890_v0, 4  ;;  %v8897_v62 = vrot.slane %v8895_v59, 3 }
 0x5b3   : > { %v8469_v17 = vpop.f32.mrb[207].mxu1  ;;  %v11165_v40 = vpop.f32.mrb[221].mxu0  ;;  %v8900_v54 = vrot.slane %v8898_v63, 4  ;;  %v9367_v53 = vshrl.u32 %v9274_v3, 16  ;;  %v9370_v4 = vshll.u32 %v9274_v3, 16  ;;  %v9375_v9 = vshrl.u32 %v9275_v31, 16 }
 0x5b4   : > { %vm8557_vm14 = vcmp.ge.f32.partialorder %v8467_v50, 0.0  ;;  %v8589_v22 = vmul.f32 0.1, %v8467_v50  ;;  %v8470_v1 = vadd.f32 %v8469_v17, %v8309_v35  ;;  %v11166_v25 = vadd.f32 %v11165_v40, %v11164_v20  ;;  %v11167_v34 = vpop.f32.mrb[222].mxu0 }
 0x5b5   : > { %v11168_v45 = vpop.f32.mrb[223].mxu0  ;;  %v8893_v60 = vor.u32 %v8892_v19, %v8889_v48  ;;  %v8901_v6 = vor.u32 %v8900_v54, %v8897_v62  ;;  %v9369_v32 = vrot.slane %v9367_v53, 4  ;;  %v9372_v30 = vrot.slane %v9370_v4, 5 }
 0x5b6   : > { %v8621_v39 = vsel %vm8557_vm14, %v8467_v50, %v8589_v22  ;;  %vm8558_vm9 = vcmp.ge.f32.partialorder %v8470_v1, 0.0  ;;  %v8590_v51 = vmul.f32 0.1, %v8470_v1  ;;  %v8314_v16 = vadd.f32 %v11166_v25, %v13467_v55 }
 0x5b7   : > { %v11169_v57 = vadd.f32 %v11168_v45, %v11167_v34  ;;  %v8902_v44 = vsel %vm676_vm15, %v8893_v60, %v8901_v6  ;;  %v9373_v49 = vor.u32 %v9372_v30, %v9369_v32  ;;  %v9377_v27 = vrot.slane %v9375_v9, 4  ;;  %v9132_v0 = vld [vmem:[#allocation2 + $0x50] sm:$0xf0]  ;;  %v9133_v59 = vld [vmem:[#allocation2 + $0x58] sm:$0xf] }
 0x5b8   : > { %v8622_v35 = vsel %vm8558_vm9, %v8470_v1, %v8590_v51  ;;  %v8475_v63 = vadd.f32 %v11600_v47, %v8314_v16  ;;  %9864 = vmatmul.mubr.bf16.gmra.mrb[240].mxu1 %v8902_v44  ;;  %v9378_v2 = vshll.u32 %v9275_v31, 16  ;;  %v9201_v5 = vrot.slane %v9132_v0, 4  ;;  %v8796_v3 = vld [vmem:[#allocation2 + $0x50] sm:$0xf8]  ;;  %v8797_v19 = vld [vmem:[#allocation2 + $0x58] sm:$0xf] }
 0x5b9   : > { %v8647_v20 = vpack.c.bf16 %v8622_v35, %v8621_v39  ;;  %v8317_v50 = vadd.f32 %v11169_v57, %v13467_v55  ;;  %v9202_v48 = vrot.slane %v9133_v59, 4  ;;  %v8904_v62 = vshrl.u32 %v8796_v3, 16  ;;  %v9276_v17 = vld [vmem:[#allocation2 + $0x50] sm:$0xf0]  ;;  %v9277_v45 = vld [vmem:[#allocation2 + $0x58] sm:$0x1f] }
 0x5ba   : > { %vm8559_vm10 = vcmp.ge.f32.partialorder %v8475_v63, 0.0  ;;  %v8591_v40 = vmul.f32 0.1, %v8475_v63  ;;  %v9380_v54 = vrot.slane %v9378_v2, 5  ;;  %v8907_v53 = vshll.u32 %v8796_v3, 16 }
 0x5bb   : > { %v8679_v4 = vrot.slane %v8647_v20, 4  ;;  %v8478_v9 = vadd.f32 %v11601_v46, %v8317_v50  ;;  %v9203_v22 = vsel %vm1045_vm8, %v9201_v5, %v9202_v48  ;;  %v8906_v47 = vrot.slane %v8904_v62, 3 }
 0x5bc   : > { %v8623_v1 = vsel %vm8559_vm10, %v8475_v63, %v8591_v40  ;;  %v9381_v31 = vor.u32 %v9380_v54, %v9377_v27  ;;  %9871 = vmatprep.mubr.bf16.mxu1 %v9203_v22  ;;  %v8909_v25 = vrot.slane %v8907_v53, 4  ;;  %v8912_v34 = vshrl.u32 %v8797_v19, 16 }
 0x5bd   : > { %8717 = vst [vmem:[#allocation2 + $0x68] ss:$-4 sps:$4 sm:$0xff] %v8679_v4   ;;  %vm8560_vm1 = vcmp.ge.f32.partialorder %v8478_v9, 0.0  ;;  %v8592_v60 = vmul.f32 0.1, %v8478_v9  ;;  %v8915_v6 = vshll.u32 %v8797_v19, 16 }
 0x5be   : > { %v9384_v32 = vshrl.u32 %v9276_v17, 16  ;;  %v11170_v30 = vpop.f32.mrb[224].mxu0  ;;  %v9382_v39 = vsel %vm1158_vm0, %v9373_v49, %v9381_v31  ;;  %v8910_v51 = vor.u32 %v8909_v25, %v8906_v47  ;;  %v8914_v16 = vrot.slane %v8912_v34, 3 }
 0x5bf   : > { %v9387_v46 = vshll.u32 %v9276_v17, 16  ;;  %v8624_v57 = vsel %vm8560_vm1, %v8478_v9, %v8592_v60  ;;  %11642 = vmatprep.mubr.bf16.mxu0 %v9382_v39  ;;  %v11171_v44 = vpop.f32.mrb[225].mxu0  ;;  %v8917_v0 = vrot.slane %v8915_v6, 4  ;;  %v9392_v59 = vshrl.u32 %v9277_v45, 16 }
 0x5c0   : > { %v9386_v27 = vrot.slane %v9384_v32, 4  ;;  %v8648_v35 = vpack.c.bf16 %v8624_v57, %v8623_v1  ;;  %v11172_v63 = vadd.f32 %v11171_v44, %v11170_v30  ;;  %v11173_v2 = vpop.f32.mrb[226].mxu0  ;;  %v9395_v3 = vshll.u32 %v9277_v45, 16 }
 0x5c1   : > { %v9389_v5 = vrot.slane %v9387_v46, 5  ;;  %v11174_v20 = vpop.f32.mrb[227].mxu0  ;;  %v8918_v50 = vor.u32 %v8917_v0, %v8914_v16  ;;  %v9394_v48 = vrot.slane %v9392_v59, 4 }
 0x5c2   : > { %v8680_v19 = vrot.slane %v8648_v35, 4  ;;  %v11175_v62 = vadd.f32 %v11174_v20, %v11173_v2  ;;  %v8322_v49 = vadd.f32 %v11172_v63, %v13467_v55  ;;  %v9397_v54 = vrot.slane %v9395_v3, 5 }
 0x5c3   : > { %v8919_v17 = vsel %vm676_vm15, %v8910_v51, %v8918_v50  ;;  %v9390_v40 = vor.u32 %v9389_v5, %v9386_v27 }
 0x5c4   : > { %8719 = vst [vmem:[#allocation2 + $0x78] ss:$-4 sps:$4 sm:$0xff] %v8680_v19   ;;  %v8325_v53 = vadd.f32 %v11175_v62, %v13467_v55  ;;  %9872 = vmatmul.mubr.bf16.gmra.mrb[244].mxu1 %v8919_v17  ;;  %v9134_v4 = vld [vmem:[#allocation2 + $0x60] sm:$0xf0]  ;;  %v9135_v9 = vld [vmem:[#allocation2 + $0x68] sm:$0xf]  ;;  %v9398_v1 = vor.u32 %v9397_v54, %v9394_v48 }
 0x5c5   : > { %v8798_v22 = vld [vmem:[#allocation2 + $0x60] sm:$0xf8]  ;;  %v13506_v47 = vpop.f32.mrb[208].mxu1  ;;  %v9204_v31 = vrot.slane %v9134_v4, 4  ;;  %v9205_v25 = vrot.slane %v9135_v9, 4 }
 0x5c6   : > { %v8799_v34 = vld [vmem:[#allocation2 + $0x68] sm:$0xf]  ;;  %v8921_v45 = vshrl.u32 %v8798_v22, 16  ;;  %v8482_v60 = vpop.f32.mrb[209].mxu1  ;;  %v8924_v6 = vshll.u32 %v8798_v22, 16  ;;  %v9399_v46 = vsel %vm1158_vm0, %v9390_v40, %v9398_v1 }
 0x5c7   : > { %v8929_v32 = vshrl.u32 %v8799_v34, 16  ;;  %v8932_v30 = vshll.u32 %v8799_v34, 16  ;;  %v9278_v39 = vld [vmem:[#allocation2 + $0x60] sm:$0xf0]  ;;  %v8483_v51 = vadd.f32 %v8482_v60, %v8322_v49  ;;  %v13508_v16 = vpop.f32.mrb[210].mxu1  ;;  %v9206_v57 = vsel %vm1045_vm8, %v9204_v31, %v9205_v25  ;;  %11643 = vmatmul.mubr.bf16.gmra.mrb[8].mxu0 %v9399_v46 }
 0x5c8   : > { %v8923_v44 = vrot.slane %v8921_v45, 3  ;;  %v9279_v0 = vld [vmem:[#allocation2 + $0x68] sm:$0x1f]  ;;  %v8485_v27 = vpop.f32.mrb[211].mxu1  ;;  %9879 = vmatprep.mubr.bf16.mxu1 %v9206_v57  ;;  %v8926_v59 = vrot.slane %v8924_v6, 4  ;;  %v9401_v2 = vshrl.u32 %v9278_v39, 16 }
 0x5c9   : > { %v8931_v35 = vrot.slane %v8929_v32, 3  ;;  %v8934_v63 = vrot.slane %v8932_v30, 4  ;;  %vm8561_vm2 = vcmp.ge.f32.partialorder %v8483_v51, 0.0  ;;  %v8593_v5 = vmul.f32 0.1, %v8483_v51 }
 0x5ca   : > { %v8486_v3 = vadd.f32 %v8485_v27, %v8325_v53  ;;  %v9404_v20 = vshll.u32 %v9278_v39, 16  ;;  %v8927_v50 = vor.u32 %v8926_v59, %v8923_v44  ;;  %v9403_v19 = vrot.slane %v9401_v2, 4 }
 0x5cb   : > { %v8935_v48 = vor.u32 %v8934_v63, %v8931_v35  ;;  %v9409_v62 = vshrl.u32 %v9279_v0, 16  ;;  %v9136_v40 = vld [vmem:[#allocation2 + $0x70] sm:$0xf0]  ;;  %v9412_v9 = vshll.u32 %v9279_v0, 16  ;;  %v9137_v22 = vld [vmem:[#allocation2 + $0x78] sm:$0xf]  ;;  %v8625_v31 = vsel %vm8561_vm2, %v8483_v51, %v8593_v5 }
 0x5cc   : > { %vm8562_vm4 = vcmp.ge.f32.partialorder %v8486_v3, 0.0  ;;  %v8594_v49 = vmul.f32 0.1, %v8486_v3  ;;  %v9406_v17 = vrot.slane %v9404_v20, 5  ;;  %v9207_v1 = vrot.slane %v9136_v40, 4 }
 0x5cd   : > { %v8936_v54 = vsel %vm676_vm15, %v8927_v50, %v8935_v48  ;;  %v9411_v4 = vrot.slane %v9409_v62, 4  ;;  %v9208_v34 = vrot.slane %v9137_v22, 4  ;;  %v8800_v45 = vld [vmem:[#allocation2 + $0x70] sm:$0xf8]  ;;  %v8801_v60 = vld [vmem:[#allocation2 + $0x78] sm:$0xf] }
 0x5ce   : > { %v8626_v25 = vsel %vm8562_vm4, %v8486_v3, %v8594_v49  ;;  %9880 = vmatmul.mubr.bf16.gmra.mrb[248].mxu1 %v8936_v54  ;;  %v9407_v53 = vor.u32 %v9406_v17, %v9403_v19  ;;  %v11176_v32 = vpop.f32.mrb[228].mxu0  ;;  %v9414_v30 = vrot.slane %v9412_v9, 5  ;;  %v8938_v39 = vshrl.u32 %v8800_v45, 16  ;;  %v9280_v57 = vld [vmem:[#allocation2 + $0x70] sm:$0xf0] }
 0x5cf   : > { %v8649_v6 = vpack.c.bf16 %v8626_v25, %v8625_v31  ;;  %v8941_v46 = vshll.u32 %v8800_v45, 16  ;;  %v11177_v44 = vpop.f32.mrb[229].mxu0  ;;  %v9209_v27 = vsel %vm1045_vm8, %v9207_v1, %v9208_v34  ;;  %v8946_v0 = vshrl.u32 %v8801_v60, 16  ;;  %v9281_v20 = vld [vmem:[#allocation2 + $0x78] sm:$0x1f] }
 0x5d0   : > { %v8949_v59 = vshll.u32 %v8801_v60, 16  ;;  %v9418_v35 = vshrl.u32 %v9280_v57, 16  ;;  %v11178_v51 = vadd.f32 %v11177_v44, %v11176_v32  ;;  %v11179_v2 = vpop.f32.mrb[230].mxu0  ;;  %v9415_v5 = vor.u32 %v9414_v30, %v9411_v4  ;;  %9887 = vmatprep.mubr.bf16.mxu1 %v9209_v27 }
 0x5d1   : > { %v8681_v63 = vrot.slane %v8649_v6, 4  ;;  %v8940_v3 = vrot.slane %v8938_v39, 3  ;;  %v11180_v50 = vpop.f32.mrb[231].mxu0  ;;  %v8943_v48 = vrot.slane %v8941_v46, 4  ;;  %v8948_v19 = vrot.slane %v8946_v0, 3 }
 0x5d2   : > { %v8951_v62 = vrot.slane %v8949_v59, 4  ;;  %v9420_v49 = vrot.slane %v9418_v35, 4  ;;  %v8330_v17 = vadd.f32 %v11178_v51, %v13467_v55  ;;  %v11181_v40 = vadd.f32 %v11180_v50, %v11179_v2 }
 0x5d3   : > { %8721 = vst [vmem:[#allocation2 + $0x88] ss:$-4 sps:$4 sm:$0xff] %v8681_v63   ;;  %v9416_v54 = vsel %vm1158_vm0, %v9407_v53, %v9415_v5  ;;  %v9421_v9 = vshll.u32 %v9280_v57, 16  ;;  %v8944_v22 = vor.u32 %v8943_v48, %v8940_v3  ;;  %v9426_v31 = vshrl.u32 %v9281_v20, 16 }
 0x5d4   : > { %11646 = vmatprep.mubr.bf16.mxu0 %v9416_v54  ;;  %v8952_v1 = vor.u32 %v8951_v62, %v8948_v19  ;;  %v9429_v4 = vshll.u32 %v9281_v20, 16  ;;  %v8491_v25 = vadd.f32 %v13506_v47, %v8330_v17  ;;  %v8333_v34 = vadd.f32 %v11181_v40, %v13467_v55 }
 0x5d5   : > { %v9423_v45 = vrot.slane %v9421_v9, 5  ;;  %v9428_v6 = vrot.slane %v9426_v31, 4  ;;  %v11182_v53 = vpop.f32.mrb[232].mxu0 }
 0x5d6   : > { %v8953_v60 = vsel %vm676_vm15, %v8944_v22, %v8952_v1  ;;  %v9431_v32 = vrot.slane %v9429_v4, 5  ;;  %vm8563_vm6 = vcmp.ge.f32.partialorder %v8491_v25, 0.0  ;;  %v8595_v30 = vmul.f32 0.1, %v8491_v25  ;;  %v11183_v57 = vpop.f32.mrb[233].mxu0 }
 0x5d7   : > { %v8494_v39 = vadd.f32 %v13508_v16, %v8333_v34  ;;  %9888 = vmatmul.mubr.bf16.gmra.mrb[252].mxu1 %v8953_v60  ;;  %v9424_v46 = vor.u32 %v9423_v45, %v9420_v49  ;;  %v11184_v0 = vadd.f32 %v11183_v57, %v11182_v53  ;;  %v11185_v47 = vpop.f32.mrb[234].mxu0 }
 0x5d8   : > { %v9432_v44 = vor.u32 %v9431_v32, %v9428_v6  ;;  %v8627_v59 = vsel %vm8563_vm6, %v8491_v25, %v8595_v30  ;;  %v11186_v35 = vpop.f32.mrb[235].mxu0 }
 0x5d9   : > { %vm8564_vm7 = vcmp.ge.f32.partialorder %v8494_v39, 0.0  ;;  %v8596_v27 = vmul.f32 0.1, %v8494_v39  ;;  %v11187_v3 = vadd.f32 %v11186_v35, %v11185_v47  ;;  %v11608_v20 = vpop.f32.mrb[212].mxu1  ;;  %v8338_v16 = vadd.f32 %v11184_v0, %v13467_v55 }
 0x5da   : > { %v9433_v63 = vsel %vm1158_vm0, %v9424_v46, %v9432_v44  ;;  %v9138_v51 = vld [vmem:[#allocation2 + $0x80] sm:$0xf0]  ;;  %v9139_v2 = vld [vmem:[#allocation2 + $0x88] sm:$0xf]  ;;  %v8498_v49 = vpop.f32.mrb[213].mxu1 }
 0x5db   : > { %v8628_v5 = vsel %vm8564_vm7, %v8494_v39, %v8596_v27  ;;  %11647 = vmatmul.mubr.bf16.gmra.mrb[12].mxu0 %v9433_v63  ;;  %v9210_v50 = vrot.slane %v9138_v51, 4  ;;  %v8802_v48 = vld [vmem:[#allocation2 + $0x80] sm:$0xf8]  ;;  %v8803_v19 = vld [vmem:[#allocation2 + $0x88] sm:$0xf]  ;;  %v9211_v17 = vrot.slane %v9139_v2, 4  ;;  %v8499_v9 = vadd.f32 %v8498_v49, %v8338_v16 }
 0x5dc   : > { %v8650_v62 = vpack.c.bf16 %v8628_v5, %v8627_v59  ;;  %v8955_v40 = vshrl.u32 %v8802_v48, 16  ;;  %v8958_v54 = vshll.u32 %v8802_v48, 16  ;;  %v11609_v22 = vpop.f32.mrb[214].mxu1  ;;  %v8341_v1 = vadd.f32 %v11187_v3, %v13467_v55  ;;  %v9282_v25 = vld [vmem:[#allocation2 + $0x80] sm:$0xf0] }
 0x5dd   : > { %v8963_v31 = vshrl.u32 %v8803_v19, 16  ;;  %v8966_v4 = vshll.u32 %v8803_v19, 16  ;;  %v8501_v45 = vpop.f32.mrb[215].mxu1  ;;  %v9212_v60 = vsel %vm1045_vm8, %v9210_v50, %v9211_v17  ;;  %v9283_v30 = vld [vmem:[#allocation2 + $0x88] sm:$0x1f]  ;;  %vm8565_vm11 = vcmp.ge.f32.partialorder %v8499_v9, 0.0 }
 0x5de   : > { %v8682_v34 = vrot.slane %v8650_v62, 4  ;;  %v8957_v6 = vrot.slane %v8955_v40, 3  ;;  %v8960_v32 = vrot.slane %v8958_v54, 4  ;;  %v8597_v39 = vmul.f32 0.1, %v8499_v9  ;;  %9895 = vmatprep.mubr.bf16.mxu1 %v9212_v60 }
 0x5df   : > { %v8502_v53 = vadd.f32 %v8501_v45, %v8341_v1  ;;  %v8965_v46 = vrot.slane %v8963_v31, 3  ;;  %v8968_v44 = vrot.slane %v8966_v4, 4  ;;  %v9435_v27 = vshrl.u32 %v9282_v25, 16  ;;  %v13530_v31 = vld [vmem:[%s13729_s3 + $0x2] ss:$0 sm:$0xff] }
 0x5e0   : > { %8723 = vst [vmem:[#allocation2 + $0x98] ss:$-4 sps:$4 sm:$0xff] %v8682_v34   ;;  %v8961_v57 = vor.u32 %v8960_v32, %v8957_v6  ;;  %v9438_v55 = vshll.u32 %v9282_v25, 16  ;;  %v9443_v47 = vshrl.u32 %v9283_v30, 16  ;;  %v11188_v59 = vpop.f32.mrb[236].mxu0  ;;  %v9446_v2 = vshll.u32 %v9283_v30, 16 }
 0x5e1   : > { %vm8566_vm3 = vcmp.ge.f32.partialorder %v8502_v53, 0.0  ;;  %v8598_v0 = vmul.f32 0.1, %v8502_v53  ;;  %v8969_v35 = vor.u32 %v8968_v44, %v8965_v46  ;;  %v9437_v63 = vrot.slane %v9435_v27, 4  ;;  %v11189_v16 = vpop.f32.mrb[237].mxu0 }
 0x5e2   : > { %v9440_v51 = vrot.slane %v9438_v55, 5  ;;  %v8629_v5 = vsel %vm8565_vm11, %v8499_v9, %v8597_v39  ;;  %v9445_v50 = vrot.slane %v9443_v47, 4  ;;  %v11190_v19 = vadd.f32 %v11189_v16, %v11188_v59  ;;  %v11191_v62 = vpop.f32.mrb[238].mxu0 }
 0x5e3   : > { %v8630_v3 = vsel %vm8566_vm3, %v8502_v53, %v8598_v0  ;;  %v8970_v49 = vsel %vm676_vm15, %v8961_v57, %v8969_v35  ;;  %v11192_v17 = vpop.f32.mrb[239].mxu0  ;;  %v9448_v54 = vrot.slane %v9446_v2, 5 }
 0x5e4   : > { %v8651_v48 = vpack.c.bf16 %v8630_v3, %v8629_v5  ;;  %9896 = vmatmul.mubr.bf16.gmra.mrb[0].mxu1 %v8970_v49  ;;  %v9441_v40 = vor.u32 %v9440_v51, %v9437_v63  ;;  %v8346_v9 = vadd.f32 %v13530_v31, %v11190_v19  ;;  %v11193_v4 = vadd.f32 %v11192_v17, %v11191_v62 }
 0x5e5   : > { %v9449_v25 = vor.u32 %v9448_v54, %v9445_v50 }
 0x5e6   : > { %v8683_v1 = vrot.slane %v8651_v48, 4  ;;  %v8507_v6 = vadd.f32 %v11608_v20, %v8346_v9  ;;  %v8349_v32 = vadd.f32 %v13530_v31, %v11193_v4 }
 0x5e7   : > { %v9140_v34 = vld [vmem:[#allocation2 + $0x90] sm:$0xf0]  ;;  %v9141_v45 = vld [vmem:[#allocation2 + $0x98] sm:$0xf]  ;;  %v9450_v46 = vsel %vm1158_vm0, %v9441_v40, %v9449_v25 }
 0x5e8   : > { %v8804_v60 = vld [vmem:[#allocation2 + $0x90] sm:$0xf8]  ;;  %8725 = vst [vmem:[#allocation2 + $0xa8] ss:$-4 sps:$4 sm:$0xff] %v8683_v1   ;;  %v9213_v30 = vrot.slane %v9140_v34, 4  ;;  %v9214_v39 = vrot.slane %v9141_v45, 4  ;;  %v8510_v47 = vadd.f32 %v11609_v22, %v8349_v32  ;;  %11650 = vmatprep.mubr.bf16.mxu0 %v9450_v46 }
 0x5e9   : > { %v8805_v53 = vld [vmem:[#allocation2 + $0x98] sm:$0xf]  ;;  %v8972_v57 = vshrl.u32 %v8804_v60, 16  ;;  %v8975_v44 = vshll.u32 %v8804_v60, 16  ;;  %v9284_v55 = vld [vmem:[#allocation2 + $0x90] sm:$0xf0] }
 0x5ea   : > { %v8980_v27 = vshrl.u32 %v8805_v53, 16  ;;  %vm8567_vm5 = vcmp.ge.f32.partialorder %v8507_v6, 0.0  ;;  %v8599_v0 = vmul.f32 0.1, %v8507_v6  ;;  %v11194_v59 = vpop.f32.mrb[240].mxu0  ;;  %v9215_v35 = vsel %vm1045_vm8, %v9213_v30, %v9214_v39 }
 0x5eb   : > { %v9285_v63 = vld [vmem:[#allocation2 + $0x98] sm:$0x1f]  ;;  %v11195_v20 = vpop.f32.mrb[241].mxu0  ;;  %9903 = vmatprep.mubr.bf16.mxu1 %v9215_v35  ;;  %v8974_v51 = vrot.slane %v8972_v57, 3  ;;  %v8977_v2 = vrot.slane %v8975_v44, 4  ;;  %v8983_v3 = vshll.u32 %v8805_v53, 16 }
 0x5ec   : > { %v8982_v5 = vrot.slane %v8980_v27, 3  ;;  %v8631_v16 = vsel %vm8567_vm5, %v8507_v6, %v8599_v0  ;;  %vm8568_vm12 = vcmp.ge.f32.partialorder %v8510_v47, 0.0  ;;  %v8600_v50 = vmul.f32 0.1, %v8510_v47  ;;  %v11197_v19 = vpop.f32.mrb[242].mxu0  ;;  %v11612_v9 = vpop.f32.mrb[216].mxu1 }
 0x5ed   : > { %v11196_v48 = vadd.f32 %v11195_v20, %v11194_v59  ;;  %v11198_v62 = vpop.f32.mrb[243].mxu0  ;;  %v8978_v49 = vor.u32 %v8977_v2, %v8974_v51  ;;  %v8985_v17 = vrot.slane %v8983_v3, 4  ;;  %v9452_v22 = vshrl.u32 %v9284_v55, 16  ;;  %v8514_v45 = vpop.f32.mrb[217].mxu1 }
 0x5ee   : > { %v9455_v40 = vshll.u32 %v9284_v55, 16  ;;  %v8632_v54 = vsel %vm8568_vm12, %v8510_v47, %v8600_v50  ;;  %v11199_v1 = vadd.f32 %v11198_v62, %v11197_v19  ;;  %v9460_v25 = vshrl.u32 %v9285_v63, 16  ;;  %v11613_v53 = vpop.f32.mrb[218].mxu1 }
 0x5ef   : > { %v8354_v4 = vadd.f32 %v13530_v31, %v11196_v48  ;;  %v8652_v34 = vpack.c.bf16 %v8632_v54, %v8631_v16  ;;  %v8986_v60 = vor.u32 %v8985_v17, %v8982_v5  ;;  %v9454_v32 = vrot.slane %v9452_v22, 4  ;;  %v9142_v30 = vld [vmem:[#allocation2 + $0xa0] sm:$0xf0]  ;;  %v9143_v27 = vld [vmem:[#allocation2 + $0xa8] sm:$0xf]  ;;  %v8517_v0 = vpop.f32.mrb[219].mxu1 }
 0x5f0   : > { %v9457_v6 = vrot.slane %v9455_v40, 5  ;;  %v8357_v46 = vadd.f32 %v13530_v31, %v11199_v1  ;;  %v9462_v57 = vrot.slane %v9460_v25, 4  ;;  %v9463_v44 = vshll.u32 %v9285_v63, 16  ;;  %v8806_v20 = vld [vmem:[#allocation2 + $0xa0] sm:$0xf8]  ;;  %v11200_v5 = vpop.f32.mrb[244].mxu0 }
 0x5f1   : > { %v8515_v39 = vadd.f32 %v8514_v45, %v8354_v4  ;;  %v8684_v55 = vrot.slane %v8652_v34, 4  ;;  %v8987_v47 = vsel %vm676_vm15, %v8978_v49, %v8986_v60  ;;  %v9216_v35 = vrot.slane %v9142_v30, 4  ;;  %v11201_v16 = vpop.f32.mrb[245].mxu0  ;;  %v8807_v48 = vld [vmem:[#allocation2 + $0xa8] sm:$0xf] }
 0x5f2   : > { %v9458_v59 = vor.u32 %v9457_v6, %v9454_v32  ;;  %v8518_v2 = vadd.f32 %v8517_v0, %v8357_v46  ;;  %9904 = vmatmul.mubr.bf16.gmra.mrb[4].mxu1 %v8987_v47  ;;  %v9465_v3 = vrot.slane %v9463_v44, 5  ;;  %v9217_v50 = vrot.slane %v9143_v27, 4  ;;  %v11203_v49 = vpop.f32.mrb[246].mxu0  ;;  %v9286_v34 = vld [vmem:[#allocation2 + $0xa0] sm:$0xf0] }
 0x5f3   : > { %vm8569_vm13 = vcmp.ge.f32.partialorder %v8515_v39, 0.0  ;;  %v8601_v51 = vmul.f32 0.1, %v8515_v39  ;;  %8727 = vst [vmem:[#allocation2 + $0xb8] ss:$-4 sps:$4 sm:$0xff] %v8684_v55   ;;  %v8989_v19 = vshrl.u32 %v8806_v20, 16  ;;  %v11202_v40 = vadd.f32 %v11201_v16, %v11200_v5 }
 0x5f4   : > { %v8992_v63 = vshll.u32 %v8806_v20, 16  ;;  %vm8570_vm14 = vcmp.ge.f32.partialorder %v8518_v2, 0.0  ;;  %v8602_v17 = vmul.f32 0.1, %v8518_v2  ;;  %v9466_v22 = vor.u32 %v9465_v3, %v9462_v57  ;;  %v11204_v54 = vpop.f32.mrb[247].mxu0 }
 0x5f5   : > { %v8633_v62 = vsel %vm8569_vm13, %v8515_v39, %v8601_v51  ;;  %v9218_v1 = vsel %vm1045_vm8, %v9216_v35, %v9217_v50  ;;  %v8991_v4 = vrot.slane %v8989_v19, 3  ;;  %v11205_v32 = vadd.f32 %v11204_v54, %v11203_v49  ;;  %v9287_v30 = vld [vmem:[#allocation2 + $0xa8] sm:$0x1f] }
 0x5f6   : > { %v8994_v25 = vrot.slane %v8992_v63, 4  ;;  %v8634_v45 = vsel %vm8570_vm14, %v8518_v2, %v8602_v17  ;;  %v9467_v60 = vsel %vm1158_vm0, %v9458_v59, %v9466_v22  ;;  %9911 = vmatprep.mubr.bf16.mxu1 %v9218_v1  ;;  %v8997_v6 = vshrl.u32 %v8807_v48, 16 }
 0x5f7   : > { %v8653_v46 = vpack.c.bf16 %v8634_v45, %v8633_v62  ;;  %11651 = vmatmul.mubr.bf16.gmra.mrb[16].mxu0 %v9467_v60  ;;  %v8362_v39 = vadd.f32 %v13530_v31, %v11202_v40  ;;  %v9000_v44 = vshll.u32 %v8807_v48, 16  ;;  %v8365_v27 = vadd.f32 %v13530_v31, %v11205_v32 }
 0x5f8   : > { %v8995_v57 = vor.u32 %v8994_v25, %v8991_v4  ;;  %v8999_v55 = vrot.slane %v8997_v6, 3  ;;  %v9469_v0 = vshrl.u32 %v9286_v34, 16  ;;  %v9472_v47 = vshll.u32 %v9286_v34, 16  ;;  %v11206_v5 = vpop.f32.mrb[248].mxu0  ;;  %v13543_v22 = vpop.f32.mrb[220].mxu1 }
 0x5f9   : > { %v8685_v35 = vrot.slane %v8653_v46, 4  ;;  %v8523_v20 = vadd.f32 %v11612_v9, %v8362_v39  ;;  %v9002_v51 = vrot.slane %v9000_v44, 4  ;;  %v9477_v2 = vshrl.u32 %v9287_v30, 16  ;;  %v11207_v17 = vpop.f32.mrb[249].mxu0  ;;  %v8530_v1 = vpop.f32.mrb[221].mxu1 }
 0x5fa   : > { %v8526_v59 = vadd.f32 %v11613_v53, %v8365_v27  ;;  %v9471_v3 = vrot.slane %v9469_v0, 4  ;;  %v9474_v16 = vrot.slane %v9472_v47, 5  ;;  %v9480_v50 = vshll.u32 %v9287_v30, 16  ;;  %v9144_v19 = vld [vmem:[#allocation2 + $0xb0] sm:$0xf0]  ;;  %v11209_v54 = vpop.f32.mrb[250].mxu0 }
 0x5fb   : > { %8729 = vst [vmem:[#allocation2 + $0xc8] ss:$-4 sps:$4 sm:$0xff] %v8685_v35   ;;  %vm8571_vm9 = vcmp.ge.f32.partialorder %v8523_v20, 0.0  ;;  %v8603_v63 = vmul.f32 0.1, %v8523_v20  ;;  %v9003_v62 = vor.u32 %v9002_v51, %v8999_v55  ;;  %v9479_v48 = vrot.slane %v9477_v2, 4 }
 0x5fc   : > { %vm8572_vm10 = vcmp.ge.f32.partialorder %v8526_v59, 0.0  ;;  %v8604_v49 = vmul.f32 0.1, %v8526_v59  ;;  %v9475_v40 = vor.u32 %v9474_v16, %v9471_v3  ;;  %v9482_v9 = vrot.slane %v9480_v50, 5  ;;  %v11210_v34 = vpop.f32.mrb[251].mxu0  ;;  %v13546_v32 = vpop.f32.mrb[222].mxu1 }
 0x5fd   : > { %v8635_v53 = vsel %vm8571_vm9, %v8523_v20, %v8603_v63  ;;  %v9004_v4 = vsel %vm676_vm15, %v8995_v57, %v9003_v62  ;;  %v11208_v25 = vadd.f32 %v11207_v17, %v11206_v5  ;;  %v9145_v45 = vld [vmem:[#allocation2 + $0xb8] sm:$0xf]  ;;  %v9219_v60 = vrot.slane %v9144_v19, 4  ;;  %v8533_v44 = vpop.f32.mrb[223].mxu1  ;;  %v8808_v27 = vld [vmem:[#allocation2 + $0xb0] sm:$0xf8] }
 0x5fe   : > { %v8636_v6 = vsel %vm8572_vm10, %v8526_v59, %v8604_v49  ;;  %9912 = vmatmul.mubr.bf16.gmra.mrb[8].mxu1 %v9004_v4  ;;  %v9483_v30 = vor.u32 %v9482_v9, %v9479_v48  ;;  %v11211_v46 = vadd.f32 %v11210_v34, %v11209_v54  ;;  %v9220_v39 = vrot.slane %v9145_v45, 4  ;;  %v8809_v55 = vld [vmem:[#allocation2 + $0xb8] sm:$0xf]  ;;  %v9288_v57 = vld [vmem:[#allocation2 + $0xb0] sm:$0xf0] }
 0x5ff   : > { %v8654_v0 = vpack.c.bf16 %v8636_v6, %v8635_v53  ;;  %v8370_v47 = vadd.f32 %v13530_v31, %v11208_v25  ;;  %v9006_v35 = vshrl.u32 %v8808_v27, 16  ;;  %v9009_v20 = vshll.u32 %v8808_v27, 16  ;;  %v9289_v49 = vld [vmem:[#allocation2 + $0xb8] sm:$0x1f] }
 0x600   : > { %v9484_v51 = vsel %vm1158_vm0, %v9475_v40, %v9483_v30  ;;  %v9221_v2 = vsel %vm1045_vm8, %v9219_v60, %v9220_v39  ;;  %v8373_v5 = vadd.f32 %v13530_v31, %v11211_v46  ;;  %v9014_v59 = vshrl.u32 %v8809_v55, 16  ;;  %v11212_v62 = vpop.f32.mrb[252].mxu0 }
 0x601   : > { %v8686_v3 = vrot.slane %v8654_v0, 4  ;;  %11654 = vmatprep.mubr.bf16.mxu0 %v9484_v51  ;;  %9919 = vmatprep.mubr.bf16.mxu1 %v9221_v2  ;;  %v8531_v16 = vadd.f32 %v8530_v1, %v8370_v47  ;;  %v9008_v50 = vrot.slane %v9006_v35, 3  ;;  %v9011_v19 = vrot.slane %v9009_v20, 4  ;;  %v11213_v4 = vpop.f32.mrb[253].mxu0 }
 0x602   : > { %v8534_v63 = vadd.f32 %v8533_v44, %v8373_v5  ;;  %v9016_v48 = vrot.slane %v9014_v59, 3  ;;  %v9017_v17 = vshll.u32 %v8809_v55, 16  ;;  %v9486_v9 = vshrl.u32 %v9288_v57, 16  ;;  %v11215_v60 = vpop.f32.mrb[254].mxu0  ;;  %v9146_v44 = vld [vmem:[#allocation2 + $0xc0] sm:$0xf0] }
 0x603   : > { %8731 = vst [vmem:[#allocation2 + $0xd8] ss:$-4 sps:$4 sm:$0xff] %v8686_v3   ;;  %vm8573_vm1 = vcmp.ge.f32.partialorder %v8531_v16, 0.0  ;;  %v8605_v40 = vmul.f32 0.1, %v8531_v16  ;;  %v9012_v54 = vor.u32 %v9011_v19, %v9008_v50  ;;  %v9489_v53 = vshll.u32 %v9288_v57, 16 }
 0x604   : > { %vm8574_vm2 = vcmp.ge.f32.partialorder %v8534_v63, 0.0  ;;  %v8606_v25 = vmul.f32 0.1, %v8534_v63  ;;  %v9019_v34 = vrot.slane %v9017_v17, 4  ;;  %v9488_v45 = vrot.slane %v9486_v9, 4  ;;  %v11216_v39 = vpop.f32.mrb[255].mxu0 }
 0x605   : > { %v8637_v1 = vsel %vm8573_vm1, %v8531_v16, %v8605_v40  ;;  %v9491_v6 = vrot.slane %v9489_v53, 5  ;;  %v9494_v30 = vshrl.u32 %v9289_v49, 16  ;;  %v9497_v46 = vshll.u32 %v9289_v49, 16  ;;  %v9147_v35 = vld [vmem:[#allocation2 + $0xc8] sm:$0xf] }
 0x606   : > { %v8638_v27 = vsel %vm8574_vm2, %v8534_v63, %v8606_v25  ;;  %v9020_v55 = vor.u32 %v9019_v34, %v9016_v48  ;;  %v11214_v0 = vadd.f32 %v11213_v4, %v11212_v62  ;;  %v11217_v47 = vadd.f32 %v11216_v39, %v11215_v60  ;;  %v8810_v20 = vld [vmem:[#allocation2 + $0xc0] sm:$0xf8]  ;;  %v8811_v59 = vld [vmem:[#allocation2 + $0xc8] sm:$0xf] }
 0x607   : > { %v8655_v51 = vpack.c.bf16 %v8638_v27, %v8637_v1  ;;  %v9492_v57 = vor.u32 %v9491_v6, %v9488_v45  ;;  %v9496_v2 = vrot.slane %v9494_v30, 4  ;;  %v9499_v5 = vrot.slane %v9497_v46, 5  ;;  %v9290_v4 = vld [vmem:[#allocation2 + $0xc0] sm:$0xf0]  ;;  %v9291_v45 = vld [vmem:[#allocation2 + $0xc8] sm:$0x1f] }
 0x608   : > { %v9021_v3 = vsel %vm676_vm15, %v9012_v54, %v9020_v55  ;;  %v8378_v16 = vadd.f32 %v13530_v31, %v11214_v0  ;;  %v8381_v50 = vadd.f32 %v13530_v31, %v11217_v47  ;;  %v9222_v19 = vrot.slane %v9146_v44, 4 }
 0x609   : > { %v8687_v17 = vrot.slane %v8655_v51, 4  ;;  %9920 = vmatmul.mubr.bf16.gmra.mrb[12].mxu1 %v9021_v3  ;;  %v9500_v63 = vor.u32 %v9499_v5, %v9496_v2  ;;  %v9223_v48 = vrot.slane %v9147_v35, 4  ;;  %v9023_v62 = vshrl.u32 %v8810_v20, 16 }
 0x60a   : > { %v8539_v49 = vadd.f32 %v13543_v22, %v8378_v16  ;;  %v8542_v9 = vadd.f32 %v13546_v32, %v8381_v50  ;;  %v9026_v40 = vshll.u32 %v8810_v20, 16  ;;  %v9031_v53 = vshrl.u32 %v8811_v59, 16  ;;  %v9148_v46 = vld [vmem:[#allocation2 + $0xd0] sm:$0xf0]  ;;  %v9149_v0 = vld [vmem:[#allocation2 + $0xd8] sm:$0xf] }
 0x60b   : > { %8733 = vst [vmem:[#allocation2 + $0xe8] ss:$-4 sps:$4 sm:$0xff] %v8687_v17   ;;  %v9501_v54 = vsel %vm1158_vm0, %v9492_v57, %v9500_v63  ;;  %v9224_v25 = vsel %vm1045_vm8, %v9222_v19, %v9223_v48  ;;  %v9025_v34 = vrot.slane %v9023_v62, 3  ;;  %v9034_v31 = vshll.u32 %v8811_v59, 16  ;;  %v8812_v47 = vld [vmem:[#allocation2 + $0xd0] sm:$0xf8] }
 0x60c   : > { %11655 = vmatmul.mubr.bf16.gmra.mrb[20].mxu0 %v9501_v54  ;;  %vm8575_vm4 = vcmp.ge.f32.partialorder %v8539_v49, 0.0  ;;  %v8607_v60 = vmul.f32 0.1, %v8539_v49  ;;  %vm8576_vm6 = vcmp.ge.f32.partialorder %v8542_v9, 0.0  ;;  %v8608_v1 = vmul.f32 0.1, %v8542_v9  ;;  %9927 = vmatprep.mubr.bf16.mxu1 %v9224_v25 }
 0x60d   : > { %v9028_v22 = vrot.slane %v9026_v40, 4  ;;  %v9033_v6 = vrot.slane %v9031_v53, 3  ;;  %v9036_v32 = vrot.slane %v9034_v31, 4  ;;  %v9503_v30 = vshrl.u32 %v9290_v4, 16  ;;  %v8813_v2 = vld [vmem:[#allocation2 + $0xd8] sm:$0xf] }
 0x60e   : > { %v8639_v39 = vsel %vm8575_vm4, %v8539_v49, %v8607_v60  ;;  %v8640_v44 = vsel %vm8576_vm6, %v8542_v9, %v8608_v1  ;;  %v9506_v27 = vshll.u32 %v9290_v4, 16  ;;  %v9511_v55 = vshrl.u32 %v9291_v45, 16  ;;  %v9292_v50 = vld [vmem:[#allocation2 + $0xd0] sm:$0xf0]  ;;  %v9293_v62 = vld [vmem:[#allocation2 + $0xd8] sm:$0x1f] }
 0x60f   : > { %v8656_v35 = vpack.c.bf16 %v8640_v44, %v8639_v39  ;;  %v9029_v20 = vor.u32 %v9028_v22, %v9025_v34  ;;  %v9037_v51 = vor.u32 %v9036_v32, %v9033_v6  ;;  %v9505_v57 = vrot.slane %v9503_v30, 4 }
 0x610   : > { %v9508_v5 = vrot.slane %v9506_v27, 5  ;;  %v9513_v59 = vrot.slane %v9511_v55, 4  ;;  %v9514_v3 = vshll.u32 %v9291_v45, 16  ;;  %v9225_v16 = vrot.slane %v9148_v46, 4 }
 0x611   : > { %v8688_v19 = vrot.slane %v8656_v35, 4  ;;  %v9038_v17 = vsel %vm676_vm15, %v9029_v20, %v9037_v51  ;;  %v9226_v63 = vrot.slane %v9149_v0, 4  ;;  %v9040_v48 = vshrl.u32 %v8812_v47, 16 }
 0x612   : > { %9928 = vmatmul.mubr.bf16.gmra.mrb[16].mxu1 %v9038_v17  ;;  %v9509_v49 = vor.u32 %v9508_v5, %v9505_v57  ;;  %v9516_v9 = vrot.slane %v9514_v3, 5  ;;  %v9043_v40 = vshll.u32 %v8812_v47, 16  ;;  %v9048_v53 = vshrl.u32 %v8813_v2, 16  ;;  %v9150_v4 = vld [vmem:[#allocation2 + $0xe0] sm:$0xf0] }
 0x613   : > { %8735 = vst [vmem:[#allocation2 + $0xf8] ss:$-4 sps:$4 sm:$0xff] %v8688_v19   ;;  %v9227_v54 = vsel %vm1045_vm8, %v9225_v16, %v9226_v63  ;;  %v9042_v25 = vrot.slane %v9040_v48, 3  ;;  %v9051_v34 = vshll.u32 %v8813_v2, 16  ;;  %v9520_v31 = vshrl.u32 %v9292_v50, 16 }
 0x614   : > { %v9151_v45 = vld [vmem:[#allocation2 + $0xe8] sm:$0xf]  ;;  %v9517_v60 = vor.u32 %v9516_v9, %v9513_v59  ;;  %9935 = vmatprep.mubr.bf16.mxu1 %v9227_v54  ;;  %v9045_v1 = vrot.slane %v9043_v40, 4  ;;  %v9050_v22 = vrot.slane %v9048_v53, 3  ;;  %v9523_v6 = vshll.u32 %v9292_v50, 16 }
 0x615   : > { %v8814_v32 = vld [vmem:[#allocation2 + $0xe0] sm:$0xf8]  ;;  %v9053_v30 = vrot.slane %v9051_v34, 4  ;;  %v9522_v46 = vrot.slane %v9520_v31, 4  ;;  %v9528_v39 = vshrl.u32 %v9293_v62, 16  ;;  %v9531_v44 = vshll.u32 %v9293_v62, 16 }
 0x616   : > { %v8815_v27 = vld [vmem:[#allocation2 + $0xe8] sm:$0xf]  ;;  %v9518_v55 = vsel %vm1158_vm0, %v9509_v49, %v9517_v60  ;;  %v9046_v0 = vor.u32 %v9045_v1, %v9042_v25  ;;  %v9525_v47 = vrot.slane %v9523_v6, 5  ;;  %v9228_v35 = vrot.slane %v9150_v4, 4  ;;  %v9294_v5 = vld [vmem:[#allocation2 + $0xe0] sm:$0xf0] }
 0x617   : > { %11658 = vmatprep.mubr.bf16.mxu0 %v9518_v55  ;;  %v9054_v20 = vor.u32 %v9053_v30, %v9050_v22  ;;  %v9530_v51 = vrot.slane %v9528_v39, 4  ;;  %v9533_v57 = vrot.slane %v9531_v44, 5  ;;  %v9229_v2 = vrot.slane %v9151_v45, 4  ;;  %v9295_v19 = vld [vmem:[#allocation2 + $0xe8] sm:$0x1f] }
 0x618   : > { %v9526_v59 = vor.u32 %v9525_v47, %v9522_v46  ;;  %v9057_v3 = vshrl.u32 %v8814_v32, 16  ;;  %v9060_v16 = vshll.u32 %v8814_v32, 16  ;;  %v9065_v50 = vshrl.u32 %v8815_v27, 16 }
 0x619   : > { %v9055_v17 = vsel %vm676_vm15, %v9046_v0, %v9054_v20  ;;  %v9534_v63 = vor.u32 %v9533_v57, %v9530_v51  ;;  %v9230_v48 = vsel %vm1045_vm8, %v9228_v35, %v9229_v2  ;;  %v9068_v62 = vshll.u32 %v8815_v27, 16 }
 0x61a   : > { %9936 = vmatmul.mubr.bf16.gmra.mrb[20].mxu1 %v9055_v17  ;;  %v9059_v49 = vrot.slane %v9057_v3, 3  ;;  %v9062_v9 = vrot.slane %v9060_v16, 4  ;;  %v9067_v40 = vrot.slane %v9065_v50, 3  ;;  %v9537_v53 = vshrl.u32 %v9294_v5, 16  ;;  %v9152_v4 = vld [vmem:[#allocation2 + $0xf0] sm:$0xf0] }
 0x61b   : > { %v9535_v54 = vsel %vm1158_vm0, %v9526_v59, %v9534_v63  ;;  %9943 = vmatprep.mubr.bf16.mxu1 %v9230_v48  ;;  %v9070_v25 = vrot.slane %v9068_v62, 4  ;;  %v9540_v34 = vshll.u32 %v9294_v5, 16  ;;  %v9545_v31 = vshrl.u32 %v9295_v19, 16  ;;  %v9153_v45 = vld [vmem:[#allocation2 + $0xf8] sm:$0xf] }
 0x61c   : > { %11659 = vmatmul.mubr.bf16.gmra.mrb[24].mxu0 %v9535_v54  ;;  %v9063_v60 = vor.u32 %v9062_v9, %v9059_v49  ;;  %v9539_v1 = vrot.slane %v9537_v53, 4  ;;  %v9548_v22 = vshll.u32 %v9295_v19, 16  ;;  %v9231_v6 = vrot.slane %v9152_v4, 4  ;;  %v8816_v32 = vld [vmem:[#allocation2 + $0xf0] sm:$0xf8] }
 0x61d   : > { %v9071_v30 = vor.u32 %v9070_v25, %v9067_v40  ;;  %v9542_v46 = vrot.slane %v9540_v34, 5  ;;  %v9547_v39 = vrot.slane %v9545_v31, 4  ;;  %v9232_v44 = vrot.slane %v9153_v45, 4  ;;  %v8817_v27 = vld [vmem:[#allocation2 + $0xf8] sm:$0xf] }
 0x61e   : > { %v9550_v55 = vrot.slane %v9548_v22, 5  ;;  %v9074_v0 = vshrl.u32 %v8816_v32, 16  ;;  %v9077_v47 = vshll.u32 %v8816_v32, 16  ;;  %v9082_v35 = vshrl.u32 %v8817_v27, 16  ;;  %v9296_v20 = vld [vmem:[#allocation2 + $0xf0] sm:$0xf0] }
 0x61f   : > { %v9072_v51 = vsel %vm676_vm15, %v9063_v60, %v9071_v30  ;;  %v9543_v57 = vor.u32 %v9542_v46, %v9539_v1  ;;  %v9233_v2 = vsel %vm1045_vm8, %v9231_v6, %v9232_v44  ;;  %v9085_v5 = vshll.u32 %v8817_v27, 16  ;;  %v9297_v59 = vld [vmem:[#allocation2 + $0xf8] sm:$0x1f]  ;;  %v13573_v27 = vld [vmem:[%s13730_s4 + $0x2] ss:$0 sm:$0xff] }
 0x620   : > { %v9551_v3 = vor.u32 %v9550_v55, %v9547_v39  ;;  %v9076_v16 = vrot.slane %v9074_v0, 3  ;;  %v9079_v50 = vrot.slane %v9077_v47, 4  ;;  %v9084_v19 = vrot.slane %v9082_v35, 3 }
 0x621   : > { %v9087_v17 = vrot.slane %v9085_v5, 4  ;;  %v9554_v63 = vshrl.u32 %v9296_v20, 16  ;;  %v9557_v48 = vshll.u32 %v9296_v20, 16  ;;  %v9562_v62 = vshrl.u32 %v9297_v59, 16 }
 0x622   : > { %9944 = vmatmul.mubr.bf16.gmra.mrb[24].mxu1 %v9072_v51  ;;  %v9552_v49 = vsel %vm1158_vm0, %v9543_v57, %v9551_v3  ;;  %v9080_v9 = vor.u32 %v9079_v50, %v9076_v16  ;;  %v9565_v40 = vshll.u32 %v9297_v59, 16 }
 0x623   : > { %11662 = vmatprep.mubr.bf16.mxu0 %v9552_v49  ;;  %9951 = vmatprep.mubr.bf16.mxu1 %v9233_v2  ;;  %v9088_v53 = vor.u32 %v9087_v17, %v9084_v19  ;;  %v9556_v4 = vrot.slane %v9554_v63, 4  ;;  %v9559_v54 = vrot.slane %v9557_v48, 5  ;;  %v9564_v25 = vrot.slane %v9562_v62, 4 }
 0x624   : > { %v9567_v34 = vrot.slane %v9565_v40, 5 }
 0x625   : > { %v9560_v31 = vor.u32 %v9559_v54, %v9556_v4  ;;  %v9089_v60 = vsel %vm676_vm15, %v9080_v9, %v9088_v53 }
 0x626   : > { %v9568_v45 = vor.u32 %v9567_v34, %v9564_v25 }
 0x628   : > { %v9569_v1 = vsel %vm1158_vm0, %v9560_v31, %v9568_v45 }
 0x629   : > { %11663 = vmatmul.mubr.bf16.gmra.mrb[28].mxu0 %v9569_v1 }
 0x62a   : > { %9952 = vmatmul.mubr.bf16.gmra.mrb[28].mxu1 %v9089_v60 }
 0x65b   : > { %v11258_v22 = vpop.f32.mrb[224].mxu1 }
 0x65c   : > { %v11259_v6 = vpop.f32.mrb[225].mxu1 }
 0x65d   : > { %v11260_v32 = vadd.f32 %v11259_v6, %v11258_v22  ;;  %v11261_v30 = vpop.f32.mrb[226].mxu1 }
 0x65e   : > { %v11262_v46 = vpop.f32.mrb[227].mxu1 }
 0x65f   : > { %v11263_v39 = vadd.f32 %v11262_v46, %v11261_v30  ;;  %v9834_v20 = vadd.f32 %v11260_v32, %v13573_v27 }
 0x661   : > { %v9837_v16 = vadd.f32 %v11263_v39, %v13573_v27 }
 0x667   : > { %v11264_v44 = vpop.f32.mrb[228].mxu1 }
 0x668   : > { %v11265_v55 = vpop.f32.mrb[229].mxu1 }
 0x669   : > { %v11266_v0 = vadd.f32 %v11265_v55, %v11264_v44  ;;  %v11267_v47 = vpop.f32.mrb[230].mxu1  ;;  %v11636_v35 = vpop.f32.mrb[0].mxu0 }
 0x66a   : > { %v11268_v51 = vpop.f32.mrb[231].mxu1  ;;  %v9994_v2 = vpop.f32.mrb[1].mxu0 }
 0x66b   : > { %v9842_v57 = vadd.f32 %v11266_v0, %v13573_v27  ;;  %v11269_v5 = vadd.f32 %v11268_v51, %v11267_v47  ;;  %v9995_v59 = vadd.f32 %v9994_v2, %v9834_v20  ;;  %v11637_v3 = vpop.f32.mrb[2].mxu0 }
 0x66c   : > { %v9997_v17 = vpop.f32.mrb[3].mxu0 }
 0x66d   : > { %v10003_v50 = vadd.f32 %v11636_v35, %v9842_v57  ;;  %v9845_v19 = vadd.f32 %v11269_v5, %v13573_v27  ;;  %v10153_v63 = vadd.f32 %v9995_v59, %v13155_v12  ;;  %v9998_v48 = vadd.f32 %v9997_v17, %v9837_v16 }
 0x66f   : > { %v10155_v62 = vadd.f32 %v10003_v50, %v13158_v37  ;;  %v10006_v49 = vadd.f32 %v11637_v3, %v9845_v19  ;;  %10249 = vst [vmem:[%s13583_s16] sm:$0xff] %v10153_v63  ;;  %v10154_v9 = vadd.f32 %v9998_v48, %v13162_v21 }
 0x671   : > { %10251 = vst [vmem:[%s13583_s16 + $0x10] sm:$0xff] %v10155_v62  ;;  %v10156_v40 = vadd.f32 %v10006_v49, %v13167_v56  ;;  %10250 = vst [vmem:[%s13583_s16 + $0x8] sm:$0xff] %v10154_v9 }
 0x673   : > { %10252 = vst [vmem:[%s13583_s16 + $0x18] sm:$0xff] %v10156_v40 }
 0x674   : > { %v11270_v12 = vpop.f32.mrb[232].mxu1 }
 0x675   : > { %v11271_v53 = vpop.f32.mrb[233].mxu1 }
 0x676   : > { %v11272_v4 = vadd.f32 %v11271_v53, %v11270_v12  ;;  %v11273_v37 = vpop.f32.mrb[234].mxu1 }
 0x677   : > { %v11274_v54 = vpop.f32.mrb[235].mxu1 }
 0x678   : > { %v11275_v25 = vadd.f32 %v11274_v54, %v11273_v37  ;;  %v9850_v22 = vadd.f32 %v11272_v4, %v13573_v27 }
 0x67a   : > { %v9853_v39 = vadd.f32 %v11275_v25, %v13573_v27 }
 0x67f   : > { %v11276_v34 = vpop.f32.mrb[236].mxu1 }
 0x680   : > { %v11277_v31 = vpop.f32.mrb[237].mxu1 }
 0x681   : > { %v11278_v45 = vadd.f32 %v11277_v31, %v11276_v34  ;;  %v11279_v60 = vpop.f32.mrb[238].mxu1 }
 0x682   : > { %v11640_v1 = vpop.f32.mrb[4].mxu0  ;;  %v11280_v21 = vpop.f32.mrb[239].mxu1 }
 0x683   : > { %v9858_v56 = vadd.f32 %v11278_v45, %v13573_v27  ;;  %v10010_v6 = vpop.f32.mrb[5].mxu0  ;;  %v11281_v32 = vadd.f32 %v11280_v21, %v11279_v60 }
 0x684   : > { %v10011_v30 = vadd.f32 %v10010_v6, %v9850_v22  ;;  %v11641_v46 = vpop.f32.mrb[6].mxu0 }
 0x685   : > { %v10019_v44 = vadd.f32 %v11640_v1, %v9858_v56  ;;  %v9861_v55 = vadd.f32 %v11281_v32, %v13573_v27  ;;  %v10013_v0 = vpop.f32.mrb[7].mxu0 }
 0x686   : > { %v10157_v47 = vadd.f32 %v10011_v30, %v13187_v36  ;;  %v10014_v35 = vadd.f32 %v10013_v0, %v9853_v39 }
 0x687   : > { %v10159_v20 = vadd.f32 %v10019_v44, %v13184_v23  ;;  %v10022_v51 = vadd.f32 %v11641_v46, %v9861_v55 }
 0x688   : > { %10253 = vst [vmem:[%s13583_s16 + $0x20] sm:$0xff] %v10157_v47  ;;  %v10158_v57 = vadd.f32 %v10014_v35, %v13196_v14 }
 0x689   : > { %10255 = vst [vmem:[%s13583_s16 + $0x30] sm:$0xff] %v10159_v20  ;;  %v10160_v2 = vadd.f32 %v10022_v51, %v13192_v15 }
 0x68a   : > { %10254 = vst [vmem:[%s13583_s16 + $0x28] sm:$0xff] %v10158_v57 }
 0x68b   : > { %10256 = vst [vmem:[%s13583_s16 + $0x38] sm:$0xff] %v10160_v2  ;;  %v11282_v5 = vpop.f32.mrb[240].mxu1 }
 0x68c   : > { %v11283_v59 = vpop.f32.mrb[241].mxu1 }
 0x68d   : > { %v11284_v3 = vadd.f32 %v11283_v59, %v11282_v5  ;;  %v11285_v16 = vpop.f32.mrb[242].mxu1 }
 0x68e   : > { %v11286_v50 = vpop.f32.mrb[243].mxu1 }
 0x68f   : > { %v11287_v19 = vadd.f32 %v11286_v50, %v11285_v16  ;;  %v9866_v15 = vadd.f32 %v11284_v3, %v13573_v27 }
 0x691   : > { %v9869_v37 = vadd.f32 %v11287_v19, %v13573_v27 }
 0x697   : > { %v11288_v17 = vpop.f32.mrb[244].mxu1 }
 0x698   : > { %v11289_v36 = vpop.f32.mrb[245].mxu1 }
 0x699   : > { %v11290_v63 = vadd.f32 %v11289_v36, %v11288_v17  ;;  %v11291_v48 = vpop.f32.mrb[246].mxu1 }
 0x69a   : > { %v11292_v23 = vpop.f32.mrb[247].mxu1  ;;  %v11644_v62 = vpop.f32.mrb[8].mxu0 }
 0x69b   : > { %v9874_v14 = vadd.f32 %v11290_v63, %v13573_v27  ;;  %v11293_v49 = vadd.f32 %v11292_v23, %v11291_v48  ;;  %v10026_v9 = vpop.f32.mrb[9].mxu0 }
 0x69c   : > { %v10027_v12 = vadd.f32 %v10026_v9, %v9866_v15  ;;  %v11645_v53 = vpop.f32.mrb[10].mxu0 }
 0x69d   : > { %v10035_v40 = vadd.f32 %v11644_v62, %v9874_v14  ;;  %v9877_v4 = vadd.f32 %v11293_v49, %v13573_v27  ;;  %v10029_v54 = vpop.f32.mrb[11].mxu0 }
 0x69e   : > { %v10161_v34 = vadd.f32 %v10027_v12, %v13237_v28  ;;  %v10030_v45 = vadd.f32 %v10029_v54, %v9869_v37 }
 0x69f   : > { %v10163_v25 = vadd.f32 %v10035_v40, %v13233_v10  ;;  %v10038_v31 = vadd.f32 %v11645_v53, %v9877_v4 }
 0x6a0   : > { %10257 = vst [vmem:[%s13583_s16 + $0x40] sm:$0xff] %v10161_v34  ;;  %v10162_v22 = vadd.f32 %v10030_v45, %v13247_v8 }
 0x6a1   : > { %v11294_v60 = vpop.f32.mrb[248].mxu1  ;;  %10259 = vst [vmem:[%s13583_s16 + $0x50] sm:$0xff] %v10163_v25  ;;  %v10164_v1 = vadd.f32 %v10038_v31, %v13242_v24 }
 0x6a2   : > { %v11295_v21 = vpop.f32.mrb[249].mxu1  ;;  %10258 = vst [vmem:[%s13583_s16 + $0x48] sm:$0xff] %v10162_v22 }
 0x6a3   : > { %v11296_v56 = vadd.f32 %v11295_v21, %v11294_v60  ;;  %v11297_v6 = vpop.f32.mrb[250].mxu1  ;;  %10260 = vst [vmem:[%s13583_s16 + $0x58] sm:$0xff] %v10164_v1 }
 0x6a4   : > { %v11298_v32 = vpop.f32.mrb[251].mxu1 }
 0x6a5   : > { %v11299_v30 = vadd.f32 %v11298_v32, %v11297_v6  ;;  %v9882_v24 = vadd.f32 %v11296_v56, %v13573_v27 }
 0x6a7   : > { %v9885_v2 = vadd.f32 %v11299_v30, %v13573_v27 }
 0x6aa   : > { %v11300_v46 = vpop.f32.mrb[252].mxu1 }
 0x6ab   : > { %v11301_v10 = vpop.f32.mrb[253].mxu1 }
 0x6ac   : > { %v11302_v39 = vadd.f32 %v11301_v10, %v11300_v46  ;;  %v11303_v28 = vpop.f32.mrb[254].mxu1 }
 0x6ad   : > { %v11304_v44 = vpop.f32.mrb[255].mxu1 }
 0x6ae   : > { %v11648_v55 = vpop.f32.mrb[12].mxu0  ;;  %v9890_v0 = vadd.f32 %v11302_v39, %v13573_v27  ;;  %v11305_v8 = vadd.f32 %v11304_v44, %v11303_v28 }
 0x6af   : > { %v10042_v47 = vpop.f32.mrb[13].mxu0 }
 0x6b0   : > { %v10051_v35 = vadd.f32 %v11648_v55, %v9890_v0  ;;  %v10043_v20 = vadd.f32 %v10042_v47, %v9882_v24  ;;  %v11649_v51 = vpop.f32.mrb[14].mxu0  ;;  %v9893_v57 = vadd.f32 %v11305_v8, %v13573_v27 }
 0x6b1   : > { %v10045_v5 = vpop.f32.mrb[15].mxu0 }
 0x6b2   : > { %v10167_v59 = vadd.f32 %v10051_v35, %v13274_v42  ;;  %v10165_v3 = vadd.f32 %v10043_v20, %v13277_v26  ;;  %v10054_v16 = vadd.f32 %v11649_v51, %v9893_v57  ;;  %v10046_v50 = vadd.f32 %v10045_v5, %v9885_v2 }
 0x6b4   : > { %10263 = vst [vmem:[%s13583_s16 + $0x70] sm:$0xff] %v10167_v59  ;;  %10261 = vst [vmem:[%s13583_s16 + $0x60] sm:$0xff] %v10165_v3  ;;  %v10168_v19 = vadd.f32 %v10054_v16, %v13283_v18  ;;  %v10166_v17 = vadd.f32 %v10046_v50, %v13288_v43  ;;  %v13769_v50 = vld [vmem:[#allocation19_spill] sm:$0xff] }
 0x6b6   : > { %10264 = vst [vmem:[%s13583_s16 + $0x78] sm:$0xff] %v10168_v19  ;;  %10262 = vst [vmem:[%s13583_s16 + $0x68] sm:$0xff] %v10166_v17 }
 0x6b7   : > { %v11306_v36 = vpop.f32.mrb[0].mxu1 }
 0x6b8   : > { %v11307_v63 = vpop.f32.mrb[1].mxu1 }
 0x6b9   : > { %v11308_v48 = vadd.f32 %v11307_v63, %v11306_v36  ;;  %v11309_v23 = vpop.f32.mrb[2].mxu1  ;;  %v13770_v36 = vld [vmem:[#allocation20_spill] sm:$0xff] }
 0x6ba   : > { %v11310_v62 = vpop.f32.mrb[3].mxu1 }
 0x6bb   : > { %v11311_v14 = vadd.f32 %v11310_v62, %v11309_v23  ;;  %v9898_v43 = vadd.f32 %v11308_v48, %v13573_v27 }
 0x6bd   : > { %v9901_v34 = vadd.f32 %v11311_v14, %v13573_v27 }
 0x6c5   : > { %v11312_v15 = vpop.f32.mrb[4].mxu1 }
 0x6c6   : > { %v11313_v42 = vpop.f32.mrb[5].mxu1 }
 0x6c7   : > { %v11314_v49 = vadd.f32 %v11313_v42, %v11312_v15  ;;  %v11315_v26 = vpop.f32.mrb[6].mxu1 }
 0x6c8   : > { %v11316_v9 = vpop.f32.mrb[7].mxu1 }
 0x6c9   : > { %v9906_v40 = vadd.f32 %v11314_v49, %v13573_v27  ;;  %v11317_v12 = vadd.f32 %v11316_v9, %v11315_v26 }
 0x6ca   : > { %v11652_v18 = vpop.f32.mrb[16].mxu0 }
 0x6cb   : > { %v10067_v53 = vadd.f32 %v11652_v18, %v9906_v40  ;;  %v10058_v4 = vpop.f32.mrb[17].mxu0  ;;  %v9909_v37 = vadd.f32 %v11317_v12, %v13573_v27 }
 0x6cc   : > { %v10059_v54 = vadd.f32 %v10058_v4, %v9898_v43  ;;  %v11653_v25 = vpop.f32.mrb[18].mxu0 }
 0x6cd   : > { %v10171_v31 = vadd.f32 %v10067_v53, %v13309_v29  ;;  %v10070_v45 = vadd.f32 %v11653_v25, %v9909_v37  ;;  %v10061_v60 = vpop.f32.mrb[19].mxu0 }
 0x6ce   : > { %v10169_v1 = vadd.f32 %v10059_v54, %v13312_v38  ;;  %v10062_v22 = vadd.f32 %v10061_v60, %v9901_v34  ;;  %v13771_v34 = vld [vmem:[#allocation21_spill] sm:$0xff] }
 0x6cf   : > { %10267 = vst [vmem:[%s13583_s16 + $0x90] sm:$0xff] %v10171_v31  ;;  %v10172_v21 = vadd.f32 %v10070_v45, %v13319_v61 }
 0x6d0   : > { %10265 = vst [vmem:[%s13583_s16 + $0x80] sm:$0xff] %v10169_v1  ;;  %v10170_v56 = vadd.f32 %v10062_v22, %v13322_v7  ;;  %v13772_v1 = vld [vmem:[#allocation15_spill] sm:$0xff] }
 0x6d1   : > { %10268 = vst [vmem:[%s13583_s16 + $0x98] sm:$0xff] %v10172_v21  ;;  %v11318_v6 = vpop.f32.mrb[8].mxu1 }
 0x6d2   : > { %10266 = vst [vmem:[%s13583_s16 + $0x88] sm:$0xff] %v10170_v56  ;;  %v11319_v32 = vpop.f32.mrb[9].mxu1  ;;  %v13773_v56 = vld [vmem:[#allocation16_spill] sm:$0xff] }
 0x6d3   : > { %v11320_v30 = vadd.f32 %v11319_v32, %v11318_v6  ;;  %v11321_v46 = vpop.f32.mrb[10].mxu1 }
 0x6d4   : > { %v11322_v10 = vpop.f32.mrb[11].mxu1 }
 0x6d5   : > { %v11323_v39 = vadd.f32 %v11322_v10, %v11321_v46  ;;  %v9914_v0 = vadd.f32 %v11320_v30, %v13573_v27  ;;  %v13774_v46 = vld [vmem:[#allocation17_spill] sm:$0xff] }
 0x6d7   : > { %v9917_v20 = vadd.f32 %v11323_v39, %v13573_v27 }
 0x6dc   : > { %v11324_v29 = vpop.f32.mrb[12].mxu1 }
 0x6dd   : > { %v11325_v28 = vpop.f32.mrb[13].mxu1 }
 0x6de   : > { %v11326_v44 = vadd.f32 %v11325_v28, %v11324_v29  ;;  %v11327_v55 = vpop.f32.mrb[14].mxu1 }
 0x6df   : > { %v11656_v38 = vpop.f32.mrb[20].mxu0  ;;  %v11328_v61 = vpop.f32.mrb[15].mxu1 }
 0x6e0   : > { %v9922_v24 = vadd.f32 %v11326_v44, %v13573_v27  ;;  %v10074_v7 = vpop.f32.mrb[21].mxu0  ;;  %v11329_v8 = vadd.f32 %v11328_v61, %v11327_v55 }
 0x6e1   : > { %v10075_v47 = vadd.f32 %v10074_v7, %v9914_v0  ;;  %v11657_v35 = vpop.f32.mrb[22].mxu0 }
 0x6e2   : > { %v10083_v51 = vadd.f32 %v11656_v38, %v9922_v24  ;;  %v9925_v57 = vadd.f32 %v11329_v8, %v13573_v27  ;;  %v10077_v2 = vpop.f32.mrb[23].mxu0 }
 0x6e3   : > { %v10173_v5 = vadd.f32 %v10075_v47, %v13348_v41  ;;  %v10078_v59 = vadd.f32 %v10077_v2, %v9917_v20 }
 0x6e4   : > { %v10175_v3 = vadd.f32 %v10083_v51, %v13352_v33  ;;  %v10086_v16 = vadd.f32 %v11657_v35, %v9925_v57 }
 0x6e5   : > { %10269 = vst [vmem:[%s13583_s16 + $0xa0] sm:$0xff] %v10173_v5  ;;  %v10174_v19 = vadd.f32 %v10078_v59, %v13769_v50  ;;  %v11330_v17 = vpop.f32.mrb[16].mxu1 }
 0x6e6   : > { %10271 = vst [vmem:[%s13583_s16 + $0xb0] sm:$0xff] %v10175_v3  ;;  %v10176_v63 = vadd.f32 %v10086_v16, %v13770_v36  ;;  %v11331_v48 = vpop.f32.mrb[17].mxu1 }
 0x6e7   : > { %10270 = vst [vmem:[%s13583_s16 + $0xa8] sm:$0xff] %v10174_v19  ;;  %v11332_v23 = vadd.f32 %v11331_v48, %v11330_v17  ;;  %v11333_v62 = vpop.f32.mrb[18].mxu1 }
 0x6e8   : > { %10272 = vst [vmem:[%s13583_s16 + $0xb8] sm:$0xff] %v10176_v63  ;;  %v11334_v14 = vpop.f32.mrb[19].mxu1 }
 0x6e9   : > { %v11335_v15 = vadd.f32 %v11334_v14, %v11333_v62  ;;  %v9930_v33 = vadd.f32 %v11332_v23, %v13573_v27 }
 0x6eb   : > { %v9933_v37 = vadd.f32 %v11335_v15, %v13573_v27 }
 0x6ed   : > { %v11336_v42 = vpop.f32.mrb[20].mxu1 }
 0x6ee   : > { %v11337_v41 = vpop.f32.mrb[21].mxu1 }
 0x6ef   : > { %v11660_v49 = vpop.f32.mrb[24].mxu0  ;;  %v11338_v26 = vadd.f32 %v11337_v41, %v11336_v42  ;;  %v11339_v9 = vpop.f32.mrb[22].mxu1 }
 0x6f0   : > { %v10090_v40 = vpop.f32.mrb[25].mxu0  ;;  %v11340_v12 = vpop.f32.mrb[23].mxu1 }
 0x6f1   : > { %v9938_v18 = vadd.f32 %v11338_v26, %v13573_v27  ;;  %v10091_v43 = vadd.f32 %v10090_v40, %v9930_v33  ;;  %v11661_v53 = vpop.f32.mrb[26].mxu0  ;;  %v11341_v4 = vadd.f32 %v11340_v12, %v11339_v9 }
 0x6f2   : > { %v10093_v54 = vpop.f32.mrb[27].mxu0 }
 0x6f3   : > { %v10099_v25 = vadd.f32 %v11660_v49, %v9938_v18  ;;  %v10177_v31 = vadd.f32 %v10091_v43, %v13771_v34  ;;  %v9941_v45 = vadd.f32 %v11341_v4, %v13573_v27  ;;  %v10094_v60 = vadd.f32 %v10093_v54, %v9933_v37 }
 0x6f5   : > { %v10179_v22 = vadd.f32 %v10099_v25, %v13772_v1  ;;  %10273 = vst [vmem:[%s13583_s16 + $0xc0] sm:$0xff] %v10177_v31  ;;  %v10102_v21 = vadd.f32 %v11661_v53, %v9941_v45  ;;  %v10178_v6 = vadd.f32 %v10094_v60, %v13773_v56  ;;  %v11342_v32 = vpop.f32.mrb[24].mxu1 }
 0x6f6   : > { %v11343_v30 = vpop.f32.mrb[25].mxu1 }
 0x6f7   : > { %10275 = vst [vmem:[%s13583_s16 + $0xd0] sm:$0xff] %v10179_v22  ;;  %v10180_v10 = vadd.f32 %v10102_v21, %v13774_v46  ;;  %10274 = vst [vmem:[%s13583_s16 + $0xc8] sm:$0xff] %v10178_v6  ;;  %v11344_v39 = vadd.f32 %v11343_v30, %v11342_v32  ;;  %v11345_v29 = vpop.f32.mrb[26].mxu1 }
 0x6f8   : > { %v11346_v28 = vpop.f32.mrb[27].mxu1 }
 0x6f9   : > { %10276 = vst [vmem:[%s13583_s16 + $0xd8] sm:$0xff] %v10180_v10  ;;  %v11347_v44 = vadd.f32 %v11346_v28, %v11345_v29  ;;  %v9946_v38 = vadd.f32 %v11344_v39, %v13573_v27 }
 0x6fb   : > { %v9949_v47 = vadd.f32 %v11347_v44, %v13573_v27 }
 0x6fc   : > { %v11664_v55 = vpop.f32.mrb[28].mxu0 }
 0x6fd   : > { %v11348_v0 = vpop.f32.mrb[28].mxu1  ;;  %v10106_v61 = vpop.f32.mrb[29].mxu0 }
 0x6fe   : > { %v11349_v24 = vpop.f32.mrb[29].mxu1  ;;  %v10107_v7 = vadd.f32 %v10106_v61, %v9946_v38  ;;  %v11665_v8 = vpop.f32.mrb[30].mxu0 }
 0x6ff   : > { %v11350_v35 = vadd.f32 %v11349_v24, %v11348_v0  ;;  %v11351_v20 = vpop.f32.mrb[30].mxu1  ;;  %v10109_v51 = vpop.f32.mrb[31].mxu0 }
 0x700   : > { %v10181_v57 = vadd.f32 %v10107_v7, %v13423_v58  ;;  %v11352_v2 = vpop.f32.mrb[31].mxu1  ;;  %v10110_v5 = vadd.f32 %v10109_v51, %v9949_v47 }
 0x701   : > { %v9954_v59 = vadd.f32 %v11350_v35, %v13573_v27  ;;  %v11353_v3 = vadd.f32 %v11352_v2, %v11351_v20 }
 0x702   : > { %10277 = vst [vmem:[%s13583_s16 + $0xe0] sm:$0xff] %v10181_v57  ;;  %v10182_v16 = vadd.f32 %v10110_v5, %v13439_v11 }
 0x703   : > { %v10115_v50 = vadd.f32 %v11664_v55, %v9954_v59  ;;  %v9957_v19 = vadd.f32 %v11353_v3, %v13573_v27 }
 0x704   : > { %10278 = vst [vmem:[%s13583_s16 + $0xe8] sm:$0xff] %v10182_v16 }
 0x705   : > { %v10183_v58 = vadd.f32 %v10115_v50, %v13428_v13  ;;  %v10118_v17 = vadd.f32 %v11665_v8, %v9957_v19 }
 0x707   : > { %10279 = vst [vmem:[%s13583_s16 + $0xf0] sm:$0xff] %v10183_v58  ;;  %v10184_v11 = vadd.f32 %v10118_v17, %v13443_v52 }
 0x709   : > { %10280 = vst [vmem:[%s13583_s16 + $0xf8] sm:$0xff] %v10184_v11 }
 0x70a   : > { %12020 = shalt.err (!%p12017_p2)
}
 0x70b   : > { %s12021_s10 = scalar_lea.hbm %s13677_s7, 4096  ;;  %s12025_s30 = scalar_lea.hbm %s13731_s5, 8192 }
 0x70c   : > { %p12022_p13 = scmp.ne.s32.totalorder %s13677_s7, %s12021_s10  ;;  %p12026_p4 = scmp.lt.u32.totalorder %s13677_s7, %s13731_s5 }
 0x70d   : > { %p12027_p5 = scmp.lt.u32.totalorder %s12025_s30, %s12021_s10  ;;  %p12029_p11 = scmp.lt.u32.totalorder %s12021_s10, %s13677_s7 }
 0x70e   : > { %p12023_p6 = pnand %p12022_p13, %p13775_p0 }
 0x70f   : > { %p12028_p8 = por %p12027_p5, %p12026_p4 }
 0x710   : > { %p12024_p10 = pneg %p12023_p6 }
 0x711   : > { %p12030_p1 = por %p12029_p11, %p12028_p8 }
 0x713   : > { %p12031_p3 = pnand %p12030_p1, %p12024_p10 }
 0x715   : > { %12034 = shalt.err (!%p12031_p3)
}
 0x716   : > { %s12088_s17 = smov 128   ;;  %s12089_s12 = smov 8  }
 0x717   : > { %11676 = dma.vmem_to_hbm [thread:$0]  (%p13775_p0), %s13679_s9, 4096, %s13677_s7, %s10282_s22, %s12088_s17, %s12088_s17, %s12089_s12  }
 0x718 PF: > { %s10311_s13 = sand.u32 1, %s12065_s18   ;;  %p13776_p7 = scmp.ne.s32.totalorder %s13746_s25, 0 }
 0x719   : > { %p13777_p9 = scmp.ge.s32.totalorder %s12077_s21, 2  ;;  %s10312_s6 = scalar_lea.sflag [#allocation7], %s10311_s13 }
 0x71b   : > { %p11690_p12 = pnand %p13777_p9, %p13776_p7 }
 0x71d   : > { %12060 = dma.done.wait (!%p11690_p12), %s10312_s6, 4096  }
 0x71e   : > { %12062 = vsyncadd (!%p11690_p12), %s10312_s6, 4294963200  ;;  %p19_p2 = scmp.ge.s32.totalorder %s12230_s14, 4   ;;  %s13778_s18 = smov %s12069_s19 }
 0x71f   : > { %s13779_s19 = smov %s12073_s20  ;;  %s13780_s20 = smov %s12246_s27 }
 0x720   : > { %s13781_s21 = smov %s12230_s14  ;;  %21 = sbr.rel (!%p19_p2) target bundleno = 6 (0x6), region = 97 }
 0x727   :  { %10317 = vsyncpa [#allocation6], 1 }
 0x728   :  { %10319 = vsyncpa [#allocation6 + $0x1], 1 }
 0x729   :  { %10320 = vsyncpa [#allocation9], 1 }
 0x72a   :  { %10321 = vsyncpa [#allocation7], 1 }
 0x72b   :  { %10323 = vsyncpa [#allocation7 + $0x1], 1 }

</bundles_post_ra>
